<compile_context>
chip_gen: v5e
topology: v5e:2x2
jax: 0.10.0
libtpu: 0.0.40
codegen_flags: <defaults>
</compile_context>

<pallas_src>
import functools

import jax
import jax.numpy as jnp
from jax.experimental import pallas as pl
from jax.experimental.pallas import tpu as pltpu

HP = 128  # per-gate lane-aligned width (>= every hidden size used here)


# ----------------------------------------------------------------------------
# Fused kernel
# ----------------------------------------------------------------------------
def _make_lstm_deep_kernel(T, B, hp):
  def sigmoid(z):
    # exp on the EUP, approx reciprocal also on the EUP -> no VPU divide.
    return pl.reciprocal(1.0 + jnp.exp(-z), approx=True)

  def kernel(x_ref,                                   # (T*B, D)  time-major
             wih1_ref, whh1_ref, b1_ref,              # layer-1 weights (VMEM)
             b2_ref, b3_ref,                          # layer-2/3 biases (VMEM)
             fc1b_ref, fc2w_ref, fc2b_ref,            # fc tail small params
             wih2_hbm, whh2_hbm,                      # layer-2 weights (HBM)
             wih3_hbm, whh3_hbm,                      # layer-3 weights (HBM)
             fc1w_hbm,                                # fc1 weight (HBM)
             out_ref,                                 # (B, C)
             wih2_v, whh2_v, wih3_v, whh3_v, fc1w_v,  # VMEM scratch targets
             sems):                                   # DMA semaphores (5,)
    # --- Start every late-use weight DMA now; wait only where needed, so the
    #     loads are hidden behind the earlier recurrences. ---
    cp_wih2 = pltpu.make_async_copy(wih2_hbm, wih2_v, sems.at[0])
    cp_whh2 = pltpu.make_async_copy(whh2_hbm, whh2_v, sems.at[1])
    cp_wih3 = pltpu.make_async_copy(wih3_hbm, wih3_v, sems.at[2])
    cp_whh3 = pltpu.make_async_copy(whh3_hbm, whh3_v, sems.at[3])
    cp_fc1w = pltpu.make_async_copy(fc1w_hbm, fc1w_v, sems.at[4])
    cp_wih2.start()
    cp_whh2.start()
    cp_wih3.start()
    cp_whh3.start()
    cp_fc1w.start()

    def run_layer(x_seq_bf16, wih, whh, b, collect_outputs):
      """One LSTM layer over all T steps.

      x_seq_bf16: (T*B, In) bf16.  wih: (In, 4*hp) bf16.  whh: (hp, 4*hp) bf16.
      b: (1, 4*hp) f32 (b_ih + b_hh, zero in padded lanes).
      """
      # Hoisted input projection for ALL timesteps (bias folded in once).
      xp = jnp.dot(x_seq_bf16, wih,
                   preferred_element_type=jnp.float32) + b       # (T*B, 4*hp)
      h = jnp.zeros((B, hp), jnp.float32)
      c = jnp.zeros((B, hp), jnp.float32)
      outs = []
      # Static unroll: T is small here.
      # TODO(synk): for T > ~32 switch to lax.fori_loop with h/c in VMEM
      # scratch and xp indexed via pl.ds to bound vreg live ranges.
      for t in range(T):
        gates = xp[t * B:(t + 1) * B, :] + jnp.dot(
            h.astype(jnp.bfloat16), whh, preferred_element_type=jnp.float32)
        # Lane-aligned gate slices (each gate padded to hp=128 columns).
        i = sigmoid(gates[:, 0 * hp:1 * hp])
        f = sigmoid(gates[:, 1 * hp:2 * hp])
        g = jnp.tanh(gates[:, 2 * hp:3 * hp])
        o = sigmoid(gates[:, 3 * hp:4 * hp])
        c = f * c + i * g          # padded lanes stay exactly 0
        h = o * jnp.tanh(c)
        if collect_outputs:
          outs.append(h)
      seq = None
      if collect_outputs:
        seq = jnp.concatenate(outs, axis=0).astype(jnp.bfloat16)  # (T*B, hp)
      return seq, h

    x0 = x_ref[...].astype(jnp.bfloat16)                          # (T*B, D)
    seq1, _ = run_layer(x0, wih1_ref[...], whh1_ref[...], b1_ref[...], True)

    cp_wih2.wait()
    cp_whh2.wait()
    seq2, _ = run_layer(seq1, wih2_v[...], whh2_v[...], b2_ref[...], True)

    cp_wih3.wait()
    cp_whh3.wait()
    _, h3 = run_layer(seq2, wih3_v[...], whh3_v[...], b3_ref[...], False)

    # Classifier tail: hn -> fc1 -> relu -> fc2, fused in the same kernel.
    cp_fc1w.wait()
    y = jnp.maximum(
        jnp.dot(h3.astype(jnp.bfloat16), fc1w_v[...],
                preferred_element_type=jnp.float32) + fc1b_ref[...], 0.0)
    out_ref[...] = (jnp.dot(y, fc2w_ref[...],
                            preferred_element_type=jnp.float32) + fc2b_ref[...])

  return kernel


# ----------------------------------------------------------------------------
# Forward pass (mirrors LSTM_Deep.forward)
# ----------------------------------------------------------------------------
@jax.jit
def lstm_deep_forward(packed, tokens):
  """tokens: (B, T) int32.  Returns logits (B, num_classes) in f32."""
  B, T = tokens.shape
  hp = packed['l1']['whh'].shape[0]
  F = packed['fc1w'].shape[1]
  C = packed['fc2w'].shape[1]

  # TODO(synk): the nn.Embedding row gather is data-dependent and stays in XLA
  # (jnp.take); gathering in flattened time-major order removes the separate
  # transpose HLO.  For tiny vocabs it could move on-chip as a row-copy loop.
  flat_tok = tokens.T.reshape(-1)                                # (T*B,)
  x = jnp.take(packed['embedding'], flat_tok, axis=0)            # (T*B, D) f32

  vmem = functools.partial(pl.BlockSpec, memory_space=pltpu.MemorySpace.VMEM)
  hbm = functools.partial(pl.BlockSpec, memory_space=pl.ANY)

  return pl.pallas_call(
      _make_lstm_deep_kernel(T, B, hp),
      in_specs=[vmem()] * 9 + [hbm()] * 5,
      out_specs=vmem(),
      out_shape=jax.ShapeDtypeStruct((B, C), jnp.float32),
      scratch_shapes=[
          pltpu.VMEM((hp, 4 * hp), jnp.bfloat16),   # wih2
          pltpu.VMEM((hp, 4 * hp), jnp.bfloat16),   # whh2
          pltpu.VMEM((hp, 4 * hp), jnp.bfloat16),   # wih3
          pltpu.VMEM((hp, 4 * hp), jnp.bfloat16),   # whh3
          pltpu.VMEM((hp, F), jnp.bfloat16),        # fc1w
          pltpu.SemaphoreType.DMA((5,)),
      ],
  )(x,
    packed['l1']['wih'], packed['l1']['whh'], packed['l1']['b'],
    packed['l2']['b'], packed['l3']['b'],
    packed['fc1b'], packed['fc2w'], packed['fc2b'],
    packed['l2']['wih'], packed['l2']['whh'],
    packed['l3']['wih'], packed['l3']['whh'],
    packed['fc1w'])


# ----------------------------------------------------------------------------
# Parameter init (PyTorch layout) and kernel-side packing
# ----------------------------------------------------------------------------
def _uniform(key, shape, bound):
  return jax.random.uniform(key, shape, jnp.float32, -bound, bound)


def _round_bf16(x):
  # Synthetic weights are made exactly bf16-representable so the bf16 MXU
  # path and the f32 reference see identical weight values.
  return x.astype(jnp.bfloat16).astype(jnp.float32)


def init_raw_params(key, num_words, dim_embedding, num_classes, memory_size,
                    hidden_size=1024):
  k_emb, k1, k2, k3, k4, k5 = jax.random.split(key, 6)
  H1, H2 = memory_size, 2 * memory_size

  def lstm(k, in_size, h):
    kk = jax.random.split(k, 4)
    bound = 1.0 / float(h) ** 0.5
    return dict(w_ih=_round_bf16(_uniform(kk[0], (4 * h, in_size), bound)),
                w_hh=_round_bf16(_uniform(kk[1], (4 * h, h), bound)),
                b_ih=_uniform(kk[2], (4 * h,), bound),
                b_hh=_uniform(kk[3], (4 * h,), bound))

  def linear(k, d_in, d_out, bf16_w):
    kw, kb = jax.random.split(k)
    bound = 1.0 / float(d_in) ** 0.5
    w = _uniform(kw, (d_out, d_in), bound)
    return dict(w=_round_bf16(w) if bf16_w else w,
                b=_uniform(kb, (d_out,), bound))

  return dict(
      embedding=_round_bf16(
          jax.random.normal(k_emb, (num_words, dim_embedding), jnp.float32)),
      lstm1=lstm(k1, dim_embedding, H1),
      lstm2=lstm(k2, H1, H2),
      lstm3=lstm(k3, H2, H2),
      fc1=linear(k4, H2, hidden_size, bf16_w=True),
      fc2=linear(k5, hidden_size, num_classes, bf16_w=False))


def _pad_gate_cols(w, h, hp):
  """(rows, 4h) -> (rows, 4hp) with gate k occupying columns [k*hp, k*hp+h)."""
  rows = w.shape[0]
  out = jnp.zeros((rows, 4 * hp), w.dtype)
  for k in range(4):
    out = out.at[:, k * hp:k * hp + h].set(w[:, k * h:(k + 1) * h])
  return out


def _pad_rows(w, rows_p):
  return jnp.zeros((rows_p,) + w.shape[1:], w.dtype).at[:w.shape[0]].set(w)


def pack_params(raw, hp=HP):
  """All layout work (transpose, 128-lane gate padding, b_ih+b_hh folding,
  bf16 casts) hoisted out of the forward pass."""

  def lstm(p, pad_in_rows):
    h = p['w_hh'].shape[1]
    assert h <= hp and hp % 128 == 0
    wih = _pad_gate_cols(p['w_ih'].T, h, hp)                     # (In, 4hp)
    if pad_in_rows:                                              # input is a
      wih = _pad_rows(wih, hp)                                   # padded h-seq
    whh = _pad_rows(_pad_gate_cols(p['w_hh'].T, h, hp), hp)      # (hp, 4hp)
    b = _pad_gate_cols((p['b_ih'] + p['b_hh']).reshape(1, -1), h, hp)
    return dict(wih=wih.astype(jnp.bfloat16),
                whh=whh.astype(jnp.bfloat16),
                b=b.astype(jnp.float32))

  return dict(
      embedding=raw['embedding'],
      l1=lstm(raw['lstm1'], pad_in_rows=False),
      l2=lstm(raw['lstm2'], pad_in_rows=True),
      l3=lstm(raw['lstm3'], pad_in_rows=True),
      fc1w=_pad_rows(raw['fc1']['w'].T, hp).astype(jnp.bfloat16),  # (hp, F)
      fc1b=raw['fc1']['b'].reshape(1, -1).astype(jnp.float32),
      fc2w=raw['fc2']['w'].T.astype(jnp.float32),                  # (F, C)
      fc2b=raw['fc2']['b'].reshape(1, -1).astype(jnp.float32))


# ----------------------------------------------------------------------------
# Pure-JAX reference (f32, no Pallas) for the correctness cross-check
# ----------------------------------------------------------------------------
def _lstm_layer_ref(x, p):
  H = p['w_hh'].shape[1]
  w_ih_t, w_hh_t = p['w_ih'].T, p['w_hh'].T
  b = (p['b_ih'] + p['b_hh'])[None, :]
  B = x.shape[1]

  def step(carry, x_t):
    h, c = carry
    gates = x_t @ w_ih_t + h @ w_hh_t + b
    i = jax.nn.sigmoid(gates[:, 0 * H:1 * H])
    f = jax.nn.sigmoid(gates[:, 1 * H:2 * H])
    g = jnp.tanh(gates[:, 2 * H:3 * H])
    o = jax.nn.sigmoid(gates[:, 3 * H:4 * H])
    c = f * c + i * g
    h = o * jnp.tanh(c)
    return (h, c), h

  init = (jnp.zeros((B, H), jnp.float32), jnp.zeros((B, H), jnp.float32))
  (h, _), hs = jax.lax.scan(step, init, x)
  return hs, h


@jax.jit
def lstm_deep_reference(raw, tokens):
  emb = jnp.take(raw['embedding'], tokens, axis=0)
  x = jnp.transpose(emb, (1, 0, 2))
  x, _ = _lstm_layer_ref(x, raw['lstm1'])
  x, _ = _lstm_layer_ref(x, raw['lstm2'])
  _, hn = _lstm_layer_ref(x, raw['lstm3'])
  y = jnp.maximum(hn @ raw['fc1']['w'].T + raw['fc1']['b'], 0.0)
  return y @ raw['fc2']['w'].T + raw['fc2']['b']


# ----------------------------------------------------------------------------
if __name__ == "__main__":
  B, T = 2, 8
  num_words = 100
  dim_embedding = 16
  memory_size = 32            # lstm1 hidden = 32; lstm2/lstm3 hidden = 64
  num_classes = 5

  key = jax.random.PRNGKey(0)
  kp, kx = jax.random.split(key)
  raw = init_raw_params(kp, num_words, dim_embedding, num_classes, memory_size)
  packed = pack_params(raw)
  tokens = jax.random.randint(kx, (B, T), 0, num_words, dtype=jnp.int32)

  out = jax.block_until_ready(lstm_deep_forward(packed, tokens))
  assert out.shape == (B, num_classes), out.shape
  assert bool(jnp.all(jnp.isfinite(out)))

  ref = jax.block_until_ready(lstm_deep_reference(raw, tokens))
  assert bool(jnp.allclose(out, ref, rtol=2e-2, atol=2e-2)), (out, ref)

  print("KERNEL_OK")
</pallas_src>

<mosaic_0001>
module attributes {stable_mosaic.version = 11 : i64} {
  func.func @kernel(%arg0: memref<16x16xf32, #tpu.memory_space<vmem>>, %arg1: memref<16x512xbf16, #tpu.memory_space<vmem>>, %arg2: memref<128x512xbf16, #tpu.memory_space<vmem>>, %arg3: memref<1x512xf32, #tpu.memory_space<vmem>>, %arg4: memref<1x512xf32, #tpu.memory_space<vmem>>, %arg5: memref<1x512xf32, #tpu.memory_space<vmem>>, %arg6: memref<1x1024xf32, #tpu.memory_space<vmem>>, %arg7: memref<1024x5xf32, #tpu.memory_space<vmem>>, %arg8: memref<1x5xf32, #tpu.memory_space<vmem>>, %arg9: memref<128x512xbf16, #tpu.memory_space<any>>, %arg10: memref<128x512xbf16, #tpu.memory_space<any>>, %arg11: memref<128x512xbf16, #tpu.memory_space<any>>, %arg12: memref<128x512xbf16, #tpu.memory_space<any>>, %arg13: memref<128x1024xbf16, #tpu.memory_space<any>>, %arg14: memref<2x5xf32, #tpu.memory_space<vmem>>, %arg15: memref<128x512xbf16, #tpu.memory_space<vmem>>, %arg16: memref<128x512xbf16, #tpu.memory_space<vmem>>, %arg17: memref<128x512xbf16, #tpu.memory_space<vmem>>, %arg18: memref<128x512xbf16, #tpu.memory_space<vmem>>, %arg19: memref<128x1024xbf16, #tpu.memory_space<vmem>>, %arg20: memref<5x!tpu.dma_semaphore, #tpu.memory_space<semaphore_mem>>) attributes {dimension_semantics = [], scalar_prefetch = 0 : i64, scratch_operands = 6 : i64, tpu.core_type = #tpu.core_type<tc>} {
    %c0_i32 = arith.constant 0 : i32
    %0 = tpu.memref_slice %arg20[%c0_i32] : memref<5x!tpu.dma_semaphore, #tpu.memory_space<semaphore_mem>> -> memref<1x!tpu.dma_semaphore, #tpu.memory_space<semaphore_mem>>
    %1 = tpu.memref_squeeze %0 : memref<1x!tpu.dma_semaphore, #tpu.memory_space<semaphore_mem>> -> memref<!tpu.dma_semaphore, #tpu.memory_space<semaphore_mem>>
    tpu.enqueue_dma source(%arg9 : memref<128x512xbf16, #tpu.memory_space<any>>) target(%arg15 : memref<128x512xbf16, #tpu.memory_space<vmem>>) target_semaphore(%1 : memref<!tpu.dma_semaphore, #tpu.memory_space<semaphore_mem>>)
    %c1_i32 = arith.constant 1 : i32
    %2 = tpu.memref_slice %arg20[%c1_i32] : memref<5x!tpu.dma_semaphore, #tpu.memory_space<semaphore_mem>> -> memref<1x!tpu.dma_semaphore, #tpu.memory_space<semaphore_mem>>
    %3 = tpu.memref_squeeze %2 : memref<1x!tpu.dma_semaphore, #tpu.memory_space<semaphore_mem>> -> memref<!tpu.dma_semaphore, #tpu.memory_space<semaphore_mem>>
    tpu.enqueue_dma source(%arg10 : memref<128x512xbf16, #tpu.memory_space<any>>) target(%arg16 : memref<128x512xbf16, #tpu.memory_space<vmem>>) target_semaphore(%3 : memref<!tpu.dma_semaphore, #tpu.memory_space<semaphore_mem>>)
    %c2_i32 = arith.constant 2 : i32
    %4 = tpu.memref_slice %arg20[%c2_i32] : memref<5x!tpu.dma_semaphore, #tpu.memory_space<semaphore_mem>> -> memref<1x!tpu.dma_semaphore, #tpu.memory_space<semaphore_mem>>
    %5 = tpu.memref_squeeze %4 : memref<1x!tpu.dma_semaphore, #tpu.memory_space<semaphore_mem>> -> memref<!tpu.dma_semaphore, #tpu.memory_space<semaphore_mem>>
    tpu.enqueue_dma source(%arg11 : memref<128x512xbf16, #tpu.memory_space<any>>) target(%arg17 : memref<128x512xbf16, #tpu.memory_space<vmem>>) target_semaphore(%5 : memref<!tpu.dma_semaphore, #tpu.memory_space<semaphore_mem>>)
    %c3_i32 = arith.constant 3 : i32
    %6 = tpu.memref_slice %arg20[%c3_i32] : memref<5x!tpu.dma_semaphore, #tpu.memory_space<semaphore_mem>> -> memref<1x!tpu.dma_semaphore, #tpu.memory_space<semaphore_mem>>
    %7 = tpu.memref_squeeze %6 : memref<1x!tpu.dma_semaphore, #tpu.memory_space<semaphore_mem>> -> memref<!tpu.dma_semaphore, #tpu.memory_space<semaphore_mem>>
    tpu.enqueue_dma source(%arg12 : memref<128x512xbf16, #tpu.memory_space<any>>) target(%arg18 : memref<128x512xbf16, #tpu.memory_space<vmem>>) target_semaphore(%7 : memref<!tpu.dma_semaphore, #tpu.memory_space<semaphore_mem>>)
    %c4_i32 = arith.constant 4 : i32
    %8 = tpu.memref_slice %arg20[%c4_i32] : memref<5x!tpu.dma_semaphore, #tpu.memory_space<semaphore_mem>> -> memref<1x!tpu.dma_semaphore, #tpu.memory_space<semaphore_mem>>
    %9 = tpu.memref_squeeze %8 : memref<1x!tpu.dma_semaphore, #tpu.memory_space<semaphore_mem>> -> memref<!tpu.dma_semaphore, #tpu.memory_space<semaphore_mem>>
    tpu.enqueue_dma source(%arg13 : memref<128x1024xbf16, #tpu.memory_space<any>>) target(%arg19 : memref<128x1024xbf16, #tpu.memory_space<vmem>>) target_semaphore(%9 : memref<!tpu.dma_semaphore, #tpu.memory_space<semaphore_mem>>)
    %c0 = arith.constant 0 : index
    %c0_0 = arith.constant 0 : index
    %10 = vector.load %arg0[%c0, %c0_0] : memref<16x16xf32, #tpu.memory_space<vmem>>, vector<16x16xf32>
    %11 = arith.truncf %10 : vector<16x16xf32> to vector<16x16xbf16>
    %c0_1 = arith.constant 0 : index
    %c0_2 = arith.constant 0 : index
    %12 = vector.load %arg1[%c0_1, %c0_2] : memref<16x512xbf16, #tpu.memory_space<vmem>>, vector<16x512xbf16>
    %c0_3 = arith.constant 0 : index
    %c0_4 = arith.constant 0 : index
    %13 = vector.load %arg2[%c0_3, %c0_4] : memref<128x512xbf16, #tpu.memory_space<vmem>>, vector<128x512xbf16>
    %c0_5 = arith.constant 0 : index
    %c0_6 = arith.constant 0 : index
    %14 = vector.load %arg3[%c0_5, %c0_6] : memref<1x512xf32, #tpu.memory_space<vmem>>, vector<1x512xf32>
    %cst = arith.constant dense<0.000000e+00> : vector<16x512xf32>
    %15 = tpu.matmul %11, %12, %cst {dimension_numbers = #tpu.dot_dimension_numbers<[1], [0], [0], [1], [0, 0, 1, 1], [], []>} : vector<16x16xbf16>, vector<16x512xbf16>, vector<16x512xf32> -> vector<16x512xf32>
    %16 = vector.broadcast %14 : vector<1x512xf32> to vector<16x512xf32>
    %17 = arith.addf %15, %16 : vector<16x512xf32>
    %cst_7 = arith.constant 0.000000e+00 : f32
    %18 = vector.broadcast %cst_7 : f32 to vector<2x128xf32>
    %cst_8 = arith.constant 0.000000e+00 : f32
    %19 = vector.broadcast %cst_8 : f32 to vector<2x128xf32>
    %20 = vector.extract_strided_slice %17 {offsets = [0, 0], sizes = [2, 512], strides = [1, 1]} : vector<16x512xf32> to vector<2x512xf32>
    %21 = arith.truncf %18 : vector<2x128xf32> to vector<2x128xbf16>
    %cst_9 = arith.constant dense<0.000000e+00> : vector<2x512xf32>
    %22 = tpu.matmul %21, %13, %cst_9 {dimension_numbers = #tpu.dot_dimension_numbers<[1], [0], [0], [1], [0, 0, 1, 1], [], []>} : vector<2x128xbf16>, vector<128x512xbf16>, vector<2x512xf32> -> vector<2x512xf32>
    %23 = arith.addf %20, %22 : vector<2x512xf32>
    %24 = vector.extract_strided_slice %23 {offsets = [0, 0], sizes = [2, 128], strides = [1, 1]} : vector<2x512xf32> to vector<2x128xf32>
    %cst_10 = arith.constant 0.000000e+00 : f32
    %25 = vector.broadcast %cst_10 : f32 to vector<2x128xf32>
    %26 = arith.subf %25, %24 : vector<2x128xf32>
    %27 = math.exp %26 : vector<2x128xf32>
    %cst_11 = arith.constant 1.000000e+00 : f32
    %28 = vector.broadcast %cst_11 : f32 to vector<2x128xf32>
    %29 = arith.addf %28, %27 : vector<2x128xf32>
    %30 = tpu.reciprocal %29 {approx = true} : vector<2x128xf32> -> vector<2x128xf32>
    %31 = vector.extract_strided_slice %23 {offsets = [0, 128], sizes = [2, 128], strides = [1, 1]} : vector<2x512xf32> to vector<2x128xf32>
    %cst_12 = arith.constant 0.000000e+00 : f32
    %32 = vector.broadcast %cst_12 : f32 to vector<2x128xf32>
    %33 = arith.subf %32, %31 : vector<2x128xf32>
    %34 = math.exp %33 : vector<2x128xf32>
    %cst_13 = arith.constant 1.000000e+00 : f32
    %35 = vector.broadcast %cst_13 : f32 to vector<2x128xf32>
    %36 = arith.addf %35, %34 : vector<2x128xf32>
    %37 = tpu.reciprocal %36 {approx = true} : vector<2x128xf32> -> vector<2x128xf32>
    %38 = vector.extract_strided_slice %23 {offsets = [0, 256], sizes = [2, 128], strides = [1, 1]} : vector<2x512xf32> to vector<2x128xf32>
    %39 = math.tanh %38 : vector<2x128xf32>
    %40 = vector.extract_strided_slice %23 {offsets = [0, 384], sizes = [2, 128], strides = [1, 1]} : vector<2x512xf32> to vector<2x128xf32>
    %cst_14 = arith.constant 0.000000e+00 : f32
    %41 = vector.broadcast %cst_14 : f32 to vector<2x128xf32>
    %42 = arith.subf %41, %40 : vector<2x128xf32>
    %43 = math.exp %42 : vector<2x128xf32>
    %cst_15 = arith.constant 1.000000e+00 : f32
    %44 = vector.broadcast %cst_15 : f32 to vector<2x128xf32>
    %45 = arith.addf %44, %43 : vector<2x128xf32>
    %46 = tpu.reciprocal %45 {approx = true} : vector<2x128xf32> -> vector<2x128xf32>
    %47 = arith.mulf %37, %19 : vector<2x128xf32>
    %48 = arith.mulf %30, %39 : vector<2x128xf32>
    %49 = arith.addf %47, %48 : vector<2x128xf32>
    %50 = math.tanh %49 : vector<2x128xf32>
    %51 = arith.mulf %46, %50 : vector<2x128xf32>
    %52 = vector.extract_strided_slice %17 {offsets = [2, 0], sizes = [2, 512], strides = [1, 1]} : vector<16x512xf32> to vector<2x512xf32>
    %53 = arith.truncf %51 : vector<2x128xf32> to vector<2x128xbf16>
    %cst_16 = arith.constant dense<0.000000e+00> : vector<2x512xf32>
    %54 = tpu.matmul %53, %13, %cst_16 {dimension_numbers = #tpu.dot_dimension_numbers<[1], [0], [0], [1], [0, 0, 1, 1], [], []>} : vector<2x128xbf16>, vector<128x512xbf16>, vector<2x512xf32> -> vector<2x512xf32>
    %55 = arith.addf %52, %54 : vector<2x512xf32>
    %56 = vector.extract_strided_slice %55 {offsets = [0, 0], sizes = [2, 128], strides = [1, 1]} : vector<2x512xf32> to vector<2x128xf32>
    %cst_17 = arith.constant 0.000000e+00 : f32
    %57 = vector.broadcast %cst_17 : f32 to vector<2x128xf32>
    %58 = arith.subf %57, %56 : vector<2x128xf32>
    %59 = math.exp %58 : vector<2x128xf32>
    %cst_18 = arith.constant 1.000000e+00 : f32
    %60 = vector.broadcast %cst_18 : f32 to vector<2x128xf32>
    %61 = arith.addf %60, %59 : vector<2x128xf32>
    %62 = tpu.reciprocal %61 {approx = true} : vector<2x128xf32> -> vector<2x128xf32>
    %63 = vector.extract_strided_slice %55 {offsets = [0, 128], sizes = [2, 128], strides = [1, 1]} : vector<2x512xf32> to vector<2x128xf32>
    %cst_19 = arith.constant 0.000000e+00 : f32
    %64 = vector.broadcast %cst_19 : f32 to vector<2x128xf32>
    %65 = arith.subf %64, %63 : vector<2x128xf32>
    %66 = math.exp %65 : vector<2x128xf32>
    %cst_20 = arith.constant 1.000000e+00 : f32
    %67 = vector.broadcast %cst_20 : f32 to vector<2x128xf32>
    %68 = arith.addf %67, %66 : vector<2x128xf32>
    %69 = tpu.reciprocal %68 {approx = true} : vector<2x128xf32> -> vector<2x128xf32>
    %70 = vector.extract_strided_slice %55 {offsets = [0, 256], sizes = [2, 128], strides = [1, 1]} : vector<2x512xf32> to vector<2x128xf32>
    %71 = math.tanh %70 : vector<2x128xf32>
    %72 = vector.extract_strided_slice %55 {offsets = [0, 384], sizes = [2, 128], strides = [1, 1]} : vector<2x512xf32> to vector<2x128xf32>
    %cst_21 = arith.constant 0.000000e+00 : f32
    %73 = vector.broadcast %cst_21 : f32 to vector<2x128xf32>
    %74 = arith.subf %73, %72 : vector<2x128xf32>
    %75 = math.exp %74 : vector<2x128xf32>
    %cst_22 = arith.constant 1.000000e+00 : f32
    %76 = vector.broadcast %cst_22 : f32 to vector<2x128xf32>
    %77 = arith.addf %76, %75 : vector<2x128xf32>
    %78 = tpu.reciprocal %77 {approx = true} : vector<2x128xf32> -> vector<2x128xf32>
    %79 = arith.mulf %69, %49 : vector<2x128xf32>
    %80 = arith.mulf %62, %71 : vector<2x128xf32>
    %81 = arith.addf %79, %80 : vector<2x128xf32>
    %82 = math.tanh %81 : vector<2x128xf32>
    %83 = arith.mulf %78, %82 : vector<2x128xf32>
    %84 = vector.extract_strided_slice %17 {offsets = [4, 0], sizes = [2, 512], strides = [1, 1]} : vector<16x512xf32> to vector<2x512xf32>
    %85 = arith.truncf %83 : vector<2x128xf32> to vector<2x128xbf16>
    %cst_23 = arith.constant dense<0.000000e+00> : vector<2x512xf32>
    %86 = tpu.matmul %85, %13, %cst_23 {dimension_numbers = #tpu.dot_dimension_numbers<[1], [0], [0], [1], [0, 0, 1, 1], [], []>} : vector<2x128xbf16>, vector<128x512xbf16>, vector<2x512xf32> -> vector<2x512xf32>
    %87 = arith.addf %84, %86 : vector<2x512xf32>
    %88 = vector.extract_strided_slice %87 {offsets = [0, 0], sizes = [2, 128], strides = [1, 1]} : vector<2x512xf32> to vector<2x128xf32>
    %cst_24 = arith.constant 0.000000e+00 : f32
    %89 = vector.broadcast %cst_24 : f32 to vector<2x128xf32>
    %90 = arith.subf %89, %88 : vector<2x128xf32>
    %91 = math.exp %90 : vector<2x128xf32>
    %cst_25 = arith.constant 1.000000e+00 : f32
    %92 = vector.broadcast %cst_25 : f32 to vector<2x128xf32>
    %93 = arith.addf %92, %91 : vector<2x128xf32>
    %94 = tpu.reciprocal %93 {approx = true} : vector<2x128xf32> -> vector<2x128xf32>
    %95 = vector.extract_strided_slice %87 {offsets = [0, 128], sizes = [2, 128], strides = [1, 1]} : vector<2x512xf32> to vector<2x128xf32>
    %cst_26 = arith.constant 0.000000e+00 : f32
    %96 = vector.broadcast %cst_26 : f32 to vector<2x128xf32>
    %97 = arith.subf %96, %95 : vector<2x128xf32>
    %98 = math.exp %97 : vector<2x128xf32>
    %cst_27 = arith.constant 1.000000e+00 : f32
    %99 = vector.broadcast %cst_27 : f32 to vector<2x128xf32>
    %100 = arith.addf %99, %98 : vector<2x128xf32>
    %101 = tpu.reciprocal %100 {approx = true} : vector<2x128xf32> -> vector<2x128xf32>
    %102 = vector.extract_strided_slice %87 {offsets = [0, 256], sizes = [2, 128], strides = [1, 1]} : vector<2x512xf32> to vector<2x128xf32>
    %103 = math.tanh %102 : vector<2x128xf32>
    %104 = vector.extract_strided_slice %87 {offsets = [0, 384], sizes = [2, 128], strides = [1, 1]} : vector<2x512xf32> to vector<2x128xf32>
    %cst_28 = arith.constant 0.000000e+00 : f32
    %105 = vector.broadcast %cst_28 : f32 to vector<2x128xf32>
    %106 = arith.subf %105, %104 : vector<2x128xf32>
    %107 = math.exp %106 : vector<2x128xf32>
    %cst_29 = arith.constant 1.000000e+00 : f32
    %108 = vector.broadcast %cst_29 : f32 to vector<2x128xf32>
    %109 = arith.addf %108, %107 : vector<2x128xf32>
    %110 = tpu.reciprocal %109 {approx = true} : vector<2x128xf32> -> vector<2x128xf32>
    %111 = arith.mulf %101, %81 : vector<2x128xf32>
    %112 = arith.mulf %94, %103 : vector<2x128xf32>
    %113 = arith.addf %111, %112 : vector<2x128xf32>
    %114 = math.tanh %113 : vector<2x128xf32>
    %115 = arith.mulf %110, %114 : vector<2x128xf32>
    %116 = vector.extract_strided_slice %17 {offsets = [6, 0], sizes = [2, 512], strides = [1, 1]} : vector<16x512xf32> to vector<2x512xf32>
    %117 = arith.truncf %115 : vector<2x128xf32> to vector<2x128xbf16>
    %cst_30 = arith.constant dense<0.000000e+00> : vector<2x512xf32>
    %118 = tpu.matmul %117, %13, %cst_30 {dimension_numbers = #tpu.dot_dimension_numbers<[1], [0], [0], [1], [0, 0, 1, 1], [], []>} : vector<2x128xbf16>, vector<128x512xbf16>, vector<2x512xf32> -> vector<2x512xf32>
    %119 = arith.addf %116, %118 : vector<2x512xf32>
    %120 = vector.extract_strided_slice %119 {offsets = [0, 0], sizes = [2, 128], strides = [1, 1]} : vector<2x512xf32> to vector<2x128xf32>
    %cst_31 = arith.constant 0.000000e+00 : f32
    %121 = vector.broadcast %cst_31 : f32 to vector<2x128xf32>
    %122 = arith.subf %121, %120 : vector<2x128xf32>
    %123 = math.exp %122 : vector<2x128xf32>
    %cst_32 = arith.constant 1.000000e+00 : f32
    %124 = vector.broadcast %cst_32 : f32 to vector<2x128xf32>
    %125 = arith.addf %124, %123 : vector<2x128xf32>
    %126 = tpu.reciprocal %125 {approx = true} : vector<2x128xf32> -> vector<2x128xf32>
    %127 = vector.extract_strided_slice %119 {offsets = [0, 128], sizes = [2, 128], strides = [1, 1]} : vector<2x512xf32> to vector<2x128xf32>
    %cst_33 = arith.constant 0.000000e+00 : f32
    %128 = vector.broadcast %cst_33 : f32 to vector<2x128xf32>
    %129 = arith.subf %128, %127 : vector<2x128xf32>
    %130 = math.exp %129 : vector<2x128xf32>
    %cst_34 = arith.constant 1.000000e+00 : f32
    %131 = vector.broadcast %cst_34 : f32 to vector<2x128xf32>
    %132 = arith.addf %131, %130 : vector<2x128xf32>
    %133 = tpu.reciprocal %132 {approx = true} : vector<2x128xf32> -> vector<2x128xf32>
    %134 = vector.extract_strided_slice %119 {offsets = [0, 256], sizes = [2, 128], strides = [1, 1]} : vector<2x512xf32> to vector<2x128xf32>
    %135 = math.tanh %134 : vector<2x128xf32>
    %136 = vector.extract_strided_slice %119 {offsets = [0, 384], sizes = [2, 128], strides = [1, 1]} : vector<2x512xf32> to vector<2x128xf32>
    %cst_35 = arith.constant 0.000000e+00 : f32
    %137 = vector.broadcast %cst_35 : f32 to vector<2x128xf32>
    %138 = arith.subf %137, %136 : vector<2x128xf32>
    %139 = math.exp %138 : vector<2x128xf32>
    %cst_36 = arith.constant 1.000000e+00 : f32
    %140 = vector.broadcast %cst_36 : f32 to vector<2x128xf32>
    %141 = arith.addf %140, %139 : vector<2x128xf32>
    %142 = tpu.reciprocal %141 {approx = true} : vector<2x128xf32> -> vector<2x128xf32>
    %143 = arith.mulf %133, %113 : vector<2x128xf32>
    %144 = arith.mulf %126, %135 : vector<2x128xf32>
    %145 = arith.addf %143, %144 : vector<2x128xf32>
    %146 = math.tanh %145 : vector<2x128xf32>
    %147 = arith.mulf %142, %146 : vector<2x128xf32>
    %148 = vector.extract_strided_slice %17 {offsets = [8, 0], sizes = [2, 512], strides = [1, 1]} : vector<16x512xf32> to vector<2x512xf32>
    %149 = arith.truncf %147 : vector<2x128xf32> to vector<2x128xbf16>
    %cst_37 = arith.constant dense<0.000000e+00> : vector<2x512xf32>
    %150 = tpu.matmul %149, %13, %cst_37 {dimension_numbers = #tpu.dot_dimension_numbers<[1], [0], [0], [1], [0, 0, 1, 1], [], []>} : vector<2x128xbf16>, vector<128x512xbf16>, vector<2x512xf32> -> vector<2x512xf32>
    %151 = arith.addf %148, %150 : vector<2x512xf32>
    %152 = vector.extract_strided_slice %151 {offsets = [0, 0], sizes = [2, 128], strides = [1, 1]} : vector<2x512xf32> to vector<2x128xf32>
    %cst_38 = arith.constant 0.000000e+00 : f32
    %153 = vector.broadcast %cst_38 : f32 to vector<2x128xf32>
    %154 = arith.subf %153, %152 : vector<2x128xf32>
    %155 = math.exp %154 : vector<2x128xf32>
    %cst_39 = arith.constant 1.000000e+00 : f32
    %156 = vector.broadcast %cst_39 : f32 to vector<2x128xf32>
    %157 = arith.addf %156, %155 : vector<2x128xf32>
    %158 = tpu.reciprocal %157 {approx = true} : vector<2x128xf32> -> vector<2x128xf32>
    %159 = vector.extract_strided_slice %151 {offsets = [0, 128], sizes = [2, 128], strides = [1, 1]} : vector<2x512xf32> to vector<2x128xf32>
    %cst_40 = arith.constant 0.000000e+00 : f32
    %160 = vector.broadcast %cst_40 : f32 to vector<2x128xf32>
    %161 = arith.subf %160, %159 : vector<2x128xf32>
    %162 = math.exp %161 : vector<2x128xf32>
    %cst_41 = arith.constant 1.000000e+00 : f32
    %163 = vector.broadcast %cst_41 : f32 to vector<2x128xf32>
    %164 = arith.addf %163, %162 : vector<2x128xf32>
    %165 = tpu.reciprocal %164 {approx = true} : vector<2x128xf32> -> vector<2x128xf32>
    %166 = vector.extract_strided_slice %151 {offsets = [0, 256], sizes = [2, 128], strides = [1, 1]} : vector<2x512xf32> to vector<2x128xf32>
    %167 = math.tanh %166 : vector<2x128xf32>
    %168 = vector.extract_strided_slice %151 {offsets = [0, 384], sizes = [2, 128], strides = [1, 1]} : vector<2x512xf32> to vector<2x128xf32>
    %cst_42 = arith.constant 0.000000e+00 : f32
    %169 = vector.broadcast %cst_42 : f32 to vector<2x128xf32>
    %170 = arith.subf %169, %168 : vector<2x128xf32>
    %171 = math.exp %170 : vector<2x128xf32>
    %cst_43 = arith.constant 1.000000e+00 : f32
    %172 = vector.broadcast %cst_43 : f32 to vector<2x128xf32>
    %173 = arith.addf %172, %171 : vector<2x128xf32>
    %174 = tpu.reciprocal %173 {approx = true} : vector<2x128xf32> -> vector<2x128xf32>
    %175 = arith.mulf %165, %145 : vector<2x128xf32>
    %176 = arith.mulf %158, %167 : vector<2x128xf32>
    %177 = arith.addf %175, %176 : vector<2x128xf32>
    %178 = math.tanh %177 : vector<2x128xf32>
    %179 = arith.mulf %174, %178 : vector<2x128xf32>
    %180 = vector.extract_strided_slice %17 {offsets = [10, 0], sizes = [2, 512], strides = [1, 1]} : vector<16x512xf32> to vector<2x512xf32>
    %181 = arith.truncf %179 : vector<2x128xf32> to vector<2x128xbf16>
    %cst_44 = arith.constant dense<0.000000e+00> : vector<2x512xf32>
    %182 = tpu.matmul %181, %13, %cst_44 {dimension_numbers = #tpu.dot_dimension_numbers<[1], [0], [0], [1], [0, 0, 1, 1], [], []>} : vector<2x128xbf16>, vector<128x512xbf16>, vector<2x512xf32> -> vector<2x512xf32>
    %183 = arith.addf %180, %182 : vector<2x512xf32>
    %184 = vector.extract_strided_slice %183 {offsets = [0, 0], sizes = [2, 128], strides = [1, 1]} : vector<2x512xf32> to vector<2x128xf32>
    %cst_45 = arith.constant 0.000000e+00 : f32
    %185 = vector.broadcast %cst_45 : f32 to vector<2x128xf32>
    %186 = arith.subf %185, %184 : vector<2x128xf32>
    %187 = math.exp %186 : vector<2x128xf32>
    %cst_46 = arith.constant 1.000000e+00 : f32
    %188 = vector.broadcast %cst_46 : f32 to vector<2x128xf32>
    %189 = arith.addf %188, %187 : vector<2x128xf32>
    %190 = tpu.reciprocal %189 {approx = true} : vector<2x128xf32> -> vector<2x128xf32>
    %191 = vector.extract_strided_slice %183 {offsets = [0, 128], sizes = [2, 128], strides = [1, 1]} : vector<2x512xf32> to vector<2x128xf32>
    %cst_47 = arith.constant 0.000000e+00 : f32
    %192 = vector.broadcast %cst_47 : f32 to vector<2x128xf32>
    %193 = arith.subf %192, %191 : vector<2x128xf32>
    %194 = math.exp %193 : vector<2x128xf32>
    %cst_48 = arith.constant 1.000000e+00 : f32
    %195 = vector.broadcast %cst_48 : f32 to vector<2x128xf32>
    %196 = arith.addf %195, %194 : vector<2x128xf32>
    %197 = tpu.reciprocal %196 {approx = true} : vector<2x128xf32> -> vector<2x128xf32>
    %198 = vector.extract_strided_slice %183 {offsets = [0, 256], sizes = [2, 128], strides = [1, 1]} : vector<2x512xf32> to vector<2x128xf32>
    %199 = math.tanh %198 : vector<2x128xf32>
    %200 = vector.extract_strided_slice %183 {offsets = [0, 384], sizes = [2, 128], strides = [1, 1]} : vector<2x512xf32> to vector<2x128xf32>
    %cst_49 = arith.constant 0.000000e+00 : f32
    %201 = vector.broadcast %cst_49 : f32 to vector<2x128xf32>
    %202 = arith.subf %201, %200 : vector<2x128xf32>
    %203 = math.exp %202 : vector<2x128xf32>
    %cst_50 = arith.constant 1.000000e+00 : f32
    %204 = vector.broadcast %cst_50 : f32 to vector<2x128xf32>
    %205 = arith.addf %204, %203 : vector<2x128xf32>
    %206 = tpu.reciprocal %205 {approx = true} : vector<2x128xf32> -> vector<2x128xf32>
    %207 = arith.mulf %197, %177 : vector<2x128xf32>
    %208 = arith.mulf %190, %199 : vector<2x128xf32>
    %209 = arith.addf %207, %208 : vector<2x128xf32>
    %210 = math.tanh %209 : vector<2x128xf32>
    %211 = arith.mulf %206, %210 : vector<2x128xf32>
    %212 = vector.extract_strided_slice %17 {offsets = [12, 0], sizes = [2, 512], strides = [1, 1]} : vector<16x512xf32> to vector<2x512xf32>
    %213 = arith.truncf %211 : vector<2x128xf32> to vector<2x128xbf16>
    %cst_51 = arith.constant dense<0.000000e+00> : vector<2x512xf32>
    %214 = tpu.matmul %213, %13, %cst_51 {dimension_numbers = #tpu.dot_dimension_numbers<[1], [0], [0], [1], [0, 0, 1, 1], [], []>} : vector<2x128xbf16>, vector<128x512xbf16>, vector<2x512xf32> -> vector<2x512xf32>
    %215 = arith.addf %212, %214 : vector<2x512xf32>
    %216 = vector.extract_strided_slice %215 {offsets = [0, 0], sizes = [2, 128], strides = [1, 1]} : vector<2x512xf32> to vector<2x128xf32>
    %cst_52 = arith.constant 0.000000e+00 : f32
    %217 = vector.broadcast %cst_52 : f32 to vector<2x128xf32>
    %218 = arith.subf %217, %216 : vector<2x128xf32>
    %219 = math.exp %218 : vector<2x128xf32>
    %cst_53 = arith.constant 1.000000e+00 : f32
    %220 = vector.broadcast %cst_53 : f32 to vector<2x128xf32>
    %221 = arith.addf %220, %219 : vector<2x128xf32>
    %222 = tpu.reciprocal %221 {approx = true} : vector<2x128xf32> -> vector<2x128xf32>
    %223 = vector.extract_strided_slice %215 {offsets = [0, 128], sizes = [2, 128], strides = [1, 1]} : vector<2x512xf32> to vector<2x128xf32>
    %cst_54 = arith.constant 0.000000e+00 : f32
    %224 = vector.broadcast %cst_54 : f32 to vector<2x128xf32>
    %225 = arith.subf %224, %223 : vector<2x128xf32>
    %226 = math.exp %225 : vector<2x128xf32>
    %cst_55 = arith.constant 1.000000e+00 : f32
    %227 = vector.broadcast %cst_55 : f32 to vector<2x128xf32>
    %228 = arith.addf %227, %226 : vector<2x128xf32>
    %229 = tpu.reciprocal %228 {approx = true} : vector<2x128xf32> -> vector<2x128xf32>
    %230 = vector.extract_strided_slice %215 {offsets = [0, 256], sizes = [2, 128], strides = [1, 1]} : vector<2x512xf32> to vector<2x128xf32>
    %231 = math.tanh %230 : vector<2x128xf32>
    %232 = vector.extract_strided_slice %215 {offsets = [0, 384], sizes = [2, 128], strides = [1, 1]} : vector<2x512xf32> to vector<2x128xf32>
    %cst_56 = arith.constant 0.000000e+00 : f32
    %233 = vector.broadcast %cst_56 : f32 to vector<2x128xf32>
    %234 = arith.subf %233, %232 : vector<2x128xf32>
    %235 = math.exp %234 : vector<2x128xf32>
    %cst_57 = arith.constant 1.000000e+00 : f32
    %236 = vector.broadcast %cst_57 : f32 to vector<2x128xf32>
    %237 = arith.addf %236, %235 : vector<2x128xf32>
    %238 = tpu.reciprocal %237 {approx = true} : vector<2x128xf32> -> vector<2x128xf32>
    %239 = arith.mulf %229, %209 : vector<2x128xf32>
    %240 = arith.mulf %222, %231 : vector<2x128xf32>
    %241 = arith.addf %239, %240 : vector<2x128xf32>
    %242 = math.tanh %241 : vector<2x128xf32>
    %243 = arith.mulf %238, %242 : vector<2x128xf32>
    %244 = vector.extract_strided_slice %17 {offsets = [14, 0], sizes = [2, 512], strides = [1, 1]} : vector<16x512xf32> to vector<2x512xf32>
    %245 = arith.truncf %243 : vector<2x128xf32> to vector<2x128xbf16>
    %cst_58 = arith.constant dense<0.000000e+00> : vector<2x512xf32>
    %246 = tpu.matmul %245, %13, %cst_58 {dimension_numbers = #tpu.dot_dimension_numbers<[1], [0], [0], [1], [0, 0, 1, 1], [], []>} : vector<2x128xbf16>, vector<128x512xbf16>, vector<2x512xf32> -> vector<2x512xf32>
    %247 = arith.addf %244, %246 : vector<2x512xf32>
    %248 = vector.extract_strided_slice %247 {offsets = [0, 0], sizes = [2, 128], strides = [1, 1]} : vector<2x512xf32> to vector<2x128xf32>
    %cst_59 = arith.constant 0.000000e+00 : f32
    %249 = vector.broadcast %cst_59 : f32 to vector<2x128xf32>
    %250 = arith.subf %249, %248 : vector<2x128xf32>
    %251 = math.exp %250 : vector<2x128xf32>
    %cst_60 = arith.constant 1.000000e+00 : f32
    %252 = vector.broadcast %cst_60 : f32 to vector<2x128xf32>
    %253 = arith.addf %252, %251 : vector<2x128xf32>
    %254 = tpu.reciprocal %253 {approx = true} : vector<2x128xf32> -> vector<2x128xf32>
    %255 = vector.extract_strided_slice %247 {offsets = [0, 128], sizes = [2, 128], strides = [1, 1]} : vector<2x512xf32> to vector<2x128xf32>
    %cst_61 = arith.constant 0.000000e+00 : f32
    %256 = vector.broadcast %cst_61 : f32 to vector<2x128xf32>
    %257 = arith.subf %256, %255 : vector<2x128xf32>
    %258 = math.exp %257 : vector<2x128xf32>
    %cst_62 = arith.constant 1.000000e+00 : f32
    %259 = vector.broadcast %cst_62 : f32 to vector<2x128xf32>
    %260 = arith.addf %259, %258 : vector<2x128xf32>
    %261 = tpu.reciprocal %260 {approx = true} : vector<2x128xf32> -> vector<2x128xf32>
    %262 = vector.extract_strided_slice %247 {offsets = [0, 256], sizes = [2, 128], strides = [1, 1]} : vector<2x512xf32> to vector<2x128xf32>
    %263 = math.tanh %262 : vector<2x128xf32>
    %264 = vector.extract_strided_slice %247 {offsets = [0, 384], sizes = [2, 128], strides = [1, 1]} : vector<2x512xf32> to vector<2x128xf32>
    %cst_63 = arith.constant 0.000000e+00 : f32
    %265 = vector.broadcast %cst_63 : f32 to vector<2x128xf32>
    %266 = arith.subf %265, %264 : vector<2x128xf32>
    %267 = math.exp %266 : vector<2x128xf32>
    %cst_64 = arith.constant 1.000000e+00 : f32
    %268 = vector.broadcast %cst_64 : f32 to vector<2x128xf32>
    %269 = arith.addf %268, %267 : vector<2x128xf32>
    %270 = tpu.reciprocal %269 {approx = true} : vector<2x128xf32> -> vector<2x128xf32>
    %271 = arith.mulf %261, %241 : vector<2x128xf32>
    %272 = arith.mulf %254, %263 : vector<2x128xf32>
    %273 = arith.addf %271, %272 : vector<2x128xf32>
    %274 = math.tanh %273 : vector<2x128xf32>
    %275 = arith.mulf %270, %274 : vector<2x128xf32>
    %276 = tpu.concatenate %51, %83, %115, %147, %179, %211, %243, %275 in 0 : vector<2x128xf32>, vector<2x128xf32>, vector<2x128xf32>, vector<2x128xf32>, vector<2x128xf32>, vector<2x128xf32>, vector<2x128xf32>, vector<2x128xf32> -> vector<16x128xf32>
    %277 = arith.truncf %276 : vector<16x128xf32> to vector<16x128xbf16>
    %c0_i32_65 = arith.constant 0 : i32
    %278 = tpu.memref_slice %arg20[%c0_i32_65] : memref<5x!tpu.dma_semaphore, #tpu.memory_space<semaphore_mem>> -> memref<1x!tpu.dma_semaphore, #tpu.memory_space<semaphore_mem>>
    %279 = tpu.memref_squeeze %278 : memref<1x!tpu.dma_semaphore, #tpu.memory_space<semaphore_mem>> -> memref<!tpu.dma_semaphore, #tpu.memory_space<semaphore_mem>>
    tpu.wait_dma2 semaphore(%279 : memref<!tpu.dma_semaphore, #tpu.memory_space<semaphore_mem>>) src(%arg9 : memref<128x512xbf16, #tpu.memory_space<any>>) dst(%arg15 : memref<128x512xbf16, #tpu.memory_space<vmem>>)
    %c1_i32_66 = arith.constant 1 : i32
    %280 = tpu.memref_slice %arg20[%c1_i32_66] : memref<5x!tpu.dma_semaphore, #tpu.memory_space<semaphore_mem>> -> memref<1x!tpu.dma_semaphore, #tpu.memory_space<semaphore_mem>>
    %281 = tpu.memref_squeeze %280 : memref<1x!tpu.dma_semaphore, #tpu.memory_space<semaphore_mem>> -> memref<!tpu.dma_semaphore, #tpu.memory_space<semaphore_mem>>
    tpu.wait_dma2 semaphore(%281 : memref<!tpu.dma_semaphore, #tpu.memory_space<semaphore_mem>>) src(%arg10 : memref<128x512xbf16, #tpu.memory_space<any>>) dst(%arg16 : memref<128x512xbf16, #tpu.memory_space<vmem>>)
    %c0_67 = arith.constant 0 : index
    %c0_68 = arith.constant 0 : index
    %282 = vector.load %arg15[%c0_67, %c0_68] : memref<128x512xbf16, #tpu.memory_space<vmem>>, vector<128x512xbf16>
    %c0_69 = arith.constant 0 : index
    %c0_70 = arith.constant 0 : index
    %283 = vector.load %arg16[%c0_69, %c0_70] : memref<128x512xbf16, #tpu.memory_space<vmem>>, vector<128x512xbf16>
    %c0_71 = arith.constant 0 : index
    %c0_72 = arith.constant 0 : index
    %284 = vector.load %arg4[%c0_71, %c0_72] : memref<1x512xf32, #tpu.memory_space<vmem>>, vector<1x512xf32>
    %cst_73 = arith.constant dense<0.000000e+00> : vector<16x512xf32>
    %285 = tpu.matmul %277, %282, %cst_73 {dimension_numbers = #tpu.dot_dimension_numbers<[1], [0], [0], [1], [0, 0, 1, 1], [], []>} : vector<16x128xbf16>, vector<128x512xbf16>, vector<16x512xf32> -> vector<16x512xf32>
    %286 = vector.broadcast %284 : vector<1x512xf32> to vector<16x512xf32>
    %287 = arith.addf %285, %286 : vector<16x512xf32>
    %cst_74 = arith.constant 0.000000e+00 : f32
    %288 = vector.broadcast %cst_74 : f32 to vector<2x128xf32>
    %cst_75 = arith.constant 0.000000e+00 : f32
    %289 = vector.broadcast %cst_75 : f32 to vector<2x128xf32>
    %290 = vector.extract_strided_slice %287 {offsets = [0, 0], sizes = [2, 512], strides = [1, 1]} : vector<16x512xf32> to vector<2x512xf32>
    %291 = arith.truncf %288 : vector<2x128xf32> to vector<2x128xbf16>
    %cst_76 = arith.constant dense<0.000000e+00> : vector<2x512xf32>
    %292 = tpu.matmul %291, %283, %cst_76 {dimension_numbers = #tpu.dot_dimension_numbers<[1], [0], [0], [1], [0, 0, 1, 1], [], []>} : vector<2x128xbf16>, vector<128x512xbf16>, vector<2x512xf32> -> vector<2x512xf32>
    %293 = arith.addf %290, %292 : vector<2x512xf32>
    %294 = vector.extract_strided_slice %293 {offsets = [0, 0], sizes = [2, 128], strides = [1, 1]} : vector<2x512xf32> to vector<2x128xf32>
    %cst_77 = arith.constant 0.000000e+00 : f32
    %295 = vector.broadcast %cst_77 : f32 to vector<2x128xf32>
    %296 = arith.subf %295, %294 : vector<2x128xf32>
    %297 = math.exp %296 : vector<2x128xf32>
    %cst_78 = arith.constant 1.000000e+00 : f32
    %298 = vector.broadcast %cst_78 : f32 to vector<2x128xf32>
    %299 = arith.addf %298, %297 : vector<2x128xf32>
    %300 = tpu.reciprocal %299 {approx = true} : vector<2x128xf32> -> vector<2x128xf32>
    %301 = vector.extract_strided_slice %293 {offsets = [0, 128], sizes = [2, 128], strides = [1, 1]} : vector<2x512xf32> to vector<2x128xf32>
    %cst_79 = arith.constant 0.000000e+00 : f32
    %302 = vector.broadcast %cst_79 : f32 to vector<2x128xf32>
    %303 = arith.subf %302, %301 : vector<2x128xf32>
    %304 = math.exp %303 : vector<2x128xf32>
    %cst_80 = arith.constant 1.000000e+00 : f32
    %305 = vector.broadcast %cst_80 : f32 to vector<2x128xf32>
    %306 = arith.addf %305, %304 : vector<2x128xf32>
    %307 = tpu.reciprocal %306 {approx = true} : vector<2x128xf32> -> vector<2x128xf32>
    %308 = vector.extract_strided_slice %293 {offsets = [0, 256], sizes = [2, 128], strides = [1, 1]} : vector<2x512xf32> to vector<2x128xf32>
    %309 = math.tanh %308 : vector<2x128xf32>
    %310 = vector.extract_strided_slice %293 {offsets = [0, 384], sizes = [2, 128], strides = [1, 1]} : vector<2x512xf32> to vector<2x128xf32>
    %cst_81 = arith.constant 0.000000e+00 : f32
    %311 = vector.broadcast %cst_81 : f32 to vector<2x128xf32>
    %312 = arith.subf %311, %310 : vector<2x128xf32>
    %313 = math.exp %312 : vector<2x128xf32>
    %cst_82 = arith.constant 1.000000e+00 : f32
    %314 = vector.broadcast %cst_82 : f32 to vector<2x128xf32>
    %315 = arith.addf %314, %313 : vector<2x128xf32>
    %316 = tpu.reciprocal %315 {approx = true} : vector<2x128xf32> -> vector<2x128xf32>
    %317 = arith.mulf %307, %289 : vector<2x128xf32>
    %318 = arith.mulf %300, %309 : vector<2x128xf32>
    %319 = arith.addf %317, %318 : vector<2x128xf32>
    %320 = math.tanh %319 : vector<2x128xf32>
    %321 = arith.mulf %316, %320 : vector<2x128xf32>
    %322 = vector.extract_strided_slice %287 {offsets = [2, 0], sizes = [2, 512], strides = [1, 1]} : vector<16x512xf32> to vector<2x512xf32>
    %323 = arith.truncf %321 : vector<2x128xf32> to vector<2x128xbf16>
    %cst_83 = arith.constant dense<0.000000e+00> : vector<2x512xf32>
    %324 = tpu.matmul %323, %283, %cst_83 {dimension_numbers = #tpu.dot_dimension_numbers<[1], [0], [0], [1], [0, 0, 1, 1], [], []>} : vector<2x128xbf16>, vector<128x512xbf16>, vector<2x512xf32> -> vector<2x512xf32>
    %325 = arith.addf %322, %324 : vector<2x512xf32>
    %326 = vector.extract_strided_slice %325 {offsets = [0, 0], sizes = [2, 128], strides = [1, 1]} : vector<2x512xf32> to vector<2x128xf32>
    %cst_84 = arith.constant 0.000000e+00 : f32
    %327 = vector.broadcast %cst_84 : f32 to vector<2x128xf32>
    %328 = arith.subf %327, %326 : vector<2x128xf32>
    %329 = math.exp %328 : vector<2x128xf32>
    %cst_85 = arith.constant 1.000000e+00 : f32
    %330 = vector.broadcast %cst_85 : f32 to vector<2x128xf32>
    %331 = arith.addf %330, %329 : vector<2x128xf32>
    %332 = tpu.reciprocal %331 {approx = true} : vector<2x128xf32> -> vector<2x128xf32>
    %333 = vector.extract_strided_slice %325 {offsets = [0, 128], sizes = [2, 128], strides = [1, 1]} : vector<2x512xf32> to vector<2x128xf32>
    %cst_86 = arith.constant 0.000000e+00 : f32
    %334 = vector.broadcast %cst_86 : f32 to vector<2x128xf32>
    %335 = arith.subf %334, %333 : vector<2x128xf32>
    %336 = math.exp %335 : vector<2x128xf32>
    %cst_87 = arith.constant 1.000000e+00 : f32
    %337 = vector.broadcast %cst_87 : f32 to vector<2x128xf32>
    %338 = arith.addf %337, %336 : vector<2x128xf32>
    %339 = tpu.reciprocal %338 {approx = true} : vector<2x128xf32> -> vector<2x128xf32>
    %340 = vector.extract_strided_slice %325 {offsets = [0, 256], sizes = [2, 128], strides = [1, 1]} : vector<2x512xf32> to vector<2x128xf32>
    %341 = math.tanh %340 : vector<2x128xf32>
    %342 = vector.extract_strided_slice %325 {offsets = [0, 384], sizes = [2, 128], strides = [1, 1]} : vector<2x512xf32> to vector<2x128xf32>
    %cst_88 = arith.constant 0.000000e+00 : f32
    %343 = vector.broadcast %cst_88 : f32 to vector<2x128xf32>
    %344 = arith.subf %343, %342 : vector<2x128xf32>
    %345 = math.exp %344 : vector<2x128xf32>
    %cst_89 = arith.constant 1.000000e+00 : f32
    %346 = vector.broadcast %cst_89 : f32 to vector<2x128xf32>
    %347 = arith.addf %346, %345 : vector<2x128xf32>
    %348 = tpu.reciprocal %347 {approx = true} : vector<2x128xf32> -> vector<2x128xf32>
    %349 = arith.mulf %339, %319 : vector<2x128xf32>
    %350 = arith.mulf %332, %341 : vector<2x128xf32>
    %351 = arith.addf %349, %350 : vector<2x128xf32>
    %352 = math.tanh %351 : vector<2x128xf32>
    %353 = arith.mulf %348, %352 : vector<2x128xf32>
    %354 = vector.extract_strided_slice %287 {offsets = [4, 0], sizes = [2, 512], strides = [1, 1]} : vector<16x512xf32> to vector<2x512xf32>
    %355 = arith.truncf %353 : vector<2x128xf32> to vector<2x128xbf16>
    %cst_90 = arith.constant dense<0.000000e+00> : vector<2x512xf32>
    %356 = tpu.matmul %355, %283, %cst_90 {dimension_numbers = #tpu.dot_dimension_numbers<[1], [0], [0], [1], [0, 0, 1, 1], [], []>} : vector<2x128xbf16>, vector<128x512xbf16>, vector<2x512xf32> -> vector<2x512xf32>
    %357 = arith.addf %354, %356 : vector<2x512xf32>
    %358 = vector.extract_strided_slice %357 {offsets = [0, 0], sizes = [2, 128], strides = [1, 1]} : vector<2x512xf32> to vector<2x128xf32>
    %cst_91 = arith.constant 0.000000e+00 : f32
    %359 = vector.broadcast %cst_91 : f32 to vector<2x128xf32>
    %360 = arith.subf %359, %358 : vector<2x128xf32>
    %361 = math.exp %360 : vector<2x128xf32>
    %cst_92 = arith.constant 1.000000e+00 : f32
    %362 = vector.broadcast %cst_92 : f32 to vector<2x128xf32>
    %363 = arith.addf %362, %361 : vector<2x128xf32>
    %364 = tpu.reciprocal %363 {approx = true} : vector<2x128xf32> -> vector<2x128xf32>
    %365 = vector.extract_strided_slice %357 {offsets = [0, 128], sizes = [2, 128], strides = [1, 1]} : vector<2x512xf32> to vector<2x128xf32>
    %cst_93 = arith.constant 0.000000e+00 : f32
    %366 = vector.broadcast %cst_93 : f32 to vector<2x128xf32>
    %367 = arith.subf %366, %365 : vector<2x128xf32>
    %368 = math.exp %367 : vector<2x128xf32>
    %cst_94 = arith.constant 1.000000e+00 : f32
    %369 = vector.broadcast %cst_94 : f32 to vector<2x128xf32>
    %370 = arith.addf %369, %368 : vector<2x128xf32>
    %371 = tpu.reciprocal %370 {approx = true} : vector<2x128xf32> -> vector<2x128xf32>
    %372 = vector.extract_strided_slice %357 {offsets = [0, 256], sizes = [2, 128], strides = [1, 1]} : vector<2x512xf32> to vector<2x128xf32>
    %373 = math.tanh %372 : vector<2x128xf32>
    %374 = vector.extract_strided_slice %357 {offsets = [0, 384], sizes = [2, 128], strides = [1, 1]} : vector<2x512xf32> to vector<2x128xf32>
    %cst_95 = arith.constant 0.000000e+00 : f32
    %375 = vector.broadcast %cst_95 : f32 to vector<2x128xf32>
    %376 = arith.subf %375, %374 : vector<2x128xf32>
    %377 = math.exp %376 : vector<2x128xf32>
    %cst_96 = arith.constant 1.000000e+00 : f32
    %378 = vector.broadcast %cst_96 : f32 to vector<2x128xf32>
    %379 = arith.addf %378, %377 : vector<2x128xf32>
    %380 = tpu.reciprocal %379 {approx = true} : vector<2x128xf32> -> vector<2x128xf32>
    %381 = arith.mulf %371, %351 : vector<2x128xf32>
    %382 = arith.mulf %364, %373 : vector<2x128xf32>
    %383 = arith.addf %381, %382 : vector<2x128xf32>
    %384 = math.tanh %383 : vector<2x128xf32>
    %385 = arith.mulf %380, %384 : vector<2x128xf32>
    %386 = vector.extract_strided_slice %287 {offsets = [6, 0], sizes = [2, 512], strides = [1, 1]} : vector<16x512xf32> to vector<2x512xf32>
    %387 = arith.truncf %385 : vector<2x128xf32> to vector<2x128xbf16>
    %cst_97 = arith.constant dense<0.000000e+00> : vector<2x512xf32>
    %388 = tpu.matmul %387, %283, %cst_97 {dimension_numbers = #tpu.dot_dimension_numbers<[1], [0], [0], [1], [0, 0, 1, 1], [], []>} : vector<2x128xbf16>, vector<128x512xbf16>, vector<2x512xf32> -> vector<2x512xf32>
    %389 = arith.addf %386, %388 : vector<2x512xf32>
    %390 = vector.extract_strided_slice %389 {offsets = [0, 0], sizes = [2, 128], strides = [1, 1]} : vector<2x512xf32> to vector<2x128xf32>
    %cst_98 = arith.constant 0.000000e+00 : f32
    %391 = vector.broadcast %cst_98 : f32 to vector<2x128xf32>
    %392 = arith.subf %391, %390 : vector<2x128xf32>
    %393 = math.exp %392 : vector<2x128xf32>
    %cst_99 = arith.constant 1.000000e+00 : f32
    %394 = vector.broadcast %cst_99 : f32 to vector<2x128xf32>
    %395 = arith.addf %394, %393 : vector<2x128xf32>
    %396 = tpu.reciprocal %395 {approx = true} : vector<2x128xf32> -> vector<2x128xf32>
    %397 = vector.extract_strided_slice %389 {offsets = [0, 128], sizes = [2, 128], strides = [1, 1]} : vector<2x512xf32> to vector<2x128xf32>
    %cst_100 = arith.constant 0.000000e+00 : f32
    %398 = vector.broadcast %cst_100 : f32 to vector<2x128xf32>
    %399 = arith.subf %398, %397 : vector<2x128xf32>
    %400 = math.exp %399 : vector<2x128xf32>
    %cst_101 = arith.constant 1.000000e+00 : f32
    %401 = vector.broadcast %cst_101 : f32 to vector<2x128xf32>
    %402 = arith.addf %401, %400 : vector<2x128xf32>
    %403 = tpu.reciprocal %402 {approx = true} : vector<2x128xf32> -> vector<2x128xf32>
    %404 = vector.extract_strided_slice %389 {offsets = [0, 256], sizes = [2, 128], strides = [1, 1]} : vector<2x512xf32> to vector<2x128xf32>
    %405 = math.tanh %404 : vector<2x128xf32>
    %406 = vector.extract_strided_slice %389 {offsets = [0, 384], sizes = [2, 128], strides = [1, 1]} : vector<2x512xf32> to vector<2x128xf32>
    %cst_102 = arith.constant 0.000000e+00 : f32
    %407 = vector.broadcast %cst_102 : f32 to vector<2x128xf32>
    %408 = arith.subf %407, %406 : vector<2x128xf32>
    %409 = math.exp %408 : vector<2x128xf32>
    %cst_103 = arith.constant 1.000000e+00 : f32
    %410 = vector.broadcast %cst_103 : f32 to vector<2x128xf32>
    %411 = arith.addf %410, %409 : vector<2x128xf32>
    %412 = tpu.reciprocal %411 {approx = true} : vector<2x128xf32> -> vector<2x128xf32>
    %413 = arith.mulf %403, %383 : vector<2x128xf32>
    %414 = arith.mulf %396, %405 : vector<2x128xf32>
    %415 = arith.addf %413, %414 : vector<2x128xf32>
    %416 = math.tanh %415 : vector<2x128xf32>
    %417 = arith.mulf %412, %416 : vector<2x128xf32>
    %418 = vector.extract_strided_slice %287 {offsets = [8, 0], sizes = [2, 512], strides = [1, 1]} : vector<16x512xf32> to vector<2x512xf32>
    %419 = arith.truncf %417 : vector<2x128xf32> to vector<2x128xbf16>
    %cst_104 = arith.constant dense<0.000000e+00> : vector<2x512xf32>
    %420 = tpu.matmul %419, %283, %cst_104 {dimension_numbers = #tpu.dot_dimension_numbers<[1], [0], [0], [1], [0, 0, 1, 1], [], []>} : vector<2x128xbf16>, vector<128x512xbf16>, vector<2x512xf32> -> vector<2x512xf32>
    %421 = arith.addf %418, %420 : vector<2x512xf32>
    %422 = vector.extract_strided_slice %421 {offsets = [0, 0], sizes = [2, 128], strides = [1, 1]} : vector<2x512xf32> to vector<2x128xf32>
    %cst_105 = arith.constant 0.000000e+00 : f32
    %423 = vector.broadcast %cst_105 : f32 to vector<2x128xf32>
    %424 = arith.subf %423, %422 : vector<2x128xf32>
    %425 = math.exp %424 : vector<2x128xf32>
    %cst_106 = arith.constant 1.000000e+00 : f32
    %426 = vector.broadcast %cst_106 : f32 to vector<2x128xf32>
    %427 = arith.addf %426, %425 : vector<2x128xf32>
    %428 = tpu.reciprocal %427 {approx = true} : vector<2x128xf32> -> vector<2x128xf32>
    %429 = vector.extract_strided_slice %421 {offsets = [0, 128], sizes = [2, 128], strides = [1, 1]} : vector<2x512xf32> to vector<2x128xf32>
    %cst_107 = arith.constant 0.000000e+00 : f32
    %430 = vector.broadcast %cst_107 : f32 to vector<2x128xf32>
    %431 = arith.subf %430, %429 : vector<2x128xf32>
    %432 = math.exp %431 : vector<2x128xf32>
    %cst_108 = arith.constant 1.000000e+00 : f32
    %433 = vector.broadcast %cst_108 : f32 to vector<2x128xf32>
    %434 = arith.addf %433, %432 : vector<2x128xf32>
    %435 = tpu.reciprocal %434 {approx = true} : vector<2x128xf32> -> vector<2x128xf32>
    %436 = vector.extract_strided_slice %421 {offsets = [0, 256], sizes = [2, 128], strides = [1, 1]} : vector<2x512xf32> to vector<2x128xf32>
    %437 = math.tanh %436 : vector<2x128xf32>
    %438 = vector.extract_strided_slice %421 {offsets = [0, 384], sizes = [2, 128], strides = [1, 1]} : vector<2x512xf32> to vector<2x128xf32>
    %cst_109 = arith.constant 0.000000e+00 : f32
    %439 = vector.broadcast %cst_109 : f32 to vector<2x128xf32>
    %440 = arith.subf %439, %438 : vector<2x128xf32>
    %441 = math.exp %440 : vector<2x128xf32>
    %cst_110 = arith.constant 1.000000e+00 : f32
    %442 = vector.broadcast %cst_110 : f32 to vector<2x128xf32>
    %443 = arith.addf %442, %441 : vector<2x128xf32>
    %444 = tpu.reciprocal %443 {approx = true} : vector<2x128xf32> -> vector<2x128xf32>
    %445 = arith.mulf %435, %415 : vector<2x128xf32>
    %446 = arith.mulf %428, %437 : vector<2x128xf32>
    %447 = arith.addf %445, %446 : vector<2x128xf32>
    %448 = math.tanh %447 : vector<2x128xf32>
    %449 = arith.mulf %444, %448 : vector<2x128xf32>
    %450 = vector.extract_strided_slice %287 {offsets = [10, 0], sizes = [2, 512], strides = [1, 1]} : vector<16x512xf32> to vector<2x512xf32>
    %451 = arith.truncf %449 : vector<2x128xf32> to vector<2x128xbf16>
    %cst_111 = arith.constant dense<0.000000e+00> : vector<2x512xf32>
    %452 = tpu.matmul %451, %283, %cst_111 {dimension_numbers = #tpu.dot_dimension_numbers<[1], [0], [0], [1], [0, 0, 1, 1], [], []>} : vector<2x128xbf16>, vector<128x512xbf16>, vector<2x512xf32> -> vector<2x512xf32>
    %453 = arith.addf %450, %452 : vector<2x512xf32>
    %454 = vector.extract_strided_slice %453 {offsets = [0, 0], sizes = [2, 128], strides = [1, 1]} : vector<2x512xf32> to vector<2x128xf32>
    %cst_112 = arith.constant 0.000000e+00 : f32
    %455 = vector.broadcast %cst_112 : f32 to vector<2x128xf32>
    %456 = arith.subf %455, %454 : vector<2x128xf32>
    %457 = math.exp %456 : vector<2x128xf32>
    %cst_113 = arith.constant 1.000000e+00 : f32
    %458 = vector.broadcast %cst_113 : f32 to vector<2x128xf32>
    %459 = arith.addf %458, %457 : vector<2x128xf32>
    %460 = tpu.reciprocal %459 {approx = true} : vector<2x128xf32> -> vector<2x128xf32>
    %461 = vector.extract_strided_slice %453 {offsets = [0, 128], sizes = [2, 128], strides = [1, 1]} : vector<2x512xf32> to vector<2x128xf32>
    %cst_114 = arith.constant 0.000000e+00 : f32
    %462 = vector.broadcast %cst_114 : f32 to vector<2x128xf32>
    %463 = arith.subf %462, %461 : vector<2x128xf32>
    %464 = math.exp %463 : vector<2x128xf32>
    %cst_115 = arith.constant 1.000000e+00 : f32
    %465 = vector.broadcast %cst_115 : f32 to vector<2x128xf32>
    %466 = arith.addf %465, %464 : vector<2x128xf32>
    %467 = tpu.reciprocal %466 {approx = true} : vector<2x128xf32> -> vector<2x128xf32>
    %468 = vector.extract_strided_slice %453 {offsets = [0, 256], sizes = [2, 128], strides = [1, 1]} : vector<2x512xf32> to vector<2x128xf32>
    %469 = math.tanh %468 : vector<2x128xf32>
    %470 = vector.extract_strided_slice %453 {offsets = [0, 384], sizes = [2, 128], strides = [1, 1]} : vector<2x512xf32> to vector<2x128xf32>
    %cst_116 = arith.constant 0.000000e+00 : f32
    %471 = vector.broadcast %cst_116 : f32 to vector<2x128xf32>
    %472 = arith.subf %471, %470 : vector<2x128xf32>
    %473 = math.exp %472 : vector<2x128xf32>
    %cst_117 = arith.constant 1.000000e+00 : f32
    %474 = vector.broadcast %cst_117 : f32 to vector<2x128xf32>
    %475 = arith.addf %474, %473 : vector<2x128xf32>
    %476 = tpu.reciprocal %475 {approx = true} : vector<2x128xf32> -> vector<2x128xf32>
    %477 = arith.mulf %467, %447 : vector<2x128xf32>
    %478 = arith.mulf %460, %469 : vector<2x128xf32>
    %479 = arith.addf %477, %478 : vector<2x128xf32>
    %480 = math.tanh %479 : vector<2x128xf32>
    %481 = arith.mulf %476, %480 : vector<2x128xf32>
    %482 = vector.extract_strided_slice %287 {offsets = [12, 0], sizes = [2, 512], strides = [1, 1]} : vector<16x512xf32> to vector<2x512xf32>
    %483 = arith.truncf %481 : vector<2x128xf32> to vector<2x128xbf16>
    %cst_118 = arith.constant dense<0.000000e+00> : vector<2x512xf32>
    %484 = tpu.matmul %483, %283, %cst_118 {dimension_numbers = #tpu.dot_dimension_numbers<[1], [0], [0], [1], [0, 0, 1, 1], [], []>} : vector<2x128xbf16>, vector<128x512xbf16>, vector<2x512xf32> -> vector<2x512xf32>
    %485 = arith.addf %482, %484 : vector<2x512xf32>
    %486 = vector.extract_strided_slice %485 {offsets = [0, 0], sizes = [2, 128], strides = [1, 1]} : vector<2x512xf32> to vector<2x128xf32>
    %cst_119 = arith.constant 0.000000e+00 : f32
    %487 = vector.broadcast %cst_119 : f32 to vector<2x128xf32>
    %488 = arith.subf %487, %486 : vector<2x128xf32>
    %489 = math.exp %488 : vector<2x128xf32>
    %cst_120 = arith.constant 1.000000e+00 : f32
    %490 = vector.broadcast %cst_120 : f32 to vector<2x128xf32>
    %491 = arith.addf %490, %489 : vector<2x128xf32>
    %492 = tpu.reciprocal %491 {approx = true} : vector<2x128xf32> -> vector<2x128xf32>
    %493 = vector.extract_strided_slice %485 {offsets = [0, 128], sizes = [2, 128], strides = [1, 1]} : vector<2x512xf32> to vector<2x128xf32>
    %cst_121 = arith.constant 0.000000e+00 : f32
    %494 = vector.broadcast %cst_121 : f32 to vector<2x128xf32>
    %495 = arith.subf %494, %493 : vector<2x128xf32>
    %496 = math.exp %495 : vector<2x128xf32>
    %cst_122 = arith.constant 1.000000e+00 : f32
    %497 = vector.broadcast %cst_122 : f32 to vector<2x128xf32>
    %498 = arith.addf %497, %496 : vector<2x128xf32>
    %499 = tpu.reciprocal %498 {approx = true} : vector<2x128xf32> -> vector<2x128xf32>
    %500 = vector.extract_strided_slice %485 {offsets = [0, 256], sizes = [2, 128], strides = [1, 1]} : vector<2x512xf32> to vector<2x128xf32>
    %501 = math.tanh %500 : vector<2x128xf32>
    %502 = vector.extract_strided_slice %485 {offsets = [0, 384], sizes = [2, 128], strides = [1, 1]} : vector<2x512xf32> to vector<2x128xf32>
    %cst_123 = arith.constant 0.000000e+00 : f32
    %503 = vector.broadcast %cst_123 : f32 to vector<2x128xf32>
    %504 = arith.subf %503, %502 : vector<2x128xf32>
    %505 = math.exp %504 : vector<2x128xf32>
    %cst_124 = arith.constant 1.000000e+00 : f32
    %506 = vector.broadcast %cst_124 : f32 to vector<2x128xf32>
    %507 = arith.addf %506, %505 : vector<2x128xf32>
    %508 = tpu.reciprocal %507 {approx = true} : vector<2x128xf32> -> vector<2x128xf32>
    %509 = arith.mulf %499, %479 : vector<2x128xf32>
    %510 = arith.mulf %492, %501 : vector<2x128xf32>
    %511 = arith.addf %509, %510 : vector<2x128xf32>
    %512 = math.tanh %511 : vector<2x128xf32>
    %513 = arith.mulf %508, %512 : vector<2x128xf32>
    %514 = vector.extract_strided_slice %287 {offsets = [14, 0], sizes = [2, 512], strides = [1, 1]} : vector<16x512xf32> to vector<2x512xf32>
    %515 = arith.truncf %513 : vector<2x128xf32> to vector<2x128xbf16>
    %cst_125 = arith.constant dense<0.000000e+00> : vector<2x512xf32>
    %516 = tpu.matmul %515, %283, %cst_125 {dimension_numbers = #tpu.dot_dimension_numbers<[1], [0], [0], [1], [0, 0, 1, 1], [], []>} : vector<2x128xbf16>, vector<128x512xbf16>, vector<2x512xf32> -> vector<2x512xf32>
    %517 = arith.addf %514, %516 : vector<2x512xf32>
    %518 = vector.extract_strided_slice %517 {offsets = [0, 0], sizes = [2, 128], strides = [1, 1]} : vector<2x512xf32> to vector<2x128xf32>
    %cst_126 = arith.constant 0.000000e+00 : f32
    %519 = vector.broadcast %cst_126 : f32 to vector<2x128xf32>
    %520 = arith.subf %519, %518 : vector<2x128xf32>
    %521 = math.exp %520 : vector<2x128xf32>
    %cst_127 = arith.constant 1.000000e+00 : f32
    %522 = vector.broadcast %cst_127 : f32 to vector<2x128xf32>
    %523 = arith.addf %522, %521 : vector<2x128xf32>
    %524 = tpu.reciprocal %523 {approx = true} : vector<2x128xf32> -> vector<2x128xf32>
    %525 = vector.extract_strided_slice %517 {offsets = [0, 128], sizes = [2, 128], strides = [1, 1]} : vector<2x512xf32> to vector<2x128xf32>
    %cst_128 = arith.constant 0.000000e+00 : f32
    %526 = vector.broadcast %cst_128 : f32 to vector<2x128xf32>
    %527 = arith.subf %526, %525 : vector<2x128xf32>
    %528 = math.exp %527 : vector<2x128xf32>
    %cst_129 = arith.constant 1.000000e+00 : f32
    %529 = vector.broadcast %cst_129 : f32 to vector<2x128xf32>
    %530 = arith.addf %529, %528 : vector<2x128xf32>
    %531 = tpu.reciprocal %530 {approx = true} : vector<2x128xf32> -> vector<2x128xf32>
    %532 = vector.extract_strided_slice %517 {offsets = [0, 256], sizes = [2, 128], strides = [1, 1]} : vector<2x512xf32> to vector<2x128xf32>
    %533 = math.tanh %532 : vector<2x128xf32>
    %534 = vector.extract_strided_slice %517 {offsets = [0, 384], sizes = [2, 128], strides = [1, 1]} : vector<2x512xf32> to vector<2x128xf32>
    %cst_130 = arith.constant 0.000000e+00 : f32
    %535 = vector.broadcast %cst_130 : f32 to vector<2x128xf32>
    %536 = arith.subf %535, %534 : vector<2x128xf32>
    %537 = math.exp %536 : vector<2x128xf32>
    %cst_131 = arith.constant 1.000000e+00 : f32
    %538 = vector.broadcast %cst_131 : f32 to vector<2x128xf32>
    %539 = arith.addf %538, %537 : vector<2x128xf32>
    %540 = tpu.reciprocal %539 {approx = true} : vector<2x128xf32> -> vector<2x128xf32>
    %541 = arith.mulf %531, %511 : vector<2x128xf32>
    %542 = arith.mulf %524, %533 : vector<2x128xf32>
    %543 = arith.addf %541, %542 : vector<2x128xf32>
    %544 = math.tanh %543 : vector<2x128xf32>
    %545 = arith.mulf %540, %544 : vector<2x128xf32>
    %546 = tpu.concatenate %321, %353, %385, %417, %449, %481, %513, %545 in 0 : vector<2x128xf32>, vector<2x128xf32>, vector<2x128xf32>, vector<2x128xf32>, vector<2x128xf32>, vector<2x128xf32>, vector<2x128xf32>, vector<2x128xf32> -> vector<16x128xf32>
    %547 = arith.truncf %546 : vector<16x128xf32> to vector<16x128xbf16>
    %c2_i32_132 = arith.constant 2 : i32
    %548 = tpu.memref_slice %arg20[%c2_i32_132] : memref<5x!tpu.dma_semaphore, #tpu.memory_space<semaphore_mem>> -> memref<1x!tpu.dma_semaphore, #tpu.memory_space<semaphore_mem>>
    %549 = tpu.memref_squeeze %548 : memref<1x!tpu.dma_semaphore, #tpu.memory_space<semaphore_mem>> -> memref<!tpu.dma_semaphore, #tpu.memory_space<semaphore_mem>>
    tpu.wait_dma2 semaphore(%549 : memref<!tpu.dma_semaphore, #tpu.memory_space<semaphore_mem>>) src(%arg11 : memref<128x512xbf16, #tpu.memory_space<any>>) dst(%arg17 : memref<128x512xbf16, #tpu.memory_space<vmem>>)
    %c3_i32_133 = arith.constant 3 : i32
    %550 = tpu.memref_slice %arg20[%c3_i32_133] : memref<5x!tpu.dma_semaphore, #tpu.memory_space<semaphore_mem>> -> memref<1x!tpu.dma_semaphore, #tpu.memory_space<semaphore_mem>>
    %551 = tpu.memref_squeeze %550 : memref<1x!tpu.dma_semaphore, #tpu.memory_space<semaphore_mem>> -> memref<!tpu.dma_semaphore, #tpu.memory_space<semaphore_mem>>
    tpu.wait_dma2 semaphore(%551 : memref<!tpu.dma_semaphore, #tpu.memory_space<semaphore_mem>>) src(%arg12 : memref<128x512xbf16, #tpu.memory_space<any>>) dst(%arg18 : memref<128x512xbf16, #tpu.memory_space<vmem>>)
    %c0_134 = arith.constant 0 : index
    %c0_135 = arith.constant 0 : index
    %552 = vector.load %arg17[%c0_134, %c0_135] : memref<128x512xbf16, #tpu.memory_space<vmem>>, vector<128x512xbf16>
    %c0_136 = arith.constant 0 : index
    %c0_137 = arith.constant 0 : index
    %553 = vector.load %arg18[%c0_136, %c0_137] : memref<128x512xbf16, #tpu.memory_space<vmem>>, vector<128x512xbf16>
    %c0_138 = arith.constant 0 : index
    %c0_139 = arith.constant 0 : index
    %554 = vector.load %arg5[%c0_138, %c0_139] : memref<1x512xf32, #tpu.memory_space<vmem>>, vector<1x512xf32>
    %cst_140 = arith.constant dense<0.000000e+00> : vector<16x512xf32>
    %555 = tpu.matmul %547, %552, %cst_140 {dimension_numbers = #tpu.dot_dimension_numbers<[1], [0], [0], [1], [0, 0, 1, 1], [], []>} : vector<16x128xbf16>, vector<128x512xbf16>, vector<16x512xf32> -> vector<16x512xf32>
    %556 = vector.broadcast %554 : vector<1x512xf32> to vector<16x512xf32>
    %557 = arith.addf %555, %556 : vector<16x512xf32>
    %cst_141 = arith.constant 0.000000e+00 : f32
    %558 = vector.broadcast %cst_141 : f32 to vector<2x128xf32>
    %cst_142 = arith.constant 0.000000e+00 : f32
    %559 = vector.broadcast %cst_142 : f32 to vector<2x128xf32>
    %560 = vector.extract_strided_slice %557 {offsets = [0, 0], sizes = [2, 512], strides = [1, 1]} : vector<16x512xf32> to vector<2x512xf32>
    %561 = arith.truncf %558 : vector<2x128xf32> to vector<2x128xbf16>
    %cst_143 = arith.constant dense<0.000000e+00> : vector<2x512xf32>
    %562 = tpu.matmul %561, %553, %cst_143 {dimension_numbers = #tpu.dot_dimension_numbers<[1], [0], [0], [1], [0, 0, 1, 1], [], []>} : vector<2x128xbf16>, vector<128x512xbf16>, vector<2x512xf32> -> vector<2x512xf32>
    %563 = arith.addf %560, %562 : vector<2x512xf32>
    %564 = vector.extract_strided_slice %563 {offsets = [0, 0], sizes = [2, 128], strides = [1, 1]} : vector<2x512xf32> to vector<2x128xf32>
    %cst_144 = arith.constant 0.000000e+00 : f32
    %565 = vector.broadcast %cst_144 : f32 to vector<2x128xf32>
    %566 = arith.subf %565, %564 : vector<2x128xf32>
    %567 = math.exp %566 : vector<2x128xf32>
    %cst_145 = arith.constant 1.000000e+00 : f32
    %568 = vector.broadcast %cst_145 : f32 to vector<2x128xf32>
    %569 = arith.addf %568, %567 : vector<2x128xf32>
    %570 = tpu.reciprocal %569 {approx = true} : vector<2x128xf32> -> vector<2x128xf32>
    %571 = vector.extract_strided_slice %563 {offsets = [0, 128], sizes = [2, 128], strides = [1, 1]} : vector<2x512xf32> to vector<2x128xf32>
    %cst_146 = arith.constant 0.000000e+00 : f32
    %572 = vector.broadcast %cst_146 : f32 to vector<2x128xf32>
    %573 = arith.subf %572, %571 : vector<2x128xf32>
    %574 = math.exp %573 : vector<2x128xf32>
    %cst_147 = arith.constant 1.000000e+00 : f32
    %575 = vector.broadcast %cst_147 : f32 to vector<2x128xf32>
    %576 = arith.addf %575, %574 : vector<2x128xf32>
    %577 = tpu.reciprocal %576 {approx = true} : vector<2x128xf32> -> vector<2x128xf32>
    %578 = vector.extract_strided_slice %563 {offsets = [0, 256], sizes = [2, 128], strides = [1, 1]} : vector<2x512xf32> to vector<2x128xf32>
    %579 = math.tanh %578 : vector<2x128xf32>
    %580 = vector.extract_strided_slice %563 {offsets = [0, 384], sizes = [2, 128], strides = [1, 1]} : vector<2x512xf32> to vector<2x128xf32>
    %cst_148 = arith.constant 0.000000e+00 : f32
    %581 = vector.broadcast %cst_148 : f32 to vector<2x128xf32>
    %582 = arith.subf %581, %580 : vector<2x128xf32>
    %583 = math.exp %582 : vector<2x128xf32>
    %cst_149 = arith.constant 1.000000e+00 : f32
    %584 = vector.broadcast %cst_149 : f32 to vector<2x128xf32>
    %585 = arith.addf %584, %583 : vector<2x128xf32>
    %586 = tpu.reciprocal %585 {approx = true} : vector<2x128xf32> -> vector<2x128xf32>
    %587 = arith.mulf %577, %559 : vector<2x128xf32>
    %588 = arith.mulf %570, %579 : vector<2x128xf32>
    %589 = arith.addf %587, %588 : vector<2x128xf32>
    %590 = math.tanh %589 : vector<2x128xf32>
    %591 = arith.mulf %586, %590 : vector<2x128xf32>
    %592 = vector.extract_strided_slice %557 {offsets = [2, 0], sizes = [2, 512], strides = [1, 1]} : vector<16x512xf32> to vector<2x512xf32>
    %593 = arith.truncf %591 : vector<2x128xf32> to vector<2x128xbf16>
    %cst_150 = arith.constant dense<0.000000e+00> : vector<2x512xf32>
    %594 = tpu.matmul %593, %553, %cst_150 {dimension_numbers = #tpu.dot_dimension_numbers<[1], [0], [0], [1], [0, 0, 1, 1], [], []>} : vector<2x128xbf16>, vector<128x512xbf16>, vector<2x512xf32> -> vector<2x512xf32>
    %595 = arith.addf %592, %594 : vector<2x512xf32>
    %596 = vector.extract_strided_slice %595 {offsets = [0, 0], sizes = [2, 128], strides = [1, 1]} : vector<2x512xf32> to vector<2x128xf32>
    %cst_151 = arith.constant 0.000000e+00 : f32
    %597 = vector.broadcast %cst_151 : f32 to vector<2x128xf32>
    %598 = arith.subf %597, %596 : vector<2x128xf32>
    %599 = math.exp %598 : vector<2x128xf32>
    %cst_152 = arith.constant 1.000000e+00 : f32
    %600 = vector.broadcast %cst_152 : f32 to vector<2x128xf32>
    %601 = arith.addf %600, %599 : vector<2x128xf32>
    %602 = tpu.reciprocal %601 {approx = true} : vector<2x128xf32> -> vector<2x128xf32>
    %603 = vector.extract_strided_slice %595 {offsets = [0, 128], sizes = [2, 128], strides = [1, 1]} : vector<2x512xf32> to vector<2x128xf32>
    %cst_153 = arith.constant 0.000000e+00 : f32
    %604 = vector.broadcast %cst_153 : f32 to vector<2x128xf32>
    %605 = arith.subf %604, %603 : vector<2x128xf32>
    %606 = math.exp %605 : vector<2x128xf32>
    %cst_154 = arith.constant 1.000000e+00 : f32
    %607 = vector.broadcast %cst_154 : f32 to vector<2x128xf32>
    %608 = arith.addf %607, %606 : vector<2x128xf32>
    %609 = tpu.reciprocal %608 {approx = true} : vector<2x128xf32> -> vector<2x128xf32>
    %610 = vector.extract_strided_slice %595 {offsets = [0, 256], sizes = [2, 128], strides = [1, 1]} : vector<2x512xf32> to vector<2x128xf32>
    %611 = math.tanh %610 : vector<2x128xf32>
    %612 = vector.extract_strided_slice %595 {offsets = [0, 384], sizes = [2, 128], strides = [1, 1]} : vector<2x512xf32> to vector<2x128xf32>
    %cst_155 = arith.constant 0.000000e+00 : f32
    %613 = vector.broadcast %cst_155 : f32 to vector<2x128xf32>
    %614 = arith.subf %613, %612 : vector<2x128xf32>
    %615 = math.exp %614 : vector<2x128xf32>
    %cst_156 = arith.constant 1.000000e+00 : f32
    %616 = vector.broadcast %cst_156 : f32 to vector<2x128xf32>
    %617 = arith.addf %616, %615 : vector<2x128xf32>
    %618 = tpu.reciprocal %617 {approx = true} : vector<2x128xf32> -> vector<2x128xf32>
    %619 = arith.mulf %609, %589 : vector<2x128xf32>
    %620 = arith.mulf %602, %611 : vector<2x128xf32>
    %621 = arith.addf %619, %620 : vector<2x128xf32>
    %622 = math.tanh %621 : vector<2x128xf32>
    %623 = arith.mulf %618, %622 : vector<2x128xf32>
    %624 = vector.extract_strided_slice %557 {offsets = [4, 0], sizes = [2, 512], strides = [1, 1]} : vector<16x512xf32> to vector<2x512xf32>
    %625 = arith.truncf %623 : vector<2x128xf32> to vector<2x128xbf16>
    %cst_157 = arith.constant dense<0.000000e+00> : vector<2x512xf32>
    %626 = tpu.matmul %625, %553, %cst_157 {dimension_numbers = #tpu.dot_dimension_numbers<[1], [0], [0], [1], [0, 0, 1, 1], [], []>} : vector<2x128xbf16>, vector<128x512xbf16>, vector<2x512xf32> -> vector<2x512xf32>
    %627 = arith.addf %624, %626 : vector<2x512xf32>
    %628 = vector.extract_strided_slice %627 {offsets = [0, 0], sizes = [2, 128], strides = [1, 1]} : vector<2x512xf32> to vector<2x128xf32>
    %cst_158 = arith.constant 0.000000e+00 : f32
    %629 = vector.broadcast %cst_158 : f32 to vector<2x128xf32>
    %630 = arith.subf %629, %628 : vector<2x128xf32>
    %631 = math.exp %630 : vector<2x128xf32>
    %cst_159 = arith.constant 1.000000e+00 : f32
    %632 = vector.broadcast %cst_159 : f32 to vector<2x128xf32>
    %633 = arith.addf %632, %631 : vector<2x128xf32>
    %634 = tpu.reciprocal %633 {approx = true} : vector<2x128xf32> -> vector<2x128xf32>
    %635 = vector.extract_strided_slice %627 {offsets = [0, 128], sizes = [2, 128], strides = [1, 1]} : vector<2x512xf32> to vector<2x128xf32>
    %cst_160 = arith.constant 0.000000e+00 : f32
    %636 = vector.broadcast %cst_160 : f32 to vector<2x128xf32>
    %637 = arith.subf %636, %635 : vector<2x128xf32>
    %638 = math.exp %637 : vector<2x128xf32>
    %cst_161 = arith.constant 1.000000e+00 : f32
    %639 = vector.broadcast %cst_161 : f32 to vector<2x128xf32>
    %640 = arith.addf %639, %638 : vector<2x128xf32>
    %641 = tpu.reciprocal %640 {approx = true} : vector<2x128xf32> -> vector<2x128xf32>
    %642 = vector.extract_strided_slice %627 {offsets = [0, 256], sizes = [2, 128], strides = [1, 1]} : vector<2x512xf32> to vector<2x128xf32>
    %643 = math.tanh %642 : vector<2x128xf32>
    %644 = vector.extract_strided_slice %627 {offsets = [0, 384], sizes = [2, 128], strides = [1, 1]} : vector<2x512xf32> to vector<2x128xf32>
    %cst_162 = arith.constant 0.000000e+00 : f32
    %645 = vector.broadcast %cst_162 : f32 to vector<2x128xf32>
    %646 = arith.subf %645, %644 : vector<2x128xf32>
    %647 = math.exp %646 : vector<2x128xf32>
    %cst_163 = arith.constant 1.000000e+00 : f32
    %648 = vector.broadcast %cst_163 : f32 to vector<2x128xf32>
    %649 = arith.addf %648, %647 : vector<2x128xf32>
    %650 = tpu.reciprocal %649 {approx = true} : vector<2x128xf32> -> vector<2x128xf32>
    %651 = arith.mulf %641, %621 : vector<2x128xf32>
    %652 = arith.mulf %634, %643 : vector<2x128xf32>
    %653 = arith.addf %651, %652 : vector<2x128xf32>
    %654 = math.tanh %653 : vector<2x128xf32>
    %655 = arith.mulf %650, %654 : vector<2x128xf32>
    %656 = vector.extract_strided_slice %557 {offsets = [6, 0], sizes = [2, 512], strides = [1, 1]} : vector<16x512xf32> to vector<2x512xf32>
    %657 = arith.truncf %655 : vector<2x128xf32> to vector<2x128xbf16>
    %cst_164 = arith.constant dense<0.000000e+00> : vector<2x512xf32>
    %658 = tpu.matmul %657, %553, %cst_164 {dimension_numbers = #tpu.dot_dimension_numbers<[1], [0], [0], [1], [0, 0, 1, 1], [], []>} : vector<2x128xbf16>, vector<128x512xbf16>, vector<2x512xf32> -> vector<2x512xf32>
    %659 = arith.addf %656, %658 : vector<2x512xf32>
    %660 = vector.extract_strided_slice %659 {offsets = [0, 0], sizes = [2, 128], strides = [1, 1]} : vector<2x512xf32> to vector<2x128xf32>
    %cst_165 = arith.constant 0.000000e+00 : f32
    %661 = vector.broadcast %cst_165 : f32 to vector<2x128xf32>
    %662 = arith.subf %661, %660 : vector<2x128xf32>
    %663 = math.exp %662 : vector<2x128xf32>
    %cst_166 = arith.constant 1.000000e+00 : f32
    %664 = vector.broadcast %cst_166 : f32 to vector<2x128xf32>
    %665 = arith.addf %664, %663 : vector<2x128xf32>
    %666 = tpu.reciprocal %665 {approx = true} : vector<2x128xf32> -> vector<2x128xf32>
    %667 = vector.extract_strided_slice %659 {offsets = [0, 128], sizes = [2, 128], strides = [1, 1]} : vector<2x512xf32> to vector<2x128xf32>
    %cst_167 = arith.constant 0.000000e+00 : f32
    %668 = vector.broadcast %cst_167 : f32 to vector<2x128xf32>
    %669 = arith.subf %668, %667 : vector<2x128xf32>
    %670 = math.exp %669 : vector<2x128xf32>
    %cst_168 = arith.constant 1.000000e+00 : f32
    %671 = vector.broadcast %cst_168 : f32 to vector<2x128xf32>
    %672 = arith.addf %671, %670 : vector<2x128xf32>
    %673 = tpu.reciprocal %672 {approx = true} : vector<2x128xf32> -> vector<2x128xf32>
    %674 = vector.extract_strided_slice %659 {offsets = [0, 256], sizes = [2, 128], strides = [1, 1]} : vector<2x512xf32> to vector<2x128xf32>
    %675 = math.tanh %674 : vector<2x128xf32>
    %676 = vector.extract_strided_slice %659 {offsets = [0, 384], sizes = [2, 128], strides = [1, 1]} : vector<2x512xf32> to vector<2x128xf32>
    %cst_169 = arith.constant 0.000000e+00 : f32
    %677 = vector.broadcast %cst_169 : f32 to vector<2x128xf32>
    %678 = arith.subf %677, %676 : vector<2x128xf32>
    %679 = math.exp %678 : vector<2x128xf32>
    %cst_170 = arith.constant 1.000000e+00 : f32
    %680 = vector.broadcast %cst_170 : f32 to vector<2x128xf32>
    %681 = arith.addf %680, %679 : vector<2x128xf32>
    %682 = tpu.reciprocal %681 {approx = true} : vector<2x128xf32> -> vector<2x128xf32>
    %683 = arith.mulf %673, %653 : vector<2x128xf32>
    %684 = arith.mulf %666, %675 : vector<2x128xf32>
    %685 = arith.addf %683, %684 : vector<2x128xf32>
    %686 = math.tanh %685 : vector<2x128xf32>
    %687 = arith.mulf %682, %686 : vector<2x128xf32>
    %688 = vector.extract_strided_slice %557 {offsets = [8, 0], sizes = [2, 512], strides = [1, 1]} : vector<16x512xf32> to vector<2x512xf32>
    %689 = arith.truncf %687 : vector<2x128xf32> to vector<2x128xbf16>
    %cst_171 = arith.constant dense<0.000000e+00> : vector<2x512xf32>
    %690 = tpu.matmul %689, %553, %cst_171 {dimension_numbers = #tpu.dot_dimension_numbers<[1], [0], [0], [1], [0, 0, 1, 1], [], []>} : vector<2x128xbf16>, vector<128x512xbf16>, vector<2x512xf32> -> vector<2x512xf32>
    %691 = arith.addf %688, %690 : vector<2x512xf32>
    %692 = vector.extract_strided_slice %691 {offsets = [0, 0], sizes = [2, 128], strides = [1, 1]} : vector<2x512xf32> to vector<2x128xf32>
    %cst_172 = arith.constant 0.000000e+00 : f32
    %693 = vector.broadcast %cst_172 : f32 to vector<2x128xf32>
    %694 = arith.subf %693, %692 : vector<2x128xf32>
    %695 = math.exp %694 : vector<2x128xf32>
    %cst_173 = arith.constant 1.000000e+00 : f32
    %696 = vector.broadcast %cst_173 : f32 to vector<2x128xf32>
    %697 = arith.addf %696, %695 : vector<2x128xf32>
    %698 = tpu.reciprocal %697 {approx = true} : vector<2x128xf32> -> vector<2x128xf32>
    %699 = vector.extract_strided_slice %691 {offsets = [0, 128], sizes = [2, 128], strides = [1, 1]} : vector<2x512xf32> to vector<2x128xf32>
    %cst_174 = arith.constant 0.000000e+00 : f32
    %700 = vector.broadcast %cst_174 : f32 to vector<2x128xf32>
    %701 = arith.subf %700, %699 : vector<2x128xf32>
    %702 = math.exp %701 : vector<2x128xf32>
    %cst_175 = arith.constant 1.000000e+00 : f32
    %703 = vector.broadcast %cst_175 : f32 to vector<2x128xf32>
    %704 = arith.addf %703, %702 : vector<2x128xf32>
    %705 = tpu.reciprocal %704 {approx = true} : vector<2x128xf32> -> vector<2x128xf32>
    %706 = vector.extract_strided_slice %691 {offsets = [0, 256], sizes = [2, 128], strides = [1, 1]} : vector<2x512xf32> to vector<2x128xf32>
    %707 = math.tanh %706 : vector<2x128xf32>
    %708 = vector.extract_strided_slice %691 {offsets = [0, 384], sizes = [2, 128], strides = [1, 1]} : vector<2x512xf32> to vector<2x128xf32>
    %cst_176 = arith.constant 0.000000e+00 : f32
    %709 = vector.broadcast %cst_176 : f32 to vector<2x128xf32>
    %710 = arith.subf %709, %708 : vector<2x128xf32>
    %711 = math.exp %710 : vector<2x128xf32>
    %cst_177 = arith.constant 1.000000e+00 : f32
    %712 = vector.broadcast %cst_177 : f32 to vector<2x128xf32>
    %713 = arith.addf %712, %711 : vector<2x128xf32>
    %714 = tpu.reciprocal %713 {approx = true} : vector<2x128xf32> -> vector<2x128xf32>
    %715 = arith.mulf %705, %685 : vector<2x128xf32>
    %716 = arith.mulf %698, %707 : vector<2x128xf32>
    %717 = arith.addf %715, %716 : vector<2x128xf32>
    %718 = math.tanh %717 : vector<2x128xf32>
    %719 = arith.mulf %714, %718 : vector<2x128xf32>
    %720 = vector.extract_strided_slice %557 {offsets = [10, 0], sizes = [2, 512], strides = [1, 1]} : vector<16x512xf32> to vector<2x512xf32>
    %721 = arith.truncf %719 : vector<2x128xf32> to vector<2x128xbf16>
    %cst_178 = arith.constant dense<0.000000e+00> : vector<2x512xf32>
    %722 = tpu.matmul %721, %553, %cst_178 {dimension_numbers = #tpu.dot_dimension_numbers<[1], [0], [0], [1], [0, 0, 1, 1], [], []>} : vector<2x128xbf16>, vector<128x512xbf16>, vector<2x512xf32> -> vector<2x512xf32>
    %723 = arith.addf %720, %722 : vector<2x512xf32>
    %724 = vector.extract_strided_slice %723 {offsets = [0, 0], sizes = [2, 128], strides = [1, 1]} : vector<2x512xf32> to vector<2x128xf32>
    %cst_179 = arith.constant 0.000000e+00 : f32
    %725 = vector.broadcast %cst_179 : f32 to vector<2x128xf32>
    %726 = arith.subf %725, %724 : vector<2x128xf32>
    %727 = math.exp %726 : vector<2x128xf32>
    %cst_180 = arith.constant 1.000000e+00 : f32
    %728 = vector.broadcast %cst_180 : f32 to vector<2x128xf32>
    %729 = arith.addf %728, %727 : vector<2x128xf32>
    %730 = tpu.reciprocal %729 {approx = true} : vector<2x128xf32> -> vector<2x128xf32>
    %731 = vector.extract_strided_slice %723 {offsets = [0, 128], sizes = [2, 128], strides = [1, 1]} : vector<2x512xf32> to vector<2x128xf32>
    %cst_181 = arith.constant 0.000000e+00 : f32
    %732 = vector.broadcast %cst_181 : f32 to vector<2x128xf32>
    %733 = arith.subf %732, %731 : vector<2x128xf32>
    %734 = math.exp %733 : vector<2x128xf32>
    %cst_182 = arith.constant 1.000000e+00 : f32
    %735 = vector.broadcast %cst_182 : f32 to vector<2x128xf32>
    %736 = arith.addf %735, %734 : vector<2x128xf32>
    %737 = tpu.reciprocal %736 {approx = true} : vector<2x128xf32> -> vector<2x128xf32>
    %738 = vector.extract_strided_slice %723 {offsets = [0, 256], sizes = [2, 128], strides = [1, 1]} : vector<2x512xf32> to vector<2x128xf32>
    %739 = math.tanh %738 : vector<2x128xf32>
    %740 = vector.extract_strided_slice %723 {offsets = [0, 384], sizes = [2, 128], strides = [1, 1]} : vector<2x512xf32> to vector<2x128xf32>
    %cst_183 = arith.constant 0.000000e+00 : f32
    %741 = vector.broadcast %cst_183 : f32 to vector<2x128xf32>
    %742 = arith.subf %741, %740 : vector<2x128xf32>
    %743 = math.exp %742 : vector<2x128xf32>
    %cst_184 = arith.constant 1.000000e+00 : f32
    %744 = vector.broadcast %cst_184 : f32 to vector<2x128xf32>
    %745 = arith.addf %744, %743 : vector<2x128xf32>
    %746 = tpu.reciprocal %745 {approx = true} : vector<2x128xf32> -> vector<2x128xf32>
    %747 = arith.mulf %737, %717 : vector<2x128xf32>
    %748 = arith.mulf %730, %739 : vector<2x128xf32>
    %749 = arith.addf %747, %748 : vector<2x128xf32>
    %750 = math.tanh %749 : vector<2x128xf32>
    %751 = arith.mulf %746, %750 : vector<2x128xf32>
    %752 = vector.extract_strided_slice %557 {offsets = [12, 0], sizes = [2, 512], strides = [1, 1]} : vector<16x512xf32> to vector<2x512xf32>
    %753 = arith.truncf %751 : vector<2x128xf32> to vector<2x128xbf16>
    %cst_185 = arith.constant dense<0.000000e+00> : vector<2x512xf32>
    %754 = tpu.matmul %753, %553, %cst_185 {dimension_numbers = #tpu.dot_dimension_numbers<[1], [0], [0], [1], [0, 0, 1, 1], [], []>} : vector<2x128xbf16>, vector<128x512xbf16>, vector<2x512xf32> -> vector<2x512xf32>
    %755 = arith.addf %752, %754 : vector<2x512xf32>
    %756 = vector.extract_strided_slice %755 {offsets = [0, 0], sizes = [2, 128], strides = [1, 1]} : vector<2x512xf32> to vector<2x128xf32>
    %cst_186 = arith.constant 0.000000e+00 : f32
    %757 = vector.broadcast %cst_186 : f32 to vector<2x128xf32>
    %758 = arith.subf %757, %756 : vector<2x128xf32>
    %759 = math.exp %758 : vector<2x128xf32>
    %cst_187 = arith.constant 1.000000e+00 : f32
    %760 = vector.broadcast %cst_187 : f32 to vector<2x128xf32>
    %761 = arith.addf %760, %759 : vector<2x128xf32>
    %762 = tpu.reciprocal %761 {approx = true} : vector<2x128xf32> -> vector<2x128xf32>
    %763 = vector.extract_strided_slice %755 {offsets = [0, 128], sizes = [2, 128], strides = [1, 1]} : vector<2x512xf32> to vector<2x128xf32>
    %cst_188 = arith.constant 0.000000e+00 : f32
    %764 = vector.broadcast %cst_188 : f32 to vector<2x128xf32>
    %765 = arith.subf %764, %763 : vector<2x128xf32>
    %766 = math.exp %765 : vector<2x128xf32>
    %cst_189 = arith.constant 1.000000e+00 : f32
    %767 = vector.broadcast %cst_189 : f32 to vector<2x128xf32>
    %768 = arith.addf %767, %766 : vector<2x128xf32>
    %769 = tpu.reciprocal %768 {approx = true} : vector<2x128xf32> -> vector<2x128xf32>
    %770 = vector.extract_strided_slice %755 {offsets = [0, 256], sizes = [2, 128], strides = [1, 1]} : vector<2x512xf32> to vector<2x128xf32>
    %771 = math.tanh %770 : vector<2x128xf32>
    %772 = vector.extract_strided_slice %755 {offsets = [0, 384], sizes = [2, 128], strides = [1, 1]} : vector<2x512xf32> to vector<2x128xf32>
    %cst_190 = arith.constant 0.000000e+00 : f32
    %773 = vector.broadcast %cst_190 : f32 to vector<2x128xf32>
    %774 = arith.subf %773, %772 : vector<2x128xf32>
    %775 = math.exp %774 : vector<2x128xf32>
    %cst_191 = arith.constant 1.000000e+00 : f32
    %776 = vector.broadcast %cst_191 : f32 to vector<2x128xf32>
    %777 = arith.addf %776, %775 : vector<2x128xf32>
    %778 = tpu.reciprocal %777 {approx = true} : vector<2x128xf32> -> vector<2x128xf32>
    %779 = arith.mulf %769, %749 : vector<2x128xf32>
    %780 = arith.mulf %762, %771 : vector<2x128xf32>
    %781 = arith.addf %779, %780 : vector<2x128xf32>
    %782 = math.tanh %781 : vector<2x128xf32>
    %783 = arith.mulf %778, %782 : vector<2x128xf32>
    %784 = vector.extract_strided_slice %557 {offsets = [14, 0], sizes = [2, 512], strides = [1, 1]} : vector<16x512xf32> to vector<2x512xf32>
    %785 = arith.truncf %783 : vector<2x128xf32> to vector<2x128xbf16>
    %cst_192 = arith.constant dense<0.000000e+00> : vector<2x512xf32>
    %786 = tpu.matmul %785, %553, %cst_192 {dimension_numbers = #tpu.dot_dimension_numbers<[1], [0], [0], [1], [0, 0, 1, 1], [], []>} : vector<2x128xbf16>, vector<128x512xbf16>, vector<2x512xf32> -> vector<2x512xf32>
    %787 = arith.addf %784, %786 : vector<2x512xf32>
    %788 = vector.extract_strided_slice %787 {offsets = [0, 0], sizes = [2, 128], strides = [1, 1]} : vector<2x512xf32> to vector<2x128xf32>
    %cst_193 = arith.constant 0.000000e+00 : f32
    %789 = vector.broadcast %cst_193 : f32 to vector<2x128xf32>
    %790 = arith.subf %789, %788 : vector<2x128xf32>
    %791 = math.exp %790 : vector<2x128xf32>
    %cst_194 = arith.constant 1.000000e+00 : f32
    %792 = vector.broadcast %cst_194 : f32 to vector<2x128xf32>
    %793 = arith.addf %792, %791 : vector<2x128xf32>
    %794 = tpu.reciprocal %793 {approx = true} : vector<2x128xf32> -> vector<2x128xf32>
    %795 = vector.extract_strided_slice %787 {offsets = [0, 128], sizes = [2, 128], strides = [1, 1]} : vector<2x512xf32> to vector<2x128xf32>
    %cst_195 = arith.constant 0.000000e+00 : f32
    %796 = vector.broadcast %cst_195 : f32 to vector<2x128xf32>
    %797 = arith.subf %796, %795 : vector<2x128xf32>
    %798 = math.exp %797 : vector<2x128xf32>
    %cst_196 = arith.constant 1.000000e+00 : f32
    %799 = vector.broadcast %cst_196 : f32 to vector<2x128xf32>
    %800 = arith.addf %799, %798 : vector<2x128xf32>
    %801 = tpu.reciprocal %800 {approx = true} : vector<2x128xf32> -> vector<2x128xf32>
    %802 = vector.extract_strided_slice %787 {offsets = [0, 256], sizes = [2, 128], strides = [1, 1]} : vector<2x512xf32> to vector<2x128xf32>
    %803 = math.tanh %802 : vector<2x128xf32>
    %804 = vector.extract_strided_slice %787 {offsets = [0, 384], sizes = [2, 128], strides = [1, 1]} : vector<2x512xf32> to vector<2x128xf32>
    %cst_197 = arith.constant 0.000000e+00 : f32
    %805 = vector.broadcast %cst_197 : f32 to vector<2x128xf32>
    %806 = arith.subf %805, %804 : vector<2x128xf32>
    %807 = math.exp %806 : vector<2x128xf32>
    %cst_198 = arith.constant 1.000000e+00 : f32
    %808 = vector.broadcast %cst_198 : f32 to vector<2x128xf32>
    %809 = arith.addf %808, %807 : vector<2x128xf32>
    %810 = tpu.reciprocal %809 {approx = true} : vector<2x128xf32> -> vector<2x128xf32>
    %811 = arith.mulf %801, %781 : vector<2x128xf32>
    %812 = arith.mulf %794, %803 : vector<2x128xf32>
    %813 = arith.addf %811, %812 : vector<2x128xf32>
    %814 = math.tanh %813 : vector<2x128xf32>
    %815 = arith.mulf %810, %814 : vector<2x128xf32>
    %c4_i32_199 = arith.constant 4 : i32
    %816 = tpu.memref_slice %arg20[%c4_i32_199] : memref<5x!tpu.dma_semaphore, #tpu.memory_space<semaphore_mem>> -> memref<1x!tpu.dma_semaphore, #tpu.memory_space<semaphore_mem>>
    %817 = tpu.memref_squeeze %816 : memref<1x!tpu.dma_semaphore, #tpu.memory_space<semaphore_mem>> -> memref<!tpu.dma_semaphore, #tpu.memory_space<semaphore_mem>>
    tpu.wait_dma2 semaphore(%817 : memref<!tpu.dma_semaphore, #tpu.memory_space<semaphore_mem>>) src(%arg13 : memref<128x1024xbf16, #tpu.memory_space<any>>) dst(%arg19 : memref<128x1024xbf16, #tpu.memory_space<vmem>>)
    %818 = arith.truncf %815 : vector<2x128xf32> to vector<2x128xbf16>
    %c0_200 = arith.constant 0 : index
    %c0_201 = arith.constant 0 : index
    %819 = vector.load %arg19[%c0_200, %c0_201] : memref<128x1024xbf16, #tpu.memory_space<vmem>>, vector<128x1024xbf16>
    %cst_202 = arith.constant dense<0.000000e+00> : vector<2x1024xf32>
    %820 = tpu.matmul %818, %819, %cst_202 {dimension_numbers = #tpu.dot_dimension_numbers<[1], [0], [0], [1], [0, 0, 1, 1], [], []>} : vector<2x128xbf16>, vector<128x1024xbf16>, vector<2x1024xf32> -> vector<2x1024xf32>
    %c0_203 = arith.constant 0 : index
    %c0_204 = arith.constant 0 : index
    %821 = vector.load %arg6[%c0_203, %c0_204] : memref<1x1024xf32, #tpu.memory_space<vmem>>, vector<1x1024xf32>
    %822 = vector.broadcast %821 : vector<1x1024xf32> to vector<2x1024xf32>
    %823 = arith.addf %820, %822 : vector<2x1024xf32>
    %cst_205 = arith.constant 0.000000e+00 : f32
    %824 = vector.broadcast %cst_205 : f32 to vector<2x1024xf32>
    %825 = arith.maximumf %823, %824 : vector<2x1024xf32>
    %c0_206 = arith.constant 0 : index
    %c0_207 = arith.constant 0 : index
    %826 = vector.load %arg7[%c0_206, %c0_207] : memref<1024x5xf32, #tpu.memory_space<vmem>>, vector<1024x5xf32>
    %cst_208 = arith.constant dense<0.000000e+00> : vector<2x5xf32>
    %827 = tpu.matmul %825, %826, %cst_208 {dimension_numbers = #tpu.dot_dimension_numbers<[1], [0], [0], [1], [0, 0, 1, 1], [], []>} : vector<2x1024xf32>, vector<1024x5xf32>, vector<2x5xf32> -> vector<2x5xf32>
    %c0_209 = arith.constant 0 : index
    %c0_210 = arith.constant 0 : index
    %828 = vector.load %arg8[%c0_209, %c0_210] : memref<1x5xf32, #tpu.memory_space<vmem>>, vector<1x5xf32>
    %829 = vector.broadcast %828 : vector<1x5xf32> to vector<2x5xf32>
    %830 = arith.addf %827, %829 : vector<2x5xf32>
    %c0_211 = arith.constant 0 : index
    %c0_212 = arith.constant 0 : index
    %831 = vector.load %arg14[%c0_211, %c0_212] : memref<2x5xf32, #tpu.memory_space<vmem>>, vector<2x5xf32>
    tpu.vector_store %arg14[%c0_211, %c0_212], %830 {strides = array<i32>} : memref<2x5xf32, #tpu.memory_space<vmem>>, vector<2x5xf32>,
    return
  }
}

</mosaic_0001>

<bundles_post_ra>
// kernel: lstm_deep_forward.1
= control target key start
LH: loop header
LB: loop body
LE: loop exit
PB: predicated region body
PF: predicated region fallthrough
CT: control target
= control target key end

     0   :  { %19 = vsyncpa [#allocation9], 0  ;;  %s8506_s0 = inlined_call_operand.vmem [shape: f32[16,16], index: 0, kind: input, shape index: {}]   ;;  %s8507_s1 = inlined_call_operand.vmem [shape: bf16[16,512], index: 1, kind: input, shape index: {}]   ;;  %s8508_s2 = inlined_call_operand.vmem [shape: bf16[128,512], index: 2, kind: input, shape index: {}]   ;;  %s8509_s3 = inlined_call_operand.vmem [shape: f32[1,512], index: 3, kind: input, shape index: {}]   ;;  %s8510_s4 = inlined_call_operand.vmem [shape: f32[1,512], index: 4, kind: input, shape index: {}]   ;;  %s8511_s5 = inlined_call_operand.vmem [shape: f32[1,512], index: 5, kind: input, shape index: {}]   ;;  %s8512_s6 = inlined_call_operand.vmem [shape: f32[1,1024], index: 6, kind: input, shape index: {}]   ;;  %s8513_s7 = inlined_call_operand.vmem [shape: f32[1024,5], index: 7, kind: input, shape index: {}]   ;;  %s8514_s8 = inlined_call_operand.vmem [shape: f32[1,5], index: 8, kind: input, shape index: {}]   ;;  %s8515_s9 = inlined_call_operand.vmem [shape: bf16[128,512], index: 9, kind: input, shape index: {}]   ;;  %s8516_s10 = inlined_call_operand.hbm [shape: bf16[128,512], index: 10, kind: input, shape index: {}]   ;;  %s8517_s11 = inlined_call_operand.hbm [shape: bf16[128,512], index: 11, kind: input, shape index: {}]   ;;  %s8518_s12 = inlined_call_operand.hbm [shape: bf16[128,512], index: 12, kind: input, shape index: {}]   ;;  %s8519_s13 = inlined_call_operand.vmem [shape: bf16[128,1024], index: 13, kind: input, shape index: {}]   ;;  %s8520_s14 = inlined_call_operand.hbm [shape: f32[2,5], index: 14, kind: output, shape index: {}]  }
   0x1   :  { %v49_v0 = vld [vmem:[%s8515_s9] sm:$0xff]  ;;  %v51_v1 = vld [vmem:[%s8515_s9 + $0x8] sm:$0xff]  ;;  %v53_v2 = vld [vmem:[%s8515_s9 + $0x10] sm:$0xff] }
   0x2   :  { %50 = vst [vmem:[#allocation2] sm:$0xff] %v49_v0  ;;  %v55_v3 = vld [vmem:[%s8515_s9 + $0x18] sm:$0xff]  ;;  %v57_v4 = vld [vmem:[%s8515_s9 + $0x20] sm:$0xff]  ;;  %v59_v5 = vld [vmem:[%s8515_s9 + $0x28] sm:$0xff] }
   0x3   :  { %52 = vst [vmem:[#allocation2 + $0x8] sm:$0xff] %v51_v1  ;;  %v61_v6 = vld [vmem:[%s8515_s9 + $0x30] sm:$0xff]  ;;  %v63_v7 = vld [vmem:[%s8515_s9 + $0x38] sm:$0xff]  ;;  %v65_v8 = vld [vmem:[%s8515_s9 + $0x40] sm:$0xff] }
   0x4   :  { %54 = vst [vmem:[#allocation2 + $0x10] sm:$0xff] %v53_v2  ;;  %v67_v9 = vld [vmem:[%s8515_s9 + $0x48] sm:$0xff]  ;;  %v69_v10 = vld [vmem:[%s8515_s9 + $0x50] sm:$0xff]  ;;  %v71_v11 = vld [vmem:[%s8515_s9 + $0x58] sm:$0xff] }
   0x5   :  { %56 = vst [vmem:[#allocation2 + $0x18] sm:$0xff] %v55_v3  ;;  %v73_v12 = vld [vmem:[%s8515_s9 + $0x60] sm:$0xff]  ;;  %v75_v13 = vld [vmem:[%s8515_s9 + $0x68] sm:$0xff]  ;;  %v77_v14 = vld [vmem:[%s8515_s9 + $0x70] sm:$0xff] }
   0x6   :  { %58 = vst [vmem:[#allocation2 + $0x20] sm:$0xff] %v57_v4  ;;  %v79_v15 = vld [vmem:[%s8515_s9 + $0x78] sm:$0xff]  ;;  %v81_v16 = vld [vmem:[%s8515_s9 + $0x80] sm:$0xff]  ;;  %v83_v17 = vld [vmem:[%s8515_s9 + $0x88] sm:$0xff] }
   0x7   :  { %60 = vst [vmem:[#allocation2 + $0x28] sm:$0xff] %v59_v5  ;;  %v85_v18 = vld [vmem:[%s8515_s9 + $0x90] sm:$0xff]  ;;  %v87_v19 = vld [vmem:[%s8515_s9 + $0x98] sm:$0xff]  ;;  %v89_v20 = vld [vmem:[%s8515_s9 + $0xa0] sm:$0xff] }
   0x8   :  { %62 = vst [vmem:[#allocation2 + $0x30] sm:$0xff] %v61_v6  ;;  %v91_v21 = vld [vmem:[%s8515_s9 + $0xa8] sm:$0xff]  ;;  %v93_v22 = vld [vmem:[%s8515_s9 + $0xb0] sm:$0xff]  ;;  %v95_v23 = vld [vmem:[%s8515_s9 + $0xb8] sm:$0xff] }
   0x9   :  { %64 = vst [vmem:[#allocation2 + $0x38] sm:$0xff] %v63_v7  ;;  %v97_v24 = vld [vmem:[%s8515_s9 + $0xc0] sm:$0xff]  ;;  %v99_v25 = vld [vmem:[%s8515_s9 + $0xc8] sm:$0xff]  ;;  %v101_v26 = vld [vmem:[%s8515_s9 + $0xd0] sm:$0xff] }
   0xa   :  { %66 = vst [vmem:[#allocation2 + $0x40] sm:$0xff] %v65_v8  ;;  %v103_v27 = vld [vmem:[%s8515_s9 + $0xd8] sm:$0xff]  ;;  %v105_v28 = vld [vmem:[%s8515_s9 + $0xe0] sm:$0xff]  ;;  %v107_v29 = vld [vmem:[%s8515_s9 + $0xe8] sm:$0xff] }
   0xb   :  { %68 = vst [vmem:[#allocation2 + $0x48] sm:$0xff] %v67_v9  ;;  %v109_v30 = vld [vmem:[%s8515_s9 + $0xf0] sm:$0xff]  ;;  %v111_v31 = vld [vmem:[%s8515_s9 + $0xf8] sm:$0xff] }
   0xc   :  { %70 = vst [vmem:[#allocation2 + $0x50] sm:$0xff] %v69_v10 }
   0xd   :  { %72 = vst [vmem:[#allocation2 + $0x58] sm:$0xff] %v71_v11 }
   0xe   :  { %74 = vst [vmem:[#allocation2 + $0x60] sm:$0xff] %v73_v12 }
   0xf   :  { %76 = vst [vmem:[#allocation2 + $0x68] sm:$0xff] %v75_v13 }
  0x10   :  { %78 = vst [vmem:[#allocation2 + $0x70] sm:$0xff] %v77_v14 }
  0x11   :  { %80 = vst [vmem:[#allocation2 + $0x78] sm:$0xff] %v79_v15 }
  0x12   :  { %82 = vst [vmem:[#allocation2 + $0x80] sm:$0xff] %v81_v16 }
  0x13   :  { %84 = vst [vmem:[#allocation2 + $0x88] sm:$0xff] %v83_v17 }
  0x14   :  { %86 = vst [vmem:[#allocation2 + $0x90] sm:$0xff] %v85_v18 }
  0x15   :  { %88 = vst [vmem:[#allocation2 + $0x98] sm:$0xff] %v87_v19 }
  0x16   :  { %90 = vst [vmem:[#allocation2 + $0xa0] sm:$0xff] %v89_v20 }
  0x17   :  { %92 = vst [vmem:[#allocation2 + $0xa8] sm:$0xff] %v91_v21 }
  0x18   :  { %94 = vst [vmem:[#allocation2 + $0xb0] sm:$0xff] %v93_v22 }
  0x19   :  { %96 = vst [vmem:[#allocation2 + $0xb8] sm:$0xff] %v95_v23 }
  0x1a   :  { %98 = vst [vmem:[#allocation2 + $0xc0] sm:$0xff] %v97_v24 }
  0x1b   :  { %100 = vst [vmem:[#allocation2 + $0xc8] sm:$0xff] %v99_v25 }
  0x1c   :  { %102 = vst [vmem:[#allocation2 + $0xd0] sm:$0xff] %v101_v26 }
  0x1d   :  { %104 = vst [vmem:[#allocation2 + $0xd8] sm:$0xff] %v103_v27 }
  0x1e   :  { %106 = vst [vmem:[#allocation2 + $0xe0] sm:$0xff] %v105_v28 }
  0x1f   :  { %108 = vst [vmem:[#allocation2 + $0xe8] sm:$0xff] %v107_v29 }
  0x20   :  { %110 = vst [vmem:[#allocation2 + $0xf0] sm:$0xff] %v109_v30 }
  0x21   :  { %112 = vst [vmem:[#allocation2 + $0xf8] sm:$0xff] %v111_v31 }
  0x22   :  { %118 = vsyncadd [#allocation7], 4096  ;;  %s127_s15 = sshll.u32 %s8516_s10, 4  ;;  %v172_v32 = vld [vmem:[%s8519_s13] sm:$0xff]  ;;  %v174_v33 = vld [vmem:[%s8519_s13 + $0x8] sm:$0xff]  ;;  %s6235_s20 = smov [#allocation3]   ;;  %s128_s15 = int_to_ptr.hbm [resolvable:$true] %s127_s15 }
  0x23   :  { %s129_s21 = sshll.u32 %s6235_s20, 4  ;;  %173 = vst [vmem:[#allocation6] sm:$0xff] %v172_v32  ;;  %v176_v34 = vld [vmem:[%s8519_s13 + $0x10] sm:$0xff]  ;;  %v178_v35 = vld [vmem:[%s8519_s13 + $0x18] sm:$0xff]  ;;  %s141_s26 = sshll.u32 %s8517_s11, 4  ;;  %v180_v36 = vld [vmem:[%s8519_s13 + $0x20] sm:$0xff]  ;;  %s130_s21 = int_to_ptr.vmem [resolvable:$true] %s129_s21  ;;  %s142_s26 = int_to_ptr.hbm [resolvable:$true] %s141_s26 }
  0x24   :  { %175 = vst [vmem:[#allocation6 + $0x8] sm:$0xff] %v174_v33  ;;  %132 = dma.hbm_to_vmem [thread:$0]  %s128_s15, 4096, %s130_s21, [#allocation7 + $0x1]  ;;  %v182_v37 = vld [vmem:[%s8519_s13 + $0x28] sm:$0xff]  ;;  %v184_v38 = vld [vmem:[%s8519_s13 + $0x30] sm:$0xff]  ;;  %v186_v39 = vld [vmem:[%s8519_s13 + $0x38] sm:$0xff] }
  0x25   :  { %177 = vst [vmem:[#allocation6 + $0x10] sm:$0xff] %v176_v34  ;;  %s6236_s18 = smov [#allocation4]   ;;  %s155_s9 = sshll.u32 %s8518_s12, 4  ;;  %v188_v40 = vld [vmem:[%s8519_s13 + $0x40] sm:$0xff]  ;;  %v190_v41 = vld [vmem:[%s8519_s13 + $0x48] sm:$0xff]  ;;  %v192_v42 = vld [vmem:[%s8519_s13 + $0x50] sm:$0xff]  ;;  %s156_s9 = int_to_ptr.hbm [resolvable:$true] %s155_s9 }
  0x26   :  { %179 = vst [vmem:[#allocation6 + $0x18] sm:$0xff] %v178_v35  ;;  %s143_s19 = sshll.u32 %s6236_s18, 4  ;;  %s6237_s27 = smov [#allocation5]   ;;  %v194_v43 = vld [vmem:[%s8519_s13 + $0x58] sm:$0xff]  ;;  %v196_v44 = vld [vmem:[%s8519_s13 + $0x60] sm:$0xff]  ;;  %v198_v45 = vld [vmem:[%s8519_s13 + $0x68] sm:$0xff]  ;;  %s144_s19 = int_to_ptr.vmem [resolvable:$true] %s143_s19 }
  0x27   :  { %181 = vst [vmem:[#allocation6 + $0x20] sm:$0xff] %v180_v36  ;;  %146 = dma.hbm_to_vmem [thread:$0]  %s142_s26, 4096, %s144_s19, [#allocation7 + $0x2]  ;;  %v200_v46 = vld [vmem:[%s8519_s13 + $0x70] sm:$0xff]  ;;  %v202_v47 = vld [vmem:[%s8519_s13 + $0x78] sm:$0xff]  ;;  %v204_v48 = vld [vmem:[%s8519_s13 + $0x80] sm:$0xff] }
  0x28   :  { %183 = vst [vmem:[#allocation6 + $0x28] sm:$0xff] %v182_v37  ;;  %s157_s28 = sshll.u32 %s6237_s27, 4  ;;  %v206_v49 = vld [vmem:[%s8519_s13 + $0x88] sm:$0xff]  ;;  %v208_v50 = vld [vmem:[%s8519_s13 + $0x90] sm:$0xff]  ;;  %v210_v51 = vld [vmem:[%s8519_s13 + $0x98] sm:$0xff]  ;;  %s158_s28 = int_to_ptr.vmem [resolvable:$true] %s157_s28 }
  0x29   :  { %185 = vst [vmem:[#allocation6 + $0x30] sm:$0xff] %v184_v38  ;;  %160 = dma.hbm_to_vmem [thread:$0]  %s156_s9, 4096, %s158_s28, [#allocation7 + $0x3]  ;;  %v212_v52 = vld [vmem:[%s8519_s13 + $0xa0] sm:$0xff]  ;;  %v214_v53 = vld [vmem:[%s8519_s13 + $0xa8] sm:$0xff]  ;;  %v216_v54 = vld [vmem:[%s8519_s13 + $0xb0] sm:$0xff] }
  0x2a   :  { %187 = vst [vmem:[#allocation6 + $0x38] sm:$0xff] %v186_v39  ;;  %v218_v55 = vld [vmem:[%s8519_s13 + $0xb8] sm:$0xff]  ;;  %v220_v56 = vld [vmem:[%s8519_s13 + $0xc0] sm:$0xff]  ;;  %v222_v57 = vld [vmem:[%s8519_s13 + $0xc8] sm:$0xff] }
  0x2b   :  { %189 = vst [vmem:[#allocation6 + $0x40] sm:$0xff] %v188_v40  ;;  %v224_v58 = vld [vmem:[%s8519_s13 + $0xd0] sm:$0xff]  ;;  %v226_v59 = vld [vmem:[%s8519_s13 + $0xd8] sm:$0xff]  ;;  %v228_v60 = vld [vmem:[%s8519_s13 + $0xe0] sm:$0xff] }
  0x2c   :  { %191 = vst [vmem:[#allocation6 + $0x48] sm:$0xff] %v190_v41  ;;  %v230_v61 = vld [vmem:[%s8519_s13 + $0xe8] sm:$0xff]  ;;  %v232_v62 = vld [vmem:[%s8519_s13 + $0xf0] sm:$0xff]  ;;  %v234_v63 = vld [vmem:[%s8519_s13 + $0xf8] sm:$0xff] }
  0x2d   :  { %193 = vst [vmem:[#allocation6 + $0x50] sm:$0xff] %v192_v42  ;;  %v236_v0 = vld [vmem:[%s8519_s13 + $0x100] sm:$0xff]  ;;  %v238_v1 = vld [vmem:[%s8519_s13 + $0x108] sm:$0xff]  ;;  %v240_v2 = vld [vmem:[%s8519_s13 + $0x110] sm:$0xff] }
  0x2e   :  { %195 = vst [vmem:[#allocation6 + $0x58] sm:$0xff] %v194_v43  ;;  %v242_v3 = vld [vmem:[%s8519_s13 + $0x118] sm:$0xff]  ;;  %v244_v4 = vld [vmem:[%s8519_s13 + $0x120] sm:$0xff]  ;;  %v246_v5 = vld [vmem:[%s8519_s13 + $0x128] sm:$0xff] }
  0x2f   :  { %197 = vst [vmem:[#allocation6 + $0x60] sm:$0xff] %v196_v44  ;;  %v248_v6 = vld [vmem:[%s8519_s13 + $0x130] sm:$0xff]  ;;  %v250_v7 = vld [vmem:[%s8519_s13 + $0x138] sm:$0xff]  ;;  %v252_v8 = vld [vmem:[%s8519_s13 + $0x140] sm:$0xff] }
  0x30   :  { %199 = vst [vmem:[#allocation6 + $0x68] sm:$0xff] %v198_v45  ;;  %v254_v9 = vld [vmem:[%s8519_s13 + $0x148] sm:$0xff]  ;;  %v256_v10 = vld [vmem:[%s8519_s13 + $0x150] sm:$0xff]  ;;  %v258_v11 = vld [vmem:[%s8519_s13 + $0x158] sm:$0xff] }
  0x31   :  { %201 = vst [vmem:[#allocation6 + $0x70] sm:$0xff] %v200_v46  ;;  %v260_v12 = vld [vmem:[%s8519_s13 + $0x160] sm:$0xff]  ;;  %v262_v13 = vld [vmem:[%s8519_s13 + $0x168] sm:$0xff]  ;;  %v264_v14 = vld [vmem:[%s8519_s13 + $0x170] sm:$0xff] }
  0x32   :  { %203 = vst [vmem:[#allocation6 + $0x78] sm:$0xff] %v202_v47  ;;  %v266_v15 = vld [vmem:[%s8519_s13 + $0x178] sm:$0xff]  ;;  %v268_v16 = vld [vmem:[%s8519_s13 + $0x180] sm:$0xff]  ;;  %v270_v17 = vld [vmem:[%s8519_s13 + $0x188] sm:$0xff] }
  0x33   :  { %205 = vst [vmem:[#allocation6 + $0x80] sm:$0xff] %v204_v48  ;;  %v272_v18 = vld [vmem:[%s8519_s13 + $0x190] sm:$0xff]  ;;  %v274_v19 = vld [vmem:[%s8519_s13 + $0x198] sm:$0xff]  ;;  %v276_v20 = vld [vmem:[%s8519_s13 + $0x1a0] sm:$0xff] }
  0x34   :  { %207 = vst [vmem:[#allocation6 + $0x88] sm:$0xff] %v206_v49  ;;  %v278_v21 = vld [vmem:[%s8519_s13 + $0x1a8] sm:$0xff]  ;;  %v280_v22 = vld [vmem:[%s8519_s13 + $0x1b0] sm:$0xff]  ;;  %v282_v23 = vld [vmem:[%s8519_s13 + $0x1b8] sm:$0xff] }
  0x35   :  { %209 = vst [vmem:[#allocation6 + $0x90] sm:$0xff] %v208_v50  ;;  %v284_v24 = vld [vmem:[%s8519_s13 + $0x1c0] sm:$0xff]  ;;  %v286_v25 = vld [vmem:[%s8519_s13 + $0x1c8] sm:$0xff]  ;;  %v288_v26 = vld [vmem:[%s8519_s13 + $0x1d0] sm:$0xff] }
  0x36   :  { %211 = vst [vmem:[#allocation6 + $0x98] sm:$0xff] %v210_v51  ;;  %v290_v27 = vld [vmem:[%s8519_s13 + $0x1d8] sm:$0xff]  ;;  %v292_v28 = vld [vmem:[%s8519_s13 + $0x1e0] sm:$0xff]  ;;  %v294_v29 = vld [vmem:[%s8519_s13 + $0x1e8] sm:$0xff] }
  0x37   :  { %213 = vst [vmem:[#allocation6 + $0xa0] sm:$0xff] %v212_v52  ;;  %v296_v30 = vld [vmem:[%s8519_s13 + $0x1f0] sm:$0xff]  ;;  %v298_v31 = vld [vmem:[%s8519_s13 + $0x1f8] sm:$0xff] }
  0x38   :  { %215 = vst [vmem:[#allocation6 + $0xa8] sm:$0xff] %v214_v53 }
  0x39   :  { %217 = vst [vmem:[#allocation6 + $0xb0] sm:$0xff] %v216_v54 }
  0x3a   :  { %219 = vst [vmem:[#allocation6 + $0xb8] sm:$0xff] %v218_v55 }
  0x3b   :  { %221 = vst [vmem:[#allocation6 + $0xc0] sm:$0xff] %v220_v56 }
  0x3c   :  { %223 = vst [vmem:[#allocation6 + $0xc8] sm:$0xff] %v222_v57 }
  0x3d   :  { %225 = vst [vmem:[#allocation6 + $0xd0] sm:$0xff] %v224_v58 }
  0x3e   :  { %227 = vst [vmem:[#allocation6 + $0xd8] sm:$0xff] %v226_v59 }
  0x3f   :  { %229 = vst [vmem:[#allocation6 + $0xe0] sm:$0xff] %v228_v60 }
  0x40   :  { %231 = vst [vmem:[#allocation6 + $0xe8] sm:$0xff] %v230_v61 }
  0x41   :  { %233 = vst [vmem:[#allocation6 + $0xf0] sm:$0xff] %v232_v62 }
  0x42   :  { %235 = vst [vmem:[#allocation6 + $0xf8] sm:$0xff] %v234_v63 }
  0x43   :  { %237 = vst [vmem:[#allocation6 + $0x100] sm:$0xff] %v236_v0 }
  0x44   :  { %239 = vst [vmem:[#allocation6 + $0x108] sm:$0xff] %v238_v1 }
  0x45   :  { %241 = vst [vmem:[#allocation6 + $0x110] sm:$0xff] %v240_v2 }
  0x46   :  { %243 = vst [vmem:[#allocation6 + $0x118] sm:$0xff] %v242_v3 }
  0x47   :  { %245 = vst [vmem:[#allocation6 + $0x120] sm:$0xff] %v244_v4 }
  0x48   :  { %247 = vst [vmem:[#allocation6 + $0x128] sm:$0xff] %v246_v5 }
  0x49   :  { %249 = vst [vmem:[#allocation6 + $0x130] sm:$0xff] %v248_v6 }
  0x4a   :  { %251 = vst [vmem:[#allocation6 + $0x138] sm:$0xff] %v250_v7 }
  0x4b   :  { %253 = vst [vmem:[#allocation6 + $0x140] sm:$0xff] %v252_v8 }
  0x4c   :  { %255 = vst [vmem:[#allocation6 + $0x148] sm:$0xff] %v254_v9 }
  0x4d   :  { %257 = vst [vmem:[#allocation6 + $0x150] sm:$0xff] %v256_v10 }
  0x4e   :  { %259 = vst [vmem:[#allocation6 + $0x158] sm:$0xff] %v258_v11 }
  0x4f   :  { %261 = vst [vmem:[#allocation6 + $0x160] sm:$0xff] %v260_v12 }
  0x50   :  { %263 = vst [vmem:[#allocation6 + $0x168] sm:$0xff] %v262_v13 }
  0x51   :  { %265 = vst [vmem:[#allocation6 + $0x170] sm:$0xff] %v264_v14 }
  0x52   :  { %267 = vst [vmem:[#allocation6 + $0x178] sm:$0xff] %v266_v15 }
  0x53   :  { %269 = vst [vmem:[#allocation6 + $0x180] sm:$0xff] %v268_v16 }
  0x54   :  { %271 = vst [vmem:[#allocation6 + $0x188] sm:$0xff] %v270_v17 }
  0x55   :  { %273 = vst [vmem:[#allocation6 + $0x190] sm:$0xff] %v272_v18 }
  0x56   :  { %275 = vst [vmem:[#allocation6 + $0x198] sm:$0xff] %v274_v19 }
  0x57   :  { %277 = vst [vmem:[#allocation6 + $0x1a0] sm:$0xff] %v276_v20 }
  0x58   :  { %279 = vst [vmem:[#allocation6 + $0x1a8] sm:$0xff] %v278_v21 }
  0x59   :  { %281 = vst [vmem:[#allocation6 + $0x1b0] sm:$0xff] %v280_v22 }
  0x5a   :  { %283 = vst [vmem:[#allocation6 + $0x1b8] sm:$0xff] %v282_v23 }
  0x5b   :  { %285 = vst [vmem:[#allocation6 + $0x1c0] sm:$0xff] %v284_v24 }
  0x5c   :  { %287 = vst [vmem:[#allocation6 + $0x1c8] sm:$0xff] %v286_v25 }
  0x5d   :  { %289 = vst [vmem:[#allocation6 + $0x1d0] sm:$0xff] %v288_v26 }
  0x5e   :  { %291 = vst [vmem:[#allocation6 + $0x1d8] sm:$0xff] %v290_v27 }
  0x5f   :  { %293 = vst [vmem:[#allocation6 + $0x1e0] sm:$0xff] %v292_v28 }
  0x60   :  { %295 = vst [vmem:[#allocation6 + $0x1e8] sm:$0xff] %v294_v29 }
  0x61   :  { %297 = vst [vmem:[#allocation6 + $0x1f0] sm:$0xff] %v296_v30 }
  0x62   :  { %299 = vst [vmem:[#allocation6 + $0x1f8] sm:$0xff] %v298_v31 }
  0x63   :  { %305 = vsyncadd [#allocation7 + $0x4], 8192  ;;  %v4590_v32 = vld [vmem:[%s8507_s1] sm:$0xf]  ;;  %v5511_v33 = vld [vmem:[%s8507_s1 + $0xc] sm:$0xf0] }
  0x64   :  { %v4591_v34 = vor.u32 %v5511_v33, %v4590_v32  ;;  %v5509_v35 = vld [vmem:[%s8507_s1 + $0x4] sm:$0xf]  ;;  %v4592_v36 = vld [vmem:[%s8507_s1 + $0x10] sm:$0xf0]  ;;  %v4598_v37 = vld [vmem:[%s8507_s1 + $0x8] sm:$0xf] }
  0x65   :  { %v4595_v38 = vor.u32 %v5509_v35, %v4592_v36  ;;  %v5512_v39 = vld [vmem:[%s8507_s1 + $0x14] sm:$0xf0]  ;;  %v5510_v40 = vld [vmem:[%s8507_s1 + $0xc] sm:$0xf]  ;;  %v4600_v41 = vld [vmem:[%s8507_s1 + $0x18] sm:$0xf0] }
  0x66   :  { %386 = vmatpush.bf16.msra.mxu0 %v4591_v34  ;;  %v4599_v42 = vor.u32 %v5512_v39, %v4598_v37  ;;  %v4603_v43 = vor.u32 %v5510_v40, %v4600_v41  ;;  %v4722_v44 = vld [vmem:[%s8508_s2 + $0xe0] sm:$0xf]  ;;  %v5543_v45 = vld [vmem:[%s8508_s2 + $0xec] sm:$0xf0]  ;;  %v5541_v46 = vld [vmem:[%s8508_s2 + $0xe4] sm:$0xf] }
  0x67   :  { %400 = vmatpush.bf16.msra.mxu1 %v4595_v38  ;;  %v6645_v47 = vor.u32 %v5543_v45, %v4722_v44  ;;  %v4724_v48 = vld [vmem:[%s8508_s2 + $0xf0] sm:$0xf0]  ;;  %v4730_v49 = vld [vmem:[%s8508_s2 + $0xe8] sm:$0xf]  ;;  %v5544_v50 = vld [vmem:[%s8508_s2 + $0xf4] sm:$0xf0] }
  0x68   :  { %414 = vmatpush.bf16.msra.mxu2 %v4599_v42  ;;  %428 = vmatpush.bf16.msra.mxu3 %v4603_v43  ;;  %v6656_v51 = vor.u32 %v5541_v46, %v4724_v48  ;;  %v6658_v52 = vor.u32 %v5544_v50, %v4730_v49  ;;  %v5542_v53 = vld [vmem:[%s8508_s2 + $0xec] sm:$0xf]  ;;  %v4732_v54 = vld [vmem:[%s8508_s2 + $0xf8] sm:$0xf0]  ;;  %v4706_v55 = vld [vmem:[%s8508_s2 + $0xc0] sm:$0xf] }
  0x69   :  { %v6670_v56 = vor.u32 %v5542_v53, %v4732_v54  ;;  %v5539_v57 = vld [vmem:[%s8508_s2 + $0xcc] sm:$0xf0]  ;;  %v5537_v58 = vld [vmem:[%s8508_s2 + $0xc4] sm:$0xf]  ;;  %v4708_v59 = vld [vmem:[%s8508_s2 + $0xd0] sm:$0xf0] }
  0x6a   :  { %595 = vmatpush.bf16.msrb.mxu0 %v6645_v47  ;;  %v6683_v60 = vor.u32 %v5539_v57, %v4706_v55  ;;  %v6685_v61 = vor.u32 %v5537_v58, %v4708_v59  ;;  %v4714_v62 = vld [vmem:[%s8508_s2 + $0xc8] sm:$0xf]  ;;  %v5540_v63 = vld [vmem:[%s8508_s2 + $0xd4] sm:$0xf0]  ;;  %v5538_v0 = vld [vmem:[%s8508_s2 + $0xcc] sm:$0xf] }
  0x6b   :  { %608 = vmatpush.bf16.msrb.mxu1 %v6656_v51  ;;  %v6697_v1 = vor.u32 %v5540_v63, %v4714_v62  ;;  %v4716_v2 = vld [vmem:[%s8508_s2 + $0xd8] sm:$0xf0]  ;;  %v306_v3 = vld [vmem:[%s8506_s0] sm:$0xff]  ;;  %v307_v4 = vld [vmem:[%s8506_s0 + $0x8] sm:$0xff]  ;;  %vm375_vm0 = vcmask 130048   ;;  %vm1326_vm1 = vcmask 1041408  }
  0x6c   :  { %621 = vmatpush.bf16.msrb.mxu2 %v6658_v52  ;;  %634 = vmatpush.bf16.msrb.mxu3 %v6670_v56  ;;  %v6708_v5 = vor.u32 %v5538_v0, %v4716_v2  ;;  %v308_v6 = vpack.c.bf16 %v307_v4, %v306_v3  ;;  %v4690_v7 = vld [vmem:[%s8508_s2 + $0xa0] sm:$0xf]  ;;  %v5535_v8 = vld [vmem:[%s8508_s2 + $0xac] sm:$0xf0]  ;;  %v5533_v9 = vld [vmem:[%s8508_s2 + $0xa4] sm:$0xf] }
  0x6d   :  { %v6720_v10 = vor.u32 %v5535_v8, %v4690_v7  ;;  %v4692_v11 = vld [vmem:[%s8508_s2 + $0xb0] sm:$0xf0]  ;;  %v4698_v12 = vld [vmem:[%s8508_s2 + $0xa8] sm:$0xf]  ;;  %v5536_v13 = vld [vmem:[%s8508_s2 + $0xb4] sm:$0xf0] }
  0x6e   :  { %596 = vmatpush.bf16.msrb.mxu0 %v6683_v60  ;;  %v6733_v14 = vor.u32 %v5533_v9, %v4692_v11  ;;  %v6735_v15 = vor.u32 %v5536_v13, %v4698_v12  ;;  %v5534_v16 = vld [vmem:[%s8508_s2 + $0xac] sm:$0xf]  ;;  %v4700_v17 = vld [vmem:[%s8508_s2 + $0xb8] sm:$0xf0]  ;;  %v4674_v18 = vld [vmem:[%s8508_s2 + $0x80] sm:$0xf]  ;;  %4605 = vmatmul.msk.bf16.vlgmr.msra.gmra.mxu1 %vm375_vm0, %v308_v6 }
  0x6f   :  { %609 = vmatpush.bf16.msrb.mxu1 %v6685_v61  ;;  %4604 = vmatmul.msk.bf16.vlgmr.msra.gmra.mxu0 %vm375_vm0, %v308_v6  ;;  %v6748_v19 = vor.u32 %v5534_v16, %v4700_v17  ;;  %v5531_v20 = vld [vmem:[%s8508_s2 + $0x8c] sm:$0xf0]  ;;  %v5529_v21 = vld [vmem:[%s8508_s2 + $0x84] sm:$0xf]  ;;  %v4676_v22 = vld [vmem:[%s8508_s2 + $0x90] sm:$0xf0] }
  0x70   :  { %622 = vmatpush.bf16.msrb.mxu2 %v6697_v1  ;;  %635 = vmatpush.bf16.msrb.mxu3 %v6708_v5  ;;  %v4682_v23 = vld [vmem:[%s8508_s2 + $0x88] sm:$0xf]  ;;  %v5532_v24 = vld [vmem:[%s8508_s2 + $0x94] sm:$0xf0]  ;;  %v5530_v25 = vld [vmem:[%s8508_s2 + $0x8c] sm:$0xf]  ;;  %v6771_v26 = vor.u32 %v5531_v20, %v4674_v18  ;;  %v6779_v28 = vor.u32 %v5529_v21, %v4676_v22 }
  0x71   :  { %4607 = vmatmul.msk.bf16.vlgmr.msra.gmra.mxu3 %vm375_vm0, %v308_v6  ;;  %v4684_v27 = vld [vmem:[%s8508_s2 + $0x98] sm:$0xf0]  ;;  %4606 = vmatmul.msk.bf16.vlgmr.msra.gmra.mxu2 %vm375_vm0, %v308_v6  ;;  %v6781_v29 = vor.u32 %v5532_v24, %v4682_v23  ;;  %v4658_v30 = vld [vmem:[%s8508_s2 + $0x60] sm:$0xf]  ;;  %v5527_v31 = vld [vmem:[%s8508_s2 + $0x6c] sm:$0xf0] }
  0x72   :  { %597 = vmatpush.bf16.msrb.mxu0 %v6720_v10  ;;  %v5525_v32 = vld [vmem:[%s8508_s2 + $0x64] sm:$0xf]  ;;  %v6793_v33 = vor.u32 %v5530_v25, %v4684_v27  ;;  %v4660_v34 = vld [vmem:[%s8508_s2 + $0x70] sm:$0xf0]  ;;  %v4666_v35 = vld [vmem:[%s8508_s2 + $0x68] sm:$0xf]  ;;  %v6811_v39 = vor.u32 %v5527_v31, %v4658_v30 }
  0x73   :  { %610 = vmatpush.bf16.msrb.mxu1 %v6733_v14  ;;  %v5528_v36 = vld [vmem:[%s8508_s2 + $0x74] sm:$0xf0]  ;;  %v5526_v37 = vld [vmem:[%s8508_s2 + $0x6c] sm:$0xf]  ;;  %v4668_v38 = vld [vmem:[%s8508_s2 + $0x78] sm:$0xf0]  ;;  %v6815_v40 = vor.u32 %v5525_v32, %v4660_v34 }
  0x74   :  { %623 = vmatpush.bf16.msrb.mxu2 %v6735_v15  ;;  %636 = vmatpush.bf16.msrb.mxu3 %v6748_v19  ;;  %v6817_v41 = vor.u32 %v5528_v36, %v4666_v35  ;;  %v4642_v42 = vld [vmem:[%s8508_s2 + $0x40] sm:$0xf]  ;;  %v5523_v43 = vld [vmem:[%s8508_s2 + $0x4c] sm:$0xf0]  ;;  %v5521_v44 = vld [vmem:[%s8508_s2 + $0x44] sm:$0xf]  ;;  %v6829_v45 = vor.u32 %v5526_v37, %v4668_v38 }
  0x75   :  { %v4644_v46 = vld [vmem:[%s8508_s2 + $0x50] sm:$0xf0]  ;;  %v4650_v48 = vld [vmem:[%s8508_s2 + $0x48] sm:$0xf]  ;;  %v5524_v49 = vld [vmem:[%s8508_s2 + $0x54] sm:$0xf0]  ;;  %v6847_v54 = vor.u32 %v5523_v43, %v4642_v42 }
  0x76   :  { %598 = vmatpush.bf16.msrb.mxu0 %v6771_v26  ;;  %v5522_v50 = vld [vmem:[%s8508_s2 + $0x4c] sm:$0xf]  ;;  %v4652_v53 = vld [vmem:[%s8508_s2 + $0x58] sm:$0xf0]  ;;  %v6851_v55 = vor.u32 %v5521_v44, %v4644_v46  ;;  %v6853_v57 = vor.u32 %v5524_v49, %v4650_v48  ;;  %v4626_v58 = vld [vmem:[%s8508_s2 + $0x20] sm:$0xf] }
  0x77   :  { %611 = vmatpush.bf16.msrb.mxu1 %v6779_v28  ;;  %v5519_v59 = vld [vmem:[%s8508_s2 + $0x2c] sm:$0xf0]  ;;  %v5517_v62 = vld [vmem:[%s8508_s2 + $0x24] sm:$0xf]  ;;  %v6865_v63 = vor.u32 %v5522_v50, %v4652_v53  ;;  %v4628_v0 = vld [vmem:[%s8508_s2 + $0x30] sm:$0xf0] }
  0x78   :  { %624 = vmatpush.bf16.msrb.mxu2 %v6781_v29  ;;  %637 = vmatpush.bf16.msrb.mxu3 %v6793_v33  ;;  %v4634_v2 = vld [vmem:[%s8508_s2 + $0x28] sm:$0xf]  ;;  %v5520_v3 = vld [vmem:[%s8508_s2 + $0x34] sm:$0xf0]  ;;  %v5518_v4 = vld [vmem:[%s8508_s2 + $0x2c] sm:$0xf]  ;;  %v6883_v7 = vor.u32 %v5519_v59, %v4626_v58  ;;  %v6887_v8 = vor.u32 %v5517_v62, %v4628_v0 }
  0x79   :  { %v4636_v6 = vld [vmem:[%s8508_s2 + $0x38] sm:$0xf0]  ;;  %v6889_v9 = vor.u32 %v5520_v3, %v4634_v2  ;;  %v4610_v11 = vld [vmem:[%s8508_s2] sm:$0xf]  ;;  %v5515_v12 = vld [vmem:[%s8508_s2 + $0xc] sm:$0xf0] }
  0x7a   :  { %599 = vmatpush.bf16.msrb.mxu0 %v6811_v39  ;;  %v5513_v13 = vld [vmem:[%s8508_s2 + $0x4] sm:$0xf]  ;;  %v6901_v16 = vor.u32 %v5518_v4, %v4636_v6  ;;  %v4612_v17 = vld [vmem:[%s8508_s2 + $0x10] sm:$0xf0]  ;;  %v4618_v18 = vld [vmem:[%s8508_s2 + $0x8] sm:$0xf]  ;;  %v6919_v23 = vor.u32 %v5515_v12, %v4610_v11 }
  0x7b   :  { %612 = vmatpush.bf16.msrb.mxu1 %v6815_v40  ;;  %v5516_v20 = vld [vmem:[%s8508_s2 + $0x14] sm:$0xf0]  ;;  %v5514_v21 = vld [vmem:[%s8508_s2 + $0xc] sm:$0xf]  ;;  %v4620_v22 = vld [vmem:[%s8508_s2 + $0x18] sm:$0xf0]  ;;  %v6923_v24 = vor.u32 %v5513_v13, %v4612_v17 }
  0x7c   :  { %625 = vmatpush.bf16.msrb.mxu2 %v6817_v41  ;;  %638 = vmatpush.bf16.msrb.mxu3 %v6829_v45  ;;  %v6925_v25 = vor.u32 %v5516_v20, %v4618_v18  ;;  %v6928_v27 = vor.u32 %v5514_v21, %v4620_v22  ;;  %v6238_v30 = vmov 0   ;;  %v345_v34 = vld [vmem:[%s8509_s3] sm:$0xf]  ;;  %vm1328_vm2 = vcmask 1043456  }
  0x7d   :  { %v347_v35 = vperm.slane %v345_v34, 0  ;;  %v348_v36 = vperm.slane %v345_v34, 1  ;;  %v350_v48 = vperm.slane %v345_v34, 3  ;;  %v349_v49 = vperm.slane %v345_v34, 2 }
  0x7e   :  { %600 = vmatpush.bf16.msrb.mxu0 %v6847_v54  ;;  %vm1330_vm3 = vcmask 1045504  }
  0x7f   :  { %613 = vmatpush.bf16.msrb.mxu1 %v6851_v55 }
  0x80   :  { %626 = vmatpush.bf16.msrb.mxu2 %v6853_v57  ;;  %639 = vmatpush.bf16.msrb.mxu3 %v6865_v63 }
  0x82   :  { %601 = vmatpush.bf16.msrb.mxu0 %v6883_v7 }
  0x83   :  { %614 = vmatpush.bf16.msrb.mxu1 %v6887_v8 }
  0x84   :  { %627 = vmatpush.bf16.msrb.mxu2 %v6889_v9  ;;  %640 = vmatpush.bf16.msrb.mxu3 %v6901_v16 }
  0x86   :  { %602 = vmatpush.bf16.msrb.mxu0 %v6919_v23 }
  0x87   :  { %615 = vmatpush.bf16.msrb.mxu1 %v6923_v24 }
  0x88   :  { %628 = vmatpush.bf16.msrb.mxu2 %v6925_v25  ;;  %641 = vmatpush.bf16.msrb.mxu3 %v6928_v27 }
  0x89   :  { %603 = vmatmul.bf16.vlgmr.msrb.gmra.mxu0 %v6238_v30 }
  0x8a   :  { %673 = vmatpush.bf16.msra.mxu0 %v6645_v47  ;;  %616 = vmatmul.bf16.vlgmr.msrb.gmra.mxu1 %v6238_v30 }
  0x8b   :  { %686 = vmatpush.bf16.msra.mxu1 %v6656_v51  ;;  %629 = vmatmul.bf16.vlgmr.msrb.gmra.mxu2 %v6238_v30 }
  0x8c   :  { %642 = vmatmul.bf16.vlgmr.msrb.gmra.mxu3 %v6238_v30  ;;  %699 = vmatpush.bf16.msra.mxu2 %v6658_v52 }
  0x8d   :  { %712 = vmatpush.bf16.msra.mxu3 %v6670_v56 }
  0x8e   :  { %674 = vmatpush.bf16.msra.mxu0 %v6683_v60 }
  0x8f   :  { %687 = vmatpush.bf16.msra.mxu1 %v6685_v61 }
  0x90   :  { %700 = vmatpush.bf16.msra.mxu2 %v6697_v1 }
  0x91   :  { %713 = vmatpush.bf16.msra.mxu3 %v6708_v5 }
  0x92   :  { %675 = vmatpush.bf16.msra.mxu0 %v6720_v10 }
  0x93   :  { %688 = vmatpush.bf16.msra.mxu1 %v6733_v14 }
  0x94   :  { %701 = vmatpush.bf16.msra.mxu2 %v6735_v15 }
  0x95   :  { %714 = vmatpush.bf16.msra.mxu3 %v6748_v19 }
  0x96   :  { %676 = vmatpush.bf16.msra.mxu0 %v6771_v26 }
  0x97   :  { %689 = vmatpush.bf16.msra.mxu1 %v6779_v28 }
  0x98   :  { %702 = vmatpush.bf16.msra.mxu2 %v6781_v29 }
  0x99   :  { %715 = vmatpush.bf16.msra.mxu3 %v6793_v33 }
  0x9a   :  { %677 = vmatpush.bf16.msra.mxu0 %v6811_v39 }
  0x9b   :  { %690 = vmatpush.bf16.msra.mxu1 %v6815_v40 }
  0x9c   :  { %703 = vmatpush.bf16.msra.mxu2 %v6817_v41 }
  0x9d   :  { %716 = vmatpush.bf16.msra.mxu3 %v6829_v45 }
  0x9e   :  { %678 = vmatpush.bf16.msra.mxu0 %v6847_v54 }
  0x9f   :  { %691 = vmatpush.bf16.msra.mxu1 %v6851_v55 }
  0xa0   :  { %704 = vmatpush.bf16.msra.mxu2 %v6853_v57 }
  0xa1   :  { %717 = vmatpush.bf16.msra.mxu3 %v6865_v63 }
  0xa2   :  { %679 = vmatpush.bf16.msra.mxu0 %v6883_v7 }
  0xa3   :  { %692 = vmatpush.bf16.msra.mxu1 %v6887_v8 }
  0xa4   :  { %705 = vmatpush.bf16.msra.mxu2 %v6889_v9 }
  0xa5   :  { %718 = vmatpush.bf16.msra.mxu3 %v6901_v16 }
  0xa6   :  { %680 = vmatpush.bf16.msra.mxu0 %v6919_v23 }
  0xa7   :  { %693 = vmatpush.bf16.msra.mxu1 %v6923_v24 }
  0xa8   :  { %706 = vmatpush.bf16.msra.mxu2 %v6925_v25 }
  0xa9   :  { %719 = vmatpush.bf16.msra.mxu3 %v6928_v27 }
  0xaa   :  { %769 = vmatpush.bf16.msrb.mxu0 %v6645_v47 }
  0xab   :  { %782 = vmatpush.bf16.msrb.mxu1 %v6656_v51 }
  0xac   :  { %795 = vmatpush.bf16.msrb.mxu2 %v6658_v52 }
  0xad   :  { %808 = vmatpush.bf16.msrb.mxu3 %v6670_v56 }
  0xae   :  { %770 = vmatpush.bf16.msrb.mxu0 %v6683_v60 }
  0xaf   :  { %783 = vmatpush.bf16.msrb.mxu1 %v6685_v61 }
  0xb0   :  { %796 = vmatpush.bf16.msrb.mxu2 %v6697_v1 }
  0xb1   :  { %809 = vmatpush.bf16.msrb.mxu3 %v6708_v5 }
  0xb2   :  { %771 = vmatpush.bf16.msrb.mxu0 %v6720_v10 }
  0xb3   :  { %784 = vmatpush.bf16.msrb.mxu1 %v6733_v14 }
  0xb4   :  { %797 = vmatpush.bf16.msrb.mxu2 %v6735_v15 }
  0xb5   :  { %810 = vmatpush.bf16.msrb.mxu3 %v6748_v19 }
  0xb6   :  { %772 = vmatpush.bf16.msrb.mxu0 %v6771_v26 }
  0xb7   :  { %785 = vmatpush.bf16.msrb.mxu1 %v6779_v28 }
  0xb8   :  { %798 = vmatpush.bf16.msrb.mxu2 %v6781_v29 }
  0xb9   :  { %811 = vmatpush.bf16.msrb.mxu3 %v6793_v33 }
  0xba   :  { %773 = vmatpush.bf16.msrb.mxu0 %v6811_v39 }
  0xbb   :  { %786 = vmatpush.bf16.msrb.mxu1 %v6815_v40 }
  0xbc   :  { %799 = vmatpush.bf16.msrb.mxu2 %v6817_v41 }
  0xbd   :  { %812 = vmatpush.bf16.msrb.mxu3 %v6829_v45 }
  0xbe   :  { %774 = vmatpush.bf16.msrb.mxu0 %v6847_v54 }
  0xbf   :  { %787 = vmatpush.bf16.msrb.mxu1 %v6851_v55 }
  0xc0   :  { %800 = vmatpush.bf16.msrb.mxu2 %v6853_v57 }
  0xc1   :  { %813 = vmatpush.bf16.msrb.mxu3 %v6865_v63 }
  0xc2   :  { %775 = vmatpush.bf16.msrb.mxu0 %v6883_v7 }
  0xc3   :  { %788 = vmatpush.bf16.msrb.mxu1 %v6887_v8 }
  0xc4   :  { %801 = vmatpush.bf16.msrb.mxu2 %v6889_v9 }
  0xc5   :  { %814 = vmatpush.bf16.msrb.mxu3 %v6901_v16 }
  0xc6   :  { %776 = vmatpush.bf16.msrb.mxu0 %v6919_v23 }
  0xc7   :  { %789 = vmatpush.bf16.msrb.mxu1 %v6923_v24 }
  0xc8   :  { %802 = vmatpush.bf16.msrb.mxu2 %v6925_v25 }
  0xc9   :  { %815 = vmatpush.bf16.msrb.mxu3 %v6928_v27 }
  0xeb   :  { %v402_v32 = vpop.f32.mrf.mxu1 }
  0xec   :  { %v388_v31 = vpop.f32.mrf.mxu0  ;;  %v7015_v0 = vadd.f32 %v402_v32, %v348_v36 }
  0xed   :  { %v7013_v62 = vadd.f32 %v388_v31, %v347_v35 }
  0xf3   :  { %v404_v44 = vpop.f32.mrf.mxu1 }
  0xf4   :  { %v430_v37 = vpop.f32.mrf.mxu3  ;;  %v390_v38 = vpop.f32.mrf.mxu0  ;;  %v7007_v46 = vadd.f32 %v404_v44, %v348_v36 }
  0xf5   :  { %v416_v42 = vpop.f32.mrf.mxu2  ;;  %v7005_v43 = vadd.f32 %v390_v38, %v347_v35  ;;  %v7019_v18 = vadd.f32 %v430_v37, %v350_v48 }
  0xf6   :  { %v7021_v21 = vadd.f32 %v416_v42, %v349_v49 }
  0xfc   :  { %v432_v50 = vpop.f32.mrf.mxu3 }
  0xfd   :  { %v7009_v53 = vadd.f32 %v432_v50, %v350_v48  ;;  %v418_v58 = vpop.f32.mrf.mxu2 }
  0xfe   :  { %v7011_v59 = vadd.f32 %v418_v58, %v349_v49 }
 0x106   :  { %v604_v2 = vpop.f32.mrf.mxu0 }
 0x107   :  { %v647_v3 = vadd.f32 %v604_v2, %v7013_v62  ;;  %v617_v4 = vpop.f32.mrf.mxu1 }
 0x108   :  { %v648_v6 = vadd.f32 %v617_v4, %v7015_v0 }
 0x109   :  { %v651_v11 = vsub.f32 0.0, %v647_v3 }
 0x10a   :  { %v656_v12 = vsub.f32 0.0, %v648_v6 }
 0x10b   :  { %v652_v13 = vmul.f32 1.442695, %v651_v11 }
 0x10c   :  { %v657_v17 = vmul.f32 1.442695, %v656_v12 }
 0x10d   :  { %5742 = vpow2.f32 %v652_v13 }
 0x10e   :  { %v630_v20 = vpop.f32.mrf.mxu2  ;;  %5744 = vpow2.f32 %v657_v17  ;;  %v606_v31 = vpop.f32.mrf.mxu0 }
 0x10f   :  { %v643_v22 = vpop.f32.mrf.mxu3  ;;  %v619_v34 = vpop.f32.mrf.mxu1  ;;  %v649_v35 = vadd.f32 %v630_v20, %v7021_v21 }
 0x110   :  { %v650_v32 = vadd.f32 %v643_v22, %v7019_v18 }
 0x111   :  { %5746 = vtanh.f32 %v649_v35 }
 0x112   :  { %v662_v36 = vsub.f32 0.0, %v650_v32 }
 0x113   :  { %v5743_v38 = vpop.eup %5742 }
 0x114   :  { %v663_v44 = vmul.f32 1.442695, %v662_v36  ;;  %v5745_v50 = vpop.eup %5744  ;;  %v654_v58 = vadd.f32 1.0, %v5743_v38 }
 0x115   :  { %v659_v37 = vadd.f32 1.0, %v5745_v50 }
 0x116   :  { %5748 = vpow2.f32 %v663_v44  ;;  %v632_v48 = vpop.f32.mrf.mxu2 }
 0x117   :  { %5750 = vrcp.f32 %v654_v58  ;;  %v645_v42 = vpop.f32.mrf.mxu3  ;;  %v5747_v49 = vpop.eup %5746 }
 0x118   :  { %5752 = vrcp.f32 %v659_v37 }
 0x11c   :  { %v5749_v2 = vpop.eup %5748 }
 0x11d   :  { %v5751_v3 = vpop.eup %5750  ;;  %v665_v11 = vadd.f32 1.0, %v5749_v2 }
 0x11e   :  { %v5753_v4 = vpop.eup %5752  ;;  %v668_v6 = vmul.f32 %v5751_v3, %v5747_v49 }
 0x11f   :  { %v667_v12 = vmul.f32 0.0, %v5753_v4  ;;  %5754 = vrcp.f32 %v665_v11 }
 0x121   :  { %v7025_v13 = vadd.f32 %v668_v6, %v667_v12 }
 0x123   :  { %5756 = vtanh.f32 %v7025_v13 }
 0x125   :  { %v5755_v17 = vpop.eup %5754 }
 0x129   :  { %v5757_v20 = vpop.eup %5756 }
 0x12a   :  { %v7028_v22 = vmul.f32 %v5757_v20, %v5755_v17 }
 0x12c   :  { %v672_v31 = vpack.c.bf16 %v7028_v22, %v7028_v22 }
 0x12e   :  { %681 = vmatmul.bf16.vlgmr.msra.gmra.mxu0 %v672_v31  ;;  %694 = vmatmul.bf16.vlgmr.msra.gmra.mxu1 %v672_v31 }
 0x12f   :  { %707 = vmatmul.bf16.vlgmr.msra.gmra.mxu2 %v672_v31  ;;  %720 = vmatmul.bf16.vlgmr.msra.gmra.mxu3 %v672_v31 }
 0x130   :  { %865 = vmatpush.bf16.msra.mxu0 %v6645_v47  ;;  %878 = vmatpush.bf16.msra.mxu1 %v6656_v51 }
 0x131   :  { %891 = vmatpush.bf16.msra.mxu2 %v6658_v52  ;;  %904 = vmatpush.bf16.msra.mxu3 %v6670_v56 }
 0x134   :  { %866 = vmatpush.bf16.msra.mxu0 %v6683_v60  ;;  %879 = vmatpush.bf16.msra.mxu1 %v6685_v61 }
 0x135   :  { %892 = vmatpush.bf16.msra.mxu2 %v6697_v1  ;;  %905 = vmatpush.bf16.msra.mxu3 %v6708_v5 }
 0x138   :  { %867 = vmatpush.bf16.msra.mxu0 %v6720_v10  ;;  %880 = vmatpush.bf16.msra.mxu1 %v6733_v14 }
 0x139   :  { %893 = vmatpush.bf16.msra.mxu2 %v6735_v15  ;;  %906 = vmatpush.bf16.msra.mxu3 %v6748_v19 }
 0x13c   :  { %868 = vmatpush.bf16.msra.mxu0 %v6771_v26  ;;  %881 = vmatpush.bf16.msra.mxu1 %v6779_v28 }
 0x13d   :  { %894 = vmatpush.bf16.msra.mxu2 %v6781_v29  ;;  %907 = vmatpush.bf16.msra.mxu3 %v6793_v33 }
 0x140   :  { %869 = vmatpush.bf16.msra.mxu0 %v6811_v39  ;;  %882 = vmatpush.bf16.msra.mxu1 %v6815_v40 }
 0x141   :  { %895 = vmatpush.bf16.msra.mxu2 %v6817_v41  ;;  %908 = vmatpush.bf16.msra.mxu3 %v6829_v45 }
 0x144   :  { %870 = vmatpush.bf16.msra.mxu0 %v6847_v54  ;;  %883 = vmatpush.bf16.msra.mxu1 %v6851_v55 }
 0x145   :  { %896 = vmatpush.bf16.msra.mxu2 %v6853_v57  ;;  %909 = vmatpush.bf16.msra.mxu3 %v6865_v63 }
 0x148   :  { %871 = vmatpush.bf16.msra.mxu0 %v6883_v7  ;;  %884 = vmatpush.bf16.msra.mxu1 %v6887_v8 }
 0x149   :  { %897 = vmatpush.bf16.msra.mxu2 %v6889_v9  ;;  %910 = vmatpush.bf16.msra.mxu3 %v6901_v16 }
 0x14c   :  { %872 = vmatpush.bf16.msra.mxu0 %v6919_v23  ;;  %885 = vmatpush.bf16.msra.mxu1 %v6923_v24 }
 0x14d   :  { %898 = vmatpush.bf16.msra.mxu2 %v6925_v25  ;;  %911 = vmatpush.bf16.msra.mxu3 %v6928_v27 }
 0x1ab   :  { %v682_v32 = vpop.f32.mrf.mxu0  ;;  %v695_v34 = vpop.f32.mrf.mxu1 }
 0x1ac   :  { %v729_v35 = vrot.slane %v682_v32, 6  ;;  %v730_v36 = vrot.slane %v695_v34, 6 }
 0x1ae   :  { %v737_v38 = vadd.f32 %v729_v35, %v7013_v62  ;;  %v738_v44 = vadd.f32 %v730_v36, %v7015_v0 }
 0x1b0   :  { %v741_v50 = vsub.f32 0.0, %v737_v38  ;;  %v746_v58 = vsub.f32 0.0, %v738_v44 }
 0x1b2   :  { %v742_v37 = vmul.f32 1.442695, %v741_v50  ;;  %v747_v48 = vmul.f32 1.442695, %v746_v58  ;;  %v708_v42 = vpop.f32.mrf.mxu2  ;;  %v721_v49 = vpop.f32.mrf.mxu3 }
 0x1b3   :  { %v732_v2 = vrot.slane %v721_v49, 6  ;;  %v684_v3 = vpop.f32.mrf.mxu0  ;;  %v697_v4 = vpop.f32.mrf.mxu1  ;;  %v731_v6 = vrot.slane %v708_v42, 6 }
 0x1b4   :  { %5758 = vpow2.f32 %v742_v37  ;;  %v758_v37 = vrot.slane %v7025_v13, 6 }
 0x1b5   :  { %5760 = vpow2.f32 %v747_v48  ;;  %v740_v11 = vadd.f32 %v732_v2, %v7019_v18  ;;  %v739_v17 = vadd.f32 %v731_v6, %v7021_v21 }
 0x1b7   :  { %v752_v12 = vsub.f32 0.0, %v740_v11 }
 0x1b9   :  { %v753_v20 = vmul.f32 1.442695, %v752_v12 }
 0x1ba   :  { %v5759_v31 = vpop.eup %5758  ;;  %v710_v32 = vpop.f32.mrf.mxu2 }
 0x1bb   :  { %v723_v34 = vpop.f32.mrf.mxu3  ;;  %v5761_v35 = vpop.eup %5760  ;;  %v744_v36 = vadd.f32 1.0, %v5759_v31  ;;  %5762 = vpow2.f32 %v753_v20 }
 0x1bc   :  { %v749_v38 = vadd.f32 1.0, %v5761_v35  ;;  %5764 = vtanh.f32 %v739_v17 }
 0x1bd   :  { %5766 = vrcp.f32 %v744_v36 }
 0x1be   :  { %5768 = vrcp.f32 %v749_v38 }
 0x1c1   :  { %v5763_v44 = vpop.eup %5762 }
 0x1c2   :  { %v5765_v50 = vpop.eup %5764  ;;  %v755_v49 = vadd.f32 1.0, %v5763_v44 }
 0x1c3   :  { %v5767_v58 = vpop.eup %5766 }
 0x1c4   :  { %v5769_v48 = vpop.eup %5768  ;;  %v761_v42 = vmul.f32 %v5767_v58, %v5765_v50  ;;  %5770 = vrcp.f32 %v755_v49 }
 0x1c5   :  { %v760_v2 = vmul.f32 %v5769_v48, %v758_v37 }
 0x1c7   :  { %v7069_v3 = vadd.f32 %v761_v42, %v760_v2 }
 0x1c9   :  { %5772 = vtanh.f32 %v7069_v3 }
 0x1ca   :  { %v5771_v4 = vpop.eup %5770 }
 0x1cf   :  { %v5773_v6 = vpop.eup %5772 }
 0x1d0   :  { %v7072_v11 = vmul.f32 %v5773_v6, %v5771_v4 }
 0x1d2   :  { %v765_v12 = vpack.c.bf16 %v7072_v11, %v7072_v11 }
 0x1d4   :  { %v767_v17 = vrot.slane %v765_v12, 1 }
 0x1d6   :  { %777 = vmatmul.bf16.vlgmr.msrb.gmra.mxu0 %v767_v17  ;;  %790 = vmatmul.bf16.vlgmr.msrb.gmra.mxu1 %v767_v17 }
 0x1d7   :  { %803 = vmatmul.bf16.vlgmr.msrb.gmra.mxu2 %v767_v17  ;;  %816 = vmatmul.bf16.vlgmr.msrb.gmra.mxu3 %v767_v17 }
 0x1d8   :  { %961 = vmatpush.bf16.msrb.mxu0 %v6645_v47  ;;  %974 = vmatpush.bf16.msrb.mxu1 %v6656_v51 }
 0x1d9   :  { %987 = vmatpush.bf16.msrb.mxu2 %v6658_v52  ;;  %1000 = vmatpush.bf16.msrb.mxu3 %v6670_v56 }
 0x1dc   :  { %962 = vmatpush.bf16.msrb.mxu0 %v6683_v60  ;;  %975 = vmatpush.bf16.msrb.mxu1 %v6685_v61 }
 0x1dd   :  { %988 = vmatpush.bf16.msrb.mxu2 %v6697_v1  ;;  %1001 = vmatpush.bf16.msrb.mxu3 %v6708_v5 }
 0x1e0   :  { %963 = vmatpush.bf16.msrb.mxu0 %v6720_v10  ;;  %976 = vmatpush.bf16.msrb.mxu1 %v6733_v14 }
 0x1e1   :  { %989 = vmatpush.bf16.msrb.mxu2 %v6735_v15  ;;  %1002 = vmatpush.bf16.msrb.mxu3 %v6748_v19 }
 0x1e4   :  { %964 = vmatpush.bf16.msrb.mxu0 %v6771_v26  ;;  %977 = vmatpush.bf16.msrb.mxu1 %v6779_v28 }
 0x1e5   :  { %990 = vmatpush.bf16.msrb.mxu2 %v6781_v29  ;;  %1003 = vmatpush.bf16.msrb.mxu3 %v6793_v33 }
 0x1e8   :  { %965 = vmatpush.bf16.msrb.mxu0 %v6811_v39  ;;  %978 = vmatpush.bf16.msrb.mxu1 %v6815_v40 }
 0x1e9   :  { %991 = vmatpush.bf16.msrb.mxu2 %v6817_v41  ;;  %1004 = vmatpush.bf16.msrb.mxu3 %v6829_v45 }
 0x1ec   :  { %966 = vmatpush.bf16.msrb.mxu0 %v6847_v54  ;;  %979 = vmatpush.bf16.msrb.mxu1 %v6851_v55 }
 0x1ed   :  { %992 = vmatpush.bf16.msrb.mxu2 %v6853_v57  ;;  %1005 = vmatpush.bf16.msrb.mxu3 %v6865_v63 }
 0x1f0   :  { %967 = vmatpush.bf16.msrb.mxu0 %v6883_v7  ;;  %980 = vmatpush.bf16.msrb.mxu1 %v6887_v8 }
 0x1f1   :  { %993 = vmatpush.bf16.msrb.mxu2 %v6889_v9  ;;  %1006 = vmatpush.bf16.msrb.mxu3 %v6901_v16 }
 0x1f4   :  { %968 = vmatpush.bf16.msrb.mxu0 %v6919_v23  ;;  %981 = vmatpush.bf16.msrb.mxu1 %v6923_v24 }
 0x1f5   :  { %994 = vmatpush.bf16.msrb.mxu2 %v6925_v25  ;;  %1007 = vmatpush.bf16.msrb.mxu3 %v6928_v27 }
 0x253   :  { %v778_v13 = vpop.f32.mrf.mxu0  ;;  %v791_v20 = vpop.f32.mrf.mxu1 }
 0x254   :  { %v825_v31 = vrot.slane %v778_v13, 4  ;;  %v826_v32 = vrot.slane %v791_v20, 4 }
 0x256   :  { %v833_v34 = vadd.f32 %v825_v31, %v7013_v62  ;;  %v834_v35 = vadd.f32 %v826_v32, %v7015_v0 }
 0x258   :  { %v837_v36 = vsub.f32 0.0, %v833_v34  ;;  %v842_v38 = vsub.f32 0.0, %v834_v35 }
 0x25a   :  { %v838_v44 = vmul.f32 1.442695, %v837_v36  ;;  %v843_v50 = vmul.f32 1.442695, %v842_v38  ;;  %v804_v58 = vpop.f32.mrf.mxu2  ;;  %v817_v37 = vpop.f32.mrf.mxu3 }
 0x25b   :  { %v828_v48 = vrot.slane %v817_v37, 4  ;;  %v780_v42 = vpop.f32.mrf.mxu0  ;;  %v793_v49 = vpop.f32.mrf.mxu1  ;;  %v827_v2 = vrot.slane %v804_v58, 4 }
 0x25c   :  { %5774 = vpow2.f32 %v838_v44 }
 0x25d   :  { %5776 = vpow2.f32 %v843_v50  ;;  %v836_v4 = vadd.f32 %v828_v48, %v7019_v18  ;;  %v835_v12 = vadd.f32 %v827_v2, %v7021_v21  ;;  %v854_v50 = vrot.slane %v7069_v3, 6 }
 0x25f   :  { %v848_v6 = vsub.f32 0.0, %v836_v4 }
 0x261   :  { %v849_v17 = vmul.f32 1.442695, %v848_v6 }
 0x262   :  { %v5775_v13 = vpop.eup %5774  ;;  %v806_v20 = vpop.f32.mrf.mxu2 }
 0x263   :  { %v819_v31 = vpop.f32.mrf.mxu3  ;;  %v5777_v32 = vpop.eup %5776  ;;  %v840_v34 = vadd.f32 1.0, %v5775_v13  ;;  %5778 = vpow2.f32 %v849_v17 }
 0x264   :  { %v845_v35 = vadd.f32 1.0, %v5777_v32  ;;  %5780 = vtanh.f32 %v835_v12  ;;  %v1327_v12 = vsel %vm1326_vm1, %v7028_v22, %v7072_v11 }
 0x265   :  { %5782 = vrcp.f32 %v840_v34 }
 0x266   :  { %5784 = vrcp.f32 %v845_v35 }
 0x269   :  { %v5779_v36 = vpop.eup %5778 }
 0x26a   :  { %v5781_v38 = vpop.eup %5780  ;;  %v851_v48 = vadd.f32 1.0, %v5779_v36 }
 0x26b   :  { %v5783_v44 = vpop.eup %5782 }
 0x26c   :  { %v5785_v58 = vpop.eup %5784  ;;  %v857_v37 = vmul.f32 %v5783_v44, %v5781_v38  ;;  %5786 = vrcp.f32 %v851_v48 }
 0x26d   :  { %v856_v42 = vmul.f32 %v5785_v58, %v854_v50 }
 0x26f   :  { %v7113_v49 = vadd.f32 %v857_v37, %v856_v42 }
 0x271   :  { %5788 = vtanh.f32 %v7113_v49 }
 0x272   :  { %v5787_v2 = vpop.eup %5786 }
 0x277   :  { %v5789_v4 = vpop.eup %5788 }
 0x278   :  { %v860_v6 = vmul.f32 %v5789_v4, %v5787_v2 }
 0x27a   :  { %v861_v17 = vpack.c.bf16 %v860_v6, %v860_v6  ;;  %v7120_v3 = vsel %vm1328_vm2, %v1327_v12, %v860_v6 }
 0x27c   :  { %v863_v13 = vrot.slane %v861_v17, 2 }
 0x27e   :  { %873 = vmatmul.bf16.vlgmr.msra.gmra.mxu0 %v863_v13  ;;  %886 = vmatmul.bf16.vlgmr.msra.gmra.mxu1 %v863_v13 }
 0x27f   :  { %899 = vmatmul.bf16.vlgmr.msra.gmra.mxu2 %v863_v13  ;;  %912 = vmatmul.bf16.vlgmr.msra.gmra.mxu3 %v863_v13 }
 0x280   :  { %1042 = vmatpush.bf16.msra.mxu0 %v6645_v47  ;;  %1055 = vmatpush.bf16.msra.mxu1 %v6656_v51 }
 0x281   :  { %1068 = vmatpush.bf16.msra.mxu2 %v6658_v52  ;;  %1081 = vmatpush.bf16.msra.mxu3 %v6670_v56 }
 0x284   :  { %1043 = vmatpush.bf16.msra.mxu0 %v6683_v60  ;;  %1056 = vmatpush.bf16.msra.mxu1 %v6685_v61 }
 0x285   :  { %1069 = vmatpush.bf16.msra.mxu2 %v6697_v1  ;;  %1082 = vmatpush.bf16.msra.mxu3 %v6708_v5 }
 0x288   :  { %1044 = vmatpush.bf16.msra.mxu0 %v6720_v10  ;;  %1057 = vmatpush.bf16.msra.mxu1 %v6733_v14 }
 0x289   :  { %1070 = vmatpush.bf16.msra.mxu2 %v6735_v15  ;;  %1083 = vmatpush.bf16.msra.mxu3 %v6748_v19 }
 0x28c   :  { %1045 = vmatpush.bf16.msra.mxu0 %v6771_v26  ;;  %1058 = vmatpush.bf16.msra.mxu1 %v6779_v28 }
 0x28d   :  { %1071 = vmatpush.bf16.msra.mxu2 %v6781_v29  ;;  %1084 = vmatpush.bf16.msra.mxu3 %v6793_v33 }
 0x290   :  { %1046 = vmatpush.bf16.msra.mxu0 %v6811_v39  ;;  %1059 = vmatpush.bf16.msra.mxu1 %v6815_v40 }
 0x291   :  { %1072 = vmatpush.bf16.msra.mxu2 %v6817_v41  ;;  %1085 = vmatpush.bf16.msra.mxu3 %v6829_v45 }
 0x294   :  { %1047 = vmatpush.bf16.msra.mxu0 %v6847_v54  ;;  %1060 = vmatpush.bf16.msra.mxu1 %v6851_v55 }
 0x295   :  { %1073 = vmatpush.bf16.msra.mxu2 %v6853_v57  ;;  %1086 = vmatpush.bf16.msra.mxu3 %v6865_v63 }
 0x298   :  { %1048 = vmatpush.bf16.msra.mxu0 %v6883_v7  ;;  %1061 = vmatpush.bf16.msra.mxu1 %v6887_v8 }
 0x299   :  { %1074 = vmatpush.bf16.msra.mxu2 %v6889_v9  ;;  %1087 = vmatpush.bf16.msra.mxu3 %v6901_v16 }
 0x29c   :  { %1049 = vmatpush.bf16.msra.mxu0 %v6919_v23  ;;  %1062 = vmatpush.bf16.msra.mxu1 %v6923_v24 }
 0x29d   :  { %1075 = vmatpush.bf16.msra.mxu2 %v6925_v25  ;;  %1088 = vmatpush.bf16.msra.mxu3 %v6928_v27 }
 0x2fb   :  { %v874_v22 = vpop.f32.mrf.mxu0  ;;  %v887_v11 = vpop.f32.mrf.mxu1 }
 0x2fc   :  { %v921_v20 = vrot.slane %v874_v22, 2  ;;  %v922_v31 = vrot.slane %v887_v11, 2 }
 0x2fe   :  { %v929_v32 = vadd.f32 %v921_v20, %v7013_v62  ;;  %v930_v34 = vadd.f32 %v922_v31, %v7015_v0 }
 0x300   :  { %v933_v35 = vsub.f32 0.0, %v929_v32  ;;  %v938_v36 = vsub.f32 0.0, %v930_v34 }
 0x302   :  { %v934_v38 = vmul.f32 1.442695, %v933_v35  ;;  %v939_v44 = vmul.f32 1.442695, %v938_v36  ;;  %v900_v50 = vpop.f32.mrf.mxu2  ;;  %v913_v58 = vpop.f32.mrf.mxu3  ;;  %v950_v35 = vrot.slane %v7113_v49, 6 }
 0x303   :  { %v924_v37 = vrot.slane %v913_v58, 2  ;;  %v876_v48 = vpop.f32.mrf.mxu0  ;;  %v889_v42 = vpop.f32.mrf.mxu1  ;;  %v923_v2 = vrot.slane %v900_v50, 2 }
 0x304   :  { %5790 = vpow2.f32 %v934_v38 }
 0x305   :  { %5792 = vpow2.f32 %v939_v44  ;;  %v932_v4 = vadd.f32 %v924_v37, %v7019_v18  ;;  %v931_v12 = vadd.f32 %v923_v2, %v7021_v21 }
 0x307   :  { %v944_v6 = vsub.f32 0.0, %v932_v4 }
 0x309   :  { %v945_v62 = vmul.f32 1.442695, %v944_v6 }
 0x30a   :  { %v5791_v17 = vpop.eup %5790  ;;  %v902_v0 = vpop.f32.mrf.mxu2 }
 0x30b   :  { %v915_v13 = vpop.f32.mrf.mxu3  ;;  %v5793_v22 = vpop.eup %5792  ;;  %v936_v11 = vadd.f32 1.0, %v5791_v17  ;;  %5794 = vpow2.f32 %v945_v62 }
 0x30c   :  { %v941_v20 = vadd.f32 1.0, %v5793_v22  ;;  %5796 = vtanh.f32 %v931_v12 }
 0x30d   :  { %5798 = vrcp.f32 %v936_v11 }
 0x30e   :  { %5800 = vrcp.f32 %v941_v20 }
 0x311   :  { %v5795_v31 = vpop.eup %5794 }
 0x312   :  { %v5797_v32 = vpop.eup %5796  ;;  %v947_v38 = vadd.f32 1.0, %v5795_v31 }
 0x313   :  { %v5799_v34 = vpop.eup %5798 }
 0x314   :  { %v5801_v18 = vpop.eup %5800  ;;  %v953_v36 = vmul.f32 %v5799_v34, %v5797_v32  ;;  %5802 = vrcp.f32 %v947_v38 }
 0x315   :  { %v952_v21 = vmul.f32 %v5801_v18, %v950_v35 }
 0x317   :  { %v7159_v44 = vadd.f32 %v953_v36, %v952_v21 }
 0x319   :  { %5804 = vtanh.f32 %v7159_v44 }
 0x31a   :  { %v5803_v50 = vpop.eup %5802 }
 0x31f   :  { %v5805_v58 = vpop.eup %5804 }
 0x320   :  { %v956_v37 = vmul.f32 %v5805_v58, %v5803_v50 }
 0x322   :  { %v957_v48 = vpack.c.bf16 %v956_v37, %v956_v37  ;;  %v7164_v42 = vsel %vm1330_vm3, %v7120_v3, %v956_v37 }
 0x324   :  { %v959_v2 = vrot.slane %v957_v48, 3 }
 0x326   :  { %969 = vmatmul.bf16.vlgmr.msrb.gmra.mxu0 %v959_v2  ;;  %982 = vmatmul.bf16.vlgmr.msrb.gmra.mxu1 %v959_v2 }
 0x327   :  { %995 = vmatmul.bf16.vlgmr.msrb.gmra.mxu2 %v959_v2  ;;  %1008 = vmatmul.bf16.vlgmr.msrb.gmra.mxu3 %v959_v2 }
 0x328   :  { %1138 = vmatpush.bf16.msrb.mxu0 %v6645_v47  ;;  %1151 = vmatpush.bf16.msrb.mxu1 %v6656_v51 }
 0x329   :  { %1164 = vmatpush.bf16.msrb.mxu2 %v6658_v52  ;;  %1177 = vmatpush.bf16.msrb.mxu3 %v6670_v56 }
 0x32c   :  { %1139 = vmatpush.bf16.msrb.mxu0 %v6683_v60  ;;  %1152 = vmatpush.bf16.msrb.mxu1 %v6685_v61 }
 0x32d   :  { %1165 = vmatpush.bf16.msrb.mxu2 %v6697_v1  ;;  %1178 = vmatpush.bf16.msrb.mxu3 %v6708_v5 }
 0x330   :  { %1140 = vmatpush.bf16.msrb.mxu0 %v6720_v10  ;;  %1153 = vmatpush.bf16.msrb.mxu1 %v6733_v14 }
 0x331   :  { %1166 = vmatpush.bf16.msrb.mxu2 %v6735_v15  ;;  %1179 = vmatpush.bf16.msrb.mxu3 %v6748_v19 }
 0x334   :  { %1141 = vmatpush.bf16.msrb.mxu0 %v6771_v26  ;;  %1154 = vmatpush.bf16.msrb.mxu1 %v6779_v28 }
 0x335   :  { %1167 = vmatpush.bf16.msrb.mxu2 %v6781_v29  ;;  %1180 = vmatpush.bf16.msrb.mxu3 %v6793_v33 }
 0x338   :  { %1142 = vmatpush.bf16.msrb.mxu0 %v6811_v39  ;;  %1155 = vmatpush.bf16.msrb.mxu1 %v6815_v40 }
 0x339   :  { %1168 = vmatpush.bf16.msrb.mxu2 %v6817_v41  ;;  %1181 = vmatpush.bf16.msrb.mxu3 %v6829_v45 }
 0x33c   :  { %1143 = vmatpush.bf16.msrb.mxu0 %v6847_v54  ;;  %1156 = vmatpush.bf16.msrb.mxu1 %v6851_v55 }
 0x33d   :  { %1169 = vmatpush.bf16.msrb.mxu2 %v6853_v57  ;;  %1182 = vmatpush.bf16.msrb.mxu3 %v6865_v63 }
 0x340   :  { %1144 = vmatpush.bf16.msrb.mxu0 %v6883_v7  ;;  %1157 = vmatpush.bf16.msrb.mxu1 %v6887_v8 }
 0x341   :  { %1170 = vmatpush.bf16.msrb.mxu2 %v6889_v9  ;;  %1183 = vmatpush.bf16.msrb.mxu3 %v6901_v16 }
 0x344   :  { %1145 = vmatpush.bf16.msrb.mxu0 %v6919_v23  ;;  %1158 = vmatpush.bf16.msrb.mxu1 %v6923_v24 }
 0x345   :  { %1171 = vmatpush.bf16.msrb.mxu2 %v6925_v25  ;;  %1184 = vmatpush.bf16.msrb.mxu3 %v6928_v27 }
 0x3a3   :  { %v970_v49 = vpop.f32.mrf.mxu0  ;;  %v983_v3 = vpop.f32.mrf.mxu1 }
 0x3a4   :  { %v1013_v4 = vadd.f32 %v970_v49, %v7005_v43  ;;  %v1014_v6 = vadd.f32 %v983_v3, %v7007_v46  ;;  %v1034_v49 = vrot.slane %v7159_v44, 6 }
 0x3a6   :  { %v1017_v12 = vsub.f32 0.0, %v1013_v4  ;;  %v1022_v62 = vsub.f32 0.0, %v1014_v6 }
 0x3a8   :  { %v1018_v17 = vmul.f32 1.442695, %v1017_v12  ;;  %v1023_v0 = vmul.f32 1.442695, %v1022_v62 }
 0x3aa   :  { %5806 = vpow2.f32 %v1018_v17  ;;  %v996_v13 = vpop.f32.mrf.mxu2  ;;  %v1009_v22 = vpop.f32.mrf.mxu3 }
 0x3ab   :  { %5808 = vpow2.f32 %v1023_v0  ;;  %v1016_v11 = vadd.f32 %v1009_v22, %v7009_v53  ;;  %v972_v20 = vpop.f32.mrf.mxu0  ;;  %v985_v31 = vpop.f32.mrf.mxu1  ;;  %v1015_v34 = vadd.f32 %v996_v13, %v7011_v59 }
 0x3ad   :  { %v1028_v32 = vsub.f32 0.0, %v1016_v11 }
 0x3af   :  { %v1029_v35 = vmul.f32 1.442695, %v1028_v32 }
 0x3b0   :  { %v5807_v18 = vpop.eup %5806 }
 0x3b1   :  { %v5809_v36 = vpop.eup %5808  ;;  %v1020_v38 = vadd.f32 1.0, %v5807_v18  ;;  %5810 = vpow2.f32 %v1029_v35 }
 0x3b2   :  { %v1025_v21 = vadd.f32 1.0, %v5809_v36  ;;  %5812 = vtanh.f32 %v1015_v34  ;;  %v998_v50 = vpop.f32.mrf.mxu2  ;;  %v1011_v58 = vpop.f32.mrf.mxu3 }
 0x3b3   :  { %5814 = vrcp.f32 %v1020_v38 }
 0x3b4   :  { %5816 = vrcp.f32 %v1025_v21 }
 0x3b7   :  { %v5811_v37 = vpop.eup %5810 }
 0x3b8   :  { %v5813_v48 = vpop.eup %5812  ;;  %v1031_v6 = vadd.f32 1.0, %v5811_v37 }
 0x3b9   :  { %v5815_v2 = vpop.eup %5814 }
 0x3ba   :  { %v5817_v3 = vpop.eup %5816  ;;  %v1037_v4 = vmul.f32 %v5815_v2, %v5813_v48  ;;  %5818 = vrcp.f32 %v1031_v6 }
 0x3bb   :  { %v1036_v12 = vmul.f32 %v5817_v3, %v1034_v49 }
 0x3bd   :  { %v7203_v62 = vadd.f32 %v1037_v4, %v1036_v12 }
 0x3bf   :  { %5820 = vtanh.f32 %v7203_v62 }
 0x3c0   :  { %v5819_v17 = vpop.eup %5818 }
 0x3c5   :  { %v5821_v0 = vpop.eup %5820 }
 0x3c6   :  { %v7206_v13 = vmul.f32 %v5821_v0, %v5819_v17 }
 0x3c8   :  { %v1041_v22 = vpack.c.bf16 %v7206_v13, %v7206_v13 }
 0x3ca   :  { %1050 = vmatmul.bf16.vlgmr.msra.gmra.mxu0 %v1041_v22  ;;  %1063 = vmatmul.bf16.vlgmr.msra.gmra.mxu1 %v1041_v22 }
 0x3cb   :  { %1076 = vmatmul.bf16.vlgmr.msra.gmra.mxu2 %v1041_v22  ;;  %1089 = vmatmul.bf16.vlgmr.msra.gmra.mxu3 %v1041_v22 }
 0x3cc   :  { %1234 = vmatpush.bf16.msra.mxu0 %v6645_v47  ;;  %1247 = vmatpush.bf16.msra.mxu1 %v6656_v51 }
 0x3cd   :  { %1260 = vmatpush.bf16.msra.mxu2 %v6658_v52  ;;  %1273 = vmatpush.bf16.msra.mxu3 %v6670_v56 }
 0x3d0   :  { %1235 = vmatpush.bf16.msra.mxu0 %v6683_v60  ;;  %1248 = vmatpush.bf16.msra.mxu1 %v6685_v61 }
 0x3d1   :  { %1261 = vmatpush.bf16.msra.mxu2 %v6697_v1  ;;  %1274 = vmatpush.bf16.msra.mxu3 %v6708_v5 }
 0x3d4   :  { %1236 = vmatpush.bf16.msra.mxu0 %v6720_v10  ;;  %1249 = vmatpush.bf16.msra.mxu1 %v6733_v14 }
 0x3d5   :  { %1262 = vmatpush.bf16.msra.mxu2 %v6735_v15  ;;  %1275 = vmatpush.bf16.msra.mxu3 %v6748_v19 }
 0x3d8   :  { %1237 = vmatpush.bf16.msra.mxu0 %v6771_v26  ;;  %1250 = vmatpush.bf16.msra.mxu1 %v6779_v28 }
 0x3d9   :  { %1263 = vmatpush.bf16.msra.mxu2 %v6781_v29  ;;  %1276 = vmatpush.bf16.msra.mxu3 %v6793_v33 }
 0x3dc   :  { %1238 = vmatpush.bf16.msra.mxu0 %v6811_v39  ;;  %1251 = vmatpush.bf16.msra.mxu1 %v6815_v40 }
 0x3dd   :  { %1264 = vmatpush.bf16.msra.mxu2 %v6817_v41  ;;  %1277 = vmatpush.bf16.msra.mxu3 %v6829_v45 }
 0x3e0   :  { %1239 = vmatpush.bf16.msra.mxu0 %v6847_v54  ;;  %1252 = vmatpush.bf16.msra.mxu1 %v6851_v55 }
 0x3e1   :  { %1265 = vmatpush.bf16.msra.mxu2 %v6853_v57  ;;  %1278 = vmatpush.bf16.msra.mxu3 %v6865_v63 }
 0x3e4   :  { %1240 = vmatpush.bf16.msra.mxu0 %v6883_v7  ;;  %1253 = vmatpush.bf16.msra.mxu1 %v6887_v8 }
 0x3e5   :  { %1266 = vmatpush.bf16.msra.mxu2 %v6889_v9  ;;  %1279 = vmatpush.bf16.msra.mxu3 %v6901_v16 }
 0x3e8   :  { %1241 = vmatpush.bf16.msra.mxu0 %v6919_v23  ;;  %1254 = vmatpush.bf16.msra.mxu1 %v6923_v24  ;;  %v1127_v24 = vrot.slane %v7203_v62, 6 }
 0x3e9   :  { %1267 = vmatpush.bf16.msra.mxu2 %v6925_v25  ;;  %1280 = vmatpush.bf16.msra.mxu3 %v6928_v27 }
 0x447   :  { %v1051_v47 = vpop.f32.mrf.mxu0  ;;  %v1064_v51 = vpop.f32.mrf.mxu1 }
 0x448   :  { %v1098_v52 = vrot.slane %v1051_v47, 6  ;;  %v1099_v56 = vrot.slane %v1064_v51, 6 }
 0x44a   :  { %v1106_v60 = vadd.f32 %v1098_v52, %v7005_v43  ;;  %v1107_v61 = vadd.f32 %v1099_v56, %v7007_v46 }
 0x44c   :  { %v1110_v1 = vsub.f32 0.0, %v1106_v60  ;;  %v1115_v5 = vsub.f32 0.0, %v1107_v61 }
 0x44e   :  { %v1111_v10 = vmul.f32 1.442695, %v1110_v1  ;;  %v1116_v14 = vmul.f32 1.442695, %v1115_v5  ;;  %v1077_v15 = vpop.f32.mrf.mxu2  ;;  %v1090_v19 = vpop.f32.mrf.mxu3 }
 0x44f   :  { %v1101_v26 = vrot.slane %v1090_v19, 6  ;;  %v1053_v28 = vpop.f32.mrf.mxu0  ;;  %v1066_v29 = vpop.f32.mrf.mxu1  ;;  %v1100_v33 = vrot.slane %v1077_v15, 6 }
 0x450   :  { %5822 = vpow2.f32 %v1111_v10 }
 0x451   :  { %5824 = vpow2.f32 %v1116_v14  ;;  %v1109_v39 = vadd.f32 %v1101_v26, %v7009_v53  ;;  %v1108_v41 = vadd.f32 %v1100_v33, %v7011_v59 }
 0x453   :  { %v1121_v40 = vsub.f32 0.0, %v1109_v39 }
 0x455   :  { %v1122_v45 = vmul.f32 1.442695, %v1121_v40 }
 0x456   :  { %v5823_v54 = vpop.eup %5822  ;;  %v1079_v55 = vpop.f32.mrf.mxu2 }
 0x457   :  { %v1092_v57 = vpop.f32.mrf.mxu3  ;;  %v5825_v63 = vpop.eup %5824  ;;  %v1113_v7 = vadd.f32 1.0, %v5823_v54  ;;  %5826 = vpow2.f32 %v1122_v45 }
 0x458   :  { %v1118_v8 = vadd.f32 1.0, %v5825_v63  ;;  %5828 = vtanh.f32 %v1108_v41 }
 0x459   :  { %5830 = vrcp.f32 %v1113_v7 }
 0x45a   :  { %5832 = vrcp.f32 %v1118_v8 }
 0x45d   :  { %v5827_v9 = vpop.eup %5826 }
 0x45e   :  { %v5829_v16 = vpop.eup %5828  ;;  %v1124_v44 = vadd.f32 1.0, %v5827_v9 }
 0x45f   :  { %v5831_v23 = vpop.eup %5830 }
 0x460   :  { %v5833_v25 = vpop.eup %5832  ;;  %v1130_v27 = vmul.f32 %v5831_v23, %v5829_v16  ;;  %5834 = vrcp.f32 %v1124_v44 }
 0x461   :  { %v1129_v11 = vmul.f32 %v5833_v25, %v1127_v24 }
 0x463   :  { %v1131_v20 = vadd.f32 %v1130_v27, %v1129_v11 }
 0x465   :  { %5836 = vtanh.f32 %v1131_v20  ;;  %v1223_v26 = vrot.slane %v1131_v20, 6 }
 0x466   :  { %v5835_v31 = vpop.eup %5834 }
 0x46b   :  { %v5837_v32 = vpop.eup %5836 }
 0x46c   :  { %v1133_v34 = vmul.f32 %v5837_v32, %v5835_v31 }
 0x46e   :  { %v1134_v35 = vpack.c.bf16 %v1133_v34, %v1133_v34  ;;  %v1332_v55 = vsel %vm1326_vm1, %v7206_v13, %v1133_v34 }
 0x470   :  { %v1136_v18 = vrot.slane %v1134_v35, 1 }
 0x472   :  { %1146 = vmatmul.bf16.vlgmr.msrb.gmra.mxu0 %v1136_v18  ;;  %1159 = vmatmul.bf16.vlgmr.msrb.gmra.mxu1 %v1136_v18 }
 0x473   :  { %1172 = vmatmul.bf16.vlgmr.msrb.gmra.mxu2 %v1136_v18  ;;  %1185 = vmatmul.bf16.vlgmr.msrb.gmra.mxu3 %v1136_v18 }
 0x4ef   :  { %v1147_v36 = vpop.f32.mrf.mxu0  ;;  %v1160_v38 = vpop.f32.mrf.mxu1 }
 0x4f0   :  { %v1194_v21 = vrot.slane %v1147_v36, 4  ;;  %v1195_v50 = vrot.slane %v1160_v38, 4 }
 0x4f2   :  { %v1202_v58 = vadd.f32 %v1194_v21, %v7005_v43  ;;  %v1203_v37 = vadd.f32 %v1195_v50, %v7007_v46 }
 0x4f4   :  { %v1206_v48 = vsub.f32 0.0, %v1202_v58  ;;  %v1211_v2 = vsub.f32 0.0, %v1203_v37 }
 0x4f6   :  { %v1207_v49 = vmul.f32 1.442695, %v1206_v48  ;;  %v1212_v3 = vmul.f32 1.442695, %v1211_v2  ;;  %v1173_v4 = vpop.f32.mrf.mxu2  ;;  %v1186_v6 = vpop.f32.mrf.mxu3 }
 0x4f7   :  { %v1197_v12 = vrot.slane %v1186_v6, 4  ;;  %v1149_v62 = vpop.f32.mrf.mxu0  ;;  %v1162_v17 = vpop.f32.mrf.mxu1  ;;  %v1196_v0 = vrot.slane %v1173_v4, 4 }
 0x4f8   :  { %5838 = vpow2.f32 %v1207_v49 }
 0x4f9   :  { %5840 = vpow2.f32 %v1212_v3  ;;  %v1205_v22 = vadd.f32 %v1197_v12, %v7009_v53  ;;  %v1204_v51 = vadd.f32 %v1196_v0, %v7011_v59 }
 0x4fb   :  { %v1217_v47 = vsub.f32 0.0, %v1205_v22 }
 0x4fd   :  { %v1218_v52 = vmul.f32 1.442695, %v1217_v47 }
 0x4fe   :  { %v5839_v56 = vpop.eup %5838  ;;  %v1175_v60 = vpop.f32.mrf.mxu2 }
 0x4ff   :  { %v1188_v61 = vpop.f32.mrf.mxu3  ;;  %v5841_v1 = vpop.eup %5840  ;;  %v1209_v5 = vadd.f32 1.0, %v5839_v56  ;;  %5842 = vpow2.f32 %v1218_v52 }
 0x500   :  { %v1214_v10 = vadd.f32 1.0, %v5841_v1  ;;  %5844 = vtanh.f32 %v1204_v51 }
 0x501   :  { %5846 = vrcp.f32 %v1209_v5 }
 0x502   :  { %5848 = vrcp.f32 %v1214_v10 }
 0x505   :  { %v5843_v14 = vpop.eup %5842 }
 0x506   :  { %v5845_v15 = vpop.eup %5844  ;;  %v1220_v33 = vadd.f32 1.0, %v5843_v14 }
 0x507   :  { %v5847_v19 = vpop.eup %5846 }
 0x508   :  { %v5849_v28 = vpop.eup %5848  ;;  %v1226_v29 = vmul.f32 %v5847_v19, %v5845_v15  ;;  %5850 = vrcp.f32 %v1220_v33 }
 0x509   :  { %v1225_v39 = vmul.f32 %v5849_v28, %v1223_v26 }
 0x50b   :  { %v1227_v40 = vadd.f32 %v1226_v29, %v1225_v39 }
 0x50d   :  { %5852 = vtanh.f32 %v1227_v40  ;;  %v1319_v6 = vrot.slane %v1227_v40, 6 }
 0x50e   :  { %v5851_v41 = vpop.eup %5850 }
 0x513   :  { %v5853_v45 = vpop.eup %5852 }
 0x514   :  { %v1229_v54 = vmul.f32 %v5853_v45, %v5851_v41 }
 0x516   :  { %v1230_v57 = vpack.c.bf16 %v1229_v54, %v1229_v54  ;;  %v1333_v63 = vsel %vm1328_vm2, %v1332_v55, %v1229_v54 }
 0x518   :  { %v1232_v7 = vrot.slane %v1230_v57, 2 }
 0x51a   :  { %1242 = vmatmul.bf16.vlgmr.msra.gmra.mxu0 %v1232_v7  ;;  %1255 = vmatmul.bf16.vlgmr.msra.gmra.mxu1 %v1232_v7 }
 0x51b   :  { %1268 = vmatmul.bf16.vlgmr.msra.gmra.mxu2 %v1232_v7  ;;  %1281 = vmatmul.bf16.vlgmr.msra.gmra.mxu3 %v1232_v7 }
 0x597   :  { %v1243_v8 = vpop.f32.mrf.mxu0  ;;  %v1256_v9 = vpop.f32.mrf.mxu1 }
 0x598   :  { %v1290_v16 = vrot.slane %v1243_v8, 2  ;;  %v1291_v23 = vrot.slane %v1256_v9, 2 }
 0x59a   :  { %v1298_v24 = vadd.f32 %v1290_v16, %v7005_v43  ;;  %v1299_v25 = vadd.f32 %v1291_v23, %v7007_v46 }
 0x59c   :  { %v1302_v27 = vsub.f32 0.0, %v1298_v24  ;;  %v1307_v44 = vsub.f32 0.0, %v1299_v25 }
 0x59e   :  { %v1303_v11 = vmul.f32 1.442695, %v1302_v27  ;;  %v1308_v13 = vmul.f32 1.442695, %v1307_v44  ;;  %v1269_v20 = vpop.f32.mrf.mxu2  ;;  %v1282_v31 = vpop.f32.mrf.mxu3 }
 0x59f   :  { %v1293_v32 = vrot.slane %v1282_v31, 2  ;;  %v1245_v34 = vpop.f32.mrf.mxu0  ;;  %v1258_v35 = vpop.f32.mrf.mxu1  ;;  %v1292_v18 = vrot.slane %v1269_v20, 2 }
 0x5a0   :  { %5854 = vpow2.f32 %v1303_v11 }
 0x5a1   :  { %5856 = vpow2.f32 %v1308_v13  ;;  %v1301_v36 = vadd.f32 %v1293_v32, %v7009_v53  ;;  %v1300_v21 = vadd.f32 %v1292_v18, %v7011_v59 }
 0x5a3   :  { %v1313_v38 = vsub.f32 0.0, %v1301_v36 }
 0x5a5   :  { %v1314_v43 = vmul.f32 1.442695, %v1313_v38 }
 0x5a6   :  { %v5855_v50 = vpop.eup %5854  ;;  %v1271_v46 = vpop.f32.mrf.mxu2 }
 0x5a7   :  { %v1284_v58 = vpop.f32.mrf.mxu3  ;;  %v5857_v37 = vpop.eup %5856  ;;  %v1305_v48 = vadd.f32 1.0, %v5855_v50  ;;  %5858 = vpow2.f32 %v1314_v43 }
 0x5a8   :  { %v1310_v2 = vadd.f32 1.0, %v5857_v37  ;;  %5860 = vtanh.f32 %v1300_v21 }
 0x5a9   :  { %5862 = vrcp.f32 %v1305_v48 }
 0x5aa   :  { %5864 = vrcp.f32 %v1310_v2 }
 0x5ad   :  { %v5859_v49 = vpop.eup %5858 }
 0x5ae   :  { %v5861_v3 = vpop.eup %5860  ;;  %v1316_v62 = vadd.f32 1.0, %v5859_v49 }
 0x5af   :  { %v5863_v4 = vpop.eup %5862 }
 0x5b0   :  { %v5865_v12 = vpop.eup %5864  ;;  %v1322_v53 = vmul.f32 %v5863_v4, %v5861_v3  ;;  %5866 = vrcp.f32 %v1316_v62 }
 0x5b1   :  { %v1321_v17 = vmul.f32 %v5865_v12, %v1319_v6 }
 0x5b3   :  { %v1323_v59 = vadd.f32 %v1322_v53, %v1321_v17 }
 0x5b5   :  { %5868 = vtanh.f32 %v1323_v59 }
 0x5b6   :  { %v5867_v0 = vpop.eup %5866 }
 0x5bb   :  { %v5869_v22 = vpop.eup %5868 }
 0x5bc   :  { %v1325_v47 = vmul.f32 %v5869_v22, %v5867_v0 }
 0x5be   :  { %v1334_v51 = vsel %vm1330_vm3, %v1333_v63, %v1325_v47 }
 0x5bf   :  { %v7260_v52 = vpack.c.bf16 %v1334_v51, %v7164_v42 }
 0x5c0   :  { %6223 = dma.done.wait [#allocation7], 4096 }
 0x5c1   :  { %6224 = vsyncadd [#allocation7], 4294963200 }
 0x5c2   :  { %6225 = dma.done.wait [#allocation7 + $0x1], 4096 }
 0x5c3   :  { %6226 = vsyncadd [#allocation7 + $0x1], 4294963200  ;;  %v4850_v56 = vld [vmem:[#allocation2 + $0xe0] sm:$0xf]  ;;  %v5575_v60 = vld [vmem:[#allocation2 + $0xec] sm:$0xf0] }
 0x5c4   :  { %v5573_v61 = vld [vmem:[#allocation2 + $0xe4] sm:$0xf]  ;;  %v4851_v1 = vor.u32 %v5575_v60, %v4850_v56  ;;  %v4852_v5 = vld [vmem:[#allocation2 + $0xf0] sm:$0xf0]  ;;  %v4858_v10 = vld [vmem:[#allocation2 + $0xe8] sm:$0xf] }
 0x5c5   :  { %v5576_v14 = vld [vmem:[#allocation2 + $0xf4] sm:$0xf0]  ;;  %v4855_v15 = vor.u32 %v5573_v61, %v4852_v5  ;;  %v5574_v26 = vld [vmem:[#allocation2 + $0xec] sm:$0xf]  ;;  %v4860_v28 = vld [vmem:[#allocation2 + $0xf8] sm:$0xf0] }
 0x5c6   :  { %v4859_v19 = vor.u32 %v5576_v14, %v4858_v10  ;;  %v4834_v29 = vld [vmem:[#allocation2 + $0xc0] sm:$0xf]  ;;  %1576 = vmatpush.bf16.msrb.mxu0 %v4851_v1  ;;  %v4863_v33 = vor.u32 %v5574_v26, %v4860_v28  ;;  %v5571_v42 = vld [vmem:[#allocation2 + $0xcc] sm:$0xf0]  ;;  %v5569_v39 = vld [vmem:[#allocation2 + $0xc4] sm:$0xf] }
 0x5c7   :  { %v4836_v40 = vld [vmem:[#allocation2 + $0xd0] sm:$0xf0]  ;;  %1590 = vmatpush.bf16.msrb.mxu1 %v4855_v15  ;;  %v4835_v41 = vor.u32 %v5571_v42, %v4834_v29  ;;  %v4842_v54 = vld [vmem:[#allocation2 + $0xc8] sm:$0xf]  ;;  %v5572_v55 = vld [vmem:[#allocation2 + $0xd4] sm:$0xf0] }
 0x5c8   :  { %1604 = vmatpush.bf16.msrb.mxu2 %v4859_v19  ;;  %v4839_v45 = vor.u32 %v5569_v39, %v4836_v40  ;;  %v5570_v57 = vld [vmem:[#allocation2 + $0xcc] sm:$0xf]  ;;  %1618 = vmatpush.bf16.msrb.mxu3 %v4863_v33  ;;  %v4843_v63 = vor.u32 %v5572_v55, %v4842_v54  ;;  %v4844_v7 = vld [vmem:[#allocation2 + $0xd8] sm:$0xf0]  ;;  %v4818_v8 = vld [vmem:[#allocation2 + $0xa0] sm:$0xf] }
 0x5c9   :  { %v5567_v9 = vld [vmem:[#allocation2 + $0xac] sm:$0xf0]  ;;  %v4847_v16 = vor.u32 %v5570_v57, %v4844_v7  ;;  %v5565_v23 = vld [vmem:[#allocation2 + $0xa4] sm:$0xf]  ;;  %v4820_v24 = vld [vmem:[#allocation2 + $0xb0] sm:$0xf0] }
 0x5ca   :  { %v4826_v25 = vld [vmem:[#allocation2 + $0xa8] sm:$0xf]  ;;  %1577 = vmatpush.bf16.msrb.mxu0 %v4835_v41  ;;  %v4819_v27 = vor.u32 %v5567_v9, %v4818_v8  ;;  %v5568_v44 = vld [vmem:[#allocation2 + $0xb4] sm:$0xf0]  ;;  %v5566_v11 = vld [vmem:[#allocation2 + $0xac] sm:$0xf]  ;;  %v4823_v20 = vor.u32 %v5565_v23, %v4820_v24 }
 0x5cb   :  { %v4828_v13 = vld [vmem:[#allocation2 + $0xb8] sm:$0xf0]  ;;  %1591 = vmatpush.bf16.msrb.mxu1 %v4839_v45  ;;  %v4827_v31 = vor.u32 %v5568_v44, %v4826_v25  ;;  %v4802_v32 = vld [vmem:[#allocation2 + $0x80] sm:$0xf]  ;;  %v5563_v34 = vld [vmem:[#allocation2 + $0x8c] sm:$0xf0] }
 0x5cc   :  { %1605 = vmatpush.bf16.msrb.mxu2 %v4843_v63  ;;  %v5561_v35 = vld [vmem:[#allocation2 + $0x84] sm:$0xf]  ;;  %1619 = vmatpush.bf16.msrb.mxu3 %v4847_v16  ;;  %v4831_v18 = vor.u32 %v5566_v11, %v4828_v13  ;;  %v4804_v36 = vld [vmem:[#allocation2 + $0x90] sm:$0xf0]  ;;  %v4810_v38 = vld [vmem:[#allocation2 + $0x88] sm:$0xf]  ;;  %v4803_v46 = vor.u32 %v5563_v34, %v4802_v32 }
 0x5cd   :  { %v5564_v21 = vld [vmem:[#allocation2 + $0x94] sm:$0xf0]  ;;  %v5562_v43 = vld [vmem:[#allocation2 + $0x8c] sm:$0xf]  ;;  %v4812_v50 = vld [vmem:[#allocation2 + $0x98] sm:$0xf0]  ;;  %v4807_v58 = vor.u32 %v5561_v35, %v4804_v36 }
 0x5ce   :  { %1578 = vmatpush.bf16.msrb.mxu0 %v4819_v27  ;;  %v4811_v37 = vor.u32 %v5564_v21, %v4810_v38  ;;  %v4786_v48 = vld [vmem:[#allocation2 + $0x60] sm:$0xf]  ;;  %v5559_v2 = vld [vmem:[#allocation2 + $0x6c] sm:$0xf0]  ;;  %v5557_v49 = vld [vmem:[#allocation2 + $0x64] sm:$0xf]  ;;  %v4815_v3 = vor.u32 %v5562_v43, %v4812_v50 }
 0x5cf   :  { %1592 = vmatpush.bf16.msrb.mxu1 %v4823_v20  ;;  %v4788_v4 = vld [vmem:[#allocation2 + $0x70] sm:$0xf0]  ;;  %v4794_v6 = vld [vmem:[#allocation2 + $0x68] sm:$0xf]  ;;  %v5560_v12 = vld [vmem:[#allocation2 + $0x74] sm:$0xf0]  ;;  %v4787_v17 = vor.u32 %v5559_v2, %v4786_v48 }
 0x5d0   :  { %1606 = vmatpush.bf16.msrb.mxu2 %v4827_v31  ;;  %1620 = vmatpush.bf16.msrb.mxu3 %v4831_v18  ;;  %v5558_v53 = vld [vmem:[#allocation2 + $0x6c] sm:$0xf]  ;;  %v4796_v62 = vld [vmem:[#allocation2 + $0x78] sm:$0xf0]  ;;  %v4791_v59 = vor.u32 %v5557_v49, %v4788_v4  ;;  %v4795_v0 = vor.u32 %v5560_v12, %v4794_v6  ;;  %v4770_v22 = vld [vmem:[#allocation2 + $0x40] sm:$0xf] }
 0x5d1   :  { %v5555_v47 = vld [vmem:[#allocation2 + $0x4c] sm:$0xf0]  ;;  %v5553_v51 = vld [vmem:[#allocation2 + $0x44] sm:$0xf]  ;;  %v4799_v56 = vor.u32 %v5558_v53, %v4796_v62  ;;  %v4772_v60 = vld [vmem:[#allocation2 + $0x50] sm:$0xf0] }
 0x5d2   :  { %1579 = vmatpush.bf16.msrb.mxu0 %v4803_v46  ;;  %v4778_v61 = vld [vmem:[#allocation2 + $0x48] sm:$0xf]  ;;  %v5556_v1 = vld [vmem:[#allocation2 + $0x54] sm:$0xf0]  ;;  %v5554_v5 = vld [vmem:[#allocation2 + $0x4c] sm:$0xf]  ;;  %v4771_v14 = vor.u32 %v5555_v47, %v4770_v22  ;;  %v4775_v15 = vor.u32 %v5553_v51, %v4772_v60 }
 0x5d3   :  { %1593 = vmatpush.bf16.msrb.mxu1 %v4807_v58  ;;  %v4780_v10 = vld [vmem:[#allocation2 + $0x58] sm:$0xf0]  ;;  %v4779_v19 = vor.u32 %v5556_v1, %v4778_v61  ;;  %v4754_v26 = vld [vmem:[#allocation2 + $0x20] sm:$0xf]  ;;  %v5551_v28 = vld [vmem:[#allocation2 + $0x2c] sm:$0xf0] }
 0x5d4   :  { %1607 = vmatpush.bf16.msrb.mxu2 %v4811_v37  ;;  %1621 = vmatpush.bf16.msrb.mxu3 %v4815_v3  ;;  %v5549_v29 = vld [vmem:[#allocation2 + $0x24] sm:$0xf]  ;;  %v4783_v33 = vor.u32 %v5554_v5, %v4780_v10  ;;  %v4756_v42 = vld [vmem:[#allocation2 + $0x30] sm:$0xf0]  ;;  %v4762_v39 = vld [vmem:[#allocation2 + $0x28] sm:$0xf]  ;;  %v4755_v54 = vor.u32 %v5551_v28, %v4754_v26 }
 0x5d5   :  { %v5552_v40 = vld [vmem:[#allocation2 + $0x34] sm:$0xf0]  ;;  %v5550_v41 = vld [vmem:[#allocation2 + $0x2c] sm:$0xf]  ;;  %v4764_v45 = vld [vmem:[#allocation2 + $0x38] sm:$0xf0]  ;;  %v4759_v63 = vor.u32 %v5549_v29, %v4756_v42 }
 0x5d6   :  { %1580 = vmatpush.bf16.msrb.mxu0 %v4787_v17  ;;  %v4738_v55 = vld [vmem:[#allocation2] sm:$0xf]  ;;  %v5547_v57 = vld [vmem:[#allocation2 + $0xc] sm:$0xf0]  ;;  %v4763_v7 = vor.u32 %v5552_v40, %v4762_v39  ;;  %v5545_v8 = vld [vmem:[#allocation2 + $0x4] sm:$0xf]  ;;  %v4767_v23 = vor.u32 %v5550_v41, %v4764_v45 }
 0x5d7   :  { %1594 = vmatpush.bf16.msrb.mxu1 %v4791_v59  ;;  %v4740_v9 = vld [vmem:[#allocation2 + $0x10] sm:$0xf0]  ;;  %v4746_v16 = vld [vmem:[#allocation2 + $0x8] sm:$0xf]  ;;  %v5548_v24 = vld [vmem:[#allocation2 + $0x14] sm:$0xf0]  ;;  %v4739_v20 = vor.u32 %v5547_v57, %v4738_v55 }
 0x5d8   :  { %1608 = vmatpush.bf16.msrb.mxu2 %v4795_v0  ;;  %1622 = vmatpush.bf16.msrb.mxu3 %v4799_v56  ;;  %v5546_v25 = vld [vmem:[#allocation2 + $0xc] sm:$0xf]  ;;  %v4748_v27 = vld [vmem:[#allocation2 + $0x18] sm:$0xf0]  ;;  %v4978_v44 = vld [vmem:[#allocation3 + $0xe0] sm:$0xf]  ;;  %v4743_v35 = vor.u32 %v5545_v8, %v4740_v9  ;;  %v4747_v18 = vor.u32 %v5548_v24, %v4746_v16 }
 0x5d9   :  { %v5607_v11 = vld [vmem:[#allocation3 + $0xec] sm:$0xf0]  ;;  %v5605_v13 = vld [vmem:[#allocation3 + $0xe4] sm:$0xf]  ;;  %v4980_v31 = vld [vmem:[#allocation3 + $0xf0] sm:$0xf0]  ;;  %v4751_v21 = vor.u32 %v5546_v25, %v4748_v27 }
 0x5da   :  { %1581 = vmatpush.bf16.msrb.mxu0 %v4771_v14  ;;  %v4986_v32 = vld [vmem:[#allocation3 + $0xe8] sm:$0xf]  ;;  %v5608_v34 = vld [vmem:[#allocation3 + $0xf4] sm:$0xf0]  ;;  %v5606_v36 = vld [vmem:[#allocation3 + $0xec] sm:$0xf]  ;;  %v7262_v43 = vor.u32 %v5607_v11, %v4978_v44  ;;  %v7264_v50 = vor.u32 %v5605_v13, %v4980_v31 }
 0x5db   :  { %1595 = vmatpush.bf16.msrb.mxu1 %v4775_v15  ;;  %v4988_v38 = vld [vmem:[#allocation3 + $0xf8] sm:$0xf0]  ;;  %v7266_v46 = vor.u32 %v5608_v34, %v4986_v32  ;;  %v4962_v58 = vld [vmem:[#allocation3 + $0xc0] sm:$0xf]  ;;  %v5603_v37 = vld [vmem:[#allocation3 + $0xcc] sm:$0xf0] }
 0x5dc   :  { %1609 = vmatpush.bf16.msrb.mxu2 %v4779_v19  ;;  %1623 = vmatpush.bf16.msrb.mxu3 %v4783_v33  ;;  %v5601_v48 = vld [vmem:[#allocation3 + $0xc4] sm:$0xf]  ;;  %v7268_v2 = vor.u32 %v5606_v36, %v4988_v38  ;;  %v4964_v49 = vld [vmem:[#allocation3 + $0xd0] sm:$0xf0]  ;;  %v4970_v3 = vld [vmem:[#allocation3 + $0xc8] sm:$0xf]  ;;  %v7271_v53 = vor.u32 %v5603_v37, %v4962_v58 }
 0x5dd   :  { %v5604_v4 = vld [vmem:[#allocation3 + $0xd4] sm:$0xf0]  ;;  %v5602_v6 = vld [vmem:[#allocation3 + $0xcc] sm:$0xf]  ;;  %v4972_v12 = vld [vmem:[#allocation3 + $0xd8] sm:$0xf0]  ;;  %v7275_v62 = vor.u32 %v5601_v48, %v4964_v49 }
 0x5de   :  { %1582 = vmatpush.bf16.msrb.mxu0 %v4755_v54  ;;  %v7277_v17 = vor.u32 %v5604_v4, %v4970_v3  ;;  %v4946_v59 = vld [vmem:[#allocation3 + $0xa0] sm:$0xf]  ;;  %v5599_v0 = vld [vmem:[#allocation3 + $0xac] sm:$0xf0]  ;;  %v5597_v22 = vld [vmem:[#allocation3 + $0xa4] sm:$0xf]  ;;  %v7280_v47 = vor.u32 %v5602_v6, %v4972_v12 }
 0x5df   :  { %1596 = vmatpush.bf16.msrb.mxu1 %v4759_v63  ;;  %v4948_v51 = vld [vmem:[#allocation3 + $0xb0] sm:$0xf0]  ;;  %v4954_v56 = vld [vmem:[#allocation3 + $0xa8] sm:$0xf]  ;;  %v5600_v60 = vld [vmem:[#allocation3 + $0xb4] sm:$0xf0]  ;;  %v7286_v5 = vor.u32 %v5599_v0, %v4946_v59 }
 0x5e0   :  { %1610 = vmatpush.bf16.msrb.mxu2 %v4763_v7  ;;  %1624 = vmatpush.bf16.msrb.mxu3 %v4767_v23  ;;  %v5598_v61 = vld [vmem:[#allocation3 + $0xac] sm:$0xf]  ;;  %v4956_v1 = vld [vmem:[#allocation3 + $0xb8] sm:$0xf0]  ;;  %v7291_v10 = vor.u32 %v5597_v22, %v4948_v51  ;;  %v7293_v14 = vor.u32 %v5600_v60, %v4954_v56  ;;  %v4930_v15 = vld [vmem:[#allocation3 + $0x80] sm:$0xf] }
 0x5e1   :  { %v5595_v19 = vld [vmem:[#allocation3 + $0x8c] sm:$0xf0]  ;;  %v5593_v26 = vld [vmem:[#allocation3 + $0x84] sm:$0xf]  ;;  %v7296_v28 = vor.u32 %v5598_v61, %v4956_v1  ;;  %v4932_v29 = vld [vmem:[#allocation3 + $0x90] sm:$0xf0] }
 0x5e2   :  { %1583 = vmatpush.bf16.msrb.mxu0 %v4739_v20  ;;  %v4938_v33 = vld [vmem:[#allocation3 + $0x88] sm:$0xf]  ;;  %v5596_v42 = vld [vmem:[#allocation3 + $0x94] sm:$0xf0]  ;;  %v5594_v39 = vld [vmem:[#allocation3 + $0x8c] sm:$0xf]  ;;  %v7299_v40 = vor.u32 %v5595_v19, %v4930_v15  ;;  %v7303_v41 = vor.u32 %v5593_v26, %v4932_v29 }
 0x5e3   :  { %1597 = vmatpush.bf16.msrb.mxu1 %v4743_v35  ;;  %v7305_v45 = vor.u32 %v5596_v42, %v4938_v33  ;;  %v4914_v54 = vld [vmem:[#allocation3 + $0x60] sm:$0xf]  ;;  %v5591_v55 = vld [vmem:[#allocation3 + $0x6c] sm:$0xf0]  ;;  %v5589_v57 = vld [vmem:[#allocation3 + $0x64] sm:$0xf] }
 0x5e4   :  { %1611 = vmatpush.bf16.msrb.mxu2 %v4747_v18  ;;  %1625 = vmatpush.bf16.msrb.mxu3 %v4751_v21  ;;  %v4916_v7 = vld [vmem:[#allocation3 + $0x70] sm:$0xf0]  ;;  %v4922_v8 = vld [vmem:[#allocation3 + $0x68] sm:$0xf]  ;;  %v5592_v9 = vld [vmem:[#allocation3 + $0x74] sm:$0xf0]  ;;  %v7311_v24 = vor.u32 %v5591_v55, %v4914_v54 }
 0x5e5   :  { %1584 = vmatmul.bf16.vlgmr.msrb.gmra.mxu0 %v7260_v52  ;;  %v5590_v16 = vld [vmem:[#allocation3 + $0x6c] sm:$0xf]  ;;  %v4924_v23 = vld [vmem:[#allocation3 + $0x78] sm:$0xf0]  ;;  %v7315_v25 = vor.u32 %v5589_v57, %v4916_v7  ;;  %v7317_v27 = vor.u32 %v5592_v9, %v4922_v8  ;;  %v4898_v44 = vld [vmem:[#allocation3 + $0x40] sm:$0xf] }
 0x5e6   :  { %1792 = vmatpush.bf16.msra.mxu0 %v7262_v43  ;;  %1598 = vmatmul.bf16.vlgmr.msrb.gmra.mxu1 %v7260_v52  ;;  %v5587_v11 = vld [vmem:[#allocation3 + $0x4c] sm:$0xf0]  ;;  %v5585_v13 = vld [vmem:[#allocation3 + $0x44] sm:$0xf]  ;;  %v7320_v20 = vor.u32 %v5590_v16, %v4924_v23  ;;  %v4900_v31 = vld [vmem:[#allocation3 + $0x50] sm:$0xf0] }
 0x5e7   :  { %1805 = vmatpush.bf16.msra.mxu1 %v7264_v50  ;;  %1626 = vmatmul.bf16.vlgmr.msrb.gmra.mxu3 %v7260_v52  ;;  %v4906_v32 = vld [vmem:[#allocation3 + $0x48] sm:$0xf]  ;;  %v5588_v34 = vld [vmem:[#allocation3 + $0x54] sm:$0xf0]  ;;  %v5586_v35 = vld [vmem:[#allocation3 + $0x4c] sm:$0xf]  ;;  %v7323_v36 = vor.u32 %v5587_v11, %v4898_v44  ;;  %v7327_v38 = vor.u32 %v5585_v13, %v4900_v31 }
 0x5e8   :  { %1818 = vmatpush.bf16.msra.mxu2 %v7266_v46  ;;  %1831 = vmatpush.bf16.msra.mxu3 %v7268_v2  ;;  %v4908_v18 = vld [vmem:[#allocation3 + $0x58] sm:$0xf0]  ;;  %v7329_v21 = vor.u32 %v5588_v34, %v4906_v32  ;;  %v4882_v58 = vld [vmem:[#allocation3 + $0x20] sm:$0xf]  ;;  %v5583_v37 = vld [vmem:[#allocation3 + $0x2c] sm:$0xf0] }
 0x5e9   :  { %1612 = vmatmul.bf16.vlgmr.msrb.gmra.mxu2 %v7260_v52  ;;  %v4940_v52 = vld [vmem:[#allocation3 + $0x98] sm:$0xf0]  ;;  %v5581_v48 = vld [vmem:[#allocation3 + $0x24] sm:$0xf]  ;;  %v7332_v49 = vor.u32 %v5586_v35, %v4908_v18  ;;  %v4884_v3 = vld [vmem:[#allocation3 + $0x30] sm:$0xf0]  ;;  %v7335_v0 = vor.u32 %v5583_v37, %v4882_v58 }
 0x5ea   :  { %1793 = vmatpush.bf16.msra.mxu0 %v7271_v53  ;;  %v7308_v63 = vor.u32 %v5594_v39, %v4940_v52  ;;  %v4890_v4 = vld [vmem:[#allocation3 + $0x28] sm:$0xf]  ;;  %v5584_v6 = vld [vmem:[#allocation3 + $0x34] sm:$0xf0]  ;;  %v5582_v12 = vld [vmem:[#allocation3 + $0x2c] sm:$0xf]  ;;  %v7339_v22 = vor.u32 %v5581_v48, %v4884_v3 }
 0x5eb   :  { %1806 = vmatpush.bf16.msra.mxu1 %v7275_v62  ;;  %v4892_v59 = vld [vmem:[#allocation3 + $0x38] sm:$0xf0]  ;;  %v7341_v51 = vor.u32 %v5584_v6, %v4890_v4  ;;  %v4866_v56 = vld [vmem:[#allocation3] sm:$0xf]  ;;  %v5579_v60 = vld [vmem:[#allocation3 + $0xc] sm:$0xf0] }
 0x5ec   :  { %1819 = vmatpush.bf16.msra.mxu2 %v7277_v17  ;;  %1832 = vmatpush.bf16.msra.mxu3 %v7280_v47  ;;  %v5577_v61 = vld [vmem:[#allocation3 + $0x4] sm:$0xf]  ;;  %v7344_v1 = vor.u32 %v5582_v12, %v4892_v59  ;;  %v4868_v15 = vld [vmem:[#allocation3 + $0x10] sm:$0xf0]  ;;  %v4874_v19 = vld [vmem:[#allocation3 + $0x8] sm:$0xf]  ;;  %v7347_v42 = vor.u32 %v5579_v60, %v4866_v56 }
 0x5ed   :  { %v5580_v26 = vld [vmem:[#allocation3 + $0x14] sm:$0xf0]  ;;  %v5578_v29 = vld [vmem:[#allocation3 + $0xc] sm:$0xf]  ;;  %v4876_v33 = vld [vmem:[#allocation3 + $0x18] sm:$0xf0]  ;;  %v7351_v39 = vor.u32 %v5577_v61, %v4868_v15 }
 0x5ee   :  { %1794 = vmatpush.bf16.msra.mxu0 %v7286_v5  ;;  %v7353_v52 = vor.u32 %v5580_v26, %v4874_v19  ;;  %v7356_v54 = vor.u32 %v5578_v29, %v4876_v33  ;;  %v1406_v7 = vld [vmem:[%s8510_s4] sm:$0xf] }
 0x5ef   :  { %1807 = vmatpush.bf16.msra.mxu1 %v7291_v10  ;;  %v1408_v8 = vperm.slane %v1406_v7, 0  ;;  %v1409_v9 = vperm.slane %v1406_v7, 1  ;;  %v1411_v32 = vperm.slane %v1406_v7, 3  ;;  %v1410_v34 = vperm.slane %v1406_v7, 2 }
 0x5f0   :  { %1820 = vmatpush.bf16.msra.mxu2 %v7293_v14  ;;  %1833 = vmatpush.bf16.msra.mxu3 %v7296_v28 }
 0x5f2   :  { %1795 = vmatpush.bf16.msra.mxu0 %v7299_v40 }
 0x5f3   :  { %1808 = vmatpush.bf16.msra.mxu1 %v7303_v41 }
 0x5f4   :  { %1821 = vmatpush.bf16.msra.mxu2 %v7305_v45  ;;  %1834 = vmatpush.bf16.msra.mxu3 %v7308_v63 }
 0x5f6   :  { %1796 = vmatpush.bf16.msra.mxu0 %v7311_v24 }
 0x5f7   :  { %1809 = vmatpush.bf16.msra.mxu1 %v7315_v25 }
 0x5f8   :  { %1822 = vmatpush.bf16.msra.mxu2 %v7317_v27  ;;  %1835 = vmatpush.bf16.msra.mxu3 %v7320_v20 }
 0x5fa   :  { %1797 = vmatpush.bf16.msra.mxu0 %v7323_v36 }
 0x5fb   :  { %1810 = vmatpush.bf16.msra.mxu1 %v7327_v38 }
 0x5fc   :  { %1823 = vmatpush.bf16.msra.mxu2 %v7329_v21  ;;  %1836 = vmatpush.bf16.msra.mxu3 %v7332_v49 }
 0x5fe   :  { %1798 = vmatpush.bf16.msra.mxu0 %v7335_v0 }
 0x5ff   :  { %1811 = vmatpush.bf16.msra.mxu1 %v7339_v22 }
 0x600   :  { %1824 = vmatpush.bf16.msra.mxu2 %v7341_v51  ;;  %1837 = vmatpush.bf16.msra.mxu3 %v7344_v1 }
 0x602   :  { %1799 = vmatpush.bf16.msra.mxu0 %v7347_v42 }
 0x603   :  { %1812 = vmatpush.bf16.msra.mxu1 %v7351_v39 }
 0x604   :  { %1825 = vmatpush.bf16.msra.mxu2 %v7353_v52  ;;  %1838 = vmatpush.bf16.msra.mxu3 %v7356_v54 }
 0x605   :  { %1800 = vmatmul.bf16.vlgmr.msra.gmra.mxu0 %v6238_v30 }
 0x606   :  { %1870 = vmatpush.bf16.msrb.mxu0 %v7262_v43  ;;  %1813 = vmatmul.bf16.vlgmr.msra.gmra.mxu1 %v6238_v30 }
 0x607   :  { %1883 = vmatpush.bf16.msrb.mxu1 %v7264_v50  ;;  %1826 = vmatmul.bf16.vlgmr.msra.gmra.mxu2 %v6238_v30 }
 0x608   :  { %1839 = vmatmul.bf16.vlgmr.msra.gmra.mxu3 %v6238_v30  ;;  %1896 = vmatpush.bf16.msrb.mxu2 %v7266_v46 }
 0x609   :  { %1909 = vmatpush.bf16.msrb.mxu3 %v7268_v2 }
 0x60a   :  { %1871 = vmatpush.bf16.msrb.mxu0 %v7271_v53 }
 0x60b   :  { %1884 = vmatpush.bf16.msrb.mxu1 %v7275_v62 }
 0x60c   :  { %1897 = vmatpush.bf16.msrb.mxu2 %v7277_v17 }
 0x60d   :  { %1910 = vmatpush.bf16.msrb.mxu3 %v7280_v47 }
 0x60e   :  { %1872 = vmatpush.bf16.msrb.mxu0 %v7286_v5 }
 0x60f   :  { %1885 = vmatpush.bf16.msrb.mxu1 %v7291_v10 }
 0x610   :  { %1898 = vmatpush.bf16.msrb.mxu2 %v7293_v14 }
 0x611   :  { %1911 = vmatpush.bf16.msrb.mxu3 %v7296_v28 }
 0x612   :  { %1873 = vmatpush.bf16.msrb.mxu0 %v7299_v40 }
 0x613   :  { %1886 = vmatpush.bf16.msrb.mxu1 %v7303_v41 }
 0x614   :  { %1899 = vmatpush.bf16.msrb.mxu2 %v7305_v45 }
 0x615   :  { %1912 = vmatpush.bf16.msrb.mxu3 %v7308_v63 }
 0x616   :  { %1874 = vmatpush.bf16.msrb.mxu0 %v7311_v24 }
 0x617   :  { %1887 = vmatpush.bf16.msrb.mxu1 %v7315_v25 }
 0x618   :  { %1900 = vmatpush.bf16.msrb.mxu2 %v7317_v27 }
 0x619   :  { %1913 = vmatpush.bf16.msrb.mxu3 %v7320_v20 }
 0x61a   :  { %1875 = vmatpush.bf16.msrb.mxu0 %v7323_v36 }
 0x61b   :  { %1888 = vmatpush.bf16.msrb.mxu1 %v7327_v38 }
 0x61c   :  { %1901 = vmatpush.bf16.msrb.mxu2 %v7329_v21 }
 0x61d   :  { %1914 = vmatpush.bf16.msrb.mxu3 %v7332_v49 }
 0x61e   :  { %1876 = vmatpush.bf16.msrb.mxu0 %v7335_v0 }
 0x61f   :  { %1889 = vmatpush.bf16.msrb.mxu1 %v7339_v22 }
 0x620   :  { %1902 = vmatpush.bf16.msrb.mxu2 %v7341_v51 }
 0x621   :  { %1915 = vmatpush.bf16.msrb.mxu3 %v7344_v1 }
 0x622   :  { %1877 = vmatpush.bf16.msrb.mxu0 %v7347_v42 }
 0x623   :  { %1890 = vmatpush.bf16.msrb.mxu1 %v7351_v39 }
 0x624   :  { %1903 = vmatpush.bf16.msrb.mxu2 %v7353_v52 }
 0x625   :  { %1916 = vmatpush.bf16.msrb.mxu3 %v7356_v54 }
 0x626   :  { %1966 = vmatpush.bf16.msra.mxu0 %v7262_v43 }
 0x627   :  { %1979 = vmatpush.bf16.msra.mxu1 %v7264_v50 }
 0x628   :  { %1992 = vmatpush.bf16.msra.mxu2 %v7266_v46 }
 0x629   :  { %2005 = vmatpush.bf16.msra.mxu3 %v7268_v2 }
 0x62a   :  { %1967 = vmatpush.bf16.msra.mxu0 %v7271_v53 }
 0x62b   :  { %1980 = vmatpush.bf16.msra.mxu1 %v7275_v62 }
 0x62c   :  { %1993 = vmatpush.bf16.msra.mxu2 %v7277_v17 }
 0x62d   :  { %2006 = vmatpush.bf16.msra.mxu3 %v7280_v47 }
 0x62e   :  { %1968 = vmatpush.bf16.msra.mxu0 %v7286_v5 }
 0x62f   :  { %1981 = vmatpush.bf16.msra.mxu1 %v7291_v10 }
 0x630   :  { %1994 = vmatpush.bf16.msra.mxu2 %v7293_v14 }
 0x631   :  { %2007 = vmatpush.bf16.msra.mxu3 %v7296_v28 }
 0x632   :  { %1969 = vmatpush.bf16.msra.mxu0 %v7299_v40 }
 0x633   :  { %1982 = vmatpush.bf16.msra.mxu1 %v7303_v41 }
 0x634   :  { %1995 = vmatpush.bf16.msra.mxu2 %v7305_v45 }
 0x635   :  { %2008 = vmatpush.bf16.msra.mxu3 %v7308_v63 }
 0x636   :  { %1970 = vmatpush.bf16.msra.mxu0 %v7311_v24 }
 0x637   :  { %1983 = vmatpush.bf16.msra.mxu1 %v7315_v25 }
 0x638   :  { %1996 = vmatpush.bf16.msra.mxu2 %v7317_v27 }
 0x639   :  { %2009 = vmatpush.bf16.msra.mxu3 %v7320_v20 }
 0x63a   :  { %1971 = vmatpush.bf16.msra.mxu0 %v7323_v36 }
 0x63b   :  { %1984 = vmatpush.bf16.msra.mxu1 %v7327_v38 }
 0x63c   :  { %1997 = vmatpush.bf16.msra.mxu2 %v7329_v21 }
 0x63d   :  { %2010 = vmatpush.bf16.msra.mxu3 %v7332_v49 }
 0x63e   :  { %1972 = vmatpush.bf16.msra.mxu0 %v7335_v0 }
 0x63f   :  { %1985 = vmatpush.bf16.msra.mxu1 %v7339_v22 }
 0x640   :  { %1998 = vmatpush.bf16.msra.mxu2 %v7341_v51 }
 0x641   :  { %2011 = vmatpush.bf16.msra.mxu3 %v7344_v1 }
 0x642   :  { %1973 = vmatpush.bf16.msra.mxu0 %v7347_v42 }
 0x643   :  { %1986 = vmatpush.bf16.msra.mxu1 %v7351_v39 }
 0x644   :  { %1999 = vmatpush.bf16.msra.mxu2 %v7353_v52 }
 0x645   :  { %2012 = vmatpush.bf16.msra.mxu3 %v7356_v54 }
 0x662   :  { %v1585_v55 = vpop.f32.mrf.mxu0 }
 0x663   :  { %v1599_v57 = vpop.f32.mrf.mxu1  ;;  %v7441_v48 = vadd.f32 %v1585_v55, %v1408_v8 }
 0x664   :  { %v7443_v3 = vadd.f32 %v1599_v57, %v1409_v9 }
 0x66a   :  { %v1627_v16 = vpop.f32.mrf.mxu3  ;;  %v1587_v23 = vpop.f32.mrf.mxu0 }
 0x66b   :  { %v7433_v11 = vadd.f32 %v1587_v23, %v1408_v8  ;;  %v1601_v13 = vpop.f32.mrf.mxu1  ;;  %v7447_v19 = vadd.f32 %v1627_v16, %v1411_v32 }
 0x66c   :  { %v1613_v44 = vpop.f32.mrf.mxu2  ;;  %v7435_v31 = vadd.f32 %v1601_v13, %v1409_v9 }
 0x66d   :  { %v7449_v29 = vadd.f32 %v1613_v44, %v1410_v34 }
 0x672   :  { %v1629_v35 = vpop.f32.mrf.mxu3 }
 0x673   :  { %v7437_v18 = vadd.f32 %v1629_v35, %v1411_v32 }
 0x674   :  { %v1615_v58 = vpop.f32.mrf.mxu2 }
 0x675   :  { %v7439_v37 = vadd.f32 %v1615_v58, %v1410_v34 }
 0x682   :  { %v1801_v4 = vpop.f32.mrf.mxu0 }
 0x683   :  { %v1844_v6 = vadd.f32 %v1801_v4, %v7441_v48  ;;  %v1814_v12 = vpop.f32.mrf.mxu1 }
 0x684   :  { %v1845_v59 = vadd.f32 %v1814_v12, %v7443_v3 }
 0x685   :  { %v1848_v56 = vsub.f32 0.0, %v1844_v6 }
 0x686   :  { %v1853_v60 = vsub.f32 0.0, %v1845_v59 }
 0x687   :  { %v1849_v61 = vmul.f32 1.442695, %v1848_v56 }
 0x688   :  { %v1854_v15 = vmul.f32 1.442695, %v1853_v60 }
 0x689   :  { %5870 = vpow2.f32 %v1849_v61 }
 0x68a   :  { %v1827_v26 = vpop.f32.mrf.mxu2  ;;  %5872 = vpow2.f32 %v1854_v15  ;;  %v1803_v55 = vpop.f32.mrf.mxu0 }
 0x68b   :  { %v1840_v33 = vpop.f32.mrf.mxu3  ;;  %v1816_v7 = vpop.f32.mrf.mxu1  ;;  %v1846_v8 = vadd.f32 %v1827_v26, %v7449_v29 }
 0x68c   :  { %v1847_v57 = vadd.f32 %v1840_v33, %v7447_v19 }
 0x68d   :  { %5874 = vtanh.f32 %v1846_v8 }
 0x68e   :  { %v1859_v9 = vsub.f32 0.0, %v1847_v57 }
 0x68f   :  { %v5871_v23 = vpop.eup %5870 }
 0x690   :  { %v1860_v13 = vmul.f32 1.442695, %v1859_v9  ;;  %v5873_v35 = vpop.eup %5872  ;;  %v1851_v58 = vadd.f32 1.0, %v5871_v23 }
 0x691   :  { %v1856_v16 = vadd.f32 1.0, %v5873_v35 }
 0x692   :  { %5876 = vpow2.f32 %v1860_v13  ;;  %v1829_v32 = vpop.f32.mrf.mxu2 }
 0x693   :  { %5878 = vrcp.f32 %v1851_v58  ;;  %v1842_v44 = vpop.f32.mrf.mxu3  ;;  %v5875_v34 = vpop.eup %5874 }
 0x694   :  { %5880 = vrcp.f32 %v1856_v16 }
 0x698   :  { %v5877_v4 = vpop.eup %5876 }
 0x699   :  { %v5879_v6 = vpop.eup %5878  ;;  %v1862_v56 = vadd.f32 1.0, %v5877_v4 }
 0x69a   :  { %v5881_v12 = vpop.eup %5880  ;;  %v1865_v59 = vmul.f32 %v5879_v6, %v5875_v34 }
 0x69b   :  { %v1864_v60 = vmul.f32 0.0, %v5881_v12  ;;  %5882 = vrcp.f32 %v1862_v56 }
 0x69d   :  { %v7453_v61 = vadd.f32 %v1865_v59, %v1864_v60 }
 0x69f   :  { %5884 = vtanh.f32 %v7453_v61 }
 0x6a1   :  { %v5883_v15 = vpop.eup %5882 }
 0x6a5   :  { %v5885_v26 = vpop.eup %5884 }
 0x6a6   :  { %v7456_v33 = vmul.f32 %v5885_v26, %v5883_v15 }
 0x6a8   :  { %v1869_v55 = vpack.c.bf16 %v7456_v33, %v7456_v33 }
 0x6aa   :  { %1878 = vmatmul.bf16.vlgmr.msrb.gmra.mxu0 %v1869_v55  ;;  %1891 = vmatmul.bf16.vlgmr.msrb.gmra.mxu1 %v1869_v55 }
 0x6ab   :  { %1904 = vmatmul.bf16.vlgmr.msrb.gmra.mxu2 %v1869_v55  ;;  %1917 = vmatmul.bf16.vlgmr.msrb.gmra.mxu3 %v1869_v55 }
 0x6ac   :  { %2062 = vmatpush.bf16.msrb.mxu0 %v7262_v43  ;;  %2075 = vmatpush.bf16.msrb.mxu1 %v7264_v50 }
 0x6ad   :  { %2088 = vmatpush.bf16.msrb.mxu2 %v7266_v46  ;;  %2101 = vmatpush.bf16.msrb.mxu3 %v7268_v2 }
 0x6b0   :  { %2063 = vmatpush.bf16.msrb.mxu0 %v7271_v53  ;;  %2076 = vmatpush.bf16.msrb.mxu1 %v7275_v62 }
 0x6b1   :  { %2089 = vmatpush.bf16.msrb.mxu2 %v7277_v17  ;;  %2102 = vmatpush.bf16.msrb.mxu3 %v7280_v47 }
 0x6b4   :  { %2064 = vmatpush.bf16.msrb.mxu0 %v7286_v5  ;;  %2077 = vmatpush.bf16.msrb.mxu1 %v7291_v10 }
 0x6b5   :  { %2090 = vmatpush.bf16.msrb.mxu2 %v7293_v14  ;;  %2103 = vmatpush.bf16.msrb.mxu3 %v7296_v28 }
 0x6b8   :  { %2065 = vmatpush.bf16.msrb.mxu0 %v7299_v40  ;;  %2078 = vmatpush.bf16.msrb.mxu1 %v7303_v41 }
 0x6b9   :  { %2091 = vmatpush.bf16.msrb.mxu2 %v7305_v45  ;;  %2104 = vmatpush.bf16.msrb.mxu3 %v7308_v63 }
 0x6bc   :  { %2066 = vmatpush.bf16.msrb.mxu0 %v7311_v24  ;;  %2079 = vmatpush.bf16.msrb.mxu1 %v7315_v25 }
 0x6bd   :  { %2092 = vmatpush.bf16.msrb.mxu2 %v7317_v27  ;;  %2105 = vmatpush.bf16.msrb.mxu3 %v7320_v20 }
 0x6c0   :  { %2067 = vmatpush.bf16.msrb.mxu0 %v7323_v36  ;;  %2080 = vmatpush.bf16.msrb.mxu1 %v7327_v38 }
 0x6c1   :  { %2093 = vmatpush.bf16.msrb.mxu2 %v7329_v21  ;;  %2106 = vmatpush.bf16.msrb.mxu3 %v7332_v49 }
 0x6c4   :  { %2068 = vmatpush.bf16.msrb.mxu0 %v7335_v0  ;;  %2081 = vmatpush.bf16.msrb.mxu1 %v7339_v22 }
 0x6c5   :  { %2094 = vmatpush.bf16.msrb.mxu2 %v7341_v51  ;;  %2107 = vmatpush.bf16.msrb.mxu3 %v7344_v1 }
 0x6c8   :  { %2069 = vmatpush.bf16.msrb.mxu0 %v7347_v42  ;;  %2082 = vmatpush.bf16.msrb.mxu1 %v7351_v39 }
 0x6c9   :  { %2095 = vmatpush.bf16.msrb.mxu2 %v7353_v52  ;;  %2108 = vmatpush.bf16.msrb.mxu3 %v7356_v54 }
 0x727   :  { %v1879_v57 = vpop.f32.mrf.mxu0  ;;  %v1892_v7 = vpop.f32.mrf.mxu1 }
 0x728   :  { %v1926_v8 = vrot.slane %v1879_v57, 6  ;;  %v1927_v9 = vrot.slane %v1892_v7, 6 }
 0x72a   :  { %v1934_v23 = vadd.f32 %v1926_v8, %v7441_v48  ;;  %v1935_v13 = vadd.f32 %v1927_v9, %v7443_v3 }
 0x72c   :  { %v1938_v35 = vsub.f32 0.0, %v1934_v23  ;;  %v1943_v58 = vsub.f32 0.0, %v1935_v13 }
 0x72e   :  { %v1939_v16 = vmul.f32 1.442695, %v1938_v35  ;;  %v1944_v32 = vmul.f32 1.442695, %v1943_v58  ;;  %v1905_v44 = vpop.f32.mrf.mxu2  ;;  %v1918_v34 = vpop.f32.mrf.mxu3 }
 0x72f   :  { %v1929_v4 = vrot.slane %v1918_v34, 6  ;;  %v1881_v6 = vpop.f32.mrf.mxu0  ;;  %v1894_v12 = vpop.f32.mrf.mxu1  ;;  %v1928_v59 = vrot.slane %v1905_v44, 6 }
 0x730   :  { %5886 = vpow2.f32 %v1939_v16  ;;  %v1955_v16 = vrot.slane %v7453_v61, 6 }
 0x731   :  { %5888 = vpow2.f32 %v1944_v32  ;;  %v1937_v56 = vadd.f32 %v1929_v4, %v7447_v19  ;;  %v1936_v15 = vadd.f32 %v1928_v59, %v7449_v29 }
 0x733   :  { %v1949_v60 = vsub.f32 0.0, %v1937_v56 }
 0x735   :  { %v1950_v26 = vmul.f32 1.442695, %v1949_v60 }
 0x736   :  { %v5887_v55 = vpop.eup %5886  ;;  %v1907_v57 = vpop.f32.mrf.mxu2 }
 0x737   :  { %v1920_v7 = vpop.f32.mrf.mxu3  ;;  %v5889_v8 = vpop.eup %5888  ;;  %v1941_v9 = vadd.f32 1.0, %v5887_v55  ;;  %5890 = vpow2.f32 %v1950_v26 }
 0x738   :  { %v1946_v23 = vadd.f32 1.0, %v5889_v8  ;;  %5892 = vtanh.f32 %v1936_v15 }
 0x739   :  { %5894 = vrcp.f32 %v1941_v9 }
 0x73a   :  { %5896 = vrcp.f32 %v1946_v23 }
 0x73d   :  { %v5891_v13 = vpop.eup %5890 }
 0x73e   :  { %v5893_v35 = vpop.eup %5892  ;;  %v1952_v34 = vadd.f32 1.0, %v5891_v13 }
 0x73f   :  { %v5895_v58 = vpop.eup %5894 }
 0x740   :  { %v5897_v32 = vpop.eup %5896  ;;  %v1958_v44 = vmul.f32 %v5895_v58, %v5893_v35  ;;  %5898 = vrcp.f32 %v1952_v34 }
 0x741   :  { %v1957_v4 = vmul.f32 %v5897_v32, %v1955_v16 }
 0x743   :  { %v7497_v6 = vadd.f32 %v1958_v44, %v1957_v4 }
 0x745   :  { %5900 = vtanh.f32 %v7497_v6 }
 0x746   :  { %v5899_v12 = vpop.eup %5898 }
 0x74b   :  { %v5901_v59 = vpop.eup %5900 }
 0x74c   :  { %v7500_v56 = vmul.f32 %v5901_v59, %v5899_v12 }
 0x74e   :  { %v1962_v60 = vpack.c.bf16 %v7500_v56, %v7500_v56 }
 0x750   :  { %v1964_v15 = vrot.slane %v1962_v60, 1 }
 0x752   :  { %1974 = vmatmul.bf16.vlgmr.msra.gmra.mxu0 %v1964_v15  ;;  %1987 = vmatmul.bf16.vlgmr.msra.gmra.mxu1 %v1964_v15 }
 0x753   :  { %2000 = vmatmul.bf16.vlgmr.msra.gmra.mxu2 %v1964_v15  ;;  %2013 = vmatmul.bf16.vlgmr.msra.gmra.mxu3 %v1964_v15 }
 0x754   :  { %2158 = vmatpush.bf16.msra.mxu0 %v7262_v43  ;;  %2171 = vmatpush.bf16.msra.mxu1 %v7264_v50 }
 0x755   :  { %2184 = vmatpush.bf16.msra.mxu2 %v7266_v46  ;;  %2197 = vmatpush.bf16.msra.mxu3 %v7268_v2 }
 0x758   :  { %2159 = vmatpush.bf16.msra.mxu0 %v7271_v53  ;;  %2172 = vmatpush.bf16.msra.mxu1 %v7275_v62 }
 0x759   :  { %2185 = vmatpush.bf16.msra.mxu2 %v7277_v17  ;;  %2198 = vmatpush.bf16.msra.mxu3 %v7280_v47 }
 0x75c   :  { %2160 = vmatpush.bf16.msra.mxu0 %v7286_v5  ;;  %2173 = vmatpush.bf16.msra.mxu1 %v7291_v10 }
 0x75d   :  { %2186 = vmatpush.bf16.msra.mxu2 %v7293_v14  ;;  %2199 = vmatpush.bf16.msra.mxu3 %v7296_v28 }
 0x760   :  { %2161 = vmatpush.bf16.msra.mxu0 %v7299_v40  ;;  %2174 = vmatpush.bf16.msra.mxu1 %v7303_v41 }
 0x761   :  { %2187 = vmatpush.bf16.msra.mxu2 %v7305_v45  ;;  %2200 = vmatpush.bf16.msra.mxu3 %v7308_v63 }
 0x764   :  { %2162 = vmatpush.bf16.msra.mxu0 %v7311_v24  ;;  %2175 = vmatpush.bf16.msra.mxu1 %v7315_v25 }
 0x765   :  { %2188 = vmatpush.bf16.msra.mxu2 %v7317_v27  ;;  %2201 = vmatpush.bf16.msra.mxu3 %v7320_v20 }
 0x768   :  { %2163 = vmatpush.bf16.msra.mxu0 %v7323_v36  ;;  %2176 = vmatpush.bf16.msra.mxu1 %v7327_v38 }
 0x769   :  { %2189 = vmatpush.bf16.msra.mxu2 %v7329_v21  ;;  %2202 = vmatpush.bf16.msra.mxu3 %v7332_v49 }
 0x76c   :  { %2164 = vmatpush.bf16.msra.mxu0 %v7335_v0  ;;  %2177 = vmatpush.bf16.msra.mxu1 %v7339_v22 }
 0x76d   :  { %2190 = vmatpush.bf16.msra.mxu2 %v7341_v51  ;;  %2203 = vmatpush.bf16.msra.mxu3 %v7344_v1 }
 0x770   :  { %2165 = vmatpush.bf16.msra.mxu0 %v7347_v42  ;;  %2178 = vmatpush.bf16.msra.mxu1 %v7351_v39 }
 0x771   :  { %2191 = vmatpush.bf16.msra.mxu2 %v7353_v52  ;;  %2204 = vmatpush.bf16.msra.mxu3 %v7356_v54 }
 0x7cf   :  { %v1975_v61 = vpop.f32.mrf.mxu0  ;;  %v1988_v26 = vpop.f32.mrf.mxu1 }
 0x7d0   :  { %v2022_v55 = vrot.slane %v1975_v61, 4  ;;  %v2023_v57 = vrot.slane %v1988_v26, 4 }
 0x7d2   :  { %v2030_v7 = vadd.f32 %v2022_v55, %v7441_v48  ;;  %v2031_v8 = vadd.f32 %v2023_v57, %v7443_v3 }
 0x7d4   :  { %v2034_v9 = vsub.f32 0.0, %v2030_v7  ;;  %v2039_v23 = vsub.f32 0.0, %v2031_v8 }
 0x7d6   :  { %v2035_v13 = vmul.f32 1.442695, %v2034_v9  ;;  %v2040_v35 = vmul.f32 1.442695, %v2039_v23  ;;  %v2001_v58 = vpop.f32.mrf.mxu2  ;;  %v2014_v16 = vpop.f32.mrf.mxu3 }
 0x7d7   :  { %v2025_v32 = vrot.slane %v2014_v16, 4  ;;  %v1977_v44 = vpop.f32.mrf.mxu0  ;;  %v1990_v34 = vpop.f32.mrf.mxu1  ;;  %v2024_v4 = vrot.slane %v2001_v58, 4 }
 0x7d8   :  { %5902 = vpow2.f32 %v2035_v13 }
 0x7d9   :  { %5904 = vpow2.f32 %v2040_v35  ;;  %v2033_v12 = vadd.f32 %v2025_v32, %v7447_v19  ;;  %v2032_v60 = vadd.f32 %v2024_v4, %v7449_v29  ;;  %v2051_v35 = vrot.slane %v7497_v6, 6 }
 0x7db   :  { %v2045_v59 = vsub.f32 0.0, %v2033_v12 }
 0x7dd   :  { %v2046_v15 = vmul.f32 1.442695, %v2045_v59 }
 0x7de   :  { %v5903_v61 = vpop.eup %5902  ;;  %v2003_v26 = vpop.f32.mrf.mxu2 }
 0x7df   :  { %v2016_v55 = vpop.f32.mrf.mxu3  ;;  %v5905_v57 = vpop.eup %5904  ;;  %v2037_v7 = vadd.f32 1.0, %v5903_v61  ;;  %5906 = vpow2.f32 %v2046_v15 }
 0x7e0   :  { %v2042_v8 = vadd.f32 1.0, %v5905_v57  ;;  %5908 = vtanh.f32 %v2032_v60  ;;  %v2523_v60 = vsel %vm1326_vm1, %v7456_v33, %v7500_v56 }
 0x7e1   :  { %5910 = vrcp.f32 %v2037_v7 }
 0x7e2   :  { %5912 = vrcp.f32 %v2042_v8 }
 0x7e5   :  { %v5907_v9 = vpop.eup %5906 }
 0x7e6   :  { %v5909_v23 = vpop.eup %5908  ;;  %v2048_v32 = vadd.f32 1.0, %v5907_v9 }
 0x7e7   :  { %v5911_v13 = vpop.eup %5910 }
 0x7e8   :  { %v5913_v58 = vpop.eup %5912  ;;  %v2054_v16 = vmul.f32 %v5911_v13, %v5909_v23  ;;  %5914 = vrcp.f32 %v2048_v32 }
 0x7e9   :  { %v2053_v44 = vmul.f32 %v5913_v58, %v2051_v35 }
 0x7eb   :  { %v7541_v34 = vadd.f32 %v2054_v16, %v2053_v44 }
 0x7ed   :  { %5916 = vtanh.f32 %v7541_v34 }
 0x7ee   :  { %v5915_v4 = vpop.eup %5914 }
 0x7f3   :  { %v5917_v12 = vpop.eup %5916 }
 0x7f4   :  { %v2057_v59 = vmul.f32 %v5917_v12, %v5915_v4 }
 0x7f6   :  { %v2058_v15 = vpack.c.bf16 %v2057_v59, %v2057_v59  ;;  %v7548_v61 = vsel %vm1328_vm2, %v2523_v60, %v2057_v59 }
 0x7f8   :  { %v2060_v6 = vrot.slane %v2058_v15, 2 }
 0x7fa   :  { %2070 = vmatmul.bf16.vlgmr.msrb.gmra.mxu0 %v2060_v6  ;;  %2083 = vmatmul.bf16.vlgmr.msrb.gmra.mxu1 %v2060_v6 }
 0x7fb   :  { %2096 = vmatmul.bf16.vlgmr.msrb.gmra.mxu2 %v2060_v6  ;;  %2109 = vmatmul.bf16.vlgmr.msrb.gmra.mxu3 %v2060_v6 }
 0x7fc   :  { %2239 = vmatpush.bf16.msrb.mxu0 %v7262_v43  ;;  %2252 = vmatpush.bf16.msrb.mxu1 %v7264_v50 }
 0x7fd   :  { %2265 = vmatpush.bf16.msrb.mxu2 %v7266_v46  ;;  %2278 = vmatpush.bf16.msrb.mxu3 %v7268_v2 }
 0x800   :  { %2240 = vmatpush.bf16.msrb.mxu0 %v7271_v53  ;;  %2253 = vmatpush.bf16.msrb.mxu1 %v7275_v62 }
 0x801   :  { %2266 = vmatpush.bf16.msrb.mxu2 %v7277_v17  ;;  %2279 = vmatpush.bf16.msrb.mxu3 %v7280_v47 }
 0x804   :  { %2241 = vmatpush.bf16.msrb.mxu0 %v7286_v5  ;;  %2254 = vmatpush.bf16.msrb.mxu1 %v7291_v10 }
 0x805   :  { %2267 = vmatpush.bf16.msrb.mxu2 %v7293_v14  ;;  %2280 = vmatpush.bf16.msrb.mxu3 %v7296_v28 }
 0x808   :  { %2242 = vmatpush.bf16.msrb.mxu0 %v7299_v40  ;;  %2255 = vmatpush.bf16.msrb.mxu1 %v7303_v41 }
 0x809   :  { %2268 = vmatpush.bf16.msrb.mxu2 %v7305_v45  ;;  %2281 = vmatpush.bf16.msrb.mxu3 %v7308_v63 }
 0x80c   :  { %2243 = vmatpush.bf16.msrb.mxu0 %v7311_v24  ;;  %2256 = vmatpush.bf16.msrb.mxu1 %v7315_v25 }
 0x80d   :  { %2269 = vmatpush.bf16.msrb.mxu2 %v7317_v27  ;;  %2282 = vmatpush.bf16.msrb.mxu3 %v7320_v20 }
 0x810   :  { %2244 = vmatpush.bf16.msrb.mxu0 %v7323_v36  ;;  %2257 = vmatpush.bf16.msrb.mxu1 %v7327_v38 }
 0x811   :  { %2270 = vmatpush.bf16.msrb.mxu2 %v7329_v21  ;;  %2283 = vmatpush.bf16.msrb.mxu3 %v7332_v49 }
 0x814   :  { %2245 = vmatpush.bf16.msrb.mxu0 %v7335_v0  ;;  %2258 = vmatpush.bf16.msrb.mxu1 %v7339_v22 }
 0x815   :  { %2271 = vmatpush.bf16.msrb.mxu2 %v7341_v51  ;;  %2284 = vmatpush.bf16.msrb.mxu3 %v7344_v1 }
 0x818   :  { %2246 = vmatpush.bf16.msrb.mxu0 %v7347_v42  ;;  %2259 = vmatpush.bf16.msrb.mxu1 %v7351_v39 }
 0x819   :  { %2272 = vmatpush.bf16.msrb.mxu2 %v7353_v52  ;;  %2285 = vmatpush.bf16.msrb.mxu3 %v7356_v54 }
 0x877   :  { %v2071_v33 = vpop.f32.mrf.mxu0  ;;  %v2084_v56 = vpop.f32.mrf.mxu1 }
 0x878   :  { %v2118_v26 = vrot.slane %v2071_v33, 2  ;;  %v2119_v55 = vrot.slane %v2084_v56, 2 }
 0x87a   :  { %v2126_v57 = vadd.f32 %v2118_v26, %v7441_v48  ;;  %v2127_v7 = vadd.f32 %v2119_v55, %v7443_v3 }
 0x87c   :  { %v2130_v8 = vsub.f32 0.0, %v2126_v57  ;;  %v2135_v9 = vsub.f32 0.0, %v2127_v7 }
 0x87e   :  { %v2131_v23 = vmul.f32 1.442695, %v2130_v8  ;;  %v2136_v13 = vmul.f32 1.442695, %v2135_v9  ;;  %v2097_v35 = vpop.f32.mrf.mxu2  ;;  %v2110_v58 = vpop.f32.mrf.mxu3  ;;  %v2147_v8 = vrot.slane %v7541_v34, 6 }
 0x87f   :  { %v2121_v16 = vrot.slane %v2110_v58, 2  ;;  %v2073_v32 = vpop.f32.mrf.mxu0  ;;  %v2086_v44 = vpop.f32.mrf.mxu1  ;;  %v2120_v4 = vrot.slane %v2097_v35, 2 }
 0x880   :  { %5918 = vpow2.f32 %v2131_v23 }
 0x881   :  { %5920 = vpow2.f32 %v2136_v13  ;;  %v2129_v12 = vadd.f32 %v2121_v16, %v7447_v19  ;;  %v2128_v60 = vadd.f32 %v2120_v4, %v7449_v29 }
 0x883   :  { %v2141_v59 = vsub.f32 0.0, %v2129_v12 }
 0x885   :  { %v2142_v48 = vmul.f32 1.442695, %v2141_v59 }
 0x886   :  { %v5919_v15 = vpop.eup %5918  ;;  %v2099_v3 = vpop.f32.mrf.mxu2 }
 0x887   :  { %v2112_v6 = vpop.f32.mrf.mxu3  ;;  %v5921_v33 = vpop.eup %5920  ;;  %v2133_v56 = vadd.f32 1.0, %v5919_v15  ;;  %5922 = vpow2.f32 %v2142_v48 }
 0x888   :  { %v2138_v26 = vadd.f32 1.0, %v5921_v33  ;;  %5924 = vtanh.f32 %v2128_v60 }
 0x889   :  { %5926 = vrcp.f32 %v2133_v56 }
 0x88a   :  { %5928 = vrcp.f32 %v2138_v26 }
 0x88d   :  { %v5923_v55 = vpop.eup %5922 }
 0x88e   :  { %v5925_v57 = vpop.eup %5924  ;;  %v2144_v23 = vadd.f32 1.0, %v5923_v55 }
 0x88f   :  { %v5927_v7 = vpop.eup %5926 }
 0x890   :  { %v5929_v19 = vpop.eup %5928  ;;  %v2150_v9 = vmul.f32 %v5927_v7, %v5925_v57  ;;  %5930 = vrcp.f32 %v2144_v23 }
 0x891   :  { %v2149_v29 = vmul.f32 %v5929_v19, %v2147_v8 }
 0x893   :  { %v7587_v13 = vadd.f32 %v2150_v9, %v2149_v29 }
 0x895   :  { %5932 = vtanh.f32 %v7587_v13 }
 0x896   :  { %v5931_v35 = vpop.eup %5930 }
 0x89b   :  { %v5933_v58 = vpop.eup %5932 }
 0x89c   :  { %v2153_v16 = vmul.f32 %v5933_v58, %v5931_v35 }
 0x89e   :  { %v2154_v32 = vpack.c.bf16 %v2153_v16, %v2153_v16  ;;  %v7592_v44 = vsel %vm1330_vm3, %v7548_v61, %v2153_v16 }
 0x8a0   :  { %v2156_v4 = vrot.slane %v2154_v32, 3 }
 0x8a2   :  { %2166 = vmatmul.bf16.vlgmr.msra.gmra.mxu0 %v2156_v4  ;;  %2179 = vmatmul.bf16.vlgmr.msra.gmra.mxu1 %v2156_v4 }
 0x8a3   :  { %2192 = vmatmul.bf16.vlgmr.msra.gmra.mxu2 %v2156_v4  ;;  %2205 = vmatmul.bf16.vlgmr.msra.gmra.mxu3 %v2156_v4 }
 0x8a4   :  { %2335 = vmatpush.bf16.msra.mxu0 %v7262_v43  ;;  %2348 = vmatpush.bf16.msra.mxu1 %v7264_v50 }
 0x8a5   :  { %2361 = vmatpush.bf16.msra.mxu2 %v7266_v46  ;;  %2374 = vmatpush.bf16.msra.mxu3 %v7268_v2 }
 0x8a8   :  { %2336 = vmatpush.bf16.msra.mxu0 %v7271_v53  ;;  %2349 = vmatpush.bf16.msra.mxu1 %v7275_v62 }
 0x8a9   :  { %2362 = vmatpush.bf16.msra.mxu2 %v7277_v17  ;;  %2375 = vmatpush.bf16.msra.mxu3 %v7280_v47 }
 0x8ac   :  { %2337 = vmatpush.bf16.msra.mxu0 %v7286_v5  ;;  %2350 = vmatpush.bf16.msra.mxu1 %v7291_v10 }
 0x8ad   :  { %2363 = vmatpush.bf16.msra.mxu2 %v7293_v14  ;;  %2376 = vmatpush.bf16.msra.mxu3 %v7296_v28 }
 0x8b0   :  { %2338 = vmatpush.bf16.msra.mxu0 %v7299_v40  ;;  %2351 = vmatpush.bf16.msra.mxu1 %v7303_v41 }
 0x8b1   :  { %2364 = vmatpush.bf16.msra.mxu2 %v7305_v45  ;;  %2377 = vmatpush.bf16.msra.mxu3 %v7308_v63 }
 0x8b4   :  { %2339 = vmatpush.bf16.msra.mxu0 %v7311_v24  ;;  %2352 = vmatpush.bf16.msra.mxu1 %v7315_v25 }
 0x8b5   :  { %2365 = vmatpush.bf16.msra.mxu2 %v7317_v27  ;;  %2378 = vmatpush.bf16.msra.mxu3 %v7320_v20 }
 0x8b8   :  { %2340 = vmatpush.bf16.msra.mxu0 %v7323_v36  ;;  %2353 = vmatpush.bf16.msra.mxu1 %v7327_v38 }
 0x8b9   :  { %2366 = vmatpush.bf16.msra.mxu2 %v7329_v21  ;;  %2379 = vmatpush.bf16.msra.mxu3 %v7332_v49 }
 0x8bc   :  { %2341 = vmatpush.bf16.msra.mxu0 %v7335_v0  ;;  %2354 = vmatpush.bf16.msra.mxu1 %v7339_v22 }
 0x8bd   :  { %2367 = vmatpush.bf16.msra.mxu2 %v7341_v51  ;;  %2380 = vmatpush.bf16.msra.mxu3 %v7344_v1 }
 0x8c0   :  { %2342 = vmatpush.bf16.msra.mxu0 %v7347_v42  ;;  %2355 = vmatpush.bf16.msra.mxu1 %v7351_v39 }
 0x8c1   :  { %2368 = vmatpush.bf16.msra.mxu2 %v7353_v52  ;;  %2381 = vmatpush.bf16.msra.mxu3 %v7356_v54 }
 0x91f   :  { %v2167_v34 = vpop.f32.mrf.mxu0  ;;  %v2180_v61 = vpop.f32.mrf.mxu1 }
 0x920   :  { %v2210_v12 = vadd.f32 %v2167_v34, %v7433_v11  ;;  %v2211_v59 = vadd.f32 %v2180_v61, %v7435_v31  ;;  %v2231_v34 = vrot.slane %v7587_v13, 6 }
 0x922   :  { %v2214_v60 = vsub.f32 0.0, %v2210_v12  ;;  %v2219_v48 = vsub.f32 0.0, %v2211_v59 }
 0x924   :  { %v2215_v15 = vmul.f32 1.442695, %v2214_v60  ;;  %v2220_v3 = vmul.f32 1.442695, %v2219_v48 }
 0x926   :  { %5934 = vpow2.f32 %v2215_v15  ;;  %v2193_v6 = vpop.f32.mrf.mxu2  ;;  %v2206_v33 = vpop.f32.mrf.mxu3 }
 0x927   :  { %5936 = vpow2.f32 %v2220_v3  ;;  %v2213_v56 = vadd.f32 %v2206_v33, %v7437_v18  ;;  %v2169_v26 = vpop.f32.mrf.mxu0  ;;  %v2182_v55 = vpop.f32.mrf.mxu1  ;;  %v2212_v7 = vadd.f32 %v2193_v6, %v7439_v37 }
 0x929   :  { %v2225_v57 = vsub.f32 0.0, %v2213_v56 }
 0x92b   :  { %v2226_v8 = vmul.f32 1.442695, %v2225_v57 }
 0x92c   :  { %v5935_v19 = vpop.eup %5934 }
 0x92d   :  { %v5937_v9 = vpop.eup %5936  ;;  %v2217_v23 = vadd.f32 1.0, %v5935_v19  ;;  %5938 = vpow2.f32 %v2226_v8 }
 0x92e   :  { %v2222_v29 = vadd.f32 1.0, %v5937_v9  ;;  %5940 = vtanh.f32 %v2212_v7  ;;  %v2195_v35 = vpop.f32.mrf.mxu2  ;;  %v2208_v58 = vpop.f32.mrf.mxu3 }
 0x92f   :  { %5942 = vrcp.f32 %v2217_v23 }
 0x930   :  { %5944 = vrcp.f32 %v2222_v29 }
 0x933   :  { %v5939_v16 = vpop.eup %5938 }
 0x934   :  { %v5941_v32 = vpop.eup %5940  ;;  %v2228_v59 = vadd.f32 1.0, %v5939_v16 }
 0x935   :  { %v5943_v4 = vpop.eup %5942 }
 0x936   :  { %v5945_v61 = vpop.eup %5944  ;;  %v2234_v12 = vmul.f32 %v5943_v4, %v5941_v32  ;;  %5946 = vrcp.f32 %v2228_v59 }
 0x937   :  { %v2233_v60 = vmul.f32 %v5945_v61, %v2231_v34 }
 0x939   :  { %v7631_v48 = vadd.f32 %v2234_v12, %v2233_v60 }
 0x93b   :  { %5948 = vtanh.f32 %v7631_v48 }
 0x93c   :  { %v5947_v15 = vpop.eup %5946 }
 0x941   :  { %v5949_v3 = vpop.eup %5948 }
 0x942   :  { %v7634_v6 = vmul.f32 %v5949_v3, %v5947_v15 }
 0x944   :  { %v2238_v33 = vpack.c.bf16 %v7634_v6, %v7634_v6 }
 0x946   :  { %2247 = vmatmul.bf16.vlgmr.msrb.gmra.mxu0 %v2238_v33  ;;  %2260 = vmatmul.bf16.vlgmr.msrb.gmra.mxu1 %v2238_v33 }
 0x947   :  { %2273 = vmatmul.bf16.vlgmr.msrb.gmra.mxu2 %v2238_v33  ;;  %2286 = vmatmul.bf16.vlgmr.msrb.gmra.mxu3 %v2238_v33 }
 0x948   :  { %2431 = vmatpush.bf16.msrb.mxu0 %v7262_v43  ;;  %2444 = vmatpush.bf16.msrb.mxu1 %v7264_v50 }
 0x949   :  { %2457 = vmatpush.bf16.msrb.mxu2 %v7266_v46  ;;  %2470 = vmatpush.bf16.msrb.mxu3 %v7268_v2 }
 0x94c   :  { %2432 = vmatpush.bf16.msrb.mxu0 %v7271_v53  ;;  %2445 = vmatpush.bf16.msrb.mxu1 %v7275_v62 }
 0x94d   :  { %2458 = vmatpush.bf16.msrb.mxu2 %v7277_v17  ;;  %2471 = vmatpush.bf16.msrb.mxu3 %v7280_v47 }
 0x950   :  { %2433 = vmatpush.bf16.msrb.mxu0 %v7286_v5  ;;  %2446 = vmatpush.bf16.msrb.mxu1 %v7291_v10 }
 0x951   :  { %2459 = vmatpush.bf16.msrb.mxu2 %v7293_v14  ;;  %2472 = vmatpush.bf16.msrb.mxu3 %v7296_v28 }
 0x954   :  { %2434 = vmatpush.bf16.msrb.mxu0 %v7299_v40  ;;  %2447 = vmatpush.bf16.msrb.mxu1 %v7303_v41 }
 0x955   :  { %2460 = vmatpush.bf16.msrb.mxu2 %v7305_v45  ;;  %2473 = vmatpush.bf16.msrb.mxu3 %v7308_v63 }
 0x958   :  { %2435 = vmatpush.bf16.msrb.mxu0 %v7311_v24  ;;  %2448 = vmatpush.bf16.msrb.mxu1 %v7315_v25 }
 0x959   :  { %2461 = vmatpush.bf16.msrb.mxu2 %v7317_v27  ;;  %2474 = vmatpush.bf16.msrb.mxu3 %v7320_v20 }
 0x95c   :  { %2436 = vmatpush.bf16.msrb.mxu0 %v7323_v36  ;;  %2449 = vmatpush.bf16.msrb.mxu1 %v7327_v38 }
 0x95d   :  { %2462 = vmatpush.bf16.msrb.mxu2 %v7329_v21  ;;  %2475 = vmatpush.bf16.msrb.mxu3 %v7332_v49 }
 0x960   :  { %2437 = vmatpush.bf16.msrb.mxu0 %v7335_v0  ;;  %2450 = vmatpush.bf16.msrb.mxu1 %v7339_v22 }
 0x961   :  { %2463 = vmatpush.bf16.msrb.mxu2 %v7341_v51  ;;  %2476 = vmatpush.bf16.msrb.mxu3 %v7344_v1 }
 0x964   :  { %2438 = vmatpush.bf16.msrb.mxu0 %v7347_v42  ;;  %2451 = vmatpush.bf16.msrb.mxu1 %v7351_v39  ;;  %v2324_v39 = vrot.slane %v7631_v48, 6 }
 0x965   :  { %2464 = vmatpush.bf16.msrb.mxu2 %v7353_v52  ;;  %2477 = vmatpush.bf16.msrb.mxu3 %v7356_v54 }
 0x9c3   :  { %v2248_v43 = vpop.f32.mrf.mxu0  ;;  %v2261_v50 = vpop.f32.mrf.mxu1 }
 0x9c4   :  { %v2295_v46 = vrot.slane %v2248_v43, 6  ;;  %v2296_v2 = vrot.slane %v2261_v50, 6 }
 0x9c6   :  { %v2303_v53 = vadd.f32 %v2295_v46, %v7433_v11  ;;  %v2304_v62 = vadd.f32 %v2296_v2, %v7435_v31 }
 0x9c8   :  { %v2307_v17 = vsub.f32 0.0, %v2303_v53  ;;  %v2312_v47 = vsub.f32 0.0, %v2304_v62 }
 0x9ca   :  { %v2308_v5 = vmul.f32 1.442695, %v2307_v17  ;;  %v2313_v10 = vmul.f32 1.442695, %v2312_v47  ;;  %v2274_v14 = vpop.f32.mrf.mxu2  ;;  %v2287_v28 = vpop.f32.mrf.mxu3 }
 0x9cb   :  { %v2298_v40 = vrot.slane %v2287_v28, 6  ;;  %v2250_v41 = vpop.f32.mrf.mxu0  ;;  %v2263_v45 = vpop.f32.mrf.mxu1  ;;  %v2297_v63 = vrot.slane %v2274_v14, 6 }
 0x9cc   :  { %5950 = vpow2.f32 %v2308_v5 }
 0x9cd   :  { %5952 = vpow2.f32 %v2313_v10  ;;  %v2306_v24 = vadd.f32 %v2298_v40, %v7437_v18  ;;  %v2305_v27 = vadd.f32 %v2297_v63, %v7439_v37 }
 0x9cf   :  { %v2318_v25 = vsub.f32 0.0, %v2306_v24 }
 0x9d1   :  { %v2319_v20 = vmul.f32 1.442695, %v2318_v25 }
 0x9d2   :  { %v5951_v36 = vpop.eup %5950  ;;  %v2276_v38 = vpop.f32.mrf.mxu2 }
 0x9d3   :  { %v2289_v21 = vpop.f32.mrf.mxu3  ;;  %v5953_v49 = vpop.eup %5952  ;;  %v2310_v0 = vadd.f32 1.0, %v5951_v36  ;;  %5954 = vpow2.f32 %v2319_v20 }
 0x9d4   :  { %v2315_v22 = vadd.f32 1.0, %v5953_v49  ;;  %5956 = vtanh.f32 %v2305_v27 }
 0x9d5   :  { %5958 = vrcp.f32 %v2310_v0 }
 0x9d6   :  { %5960 = vrcp.f32 %v2315_v22 }
 0x9d9   :  { %v5955_v51 = vpop.eup %5954 }
 0x9da   :  { %v5957_v1 = vpop.eup %5956  ;;  %v2321_v13 = vadd.f32 1.0, %v5955_v51 }
 0x9db   :  { %v5959_v42 = vpop.eup %5958 }
 0x9dc   :  { %v5961_v52 = vpop.eup %5960  ;;  %v2327_v54 = vmul.f32 %v5959_v42, %v5957_v1  ;;  %5962 = vrcp.f32 %v2321_v13 }
 0x9dd   :  { %v2326_v56 = vmul.f32 %v5961_v52, %v2324_v39 }
 0x9df   :  { %v2328_v26 = vadd.f32 %v2327_v54, %v2326_v56 }
 0x9e1   :  { %5964 = vtanh.f32 %v2328_v26  ;;  %v2420_v40 = vrot.slane %v2328_v26, 6 }
 0x9e2   :  { %v5963_v55 = vpop.eup %5962 }
 0x9e7   :  { %v5965_v57 = vpop.eup %5964 }
 0x9e8   :  { %v2330_v7 = vmul.f32 %v5965_v57, %v5963_v55 }
 0x9ea   :  { %v2331_v8 = vpack.c.bf16 %v2330_v7, %v2330_v7  ;;  %v2526_v38 = vsel %vm1326_vm1, %v7634_v6, %v2330_v7 }
 0x9ec   :  { %v2333_v19 = vrot.slane %v2331_v8, 1 }
 0x9ee   :  { %2343 = vmatmul.bf16.vlgmr.msra.gmra.mxu0 %v2333_v19  ;;  %2356 = vmatmul.bf16.vlgmr.msra.gmra.mxu1 %v2333_v19 }
 0x9ef   :  { %2369 = vmatmul.bf16.vlgmr.msra.gmra.mxu2 %v2333_v19  ;;  %2382 = vmatmul.bf16.vlgmr.msra.gmra.mxu3 %v2333_v19 }
 0xa6b   :  { %v2344_v9 = vpop.f32.mrf.mxu0  ;;  %v2357_v23 = vpop.f32.mrf.mxu1 }
 0xa6c   :  { %v2391_v29 = vrot.slane %v2344_v9, 4  ;;  %v2392_v35 = vrot.slane %v2357_v23, 4 }
 0xa6e   :  { %v2399_v58 = vadd.f32 %v2391_v29, %v7433_v11  ;;  %v2400_v16 = vadd.f32 %v2392_v35, %v7435_v31 }
 0xa70   :  { %v2403_v32 = vsub.f32 0.0, %v2399_v58  ;;  %v2408_v4 = vsub.f32 0.0, %v2400_v16 }
 0xa72   :  { %v2404_v34 = vmul.f32 1.442695, %v2403_v32  ;;  %v2409_v61 = vmul.f32 1.442695, %v2408_v4  ;;  %v2370_v12 = vpop.f32.mrf.mxu2  ;;  %v2383_v59 = vpop.f32.mrf.mxu3 }
 0xa73   :  { %v2394_v60 = vrot.slane %v2383_v59, 4  ;;  %v2346_v48 = vpop.f32.mrf.mxu0  ;;  %v2359_v15 = vpop.f32.mrf.mxu1  ;;  %v2393_v3 = vrot.slane %v2370_v12, 4 }
 0xa74   :  { %5966 = vpow2.f32 %v2404_v34 }
 0xa75   :  { %5968 = vpow2.f32 %v2409_v61  ;;  %v2402_v33 = vadd.f32 %v2394_v60, %v7437_v18  ;;  %v2401_v50 = vadd.f32 %v2393_v3, %v7439_v37 }
 0xa77   :  { %v2414_v43 = vsub.f32 0.0, %v2402_v33 }
 0xa79   :  { %v2415_v46 = vmul.f32 1.442695, %v2414_v43 }
 0xa7a   :  { %v5967_v2 = vpop.eup %5966  ;;  %v2372_v53 = vpop.f32.mrf.mxu2 }
 0xa7b   :  { %v2385_v62 = vpop.f32.mrf.mxu3  ;;  %v5969_v17 = vpop.eup %5968  ;;  %v2406_v47 = vadd.f32 1.0, %v5967_v2  ;;  %5970 = vpow2.f32 %v2415_v46 }
 0xa7c   :  { %v2411_v5 = vadd.f32 1.0, %v5969_v17  ;;  %5972 = vtanh.f32 %v2401_v50 }
 0xa7d   :  { %5974 = vrcp.f32 %v2406_v47 }
 0xa7e   :  { %5976 = vrcp.f32 %v2411_v5 }
 0xa81   :  { %v5971_v10 = vpop.eup %5970 }
 0xa82   :  { %v5973_v14 = vpop.eup %5972  ;;  %v2417_v63 = vadd.f32 1.0, %v5971_v10 }
 0xa83   :  { %v5975_v28 = vpop.eup %5974 }
 0xa84   :  { %v5977_v41 = vpop.eup %5976  ;;  %v2423_v45 = vmul.f32 %v5975_v28, %v5973_v14  ;;  %5978 = vrcp.f32 %v2417_v63 }
 0xa85   :  { %v2422_v24 = vmul.f32 %v5977_v41, %v2420_v40 }
 0xa87   :  { %v2424_v25 = vadd.f32 %v2423_v45, %v2422_v24 }
 0xa89   :  { %5980 = vtanh.f32 %v2424_v25  ;;  %v2516_v59 = vrot.slane %v2424_v25, 6 }
 0xa8a   :  { %v5979_v27 = vpop.eup %5978 }
 0xa8f   :  { %v5981_v20 = vpop.eup %5980 }
 0xa90   :  { %v2426_v36 = vmul.f32 %v5981_v20, %v5979_v27 }
 0xa92   :  { %v2427_v21 = vpack.c.bf16 %v2426_v36, %v2426_v36  ;;  %v2527_v49 = vsel %vm1328_vm2, %v2526_v38, %v2426_v36 }
 0xa94   :  { %v2429_v0 = vrot.slane %v2427_v21, 2 }
 0xa96   :  { %2439 = vmatmul.bf16.vlgmr.msrb.gmra.mxu0 %v2429_v0  ;;  %2452 = vmatmul.bf16.vlgmr.msrb.gmra.mxu1 %v2429_v0 }
 0xa97   :  { %2465 = vmatmul.bf16.vlgmr.msrb.gmra.mxu2 %v2429_v0  ;;  %2478 = vmatmul.bf16.vlgmr.msrb.gmra.mxu3 %v2429_v0 }
 0xb13   :  { %v2440_v22 = vpop.f32.mrf.mxu0  ;;  %v2453_v51 = vpop.f32.mrf.mxu1 }
 0xb14   :  { %v2487_v1 = vrot.slane %v2440_v22, 2  ;;  %v2488_v42 = vrot.slane %v2453_v51, 2 }
 0xb16   :  { %v2495_v39 = vadd.f32 %v2487_v1, %v7433_v11  ;;  %v2496_v52 = vadd.f32 %v2488_v42, %v7435_v31 }
 0xb18   :  { %v2499_v54 = vsub.f32 0.0, %v2495_v39  ;;  %v2504_v13 = vsub.f32 0.0, %v2496_v52 }
 0xb1a   :  { %v2500_v56 = vmul.f32 1.442695, %v2499_v54  ;;  %v2505_v6 = vmul.f32 1.442695, %v2504_v13  ;;  %v2466_v26 = vpop.f32.mrf.mxu2  ;;  %v2479_v55 = vpop.f32.mrf.mxu3 }
 0xb1b   :  { %v2490_v57 = vrot.slane %v2479_v55, 2  ;;  %v2442_v7 = vpop.f32.mrf.mxu0  ;;  %v2455_v8 = vpop.f32.mrf.mxu1  ;;  %v2489_v19 = vrot.slane %v2466_v26, 2 }
 0xb1c   :  { %5982 = vpow2.f32 %v2500_v56 }
 0xb1d   :  { %5984 = vpow2.f32 %v2505_v6  ;;  %v2498_v9 = vadd.f32 %v2490_v57, %v7437_v18  ;;  %v2497_v29 = vadd.f32 %v2489_v19, %v7439_v37 }
 0xb1f   :  { %v2510_v23 = vsub.f32 0.0, %v2498_v9 }
 0xb21   :  { %v2511_v11 = vmul.f32 1.442695, %v2510_v23 }
 0xb22   :  { %v5983_v35 = vpop.eup %5982  ;;  %v2468_v31 = vpop.f32.mrf.mxu2 }
 0xb23   :  { %v2481_v58 = vpop.f32.mrf.mxu3  ;;  %v5985_v16 = vpop.eup %5984  ;;  %v2502_v32 = vadd.f32 1.0, %v5983_v35  ;;  %5986 = vpow2.f32 %v2511_v11 }
 0xb24   :  { %v2507_v4 = vadd.f32 1.0, %v5985_v16  ;;  %5988 = vtanh.f32 %v2497_v29 }
 0xb25   :  { %5990 = vrcp.f32 %v2502_v32 }
 0xb26   :  { %5992 = vrcp.f32 %v2507_v4 }
 0xb29   :  { %v5987_v34 = vpop.eup %5986 }
 0xb2a   :  { %v5989_v61 = vpop.eup %5988  ;;  %v2513_v48 = vadd.f32 1.0, %v5987_v34 }
 0xb2b   :  { %v5991_v12 = vpop.eup %5990 }
 0xb2c   :  { %v5993_v60 = vpop.eup %5992  ;;  %v2519_v18 = vmul.f32 %v5991_v12, %v5989_v61  ;;  %5994 = vrcp.f32 %v2513_v48 }
 0xb2d   :  { %v2518_v15 = vmul.f32 %v5993_v60, %v2516_v59 }
 0xb2f   :  { %v2520_v37 = vadd.f32 %v2519_v18, %v2518_v15 }
 0xb31   :  { %5996 = vtanh.f32 %v2520_v37 }
 0xb32   :  { %v5995_v3 = vpop.eup %5994 }
 0xb37   :  { %v5997_v33 = vpop.eup %5996 }
 0xb38   :  { %v2522_v43 = vmul.f32 %v5997_v33, %v5995_v3 }
 0xb3a   :  { %v2528_v50 = vsel %vm1330_vm3, %v2527_v49, %v2522_v43 }
 0xb3b   :  { %v7688_v46 = vpack.c.bf16 %v2528_v50, %v7592_v44 }
 0xb3c   :  { %6227 = dma.done.wait [#allocation7 + $0x2], 4096 }
 0xb3d   :  { %6228 = vsyncadd [#allocation7 + $0x2], 4294963200 }
 0xb3e   :  { %6229 = dma.done.wait [#allocation7 + $0x3], 4096 }
 0xb3f   :  { %6230 = vsyncadd [#allocation7 + $0x3], 4294963200  ;;  %v5106_v2 = vld [vmem:[#allocation4 + $0xe0] sm:$0xf]  ;;  %v5639_v53 = vld [vmem:[#allocation4 + $0xec] sm:$0xf0] }
 0xb40   :  { %v5637_v62 = vld [vmem:[#allocation4 + $0xe4] sm:$0xf]  ;;  %v5107_v17 = vor.u32 %v5639_v53, %v5106_v2  ;;  %v5108_v47 = vld [vmem:[#allocation4 + $0xf0] sm:$0xf0]  ;;  %v5114_v5 = vld [vmem:[#allocation4 + $0xe8] sm:$0xf] }
 0xb41   :  { %v5640_v10 = vld [vmem:[#allocation4 + $0xf4] sm:$0xf0]  ;;  %v5111_v14 = vor.u32 %v5637_v62, %v5108_v47  ;;  %v5638_v40 = vld [vmem:[#allocation4 + $0xec] sm:$0xf]  ;;  %v5116_v41 = vld [vmem:[#allocation4 + $0xf8] sm:$0xf0] }
 0xb42   :  { %v5115_v28 = vor.u32 %v5640_v10, %v5114_v5  ;;  %v5090_v45 = vld [vmem:[#allocation4 + $0xc0] sm:$0xf]  ;;  %2768 = vmatpush.bf16.msra.mxu0 %v5107_v17  ;;  %v5119_v63 = vor.u32 %v5638_v40, %v5116_v41  ;;  %v5635_v44 = vld [vmem:[#allocation4 + $0xcc] sm:$0xf0]  ;;  %v5633_v24 = vld [vmem:[#allocation4 + $0xc4] sm:$0xf] }
 0xb43   :  { %v5092_v25 = vld [vmem:[#allocation4 + $0xd0] sm:$0xf0]  ;;  %2782 = vmatpush.bf16.msra.mxu1 %v5111_v14  ;;  %v5091_v27 = vor.u32 %v5635_v44, %v5090_v45  ;;  %v5098_v36 = vld [vmem:[#allocation4 + $0xc8] sm:$0xf]  ;;  %v5636_v38 = vld [vmem:[#allocation4 + $0xd4] sm:$0xf0] }
 0xb44   :  { %2796 = vmatpush.bf16.msra.mxu2 %v5115_v28  ;;  %v5095_v20 = vor.u32 %v5633_v24, %v5092_v25  ;;  %v5634_v21 = vld [vmem:[#allocation4 + $0xcc] sm:$0xf]  ;;  %2810 = vmatpush.bf16.msra.mxu3 %v5119_v63  ;;  %v5099_v49 = vor.u32 %v5636_v38, %v5098_v36  ;;  %v5100_v0 = vld [vmem:[#allocation4 + $0xd8] sm:$0xf0]  ;;  %v5074_v22 = vld [vmem:[#allocation4 + $0xa0] sm:$0xf] }
 0xb45   :  { %v5631_v51 = vld [vmem:[#allocation4 + $0xac] sm:$0xf0]  ;;  %v5103_v1 = vor.u32 %v5634_v21, %v5100_v0  ;;  %v5629_v42 = vld [vmem:[#allocation4 + $0xa4] sm:$0xf]  ;;  %v5076_v39 = vld [vmem:[#allocation4 + $0xb0] sm:$0xf0] }
 0xb46   :  { %v5082_v52 = vld [vmem:[#allocation4 + $0xa8] sm:$0xf]  ;;  %2769 = vmatpush.bf16.msra.mxu0 %v5091_v27  ;;  %v5075_v54 = vor.u32 %v5631_v51, %v5074_v22  ;;  %v5632_v13 = vld [vmem:[#allocation4 + $0xb4] sm:$0xf0]  ;;  %v5630_v56 = vld [vmem:[#allocation4 + $0xac] sm:$0xf]  ;;  %v5079_v26 = vor.u32 %v5629_v42, %v5076_v39 }
 0xb47   :  { %v5084_v6 = vld [vmem:[#allocation4 + $0xb8] sm:$0xf0]  ;;  %2783 = vmatpush.bf16.msra.mxu1 %v5095_v20  ;;  %v5083_v55 = vor.u32 %v5632_v13, %v5082_v52  ;;  %v5058_v57 = vld [vmem:[#allocation4 + $0x80] sm:$0xf]  ;;  %v5627_v7 = vld [vmem:[#allocation4 + $0x8c] sm:$0xf0] }
 0xb48   :  { %2797 = vmatpush.bf16.msra.mxu2 %v5099_v49  ;;  %v5625_v8 = vld [vmem:[#allocation4 + $0x84] sm:$0xf]  ;;  %2811 = vmatpush.bf16.msra.mxu3 %v5103_v1  ;;  %v5087_v19 = vor.u32 %v5630_v56, %v5084_v6  ;;  %v5060_v9 = vld [vmem:[#allocation4 + $0x90] sm:$0xf0]  ;;  %v5066_v23 = vld [vmem:[#allocation4 + $0x88] sm:$0xf]  ;;  %v5059_v31 = vor.u32 %v5627_v7, %v5058_v57 }
 0xb49   :  { %v5628_v29 = vld [vmem:[#allocation4 + $0x94] sm:$0xf0]  ;;  %v5626_v11 = vld [vmem:[#allocation4 + $0x8c] sm:$0xf]  ;;  %v5068_v35 = vld [vmem:[#allocation4 + $0x98] sm:$0xf0]  ;;  %v5063_v58 = vor.u32 %v5625_v8, %v5060_v9 }
 0xb4a   :  { %2770 = vmatpush.bf16.msra.mxu0 %v5075_v54  ;;  %v5067_v16 = vor.u32 %v5628_v29, %v5066_v23  ;;  %v5042_v32 = vld [vmem:[#allocation4 + $0x60] sm:$0xf]  ;;  %v5623_v4 = vld [vmem:[#allocation4 + $0x6c] sm:$0xf0]  ;;  %v5621_v34 = vld [vmem:[#allocation4 + $0x64] sm:$0xf]  ;;  %v5071_v61 = vor.u32 %v5626_v11, %v5068_v35 }
 0xb4b   :  { %2784 = vmatpush.bf16.msra.mxu1 %v5079_v26  ;;  %v5044_v12 = vld [vmem:[#allocation4 + $0x70] sm:$0xf0]  ;;  %v5050_v59 = vld [vmem:[#allocation4 + $0x68] sm:$0xf]  ;;  %v5624_v60 = vld [vmem:[#allocation4 + $0x74] sm:$0xf0]  ;;  %v5043_v15 = vor.u32 %v5623_v4, %v5042_v32 }
 0xb4c   :  { %2798 = vmatpush.bf16.msra.mxu2 %v5083_v55  ;;  %2812 = vmatpush.bf16.msra.mxu3 %v5087_v19  ;;  %v5622_v18 = vld [vmem:[#allocation4 + $0x6c] sm:$0xf]  ;;  %v5052_v48 = vld [vmem:[#allocation4 + $0x78] sm:$0xf0]  ;;  %v5047_v37 = vor.u32 %v5621_v34, %v5044_v12  ;;  %v5051_v3 = vor.u32 %v5624_v60, %v5050_v59  ;;  %v5026_v33 = vld [vmem:[#allocation4 + $0x40] sm:$0xf] }
 0xb4d   :  { %v5619_v43 = vld [vmem:[#allocation4 + $0x4c] sm:$0xf0]  ;;  %v5617_v50 = vld [vmem:[#allocation4 + $0x44] sm:$0xf]  ;;  %v5055_v2 = vor.u32 %v5622_v18, %v5052_v48  ;;  %v5028_v53 = vld [vmem:[#allocation4 + $0x50] sm:$0xf0] }
 0xb4e   :  { %2771 = vmatpush.bf16.msra.mxu0 %v5059_v31  ;;  %v5034_v62 = vld [vmem:[#allocation4 + $0x48] sm:$0xf]  ;;  %v5620_v17 = vld [vmem:[#allocation4 + $0x54] sm:$0xf0]  ;;  %v5618_v47 = vld [vmem:[#allocation4 + $0x4c] sm:$0xf]  ;;  %v5027_v10 = vor.u32 %v5619_v43, %v5026_v33  ;;  %v5031_v14 = vor.u32 %v5617_v50, %v5028_v53 }
 0xb4f   :  { %2785 = vmatpush.bf16.msra.mxu1 %v5063_v58  ;;  %v5036_v5 = vld [vmem:[#allocation4 + $0x58] sm:$0xf0]  ;;  %v5035_v28 = vor.u32 %v5620_v17, %v5034_v62  ;;  %v5010_v40 = vld [vmem:[#allocation4 + $0x20] sm:$0xf]  ;;  %v5615_v41 = vld [vmem:[#allocation4 + $0x2c] sm:$0xf0] }
 0xb50   :  { %2799 = vmatpush.bf16.msra.mxu2 %v5067_v16  ;;  %2813 = vmatpush.bf16.msra.mxu3 %v5071_v61  ;;  %v5613_v45 = vld [vmem:[#allocation4 + $0x24] sm:$0xf]  ;;  %v5039_v63 = vor.u32 %v5618_v47, %v5036_v5  ;;  %v5012_v44 = vld [vmem:[#allocation4 + $0x30] sm:$0xf0]  ;;  %v5018_v24 = vld [vmem:[#allocation4 + $0x28] sm:$0xf]  ;;  %v5011_v36 = vor.u32 %v5615_v41, %v5010_v40 }
 0xb51   :  { %v5616_v25 = vld [vmem:[#allocation4 + $0x34] sm:$0xf0]  ;;  %v5614_v27 = vld [vmem:[#allocation4 + $0x2c] sm:$0xf]  ;;  %v5020_v20 = vld [vmem:[#allocation4 + $0x38] sm:$0xf0]  ;;  %v5015_v49 = vor.u32 %v5613_v45, %v5012_v44 }
 0xb52   :  { %2772 = vmatpush.bf16.msra.mxu0 %v5043_v15  ;;  %v4994_v38 = vld [vmem:[#allocation4] sm:$0xf]  ;;  %v5611_v21 = vld [vmem:[#allocation4 + $0xc] sm:$0xf0]  ;;  %v5019_v0 = vor.u32 %v5616_v25, %v5018_v24  ;;  %v5609_v22 = vld [vmem:[#allocation4 + $0x4] sm:$0xf]  ;;  %v5023_v42 = vor.u32 %v5614_v27, %v5020_v20 }
 0xb53   :  { %2786 = vmatpush.bf16.msra.mxu1 %v5047_v37  ;;  %v4996_v51 = vld [vmem:[#allocation4 + $0x10] sm:$0xf0]  ;;  %v5002_v1 = vld [vmem:[#allocation4 + $0x8] sm:$0xf]  ;;  %v5612_v39 = vld [vmem:[#allocation4 + $0x14] sm:$0xf0]  ;;  %v4995_v26 = vor.u32 %v5611_v21, %v4994_v38 }
 0xb54   :  { %2800 = vmatpush.bf16.msra.mxu2 %v5051_v3  ;;  %2814 = vmatpush.bf16.msra.mxu3 %v5055_v2  ;;  %v5610_v52 = vld [vmem:[#allocation4 + $0xc] sm:$0xf]  ;;  %v5004_v54 = vld [vmem:[#allocation4 + $0x18] sm:$0xf0]  ;;  %v5234_v13 = vld [vmem:[#allocation5 + $0xe0] sm:$0xf]  ;;  %v4999_v8 = vor.u32 %v5609_v22, %v4996_v51  ;;  %v5003_v19 = vor.u32 %v5612_v39, %v5002_v1 }
 0xb55   :  { %v5671_v56 = vld [vmem:[#allocation5 + $0xec] sm:$0xf0]  ;;  %v5669_v6 = vld [vmem:[#allocation5 + $0xe4] sm:$0xf]  ;;  %v5236_v55 = vld [vmem:[#allocation5 + $0xf0] sm:$0xf0]  ;;  %v5007_v29 = vor.u32 %v5610_v52, %v5004_v54 }
 0xb56   :  { %2773 = vmatpush.bf16.msra.mxu0 %v5027_v10  ;;  %v5242_v57 = vld [vmem:[#allocation5 + $0xe8] sm:$0xf]  ;;  %v5672_v7 = vld [vmem:[#allocation5 + $0xf4] sm:$0xf0]  ;;  %v5670_v9 = vld [vmem:[#allocation5 + $0xec] sm:$0xf]  ;;  %v7690_v11 = vor.u32 %v5671_v56, %v5234_v13  ;;  %v7692_v35 = vor.u32 %v5669_v6, %v5236_v55 }
 0xb57   :  { %2787 = vmatpush.bf16.msra.mxu1 %v5031_v14  ;;  %v5244_v23 = vld [vmem:[#allocation5 + $0xf8] sm:$0xf0]  ;;  %v7694_v31 = vor.u32 %v5672_v7, %v5242_v57  ;;  %v5218_v58 = vld [vmem:[#allocation5 + $0xc0] sm:$0xf]  ;;  %v5667_v16 = vld [vmem:[#allocation5 + $0xcc] sm:$0xf0] }
 0xb58   :  { %2801 = vmatpush.bf16.msra.mxu2 %v5035_v28  ;;  %2815 = vmatpush.bf16.msra.mxu3 %v5039_v63  ;;  %v5665_v32 = vld [vmem:[#allocation5 + $0xc4] sm:$0xf]  ;;  %v7696_v4 = vor.u32 %v5670_v9, %v5244_v23  ;;  %v5220_v34 = vld [vmem:[#allocation5 + $0xd0] sm:$0xf0]  ;;  %v5226_v61 = vld [vmem:[#allocation5 + $0xc8] sm:$0xf]  ;;  %v7699_v18 = vor.u32 %v5667_v16, %v5218_v58 }
 0xb59   :  { %v5668_v12 = vld [vmem:[#allocation5 + $0xd4] sm:$0xf0]  ;;  %v5666_v59 = vld [vmem:[#allocation5 + $0xcc] sm:$0xf]  ;;  %v5228_v60 = vld [vmem:[#allocation5 + $0xd8] sm:$0xf0]  ;;  %v7703_v48 = vor.u32 %v5665_v32, %v5220_v34 }
 0xb5a   :  { %2774 = vmatpush.bf16.msra.mxu0 %v5011_v36  ;;  %v7705_v15 = vor.u32 %v5668_v12, %v5226_v61  ;;  %v5202_v37 = vld [vmem:[#allocation5 + $0xa0] sm:$0xf]  ;;  %v5663_v3 = vld [vmem:[#allocation5 + $0xac] sm:$0xf0]  ;;  %v5661_v33 = vld [vmem:[#allocation5 + $0xa4] sm:$0xf]  ;;  %v7708_v43 = vor.u32 %v5666_v59, %v5228_v60 }
 0xb5b   :  { %2788 = vmatpush.bf16.msra.mxu1 %v5015_v49  ;;  %v5204_v50 = vld [vmem:[#allocation5 + $0xb0] sm:$0xf0]  ;;  %v5210_v2 = vld [vmem:[#allocation5 + $0xa8] sm:$0xf]  ;;  %v5664_v53 = vld [vmem:[#allocation5 + $0xb4] sm:$0xf0]  ;;  %v7714_v47 = vor.u32 %v5663_v3, %v5202_v37 }
 0xb5c   :  { %2802 = vmatpush.bf16.msra.mxu2 %v5019_v0  ;;  %2816 = vmatpush.bf16.msra.mxu3 %v5023_v42  ;;  %v5662_v62 = vld [vmem:[#allocation5 + $0xac] sm:$0xf]  ;;  %v5212_v17 = vld [vmem:[#allocation5 + $0xb8] sm:$0xf0]  ;;  %v7719_v5 = vor.u32 %v5661_v33, %v5204_v50  ;;  %v7721_v10 = vor.u32 %v5664_v53, %v5210_v2  ;;  %v5186_v14 = vld [vmem:[#allocation5 + $0x80] sm:$0xf] }
 0xb5d   :  { %v5659_v28 = vld [vmem:[#allocation5 + $0x8c] sm:$0xf0]  ;;  %v5657_v40 = vld [vmem:[#allocation5 + $0x84] sm:$0xf]  ;;  %v7724_v41 = vor.u32 %v5662_v62, %v5212_v17  ;;  %v5188_v45 = vld [vmem:[#allocation5 + $0x90] sm:$0xf0] }
 0xb5e   :  { %2775 = vmatpush.bf16.msra.mxu0 %v4995_v26  ;;  %v5194_v63 = vld [vmem:[#allocation5 + $0x88] sm:$0xf]  ;;  %v5660_v44 = vld [vmem:[#allocation5 + $0x94] sm:$0xf0]  ;;  %v5658_v24 = vld [vmem:[#allocation5 + $0x8c] sm:$0xf]  ;;  %v7727_v25 = vor.u32 %v5659_v28, %v5186_v14  ;;  %v7731_v27 = vor.u32 %v5657_v40, %v5188_v45 }
 0xb5f   :  { %2789 = vmatpush.bf16.msra.mxu1 %v4999_v8  ;;  %v7733_v20 = vor.u32 %v5660_v44, %v5194_v63  ;;  %v5170_v36 = vld [vmem:[#allocation5 + $0x60] sm:$0xf]  ;;  %v5655_v38 = vld [vmem:[#allocation5 + $0x6c] sm:$0xf0]  ;;  %v5653_v21 = vld [vmem:[#allocation5 + $0x64] sm:$0xf] }
 0xb60   :  { %2803 = vmatpush.bf16.msra.mxu2 %v5003_v19  ;;  %2817 = vmatpush.bf16.msra.mxu3 %v5007_v29  ;;  %v5172_v0 = vld [vmem:[#allocation5 + $0x70] sm:$0xf0]  ;;  %v5178_v22 = vld [vmem:[#allocation5 + $0x68] sm:$0xf]  ;;  %v5656_v51 = vld [vmem:[#allocation5 + $0x74] sm:$0xf0]  ;;  %v7739_v39 = vor.u32 %v5655_v38, %v5170_v36 }
 0xb61   :  { %2776 = vmatmul.bf16.vlgmr.msra.gmra.mxu0 %v7688_v46  ;;  %v5654_v1 = vld [vmem:[#allocation5 + $0x6c] sm:$0xf]  ;;  %v5180_v42 = vld [vmem:[#allocation5 + $0x78] sm:$0xf0]  ;;  %v7743_v52 = vor.u32 %v5653_v21, %v5172_v0  ;;  %v7745_v54 = vor.u32 %v5656_v51, %v5178_v22  ;;  %v5154_v13 = vld [vmem:[#allocation5 + $0x40] sm:$0xf] }
 0xb62   :  { %2984 = vmatpush.bf16.msrb.mxu0 %v7690_v11  ;;  %2790 = vmatmul.bf16.vlgmr.msra.gmra.mxu1 %v7688_v46  ;;  %v5651_v56 = vld [vmem:[#allocation5 + $0x4c] sm:$0xf0]  ;;  %v5649_v6 = vld [vmem:[#allocation5 + $0x44] sm:$0xf]  ;;  %v7748_v26 = vor.u32 %v5654_v1, %v5180_v42  ;;  %v5156_v55 = vld [vmem:[#allocation5 + $0x50] sm:$0xf0] }
 0xb63   :  { %2997 = vmatpush.bf16.msrb.mxu1 %v7692_v35  ;;  %2818 = vmatmul.bf16.vlgmr.msra.gmra.mxu3 %v7688_v46  ;;  %v5162_v57 = vld [vmem:[#allocation5 + $0x48] sm:$0xf]  ;;  %v5652_v7 = vld [vmem:[#allocation5 + $0x54] sm:$0xf0]  ;;  %v5650_v8 = vld [vmem:[#allocation5 + $0x4c] sm:$0xf]  ;;  %v7751_v9 = vor.u32 %v5651_v56, %v5154_v13  ;;  %v7755_v23 = vor.u32 %v5649_v6, %v5156_v55 }
 0xb64   :  { %3010 = vmatpush.bf16.msrb.mxu2 %v7694_v31  ;;  %3023 = vmatpush.bf16.msrb.mxu3 %v7696_v4  ;;  %v5164_v19 = vld [vmem:[#allocation5 + $0x58] sm:$0xf0]  ;;  %v7757_v29 = vor.u32 %v5652_v7, %v5162_v57  ;;  %v5138_v58 = vld [vmem:[#allocation5 + $0x20] sm:$0xf]  ;;  %v5647_v16 = vld [vmem:[#allocation5 + $0x2c] sm:$0xf0] }
 0xb65   :  { %2804 = vmatmul.bf16.vlgmr.msra.gmra.mxu2 %v7688_v46  ;;  %v5196_v46 = vld [vmem:[#allocation5 + $0x98] sm:$0xf0]  ;;  %v5645_v32 = vld [vmem:[#allocation5 + $0x24] sm:$0xf]  ;;  %v7760_v34 = vor.u32 %v5650_v8, %v5164_v19  ;;  %v5140_v61 = vld [vmem:[#allocation5 + $0x30] sm:$0xf0]  ;;  %v7763_v3 = vor.u32 %v5647_v16, %v5138_v58 }
 0xb66   :  { %2985 = vmatpush.bf16.msrb.mxu0 %v7699_v18  ;;  %v7736_v49 = vor.u32 %v5658_v24, %v5196_v46  ;;  %v5146_v12 = vld [vmem:[#allocation5 + $0x28] sm:$0xf]  ;;  %v5648_v59 = vld [vmem:[#allocation5 + $0x34] sm:$0xf0]  ;;  %v5646_v60 = vld [vmem:[#allocation5 + $0x2c] sm:$0xf]  ;;  %v7767_v33 = vor.u32 %v5645_v32, %v5140_v61 }
 0xb67   :  { %2998 = vmatpush.bf16.msrb.mxu1 %v7703_v48  ;;  %v5148_v37 = vld [vmem:[#allocation5 + $0x38] sm:$0xf0]  ;;  %v7769_v50 = vor.u32 %v5648_v59, %v5146_v12  ;;  %v5122_v2 = vld [vmem:[#allocation5] sm:$0xf]  ;;  %v5643_v53 = vld [vmem:[#allocation5 + $0xc] sm:$0xf0] }
 0xb68   :  { %3011 = vmatpush.bf16.msrb.mxu2 %v7705_v15  ;;  %3024 = vmatpush.bf16.msrb.mxu3 %v7708_v43  ;;  %v5641_v62 = vld [vmem:[#allocation5 + $0x4] sm:$0xf]  ;;  %v7772_v17 = vor.u32 %v5646_v60, %v5148_v37  ;;  %v5124_v14 = vld [vmem:[#allocation5 + $0x10] sm:$0xf0]  ;;  %v5130_v28 = vld [vmem:[#allocation5 + $0x8] sm:$0xf]  ;;  %v7775_v44 = vor.u32 %v5643_v53, %v5122_v2 }
 0xb69   :  { %v5644_v40 = vld [vmem:[#allocation5 + $0x14] sm:$0xf0]  ;;  %v5642_v45 = vld [vmem:[#allocation5 + $0xc] sm:$0xf]  ;;  %v5132_v63 = vld [vmem:[#allocation5 + $0x18] sm:$0xf0]  ;;  %v7779_v24 = vor.u32 %v5641_v62, %v5124_v14 }
 0xb6a   :  { %2986 = vmatpush.bf16.msrb.mxu0 %v7714_v47  ;;  %v7781_v46 = vor.u32 %v5644_v40, %v5130_v28  ;;  %v7784_v36 = vor.u32 %v5642_v45, %v5132_v63  ;;  %v2598_v21 = vld [vmem:[%s8511_s5] sm:$0xf] }
 0xb6b   :  { %2999 = vmatpush.bf16.msrb.mxu1 %v7719_v5  ;;  %v2600_v0 = vperm.slane %v2598_v21, 0  ;;  %v2601_v22 = vperm.slane %v2598_v21, 1  ;;  %v2603_v55 = vperm.slane %v2598_v21, 3  ;;  %v2602_v57 = vperm.slane %v2598_v21, 2 }
 0xb6c   :  { %3012 = vmatpush.bf16.msrb.mxu2 %v7721_v10  ;;  %3025 = vmatpush.bf16.msrb.mxu3 %v7724_v41 }
 0xb6e   :  { %2987 = vmatpush.bf16.msrb.mxu0 %v7727_v25 }
 0xb6f   :  { %3000 = vmatpush.bf16.msrb.mxu1 %v7731_v27 }
 0xb70   :  { %3013 = vmatpush.bf16.msrb.mxu2 %v7733_v20  ;;  %3026 = vmatpush.bf16.msrb.mxu3 %v7736_v49 }
 0xb72   :  { %2988 = vmatpush.bf16.msrb.mxu0 %v7739_v39 }
 0xb73   :  { %3001 = vmatpush.bf16.msrb.mxu1 %v7743_v52 }
 0xb74   :  { %3014 = vmatpush.bf16.msrb.mxu2 %v7745_v54  ;;  %3027 = vmatpush.bf16.msrb.mxu3 %v7748_v26 }
 0xb76   :  { %2989 = vmatpush.bf16.msrb.mxu0 %v7751_v9 }
 0xb77   :  { %3002 = vmatpush.bf16.msrb.mxu1 %v7755_v23 }
 0xb78   :  { %3015 = vmatpush.bf16.msrb.mxu2 %v7757_v29  ;;  %3028 = vmatpush.bf16.msrb.mxu3 %v7760_v34 }
 0xb7a   :  { %2990 = vmatpush.bf16.msrb.mxu0 %v7763_v3 }
 0xb7b   :  { %3003 = vmatpush.bf16.msrb.mxu1 %v7767_v33 }
 0xb7c   :  { %3016 = vmatpush.bf16.msrb.mxu2 %v7769_v50  ;;  %3029 = vmatpush.bf16.msrb.mxu3 %v7772_v17 }
 0xb7e   :  { %2991 = vmatpush.bf16.msrb.mxu0 %v7775_v44 }
 0xb7f   :  { %3004 = vmatpush.bf16.msrb.mxu1 %v7779_v24 }
 0xb80   :  { %3017 = vmatpush.bf16.msrb.mxu2 %v7781_v46  ;;  %3030 = vmatpush.bf16.msrb.mxu3 %v7784_v36 }
 0xb81   :  { %2992 = vmatmul.bf16.vlgmr.msrb.gmra.mxu0 %v6238_v30 }
 0xb82   :  { %3062 = vmatpush.bf16.msra.mxu0 %v7690_v11  ;;  %3005 = vmatmul.bf16.vlgmr.msrb.gmra.mxu1 %v6238_v30 }
 0xb83   :  { %3075 = vmatpush.bf16.msra.mxu1 %v7692_v35  ;;  %3018 = vmatmul.bf16.vlgmr.msrb.gmra.mxu2 %v6238_v30 }
 0xb84   :  { %3031 = vmatmul.bf16.vlgmr.msrb.gmra.mxu3 %v6238_v30  ;;  %3088 = vmatpush.bf16.msra.mxu2 %v7694_v31 }
 0xb85   :  { %3101 = vmatpush.bf16.msra.mxu3 %v7696_v4 }
 0xb86   :  { %3063 = vmatpush.bf16.msra.mxu0 %v7699_v18 }
 0xb87   :  { %3076 = vmatpush.bf16.msra.mxu1 %v7703_v48 }
 0xb88   :  { %3089 = vmatpush.bf16.msra.mxu2 %v7705_v15 }
 0xb89   :  { %3102 = vmatpush.bf16.msra.mxu3 %v7708_v43 }
 0xb8a   :  { %3064 = vmatpush.bf16.msra.mxu0 %v7714_v47 }
 0xb8b   :  { %3077 = vmatpush.bf16.msra.mxu1 %v7719_v5 }
 0xb8c   :  { %3090 = vmatpush.bf16.msra.mxu2 %v7721_v10 }
 0xb8d   :  { %3103 = vmatpush.bf16.msra.mxu3 %v7724_v41 }
 0xb8e   :  { %3065 = vmatpush.bf16.msra.mxu0 %v7727_v25 }
 0xb8f   :  { %3078 = vmatpush.bf16.msra.mxu1 %v7731_v27 }
 0xb90   :  { %3091 = vmatpush.bf16.msra.mxu2 %v7733_v20 }
 0xb91   :  { %3104 = vmatpush.bf16.msra.mxu3 %v7736_v49 }
 0xb92   :  { %3066 = vmatpush.bf16.msra.mxu0 %v7739_v39 }
 0xb93   :  { %3079 = vmatpush.bf16.msra.mxu1 %v7743_v52 }
 0xb94   :  { %3092 = vmatpush.bf16.msra.mxu2 %v7745_v54 }
 0xb95   :  { %3105 = vmatpush.bf16.msra.mxu3 %v7748_v26 }
 0xb96   :  { %3067 = vmatpush.bf16.msra.mxu0 %v7751_v9 }
 0xb97   :  { %3080 = vmatpush.bf16.msra.mxu1 %v7755_v23 }
 0xb98   :  { %3093 = vmatpush.bf16.msra.mxu2 %v7757_v29 }
 0xb99   :  { %3106 = vmatpush.bf16.msra.mxu3 %v7760_v34 }
 0xb9a   :  { %3068 = vmatpush.bf16.msra.mxu0 %v7763_v3 }
 0xb9b   :  { %3081 = vmatpush.bf16.msra.mxu1 %v7767_v33 }
 0xb9c   :  { %3094 = vmatpush.bf16.msra.mxu2 %v7769_v50 }
 0xb9d   :  { %3107 = vmatpush.bf16.msra.mxu3 %v7772_v17 }
 0xb9e   :  { %3069 = vmatpush.bf16.msra.mxu0 %v7775_v44 }
 0xb9f   :  { %3082 = vmatpush.bf16.msra.mxu1 %v7779_v24 }
 0xba0   :  { %3095 = vmatpush.bf16.msra.mxu2 %v7781_v46 }
 0xba1   :  { %3108 = vmatpush.bf16.msra.mxu3 %v7784_v36 }
 0xba2   :  { %3158 = vmatpush.bf16.msrb.mxu0 %v7690_v11 }
 0xba3   :  { %3171 = vmatpush.bf16.msrb.mxu1 %v7692_v35 }
 0xba4   :  { %3184 = vmatpush.bf16.msrb.mxu2 %v7694_v31 }
 0xba5   :  { %3197 = vmatpush.bf16.msrb.mxu3 %v7696_v4 }
 0xba6   :  { %3159 = vmatpush.bf16.msrb.mxu0 %v7699_v18 }
 0xba7   :  { %3172 = vmatpush.bf16.msrb.mxu1 %v7703_v48 }
 0xba8   :  { %3185 = vmatpush.bf16.msrb.mxu2 %v7705_v15 }
 0xba9   :  { %3198 = vmatpush.bf16.msrb.mxu3 %v7708_v43 }
 0xbaa   :  { %3160 = vmatpush.bf16.msrb.mxu0 %v7714_v47 }
 0xbab   :  { %3173 = vmatpush.bf16.msrb.mxu1 %v7719_v5 }
 0xbac   :  { %3186 = vmatpush.bf16.msrb.mxu2 %v7721_v10 }
 0xbad   :  { %3199 = vmatpush.bf16.msrb.mxu3 %v7724_v41 }
 0xbae   :  { %3161 = vmatpush.bf16.msrb.mxu0 %v7727_v25 }
 0xbaf   :  { %3174 = vmatpush.bf16.msrb.mxu1 %v7731_v27 }
 0xbb0   :  { %3187 = vmatpush.bf16.msrb.mxu2 %v7733_v20 }
 0xbb1   :  { %3200 = vmatpush.bf16.msrb.mxu3 %v7736_v49 }
 0xbb2   :  { %3162 = vmatpush.bf16.msrb.mxu0 %v7739_v39 }
 0xbb3   :  { %3175 = vmatpush.bf16.msrb.mxu1 %v7743_v52 }
 0xbb4   :  { %3188 = vmatpush.bf16.msrb.mxu2 %v7745_v54 }
 0xbb5   :  { %3201 = vmatpush.bf16.msrb.mxu3 %v7748_v26 }
 0xbb6   :  { %3163 = vmatpush.bf16.msrb.mxu0 %v7751_v9 }
 0xbb7   :  { %3176 = vmatpush.bf16.msrb.mxu1 %v7755_v23 }
 0xbb8   :  { %3189 = vmatpush.bf16.msrb.mxu2 %v7757_v29 }
 0xbb9   :  { %3202 = vmatpush.bf16.msrb.mxu3 %v7760_v34 }
 0xbba   :  { %3164 = vmatpush.bf16.msrb.mxu0 %v7763_v3 }
 0xbbb   :  { %3177 = vmatpush.bf16.msrb.mxu1 %v7767_v33 }
 0xbbc   :  { %3190 = vmatpush.bf16.msrb.mxu2 %v7769_v50 }
 0xbbd   :  { %3203 = vmatpush.bf16.msrb.mxu3 %v7772_v17 }
 0xbbe   :  { %3165 = vmatpush.bf16.msrb.mxu0 %v7775_v44 }
 0xbbf   :  { %3178 = vmatpush.bf16.msrb.mxu1 %v7779_v24 }
 0xbc0   :  { %3191 = vmatpush.bf16.msrb.mxu2 %v7781_v46 }
 0xbc1   :  { %3204 = vmatpush.bf16.msrb.mxu3 %v7784_v36 }
 0xbde   :  { %v2777_v30 = vpop.f32.mrf.mxu0 }
 0xbdf   :  { %v2791_v38 = vpop.f32.mrf.mxu1  ;;  %v7869_v16 = vadd.f32 %v2777_v30, %v2600_v0 }
 0xbe0   :  { %v7871_v32 = vadd.f32 %v2791_v38, %v2601_v22 }
 0xbe6   :  { %v2819_v51 = vpop.f32.mrf.mxu3  ;;  %v2779_v1 = vpop.f32.mrf.mxu0 }
 0xbe7   :  { %v7861_v13 = vadd.f32 %v2779_v1, %v2600_v0  ;;  %v2793_v56 = vpop.f32.mrf.mxu1  ;;  %v7875_v14 = vadd.f32 %v2819_v51, %v2603_v55 }
 0xbe8   :  { %v2805_v42 = vpop.f32.mrf.mxu2  ;;  %v7863_v6 = vadd.f32 %v2793_v56, %v2601_v22 }
 0xbe9   :  { %v7877_v40 = vadd.f32 %v2805_v42, %v2602_v57 }
 0xbee   :  { %v2821_v7 = vpop.f32.mrf.mxu3 }
 0xbef   :  { %v7865_v8 = vadd.f32 %v2821_v7, %v2603_v55 }
 0xbf0   :  { %v2807_v19 = vpop.f32.mrf.mxu2 }
 0xbf1   :  { %v7867_v58 = vadd.f32 %v2807_v19, %v2602_v57 }
 0xbfe   :  { %v2993_v61 = vpop.f32.mrf.mxu0 }
 0xbff   :  { %v3036_v12 = vadd.f32 %v2993_v61, %v7869_v16  ;;  %v3006_v59 = vpop.f32.mrf.mxu1 }
 0xc00   :  { %v3037_v60 = vadd.f32 %v3006_v59, %v7871_v32 }
 0xc01   :  { %v3040_v37 = vsub.f32 0.0, %v3036_v12 }
 0xc02   :  { %v3045_v2 = vsub.f32 0.0, %v3037_v60 }
 0xc03   :  { %v3041_v53 = vmul.f32 1.442695, %v3040_v37 }
 0xc04   :  { %v3046_v62 = vmul.f32 1.442695, %v3045_v2 }
 0xc05   :  { %5998 = vpow2.f32 %v3041_v53 }
 0xc06   :  { %v3019_v28 = vpop.f32.mrf.mxu2  ;;  %6000 = vpow2.f32 %v3046_v62  ;;  %v2995_v63 = vpop.f32.mrf.mxu0 }
 0xc07   :  { %v3032_v45 = vpop.f32.mrf.mxu3  ;;  %v3008_v38 = vpop.f32.mrf.mxu1  ;;  %v3038_v21 = vadd.f32 %v3019_v28, %v7877_v40 }
 0xc08   :  { %v3039_v30 = vadd.f32 %v3032_v45, %v7875_v14 }
 0xc09   :  { %6002 = vtanh.f32 %v3038_v21 }
 0xc0a   :  { %v3051_v0 = vsub.f32 0.0, %v3039_v30 }
 0xc0b   :  { %v5999_v22 = vpop.eup %5998 }
 0xc0c   :  { %v3052_v1 = vmul.f32 1.442695, %v3051_v0  ;;  %v6001_v56 = vpop.eup %6000  ;;  %v3043_v7 = vadd.f32 1.0, %v5999_v22 }
 0xc0d   :  { %v3048_v51 = vadd.f32 1.0, %v6001_v56 }
 0xc0e   :  { %6004 = vpow2.f32 %v3052_v1  ;;  %v3021_v55 = vpop.f32.mrf.mxu2 }
 0xc0f   :  { %6006 = vrcp.f32 %v3043_v7  ;;  %v3034_v42 = vpop.f32.mrf.mxu3  ;;  %v6003_v57 = vpop.eup %6002 }
 0xc10   :  { %6008 = vrcp.f32 %v3048_v51 }
 0xc14   :  { %v6005_v19 = vpop.eup %6004 }
 0xc15   :  { %v6007_v61 = vpop.eup %6006  ;;  %v3054_v60 = vadd.f32 1.0, %v6005_v19 }
 0xc16   :  { %v6009_v12 = vpop.eup %6008  ;;  %v3057_v59 = vmul.f32 %v6007_v61, %v6003_v57 }
 0xc17   :  { %v3056_v37 = vmul.f32 0.0, %v6009_v12  ;;  %6010 = vrcp.f32 %v3054_v60 }
 0xc19   :  { %v7881_v2 = vadd.f32 %v3057_v59, %v3056_v37 }
 0xc1b   :  { %6012 = vtanh.f32 %v7881_v2 }
 0xc1d   :  { %v6011_v53 = vpop.eup %6010 }
 0xc21   :  { %v6013_v62 = vpop.eup %6012 }
 0xc22   :  { %v3060_v28 = vmul.f32 %v6013_v62, %v6011_v53 }
 0xc24   :  { %v3061_v45 = vpack.c.bf16 %v3060_v28, %v3060_v28 }
 0xc26   :  { %3070 = vmatmul.bf16.vlgmr.msra.gmra.mxu0 %v3061_v45  ;;  %3083 = vmatmul.bf16.vlgmr.msra.gmra.mxu1 %v3061_v45 }
 0xc27   :  { %3096 = vmatmul.bf16.vlgmr.msra.gmra.mxu2 %v3061_v45  ;;  %3109 = vmatmul.bf16.vlgmr.msra.gmra.mxu3 %v3061_v45 }
 0xc28   :  { %3254 = vmatpush.bf16.msra.mxu0 %v7690_v11  ;;  %3267 = vmatpush.bf16.msra.mxu1 %v7692_v35 }
 0xc29   :  { %3280 = vmatpush.bf16.msra.mxu2 %v7694_v31  ;;  %3293 = vmatpush.bf16.msra.mxu3 %v7696_v4 }
 0xc2c   :  { %3255 = vmatpush.bf16.msra.mxu0 %v7699_v18  ;;  %3268 = vmatpush.bf16.msra.mxu1 %v7703_v48 }
 0xc2d   :  { %3281 = vmatpush.bf16.msra.mxu2 %v7705_v15  ;;  %3294 = vmatpush.bf16.msra.mxu3 %v7708_v43 }
 0xc30   :  { %3256 = vmatpush.bf16.msra.mxu0 %v7714_v47  ;;  %3269 = vmatpush.bf16.msra.mxu1 %v7719_v5 }
 0xc31   :  { %3282 = vmatpush.bf16.msra.mxu2 %v7721_v10  ;;  %3295 = vmatpush.bf16.msra.mxu3 %v7724_v41 }
 0xc34   :  { %3257 = vmatpush.bf16.msra.mxu0 %v7727_v25  ;;  %3270 = vmatpush.bf16.msra.mxu1 %v7731_v27 }
 0xc35   :  { %3283 = vmatpush.bf16.msra.mxu2 %v7733_v20  ;;  %3296 = vmatpush.bf16.msra.mxu3 %v7736_v49 }
 0xc38   :  { %3258 = vmatpush.bf16.msra.mxu0 %v7739_v39  ;;  %3271 = vmatpush.bf16.msra.mxu1 %v7743_v52 }
 0xc39   :  { %3284 = vmatpush.bf16.msra.mxu2 %v7745_v54  ;;  %3297 = vmatpush.bf16.msra.mxu3 %v7748_v26 }
 0xc3c   :  { %3259 = vmatpush.bf16.msra.mxu0 %v7751_v9  ;;  %3272 = vmatpush.bf16.msra.mxu1 %v7755_v23 }
 0xc3d   :  { %3285 = vmatpush.bf16.msra.mxu2 %v7757_v29  ;;  %3298 = vmatpush.bf16.msra.mxu3 %v7760_v34 }
 0xc40   :  { %3260 = vmatpush.bf16.msra.mxu0 %v7763_v3  ;;  %3273 = vmatpush.bf16.msra.mxu1 %v7767_v33 }
 0xc41   :  { %3286 = vmatpush.bf16.msra.mxu2 %v7769_v50  ;;  %3299 = vmatpush.bf16.msra.mxu3 %v7772_v17 }
 0xc44   :  { %3261 = vmatpush.bf16.msra.mxu0 %v7775_v44  ;;  %3274 = vmatpush.bf16.msra.mxu1 %v7779_v24 }
 0xc45   :  { %3287 = vmatpush.bf16.msra.mxu2 %v7781_v46  ;;  %3300 = vmatpush.bf16.msra.mxu3 %v7784_v36 }
 0xca3   :  { %v3071_v63 = vpop.f32.mrf.mxu0  ;;  %v3084_v30 = vpop.f32.mrf.mxu1 }
 0xca4   :  { %v3118_v38 = vrot.slane %v3071_v63, 6  ;;  %v3119_v21 = vrot.slane %v3084_v30, 6 }
 0xca6   :  { %v3126_v0 = vadd.f32 %v3118_v38, %v7869_v16  ;;  %v3127_v22 = vadd.f32 %v3119_v21, %v7871_v32 }
 0xca8   :  { %v3130_v1 = vsub.f32 0.0, %v3126_v0  ;;  %v3135_v56 = vsub.f32 0.0, %v3127_v22 }
 0xcaa   :  { %v3131_v7 = vmul.f32 1.442695, %v3130_v1  ;;  %v3136_v51 = vmul.f32 1.442695, %v3135_v56  ;;  %v3097_v55 = vpop.f32.mrf.mxu2  ;;  %v3110_v42 = vpop.f32.mrf.mxu3  ;;  %v3147_v1 = vrot.slane %v7881_v2, 6 }
 0xcab   :  { %v3121_v57 = vrot.slane %v3110_v42, 6  ;;  %v3073_v19 = vpop.f32.mrf.mxu0  ;;  %v3086_v61 = vpop.f32.mrf.mxu1  ;;  %v3120_v12 = vrot.slane %v3097_v55, 6 }
 0xcac   :  { %6014 = vpow2.f32 %v3131_v7 }
 0xcad   :  { %6016 = vpow2.f32 %v3136_v51  ;;  %v3129_v59 = vadd.f32 %v3121_v57, %v7875_v14  ;;  %v3128_v37 = vadd.f32 %v3120_v12, %v7877_v40 }
 0xcaf   :  { %v3141_v60 = vsub.f32 0.0, %v3129_v59 }
 0xcb1   :  { %v3142_v53 = vmul.f32 1.442695, %v3141_v60 }
 0xcb2   :  { %v6015_v62 = vpop.eup %6014  ;;  %v3099_v28 = vpop.f32.mrf.mxu2 }
 0xcb3   :  { %v3112_v45 = vpop.f32.mrf.mxu3  ;;  %v6017_v63 = vpop.eup %6016  ;;  %v3133_v30 = vadd.f32 1.0, %v6015_v62  ;;  %6018 = vpow2.f32 %v3142_v53 }
 0xcb4   :  { %v3138_v38 = vadd.f32 1.0, %v6017_v63  ;;  %6020 = vtanh.f32 %v3128_v37 }
 0xcb5   :  { %6022 = vrcp.f32 %v3133_v30 }
 0xcb6   :  { %6024 = vrcp.f32 %v3138_v38 }
 0xcb9   :  { %v6019_v21 = vpop.eup %6018 }
 0xcba   :  { %v6021_v0 = vpop.eup %6020  ;;  %v3144_v51 = vadd.f32 1.0, %v6019_v21 }
 0xcbb   :  { %v6023_v22 = vpop.eup %6022 }
 0xcbc   :  { %v6025_v56 = vpop.eup %6024  ;;  %v3150_v7 = vmul.f32 %v6023_v22, %v6021_v0  ;;  %6026 = vrcp.f32 %v3144_v51 }
 0xcbd   :  { %v3149_v55 = vmul.f32 %v6025_v56, %v3147_v1 }
 0xcbf   :  { %v7921_v42 = vadd.f32 %v3150_v7, %v3149_v55 }
 0xcc1   :  { %6028 = vtanh.f32 %v7921_v42 }
 0xcc2   :  { %v6027_v57 = vpop.eup %6026 }
 0xcc7   :  { %v6029_v19 = vpop.eup %6028 }
 0xcc8   :  { %v3153_v61 = vmul.f32 %v6029_v19, %v6027_v57 }
 0xcca   :  { %v3154_v12 = vpack.c.bf16 %v3153_v61, %v3153_v61 }
 0xccc   :  { %v3156_v59 = vrot.slane %v3154_v12, 1 }
 0xcce   :  { %3166 = vmatmul.bf16.vlgmr.msrb.gmra.mxu0 %v3156_v59  ;;  %3179 = vmatmul.bf16.vlgmr.msrb.gmra.mxu1 %v3156_v59 }
 0xccf   :  { %3192 = vmatmul.bf16.vlgmr.msrb.gmra.mxu2 %v3156_v59  ;;  %3205 = vmatmul.bf16.vlgmr.msrb.gmra.mxu3 %v3156_v59 }
 0xcd0   :  { %3350 = vmatpush.bf16.msrb.mxu0 %v7690_v11  ;;  %3363 = vmatpush.bf16.msrb.mxu1 %v7692_v35 }
 0xcd1   :  { %3376 = vmatpush.bf16.msrb.mxu2 %v7694_v31  ;;  %3389 = vmatpush.bf16.msrb.mxu3 %v7696_v4 }
 0xcd4   :  { %3351 = vmatpush.bf16.msrb.mxu0 %v7699_v18  ;;  %3364 = vmatpush.bf16.msrb.mxu1 %v7703_v48 }
 0xcd5   :  { %3377 = vmatpush.bf16.msrb.mxu2 %v7705_v15  ;;  %3390 = vmatpush.bf16.msrb.mxu3 %v7708_v43 }
 0xcd8   :  { %3352 = vmatpush.bf16.msrb.mxu0 %v7714_v47  ;;  %3365 = vmatpush.bf16.msrb.mxu1 %v7719_v5 }
 0xcd9   :  { %3378 = vmatpush.bf16.msrb.mxu2 %v7721_v10  ;;  %3391 = vmatpush.bf16.msrb.mxu3 %v7724_v41 }
 0xcdc   :  { %3353 = vmatpush.bf16.msrb.mxu0 %v7727_v25  ;;  %3366 = vmatpush.bf16.msrb.mxu1 %v7731_v27 }
 0xcdd   :  { %3379 = vmatpush.bf16.msrb.mxu2 %v7733_v20  ;;  %3392 = vmatpush.bf16.msrb.mxu3 %v7736_v49 }
 0xce0   :  { %3354 = vmatpush.bf16.msrb.mxu0 %v7739_v39  ;;  %3367 = vmatpush.bf16.msrb.mxu1 %v7743_v52 }
 0xce1   :  { %3380 = vmatpush.bf16.msrb.mxu2 %v7745_v54  ;;  %3393 = vmatpush.bf16.msrb.mxu3 %v7748_v26 }
 0xce4   :  { %3355 = vmatpush.bf16.msrb.mxu0 %v7751_v9  ;;  %3368 = vmatpush.bf16.msrb.mxu1 %v7755_v23 }
 0xce5   :  { %3381 = vmatpush.bf16.msrb.mxu2 %v7757_v29  ;;  %3394 = vmatpush.bf16.msrb.mxu3 %v7760_v34 }
 0xce8   :  { %3356 = vmatpush.bf16.msrb.mxu0 %v7763_v3  ;;  %3369 = vmatpush.bf16.msrb.mxu1 %v7767_v33 }
 0xce9   :  { %3382 = vmatpush.bf16.msrb.mxu2 %v7769_v50  ;;  %3395 = vmatpush.bf16.msrb.mxu3 %v7772_v17 }
 0xcec   :  { %3357 = vmatpush.bf16.msrb.mxu0 %v7775_v44  ;;  %3370 = vmatpush.bf16.msrb.mxu1 %v7779_v24 }
 0xced   :  { %3383 = vmatpush.bf16.msrb.mxu2 %v7781_v46  ;;  %3396 = vmatpush.bf16.msrb.mxu3 %v7784_v36 }
 0xd4b   :  { %v3167_v2 = vpop.f32.mrf.mxu0  ;;  %v3180_v60 = vpop.f32.mrf.mxu1 }
 0xd4c   :  { %v3214_v37 = vrot.slane %v3167_v2, 4  ;;  %v3215_v53 = vrot.slane %v3180_v60, 4 }
 0xd4e   :  { %v3222_v62 = vadd.f32 %v3214_v37, %v7869_v16  ;;  %v3223_v28 = vadd.f32 %v3215_v53, %v7871_v32 }
 0xd50   :  { %v3226_v45 = vsub.f32 0.0, %v3222_v62  ;;  %v3231_v63 = vsub.f32 0.0, %v3223_v28 }
 0xd52   :  { %v3227_v30 = vmul.f32 1.442695, %v3226_v45  ;;  %v3232_v38 = vmul.f32 1.442695, %v3231_v63  ;;  %v3193_v21 = vpop.f32.mrf.mxu2  ;;  %v3206_v0 = vpop.f32.mrf.mxu3  ;;  %v3243_v45 = vrot.slane %v7921_v42, 6 }
 0xd53   :  { %v3217_v22 = vrot.slane %v3206_v0, 4  ;;  %v3169_v1 = vpop.f32.mrf.mxu0  ;;  %v3182_v56 = vpop.f32.mrf.mxu1  ;;  %v3216_v7 = vrot.slane %v3193_v21, 4 }
 0xd54   :  { %6030 = vpow2.f32 %v3227_v30 }
 0xd55   :  { %6032 = vpow2.f32 %v3232_v38  ;;  %v3225_v51 = vadd.f32 %v3217_v22, %v7875_v14  ;;  %v3224_v57 = vadd.f32 %v3216_v7, %v7877_v40 }
 0xd57   :  { %v3237_v55 = vsub.f32 0.0, %v3225_v51 }
 0xd59   :  { %v3238_v19 = vmul.f32 1.442695, %v3237_v55 }
 0xd5a   :  { %v6031_v61 = vpop.eup %6030  ;;  %v3195_v12 = vpop.f32.mrf.mxu2 }
 0xd5b   :  { %v3208_v59 = vpop.f32.mrf.mxu3  ;;  %v6033_v2 = vpop.eup %6032  ;;  %v3229_v60 = vadd.f32 1.0, %v6031_v61  ;;  %6034 = vpow2.f32 %v3238_v19 }
 0xd5c   :  { %v3234_v37 = vadd.f32 1.0, %v6033_v2  ;;  %6036 = vtanh.f32 %v3224_v57 }
 0xd5d   :  { %6038 = vrcp.f32 %v3229_v60 }
 0xd5e   :  { %6040 = vrcp.f32 %v3234_v37 }
 0xd61   :  { %v6035_v53 = vpop.eup %6034 }
 0xd62   :  { %v6037_v62 = vpop.eup %6036  ;;  %v3240_v38 = vadd.f32 1.0, %v6035_v53 }
 0xd63   :  { %v6039_v28 = vpop.eup %6038 }
 0xd64   :  { %v6041_v63 = vpop.eup %6040  ;;  %v3246_v30 = vmul.f32 %v6039_v28, %v6037_v62  ;;  %6042 = vrcp.f32 %v3240_v38 }
 0xd65   :  { %v3245_v21 = vmul.f32 %v6041_v63, %v3243_v45 }
 0xd67   :  { %v7961_v0 = vadd.f32 %v3246_v30, %v3245_v21 }
 0xd69   :  { %6044 = vtanh.f32 %v7961_v0 }
 0xd6a   :  { %v6043_v22 = vpop.eup %6042 }
 0xd6f   :  { %v6045_v1 = vpop.eup %6044 }
 0xd70   :  { %v3249_v56 = vmul.f32 %v6045_v1, %v6043_v22 }
 0xd72   :  { %v3250_v7 = vpack.c.bf16 %v3249_v56, %v3249_v56 }
 0xd74   :  { %v3252_v51 = vrot.slane %v3250_v7, 2 }
 0xd76   :  { %3262 = vmatmul.bf16.vlgmr.msra.gmra.mxu0 %v3252_v51  ;;  %3275 = vmatmul.bf16.vlgmr.msra.gmra.mxu1 %v3252_v51 }
 0xd77   :  { %3288 = vmatmul.bf16.vlgmr.msra.gmra.mxu2 %v3252_v51  ;;  %3301 = vmatmul.bf16.vlgmr.msra.gmra.mxu3 %v3252_v51 }
 0xd78   :  { %3431 = vmatpush.bf16.msra.mxu0 %v7690_v11  ;;  %3444 = vmatpush.bf16.msra.mxu1 %v7692_v35 }
 0xd79   :  { %3457 = vmatpush.bf16.msra.mxu2 %v7694_v31  ;;  %3470 = vmatpush.bf16.msra.mxu3 %v7696_v4 }
 0xd7c   :  { %3432 = vmatpush.bf16.msra.mxu0 %v7699_v18  ;;  %3445 = vmatpush.bf16.msra.mxu1 %v7703_v48 }
 0xd7d   :  { %3458 = vmatpush.bf16.msra.mxu2 %v7705_v15  ;;  %3471 = vmatpush.bf16.msra.mxu3 %v7708_v43 }
 0xd80   :  { %3433 = vmatpush.bf16.msra.mxu0 %v7714_v47  ;;  %3446 = vmatpush.bf16.msra.mxu1 %v7719_v5 }
 0xd81   :  { %3459 = vmatpush.bf16.msra.mxu2 %v7721_v10  ;;  %3472 = vmatpush.bf16.msra.mxu3 %v7724_v41 }
 0xd84   :  { %3434 = vmatpush.bf16.msra.mxu0 %v7727_v25  ;;  %3447 = vmatpush.bf16.msra.mxu1 %v7731_v27 }
 0xd85   :  { %3460 = vmatpush.bf16.msra.mxu2 %v7733_v20  ;;  %3473 = vmatpush.bf16.msra.mxu3 %v7736_v49 }
 0xd88   :  { %3435 = vmatpush.bf16.msra.mxu0 %v7739_v39  ;;  %3448 = vmatpush.bf16.msra.mxu1 %v7743_v52 }
 0xd89   :  { %3461 = vmatpush.bf16.msra.mxu2 %v7745_v54  ;;  %3474 = vmatpush.bf16.msra.mxu3 %v7748_v26 }
 0xd8c   :  { %3436 = vmatpush.bf16.msra.mxu0 %v7751_v9  ;;  %3449 = vmatpush.bf16.msra.mxu1 %v7755_v23 }
 0xd8d   :  { %3462 = vmatpush.bf16.msra.mxu2 %v7757_v29  ;;  %3475 = vmatpush.bf16.msra.mxu3 %v7760_v34 }
 0xd90   :  { %3437 = vmatpush.bf16.msra.mxu0 %v7763_v3  ;;  %3450 = vmatpush.bf16.msra.mxu1 %v7767_v33 }
 0xd91   :  { %3463 = vmatpush.bf16.msra.mxu2 %v7769_v50  ;;  %3476 = vmatpush.bf16.msra.mxu3 %v7772_v17 }
 0xd94   :  { %3438 = vmatpush.bf16.msra.mxu0 %v7775_v44  ;;  %3451 = vmatpush.bf16.msra.mxu1 %v7779_v24 }
 0xd95   :  { %3464 = vmatpush.bf16.msra.mxu2 %v7781_v46  ;;  %3477 = vmatpush.bf16.msra.mxu3 %v7784_v36 }
 0xdf3   :  { %v3263_v42 = vpop.f32.mrf.mxu0  ;;  %v3276_v55 = vpop.f32.mrf.mxu1 }
 0xdf4   :  { %v3310_v57 = vrot.slane %v3263_v42, 2  ;;  %v3311_v19 = vrot.slane %v3276_v55, 2 }
 0xdf6   :  { %v3318_v61 = vadd.f32 %v3310_v57, %v7869_v16  ;;  %v3319_v12 = vadd.f32 %v3311_v19, %v7871_v32 }
 0xdf8   :  { %v3322_v59 = vsub.f32 0.0, %v3318_v61  ;;  %v3327_v2 = vsub.f32 0.0, %v3319_v12  ;;  %v3339_v61 = vrot.slane %v7961_v0, 6 }
 0xdfa   :  { %v3323_v60 = vmul.f32 1.442695, %v3322_v59  ;;  %v3328_v37 = vmul.f32 1.442695, %v3327_v2  ;;  %v3289_v53 = vpop.f32.mrf.mxu2  ;;  %v3302_v62 = vpop.f32.mrf.mxu3 }
 0xdfb   :  { %v3313_v28 = vrot.slane %v3302_v62, 2  ;;  %v3265_v45 = vpop.f32.mrf.mxu0  ;;  %v3278_v63 = vpop.f32.mrf.mxu1  ;;  %v3312_v30 = vrot.slane %v3289_v53, 2 }
 0xdfc   :  { %6046 = vpow2.f32 %v3323_v60 }
 0xdfd   :  { %6048 = vpow2.f32 %v3328_v37  ;;  %v3321_v38 = vadd.f32 %v3313_v28, %v7875_v14  ;;  %v3320_v22 = vadd.f32 %v3312_v30, %v7877_v40 }
 0xdff   :  { %v3333_v21 = vsub.f32 0.0, %v3321_v38 }
 0xe01   :  { %v3334_v16 = vmul.f32 1.442695, %v3333_v21 }
 0xe02   :  { %v6047_v1 = vpop.eup %6046  ;;  %v3291_v32 = vpop.f32.mrf.mxu2 }
 0xe03   :  { %v3304_v56 = vpop.f32.mrf.mxu3  ;;  %v6049_v7 = vpop.eup %6048  ;;  %v3325_v51 = vadd.f32 1.0, %v6047_v1  ;;  %6050 = vpow2.f32 %v3334_v16 }
 0xe04   :  { %v3330_v42 = vadd.f32 1.0, %v6049_v7  ;;  %6052 = vtanh.f32 %v3320_v22 }
 0xe05   :  { %6054 = vrcp.f32 %v3325_v51 }
 0xe06   :  { %6056 = vrcp.f32 %v3330_v42 }
 0xe09   :  { %v6051_v55 = vpop.eup %6050 }
 0xe0a   :  { %v6053_v57 = vpop.eup %6052  ;;  %v3336_v59 = vadd.f32 1.0, %v6051_v55 }
 0xe0b   :  { %v6055_v19 = vpop.eup %6054 }
 0xe0c   :  { %v6057_v14 = vpop.eup %6056  ;;  %v3342_v12 = vmul.f32 %v6055_v19, %v6053_v57  ;;  %6058 = vrcp.f32 %v3336_v59 }
 0xe0d   :  { %v3341_v40 = vmul.f32 %v6057_v14, %v3339_v61 }
 0xe0f   :  { %v8001_v2 = vadd.f32 %v3342_v12, %v3341_v40 }
 0xe11   :  { %6060 = vtanh.f32 %v8001_v2 }
 0xe12   :  { %v6059_v60 = vpop.eup %6058 }
 0xe17   :  { %v6061_v37 = vpop.eup %6060 }
 0xe18   :  { %v3345_v53 = vmul.f32 %v6061_v37, %v6059_v60 }
 0xe1a   :  { %v3346_v62 = vpack.c.bf16 %v3345_v53, %v3345_v53 }
 0xe1c   :  { %v3348_v28 = vrot.slane %v3346_v62, 3  ;;  %v3423_v62 = vrot.slane %v8001_v2, 6 }
 0xe1e   :  { %3358 = vmatmul.bf16.vlgmr.msrb.gmra.mxu0 %v3348_v28  ;;  %3371 = vmatmul.bf16.vlgmr.msrb.gmra.mxu1 %v3348_v28 }
 0xe1f   :  { %3384 = vmatmul.bf16.vlgmr.msrb.gmra.mxu2 %v3348_v28  ;;  %3397 = vmatmul.bf16.vlgmr.msrb.gmra.mxu3 %v3348_v28 }
 0xe20   :  { %3527 = vmatpush.bf16.msrb.mxu0 %v7690_v11  ;;  %3540 = vmatpush.bf16.msrb.mxu1 %v7692_v35 }
 0xe21   :  { %3553 = vmatpush.bf16.msrb.mxu2 %v7694_v31  ;;  %3566 = vmatpush.bf16.msrb.mxu3 %v7696_v4 }
 0xe24   :  { %3528 = vmatpush.bf16.msrb.mxu0 %v7699_v18  ;;  %3541 = vmatpush.bf16.msrb.mxu1 %v7703_v48 }
 0xe25   :  { %3554 = vmatpush.bf16.msrb.mxu2 %v7705_v15  ;;  %3567 = vmatpush.bf16.msrb.mxu3 %v7708_v43 }
 0xe28   :  { %3529 = vmatpush.bf16.msrb.mxu0 %v7714_v47  ;;  %3542 = vmatpush.bf16.msrb.mxu1 %v7719_v5 }
 0xe29   :  { %3555 = vmatpush.bf16.msrb.mxu2 %v7721_v10  ;;  %3568 = vmatpush.bf16.msrb.mxu3 %v7724_v41 }
 0xe2c   :  { %3530 = vmatpush.bf16.msrb.mxu0 %v7727_v25  ;;  %3543 = vmatpush.bf16.msrb.mxu1 %v7731_v27 }
 0xe2d   :  { %3556 = vmatpush.bf16.msrb.mxu2 %v7733_v20  ;;  %3569 = vmatpush.bf16.msrb.mxu3 %v7736_v49 }
 0xe30   :  { %3531 = vmatpush.bf16.msrb.mxu0 %v7739_v39  ;;  %3544 = vmatpush.bf16.msrb.mxu1 %v7743_v52 }
 0xe31   :  { %3557 = vmatpush.bf16.msrb.mxu2 %v7745_v54  ;;  %3570 = vmatpush.bf16.msrb.mxu3 %v7748_v26 }
 0xe34   :  { %3532 = vmatpush.bf16.msrb.mxu0 %v7751_v9  ;;  %3545 = vmatpush.bf16.msrb.mxu1 %v7755_v23 }
 0xe35   :  { %3558 = vmatpush.bf16.msrb.mxu2 %v7757_v29  ;;  %3571 = vmatpush.bf16.msrb.mxu3 %v7760_v34 }
 0xe38   :  { %3533 = vmatpush.bf16.msrb.mxu0 %v7763_v3  ;;  %3546 = vmatpush.bf16.msrb.mxu1 %v7767_v33 }
 0xe39   :  { %3559 = vmatpush.bf16.msrb.mxu2 %v7769_v50  ;;  %3572 = vmatpush.bf16.msrb.mxu3 %v7772_v17 }
 0xe3c   :  { %3534 = vmatpush.bf16.msrb.mxu0 %v7775_v44  ;;  %3547 = vmatpush.bf16.msrb.mxu1 %v7779_v24 }
 0xe3d   :  { %3560 = vmatpush.bf16.msrb.mxu2 %v7781_v46  ;;  %3573 = vmatpush.bf16.msrb.mxu3 %v7784_v36 }
 0xe9b   :  { %v3359_v0 = vpop.f32.mrf.mxu0  ;;  %v3372_v45 = vpop.f32.mrf.mxu1 }
 0xe9c   :  { %v3402_v63 = vadd.f32 %v3359_v0, %v7861_v13  ;;  %v3403_v30 = vadd.f32 %v3372_v45, %v7863_v6 }
 0xe9e   :  { %v3406_v38 = vsub.f32 0.0, %v3402_v63  ;;  %v3411_v21 = vsub.f32 0.0, %v3403_v30 }
 0xea0   :  { %v3407_v22 = vmul.f32 1.442695, %v3406_v38  ;;  %v3412_v16 = vmul.f32 1.442695, %v3411_v21 }
 0xea2   :  { %6062 = vpow2.f32 %v3407_v22  ;;  %v3385_v1 = vpop.f32.mrf.mxu2  ;;  %v3398_v32 = vpop.f32.mrf.mxu3 }
 0xea3   :  { %6064 = vpow2.f32 %v3412_v16  ;;  %v3405_v56 = vadd.f32 %v3398_v32, %v7865_v8  ;;  %v3361_v7 = vpop.f32.mrf.mxu0  ;;  %v3374_v51 = vpop.f32.mrf.mxu1  ;;  %v3404_v55 = vadd.f32 %v3385_v1, %v7867_v58 }
 0xea5   :  { %v3417_v42 = vsub.f32 0.0, %v3405_v56 }
 0xea7   :  { %v3418_v57 = vmul.f32 1.442695, %v3417_v42 }
 0xea8   :  { %v6063_v19 = vpop.eup %6062 }
 0xea9   :  { %v6065_v61 = vpop.eup %6064  ;;  %v3409_v14 = vadd.f32 1.0, %v6063_v19  ;;  %6066 = vpow2.f32 %v3418_v57 }
 0xeaa   :  { %v3414_v12 = vadd.f32 1.0, %v6065_v61  ;;  %6068 = vtanh.f32 %v3404_v55  ;;  %v3387_v59 = vpop.f32.mrf.mxu2  ;;  %v3400_v40 = vpop.f32.mrf.mxu3 }
 0xeab   :  { %6070 = vrcp.f32 %v3409_v14 }
 0xeac   :  { %6072 = vrcp.f32 %v3414_v12 }
 0xeaf   :  { %v6067_v60 = vpop.eup %6066 }
 0xeb0   :  { %v6069_v37 = vpop.eup %6068  ;;  %v3420_v45 = vadd.f32 1.0, %v6067_v60 }
 0xeb1   :  { %v6071_v53 = vpop.eup %6070 }
 0xeb2   :  { %v6073_v28 = vpop.eup %6072  ;;  %v3426_v0 = vmul.f32 %v6071_v53, %v6069_v37  ;;  %6074 = vrcp.f32 %v3420_v45 }
 0xeb3   :  { %v3425_v63 = vmul.f32 %v6073_v28, %v3423_v62 }
 0xeb5   :  { %v8041_v30 = vadd.f32 %v3426_v0, %v3425_v63 }
 0xeb7   :  { %6076 = vtanh.f32 %v8041_v30 }
 0xeb8   :  { %v6075_v38 = vpop.eup %6074 }
 0xebd   :  { %v6077_v21 = vpop.eup %6076 }
 0xebe   :  { %v3429_v22 = vmul.f32 %v6077_v21, %v6075_v38 }
 0xec0   :  { %v3430_v16 = vpack.c.bf16 %v3429_v22, %v3429_v22 }
 0xec2   :  { %3439 = vmatmul.bf16.vlgmr.msra.gmra.mxu0 %v3430_v16  ;;  %3452 = vmatmul.bf16.vlgmr.msra.gmra.mxu1 %v3430_v16 }
 0xec3   :  { %3465 = vmatmul.bf16.vlgmr.msra.gmra.mxu2 %v3430_v16  ;;  %3478 = vmatmul.bf16.vlgmr.msra.gmra.mxu3 %v3430_v16 }
 0xec4   :  { %3623 = vmatpush.bf16.msra.mxu0 %v7690_v11  ;;  %3636 = vmatpush.bf16.msra.mxu1 %v7692_v35 }
 0xec5   :  { %3649 = vmatpush.bf16.msra.mxu2 %v7694_v31  ;;  %3662 = vmatpush.bf16.msra.mxu3 %v7696_v4 }
 0xec8   :  { %3624 = vmatpush.bf16.msra.mxu0 %v7699_v18  ;;  %3637 = vmatpush.bf16.msra.mxu1 %v7703_v48 }
 0xec9   :  { %3650 = vmatpush.bf16.msra.mxu2 %v7705_v15  ;;  %3663 = vmatpush.bf16.msra.mxu3 %v7708_v43 }
 0xecc   :  { %3625 = vmatpush.bf16.msra.mxu0 %v7714_v47  ;;  %3638 = vmatpush.bf16.msra.mxu1 %v7719_v5 }
 0xecd   :  { %3651 = vmatpush.bf16.msra.mxu2 %v7721_v10  ;;  %3664 = vmatpush.bf16.msra.mxu3 %v7724_v41 }
 0xed0   :  { %3626 = vmatpush.bf16.msra.mxu0 %v7727_v25  ;;  %3639 = vmatpush.bf16.msra.mxu1 %v7731_v27 }
 0xed1   :  { %3652 = vmatpush.bf16.msra.mxu2 %v7733_v20  ;;  %3665 = vmatpush.bf16.msra.mxu3 %v7736_v49 }
 0xed4   :  { %3627 = vmatpush.bf16.msra.mxu0 %v7739_v39  ;;  %3640 = vmatpush.bf16.msra.mxu1 %v7743_v52 }
 0xed5   :  { %3653 = vmatpush.bf16.msra.mxu2 %v7745_v54  ;;  %3666 = vmatpush.bf16.msra.mxu3 %v7748_v26 }
 0xed8   :  { %3628 = vmatpush.bf16.msra.mxu0 %v7751_v9  ;;  %3641 = vmatpush.bf16.msra.mxu1 %v7755_v23 }
 0xed9   :  { %3654 = vmatpush.bf16.msra.mxu2 %v7757_v29  ;;  %3667 = vmatpush.bf16.msra.mxu3 %v7760_v34 }
 0xedc   :  { %3629 = vmatpush.bf16.msra.mxu0 %v7763_v3  ;;  %3642 = vmatpush.bf16.msra.mxu1 %v7767_v33 }
 0xedd   :  { %3655 = vmatpush.bf16.msra.mxu2 %v7769_v50  ;;  %3668 = vmatpush.bf16.msra.mxu3 %v7772_v17 }
 0xee0   :  { %3630 = vmatpush.bf16.msra.mxu0 %v7775_v44  ;;  %3643 = vmatpush.bf16.msra.mxu1 %v7779_v24  ;;  %v3516_v24 = vrot.slane %v8041_v30, 6 }
 0xee1   :  { %3656 = vmatpush.bf16.msra.mxu2 %v7781_v46  ;;  %3669 = vmatpush.bf16.msra.mxu3 %v7784_v36 }
 0xf3f   :  { %v3440_v11 = vpop.f32.mrf.mxu0  ;;  %v3453_v35 = vpop.f32.mrf.mxu1 }
 0xf40   :  { %v3487_v31 = vrot.slane %v3440_v11, 6  ;;  %v3488_v4 = vrot.slane %v3453_v35, 6 }
 0xf42   :  { %v3495_v18 = vadd.f32 %v3487_v31, %v7861_v13  ;;  %v3496_v48 = vadd.f32 %v3488_v4, %v7863_v6 }
 0xf44   :  { %v3499_v15 = vsub.f32 0.0, %v3495_v18  ;;  %v3504_v43 = vsub.f32 0.0, %v3496_v48 }
 0xf46   :  { %v3500_v47 = vmul.f32 1.442695, %v3499_v15  ;;  %v3505_v5 = vmul.f32 1.442695, %v3504_v43  ;;  %v3466_v10 = vpop.f32.mrf.mxu2  ;;  %v3479_v41 = vpop.f32.mrf.mxu3 }
 0xf47   :  { %v3490_v25 = vrot.slane %v3479_v41, 6  ;;  %v3442_v27 = vpop.f32.mrf.mxu0  ;;  %v3455_v20 = vpop.f32.mrf.mxu1  ;;  %v3489_v49 = vrot.slane %v3466_v10, 6 }
 0xf48   :  { %6078 = vpow2.f32 %v3500_v47 }
 0xf49   :  { %6080 = vpow2.f32 %v3505_v5  ;;  %v3498_v39 = vadd.f32 %v3490_v25, %v7865_v8  ;;  %v3497_v54 = vadd.f32 %v3489_v49, %v7867_v58 }
 0xf4b   :  { %v3510_v52 = vsub.f32 0.0, %v3498_v39 }
 0xf4d   :  { %v3511_v26 = vmul.f32 1.442695, %v3510_v52 }
 0xf4e   :  { %v6079_v9 = vpop.eup %6078  ;;  %v3468_v23 = vpop.f32.mrf.mxu2 }
 0xf4f   :  { %v3481_v29 = vpop.f32.mrf.mxu3  ;;  %v6081_v34 = vpop.eup %6080  ;;  %v3502_v3 = vadd.f32 1.0, %v6079_v9  ;;  %6082 = vpow2.f32 %v3511_v26 }
 0xf50   :  { %v3507_v33 = vadd.f32 1.0, %v6081_v34  ;;  %6084 = vtanh.f32 %v3497_v54 }
 0xf51   :  { %6086 = vrcp.f32 %v3502_v3 }
 0xf52   :  { %6088 = vrcp.f32 %v3507_v33 }
 0xf55   :  { %v6083_v50 = vpop.eup %6082 }
 0xf56   :  { %v6085_v17 = vpop.eup %6084  ;;  %v3513_v2 = vadd.f32 1.0, %v6083_v50 }
 0xf57   :  { %v6087_v44 = vpop.eup %6086 }
 0xf58   :  { %v6089_v46 = vpop.eup %6088  ;;  %v3519_v36 = vmul.f32 %v6087_v44, %v6085_v17  ;;  %6090 = vrcp.f32 %v3513_v2 }
 0xf59   :  { %v3518_v1 = vmul.f32 %v6089_v46, %v3516_v24 }
 0xf5b   :  { %v3520_v32 = vadd.f32 %v3519_v36, %v3518_v1 }
 0xf5d   :  { %6092 = vtanh.f32 %v3520_v32  ;;  %v3612_v5 = vrot.slane %v3520_v32, 6 }
 0xf5e   :  { %v6091_v56 = vpop.eup %6090 }
 0xf63   :  { %v6093_v7 = vpop.eup %6092 }
 0xf64   :  { %v3522_v51 = vmul.f32 %v6093_v7, %v6091_v56 }
 0xf66   :  { %v3523_v42 = vpack.c.bf16 %v3522_v51, %v3522_v51 }
 0xf68   :  { %v3525_v55 = vrot.slane %v3523_v42, 1 }
 0xf6a   :  { %3535 = vmatmul.bf16.vlgmr.msrb.gmra.mxu0 %v3525_v55  ;;  %3548 = vmatmul.bf16.vlgmr.msrb.gmra.mxu1 %v3525_v55 }
 0xf6b   :  { %3561 = vmatmul.bf16.vlgmr.msrb.gmra.mxu2 %v3525_v55  ;;  %3574 = vmatmul.bf16.vlgmr.msrb.gmra.mxu3 %v3525_v55 }
 0xfe7   :  { %v3536_v57 = vpop.f32.mrf.mxu0  ;;  %v3549_v19 = vpop.f32.mrf.mxu1 }
 0xfe8   :  { %v3583_v61 = vrot.slane %v3536_v57, 4  ;;  %v3584_v14 = vrot.slane %v3549_v19, 4 }
 0xfea   :  { %v3591_v12 = vadd.f32 %v3583_v61, %v7861_v13  ;;  %v3592_v59 = vadd.f32 %v3584_v14, %v7863_v6 }
 0xfec   :  { %v3595_v40 = vsub.f32 0.0, %v3591_v12  ;;  %v3600_v60 = vsub.f32 0.0, %v3592_v59 }
 0xfee   :  { %v3596_v37 = vmul.f32 1.442695, %v3595_v40  ;;  %v3601_v53 = vmul.f32 1.442695, %v3600_v60  ;;  %v3562_v62 = vpop.f32.mrf.mxu2  ;;  %v3575_v28 = vpop.f32.mrf.mxu3 }
 0xfef   :  { %v3586_v0 = vrot.slane %v3575_v28, 4  ;;  %v3538_v45 = vpop.f32.mrf.mxu0  ;;  %v3551_v63 = vpop.f32.mrf.mxu1  ;;  %v3585_v30 = vrot.slane %v3562_v62, 4 }
 0xff0   :  { %6094 = vpow2.f32 %v3596_v37 }
 0xff1   :  { %6096 = vpow2.f32 %v3601_v53  ;;  %v3594_v38 = vadd.f32 %v3586_v0, %v7865_v8  ;;  %v3593_v22 = vadd.f32 %v3585_v30, %v7867_v58 }
 0xff3   :  { %v3606_v21 = vsub.f32 0.0, %v3594_v38 }
 0xff5   :  { %v3607_v16 = vmul.f32 1.442695, %v3606_v21 }
 0xff6   :  { %v6095_v11 = vpop.eup %6094  ;;  %v3564_v35 = vpop.f32.mrf.mxu2 }
 0xff7   :  { %v3577_v31 = vpop.f32.mrf.mxu3  ;;  %v6097_v4 = vpop.eup %6096  ;;  %v3598_v18 = vadd.f32 1.0, %v6095_v11  ;;  %6098 = vpow2.f32 %v3607_v16 }
 0xff8   :  { %v3603_v48 = vadd.f32 1.0, %v6097_v4  ;;  %6100 = vtanh.f32 %v3593_v22 }
 0xff9   :  { %6102 = vrcp.f32 %v3598_v18 }
 0xffa   :  { %6104 = vrcp.f32 %v3603_v48 }
 0xffd   :  { %v6099_v15 = vpop.eup %6098 }
 0xffe   :  { %v6101_v43 = vpop.eup %6100  ;;  %v3609_v25 = vadd.f32 1.0, %v6099_v15 }
 0xfff   :  { %v6103_v47 = vpop.eup %6102 }
0x1000   :  { %v6105_v10 = vpop.eup %6104  ;;  %v3615_v41 = vmul.f32 %v6103_v47, %v6101_v43  ;;  %6106 = vrcp.f32 %v3609_v25 }
0x1001   :  { %v3614_v27 = vmul.f32 %v6105_v10, %v3612_v5 }
0x1003   :  { %v3616_v20 = vadd.f32 %v3615_v41, %v3614_v27 }
0x1005   :  { %6108 = vtanh.f32 %v3616_v20  ;;  %v3708_v60 = vrot.slane %v3616_v20, 6 }
0x1006   :  { %v6107_v49 = vpop.eup %6106 }
0x100b   :  { %v6109_v39 = vpop.eup %6108 }
0x100c   :  { %v3618_v52 = vmul.f32 %v6109_v39, %v6107_v49 }
0x100e   :  { %v3619_v54 = vpack.c.bf16 %v3618_v52, %v3618_v52 }
0x1010   :  { %v3621_v26 = vrot.slane %v3619_v54, 2 }
0x1012   :  { %3631 = vmatmul.bf16.vlgmr.msra.gmra.mxu0 %v3621_v26  ;;  %3644 = vmatmul.bf16.vlgmr.msra.gmra.mxu1 %v3621_v26 }
0x1013   :  { %3657 = vmatmul.bf16.vlgmr.msra.gmra.mxu2 %v3621_v26  ;;  %3670 = vmatmul.bf16.vlgmr.msra.gmra.mxu3 %v3621_v26 }
0x108f   :  { %v3632_v9 = vpop.f32.mrf.mxu0  ;;  %v3645_v23 = vpop.f32.mrf.mxu1 }
0x1090   :  { %v3679_v29 = vrot.slane %v3632_v9, 2  ;;  %v3680_v34 = vrot.slane %v3645_v23, 2 }
0x1092   :  { %v3687_v3 = vadd.f32 %v3679_v29, %v7861_v13  ;;  %v3688_v33 = vadd.f32 %v3680_v34, %v7863_v6 }
0x1094   :  { %v3691_v50 = vsub.f32 0.0, %v3687_v3  ;;  %v3696_v17 = vsub.f32 0.0, %v3688_v33 }
0x1096   :  { %v3692_v44 = vmul.f32 1.442695, %v3691_v50  ;;  %v3697_v24 = vmul.f32 1.442695, %v3696_v17  ;;  %v3658_v46 = vpop.f32.mrf.mxu2  ;;  %v3671_v36 = vpop.f32.mrf.mxu3 }
0x1097   :  { %v3682_v2 = vrot.slane %v3671_v36, 2  ;;  %v3634_v1 = vpop.f32.mrf.mxu0  ;;  %v3647_v32 = vpop.f32.mrf.mxu1  ;;  %v3681_v56 = vrot.slane %v3658_v46, 2 }
0x1098   :  { %6110 = vpow2.f32 %v3692_v44 }
0x1099   :  { %6112 = vpow2.f32 %v3697_v24  ;;  %v3690_v7 = vadd.f32 %v3682_v2, %v7865_v8  ;;  %v3689_v42 = vadd.f32 %v3681_v56, %v7867_v58 }
0x109b   :  { %v3702_v51 = vsub.f32 0.0, %v3690_v7 }
0x109d   :  { %v3703_v13 = vmul.f32 1.442695, %v3702_v51 }
0x109e   :  { %v6111_v55 = vpop.eup %6110  ;;  %v3660_v6 = vpop.f32.mrf.mxu2 }
0x109f   :  { %v3673_v57 = vpop.f32.mrf.mxu3  ;;  %v6113_v19 = vpop.eup %6112  ;;  %v3694_v61 = vadd.f32 1.0, %v6111_v55  ;;  %6114 = vpow2.f32 %v3703_v13 }
0x10a0   :  { %v3699_v14 = vadd.f32 1.0, %v6113_v19  ;;  %6116 = vtanh.f32 %v3689_v42 }
0x10a1   :  { %6118 = vrcp.f32 %v3694_v61 }
0x10a2   :  { %6120 = vrcp.f32 %v3699_v14 }
0x10a5   :  { %v6115_v12 = vpop.eup %6114 }
0x10a6   :  { %v6117_v59 = vpop.eup %6116  ;;  %v3705_v53 = vadd.f32 1.0, %v6115_v12 }
0x10a7   :  { %v6119_v40 = vpop.eup %6118 }
0x10a8   :  { %v6121_v37 = vpop.eup %6120  ;;  %v3711_v8 = vmul.f32 %v6119_v40, %v6117_v59  ;;  %6122 = vrcp.f32 %v3705_v53 }
0x10a9   :  { %v3710_v62 = vmul.f32 %v6121_v37, %v3708_v60 }
0x10ab   :  { %v3712_v58 = vadd.f32 %v3711_v8, %v3710_v62 }
0x10ad   :  { %6124 = vtanh.f32 %v3712_v58 }
0x10ae   :  { %v6123_v28 = vpop.eup %6122 }
0x10b3   :  { %v6125_v0 = vpop.eup %6124 }
0x10b4   :  { %v8089_v45 = vmul.f32 %v6125_v0, %v6123_v28 }
0x10b5   :  { %6231 = dma.done.wait [#allocation7 + $0x4], 8192 }
0x10b6   :  { %6232 = vsyncadd [#allocation7 + $0x4], 4294959104  ;;  %v5474_v63 = vld [vmem:[#allocation6 + $0x1c0] sm:$0xf]  ;;  %v5482_v38 = vld [vmem:[#allocation6 + $0x1c8] sm:$0xf] }
0x10b7   :  { %v5733_v30 = vld [vmem:[#allocation6 + $0x1dc] sm:$0xf0]  ;;  %v5734_v22 = vld [vmem:[#allocation6 + $0x1e4] sm:$0xf0]  ;;  %v5730_v16 = vld [vmem:[#allocation6 + $0x1cc] sm:$0xf] }
0x10b8   :  { %v5475_v21 = vor.u32 %v5733_v30, %v5474_v63  ;;  %v5484_v11 = vld [vmem:[#allocation6 + $0x1e8] sm:$0xf0]  ;;  %v5483_v35 = vor.u32 %v5734_v22, %v5482_v38  ;;  %v5729_v4 = vld [vmem:[#allocation6 + $0x1c4] sm:$0xf]  ;;  %v5442_v48 = vld [vmem:[#allocation6 + $0x180] sm:$0xf] }
0x10b9   :  { %v5487_v31 = vor.u32 %v5730_v16, %v5484_v11  ;;  %v5476_v18 = vld [vmem:[#allocation6 + $0x1e0] sm:$0xf0]  ;;  %v5725_v43 = vld [vmem:[#allocation6 + $0x19c] sm:$0xf0]  ;;  %v5450_v47 = vld [vmem:[#allocation6 + $0x188] sm:$0xf] }
0x10ba   :  { %4124 = vmatpush.bf16.msrb.mxu0 %v5475_v21  ;;  %v5479_v15 = vor.u32 %v5729_v4, %v5476_v18  ;;  %v5726_v5 = vld [vmem:[#allocation6 + $0x1a4] sm:$0xf0]  ;;  %4150 = vmatpush.bf16.msrb.mxu2 %v5483_v35  ;;  %v5443_v10 = vor.u32 %v5725_v43, %v5442_v48  ;;  %v5722_v25 = vld [vmem:[#allocation6 + $0x18c] sm:$0xf]  ;;  %v5721_v20 = vld [vmem:[#allocation6 + $0x184] sm:$0xf] }
0x10bb   :  { %4163 = vmatpush.bf16.msrb.mxu3 %v5487_v31  ;;  %v5451_v41 = vor.u32 %v5726_v5, %v5450_v47  ;;  %v5452_v27 = vld [vmem:[#allocation6 + $0x1a8] sm:$0xf0]  ;;  %v5444_v39 = vld [vmem:[#allocation6 + $0x1a0] sm:$0xf0]  ;;  %v5410_v52 = vld [vmem:[#allocation6 + $0x140] sm:$0xf] }
0x10bc   :  { %4137 = vmatpush.bf16.msrb.mxu1 %v5479_v15  ;;  %v5455_v49 = vor.u32 %v5722_v25, %v5452_v27  ;;  %v5717_v54 = vld [vmem:[#allocation6 + $0x15c] sm:$0xf0]  ;;  %v5447_v26 = vor.u32 %v5721_v20, %v5444_v39  ;;  %v5418_v9 = vld [vmem:[#allocation6 + $0x148] sm:$0xf]  ;;  %v5714_v29 = vld [vmem:[#allocation6 + $0x14c] sm:$0xf] }
0x10bd   :  { %v5718_v23 = vld [vmem:[#allocation6 + $0x164] sm:$0xf0]  ;;  %v5411_v34 = vor.u32 %v5717_v54, %v5410_v52  ;;  %v5420_v3 = vld [vmem:[#allocation6 + $0x168] sm:$0xf0]  ;;  %v5713_v33 = vld [vmem:[#allocation6 + $0x144] sm:$0xf] }
0x10be   :  { %4125 = vmatpush.bf16.msrb.mxu0 %v5443_v10  ;;  %v5412_v50 = vld [vmem:[#allocation6 + $0x160] sm:$0xf0]  ;;  %4151 = vmatpush.bf16.msrb.mxu2 %v5451_v41  ;;  %v5419_v17 = vor.u32 %v5718_v23, %v5418_v9  ;;  %v5423_v44 = vor.u32 %v5714_v29, %v5420_v3  ;;  %v5378_v24 = vld [vmem:[#allocation6 + $0x100] sm:$0xf]  ;;  %v5386_v36 = vld [vmem:[#allocation6 + $0x108] sm:$0xf] }
0x10bf   :  { %4164 = vmatpush.bf16.msrb.mxu3 %v5455_v49  ;;  %v5709_v46 = vld [vmem:[#allocation6 + $0x11c] sm:$0xf0]  ;;  %v5415_v2 = vor.u32 %v5713_v33, %v5412_v50  ;;  %v5710_v1 = vld [vmem:[#allocation6 + $0x124] sm:$0xf0]  ;;  %v5706_v32 = vld [vmem:[#allocation6 + $0x10c] sm:$0xf] }
0x10c0   :  { %4138 = vmatpush.bf16.msrb.mxu1 %v5447_v26  ;;  %v5388_v56 = vld [vmem:[#allocation6 + $0x128] sm:$0xf0]  ;;  %v5705_v7 = vld [vmem:[#allocation6 + $0x104] sm:$0xf]  ;;  %v5379_v42 = vor.u32 %v5709_v46, %v5378_v24  ;;  %v5387_v13 = vor.u32 %v5710_v1, %v5386_v36  ;;  %v5346_v6 = vld [vmem:[#allocation6 + $0xc0] sm:$0xf]  ;;  %v3718_v46 = vpack.c.bf16 %v8089_v45, %v8089_v45 }
0x10c1   :  { %v5380_v51 = vld [vmem:[#allocation6 + $0x120] sm:$0xf0]  ;;  %v5391_v55 = vor.u32 %v5706_v32, %v5388_v56  ;;  %v5701_v57 = vld [vmem:[#allocation6 + $0xdc] sm:$0xf0]  ;;  %v5354_v19 = vld [vmem:[#allocation6 + $0xc8] sm:$0xf] }
0x10c2   :  { %4126 = vmatpush.bf16.msrb.mxu0 %v5411_v34  ;;  %4152 = vmatpush.bf16.msrb.mxu2 %v5419_v17  ;;  %v5383_v61 = vor.u32 %v5705_v7, %v5380_v51  ;;  %v5702_v14 = vld [vmem:[#allocation6 + $0xe4] sm:$0xf0]  ;;  %v5698_v12 = vld [vmem:[#allocation6 + $0xcc] sm:$0xf]  ;;  %v5697_v40 = vld [vmem:[#allocation6 + $0xc4] sm:$0xf]  ;;  %v5347_v37 = vor.u32 %v5701_v57, %v5346_v6 }
0x10c3   :  { %4165 = vmatpush.bf16.msrb.mxu3 %v5423_v44  ;;  %v5356_v59 = vld [vmem:[#allocation6 + $0xe8] sm:$0xf0]  ;;  %v5348_v60 = vld [vmem:[#allocation6 + $0xe0] sm:$0xf0]  ;;  %v5355_v8 = vor.u32 %v5702_v14, %v5354_v19  ;;  %v5314_v62 = vld [vmem:[#allocation6 + $0x80] sm:$0xf] }
0x10c4   :  { %4139 = vmatpush.bf16.msrb.mxu1 %v5415_v2  ;;  %v5359_v53 = vor.u32 %v5698_v12, %v5356_v59  ;;  %v5693_v58 = vld [vmem:[#allocation6 + $0x9c] sm:$0xf0]  ;;  %v5322_v28 = vld [vmem:[#allocation6 + $0x88] sm:$0xf]  ;;  %v5351_v0 = vor.u32 %v5697_v40, %v5348_v60  ;;  %v5690_v30 = vld [vmem:[#allocation6 + $0x8c] sm:$0xf] }
0x10c5   :  { %v5694_v63 = vld [vmem:[#allocation6 + $0xa4] sm:$0xf0]  ;;  %v5324_v38 = vld [vmem:[#allocation6 + $0xa8] sm:$0xf0]  ;;  %v5689_v21 = vld [vmem:[#allocation6 + $0x84] sm:$0xf]  ;;  %v5315_v16 = vor.u32 %v5693_v58, %v5314_v62 }
0x10c6   :  { %4127 = vmatpush.bf16.msrb.mxu0 %v5379_v42  ;;  %4153 = vmatpush.bf16.msrb.mxu2 %v5387_v13  ;;  %v5316_v22 = vld [vmem:[#allocation6 + $0xa0] sm:$0xf0]  ;;  %v5323_v11 = vor.u32 %v5694_v63, %v5322_v28  ;;  %v5327_v35 = vor.u32 %v5690_v30, %v5324_v38  ;;  %v5282_v31 = vld [vmem:[#allocation6 + $0x40] sm:$0xf]  ;;  %v5290_v18 = vld [vmem:[#allocation6 + $0x48] sm:$0xf] }
0x10c7   :  { %4166 = vmatpush.bf16.msrb.mxu3 %v5391_v55  ;;  %v5685_v4 = vld [vmem:[#allocation6 + $0x5c] sm:$0xf0]  ;;  %v5319_v48 = vor.u32 %v5689_v21, %v5316_v22  ;;  %v5686_v15 = vld [vmem:[#allocation6 + $0x64] sm:$0xf0]  ;;  %v5682_v43 = vld [vmem:[#allocation6 + $0x4c] sm:$0xf] }
0x10c8   :  { %4140 = vmatpush.bf16.msrb.mxu1 %v5383_v61  ;;  %v5292_v47 = vld [vmem:[#allocation6 + $0x68] sm:$0xf0]  ;;  %v5681_v5 = vld [vmem:[#allocation6 + $0x44] sm:$0xf]  ;;  %v5283_v41 = vor.u32 %v5685_v4, %v5282_v31  ;;  %v5250_v25 = vld [vmem:[#allocation6] sm:$0xf]  ;;  %v5291_v20 = vor.u32 %v5686_v15, %v5290_v18 }
0x10c9   :  { %v5284_v10 = vld [vmem:[#allocation6 + $0x60] sm:$0xf0]  ;;  %v5677_v27 = vld [vmem:[#allocation6 + $0x1c] sm:$0xf0]  ;;  %v5295_v49 = vor.u32 %v5682_v43, %v5292_v47  ;;  %v5258_v39 = vld [vmem:[#allocation6 + $0x8] sm:$0xf] }
0x10ca   :  { %4128 = vmatpush.bf16.msrb.mxu0 %v5347_v37  ;;  %4154 = vmatpush.bf16.msrb.mxu2 %v5355_v8  ;;  %v5678_v52 = vld [vmem:[#allocation6 + $0x24] sm:$0xf0]  ;;  %v5674_v54 = vld [vmem:[#allocation6 + $0xc] sm:$0xf]  ;;  %v5287_v26 = vor.u32 %v5681_v5, %v5284_v10  ;;  %v5490_v23 = vld [vmem:[#allocation6 + $0x1d0] sm:$0xf]  ;;  %v5251_v50 = vor.u32 %v5677_v27, %v5250_v25 }
0x10cb   :  { %4167 = vmatpush.bf16.msrb.mxu3 %v5359_v53  ;;  %v5260_v9 = vld [vmem:[#allocation6 + $0x28] sm:$0xf0]  ;;  %v5735_v29 = vld [vmem:[#allocation6 + $0x1ec] sm:$0xf0]  ;;  %v5498_v34 = vld [vmem:[#allocation6 + $0x1d8] sm:$0xf]  ;;  %v5259_v36 = vor.u32 %v5678_v52, %v5258_v39 }
0x10cc   :  { %4141 = vmatpush.bf16.msrb.mxu1 %v5351_v0  ;;  %v5736_v3 = vld [vmem:[#allocation6 + $0x1f4] sm:$0xf0]  ;;  %v5732_v33 = vld [vmem:[#allocation6 + $0x1dc] sm:$0xf]  ;;  %v5673_v44 = vld [vmem:[#allocation6 + $0x4] sm:$0xf]  ;;  %v5263_v2 = vor.u32 %v5674_v54, %v5260_v9  ;;  %v5491_v56 = vor.u32 %v5735_v29, %v5490_v23 }
0x10cd   :  { %v5500_v17 = vld [vmem:[#allocation6 + $0x1f8] sm:$0xf0]  ;;  %v5252_v24 = vld [vmem:[#allocation6 + $0x20] sm:$0xf0]  ;;  %v5731_v1 = vld [vmem:[#allocation6 + $0x1d4] sm:$0xf]  ;;  %v5499_v7 = vor.u32 %v5736_v3, %v5498_v34 }
0x10ce   :  { %4129 = vmatpush.bf16.msrb.mxu0 %v5315_v16  ;;  %4155 = vmatpush.bf16.msrb.mxu2 %v5323_v11  ;;  %v5492_v32 = vld [vmem:[#allocation6 + $0x1f0] sm:$0xf0]  ;;  %v5458_v51 = vld [vmem:[#allocation6 + $0x190] sm:$0xf]  ;;  %v5503_v42 = vor.u32 %v5732_v33, %v5500_v17  ;;  %v5255_v13 = vor.u32 %v5673_v44, %v5252_v24  ;;  %v5466_v6 = vld [vmem:[#allocation6 + $0x198] sm:$0xf] }
0x10cf   :  { %4168 = vmatpush.bf16.msrb.mxu3 %v5327_v35  ;;  %v5727_v55 = vld [vmem:[#allocation6 + $0x1ac] sm:$0xf0]  ;;  %v5728_v57 = vld [vmem:[#allocation6 + $0x1b4] sm:$0xf0]  ;;  %v5495_v19 = vor.u32 %v5731_v1, %v5492_v32  ;;  %v5724_v61 = vld [vmem:[#allocation6 + $0x19c] sm:$0xf] }
0x10d0   :  { %4142 = vmatpush.bf16.msrb.mxu1 %v5319_v48  ;;  %v5468_v14 = vld [vmem:[#allocation6 + $0x1b8] sm:$0xf0]  ;;  %v8093_v45 = vrot.slane %v3718_v46, 3  ;;  %v5723_v12 = vld [vmem:[#allocation6 + $0x194] sm:$0xf]  ;;  %v5459_v40 = vor.u32 %v5727_v55, %v5458_v51  ;;  %v5467_v60 = vor.u32 %v5728_v57, %v5466_v6  ;;  %s6239_s21 = smov [#allocation8]  }
0x10d1   :  { %v5460_v59 = vld [vmem:[#allocation6 + $0x1b0] sm:$0xf0]  ;;  %v5426_v37 = vld [vmem:[#allocation6 + $0x150] sm:$0xf]  ;;  %v5471_v8 = vor.u32 %v5724_v61, %v5468_v14  ;;  %v5434_v62 = vld [vmem:[#allocation6 + $0x158] sm:$0xf] }
0x10d2   :  { %4130 = vmatpush.bf16.msrb.mxu0 %v5283_v41  ;;  %4156 = vmatpush.bf16.msrb.mxu2 %v5291_v20  ;;  %v5719_v53 = vld [vmem:[#allocation6 + $0x16c] sm:$0xf0]  ;;  %v5720_v58 = vld [vmem:[#allocation6 + $0x174] sm:$0xf0]  ;;  %v5463_v28 = vor.u32 %v5723_v12, %v5460_v59  ;;  %v5716_v0 = vld [vmem:[#allocation6 + $0x15c] sm:$0xf] }
0x10d3   :  { %4169 = vmatpush.bf16.msrb.mxu3 %v5295_v49  ;;  %v5436_v63 = vld [vmem:[#allocation6 + $0x178] sm:$0xf0]  ;;  %v5715_v30 = vld [vmem:[#allocation6 + $0x154] sm:$0xf]  ;;  %v5427_v21 = vor.u32 %v5719_v53, %v5426_v37  ;;  %v5435_v22 = vor.u32 %v5720_v58, %v5434_v62  ;;  %v5394_v16 = vld [vmem:[#allocation6 + $0x110] sm:$0xf] }
0x10d4   :  { %4143 = vmatpush.bf16.msrb.mxu1 %v5287_v26  ;;  %v5428_v38 = vld [vmem:[#allocation6 + $0x170] sm:$0xf0]  ;;  %v5439_v11 = vor.u32 %v5716_v0, %v5436_v63  ;;  %v5711_v35 = vld [vmem:[#allocation6 + $0x12c] sm:$0xf0]  ;;  %v5402_v31 = vld [vmem:[#allocation6 + $0x118] sm:$0xf] }
0x10d5   :  { %v5712_v4 = vld [vmem:[#allocation6 + $0x134] sm:$0xf0]  ;;  %v5431_v18 = vor.u32 %v5715_v30, %v5428_v38  ;;  %v5708_v48 = vld [vmem:[#allocation6 + $0x11c] sm:$0xf]  ;;  %v5707_v43 = vld [vmem:[#allocation6 + $0x114] sm:$0xf]  ;;  %v5395_v5 = vor.u32 %v5711_v35, %v5394_v16 }
0x10d6   :  { %4131 = vmatpush.bf16.msrb.mxu0 %v5251_v50  ;;  %4157 = vmatpush.bf16.msrb.mxu2 %v5259_v36  ;;  %v5404_v15 = vld [vmem:[#allocation6 + $0x138] sm:$0xf0]  ;;  %v5396_v47 = vld [vmem:[#allocation6 + $0x130] sm:$0xf0]  ;;  %v5403_v10 = vor.u32 %v5712_v4, %v5402_v31  ;;  %v5362_v41 = vld [vmem:[#allocation6 + $0xd0] sm:$0xf] }
0x10d7   :  { %4170 = vmatpush.bf16.msrb.mxu3 %v5263_v2  ;;  %v5407_v25 = vor.u32 %v5708_v48, %v5404_v15  ;;  %v5703_v27 = vld [vmem:[#allocation6 + $0xec] sm:$0xf0]  ;;  %v5370_v20 = vld [vmem:[#allocation6 + $0xd8] sm:$0xf]  ;;  %v5399_v39 = vor.u32 %v5707_v43, %v5396_v47  ;;  %v5700_v52 = vld [vmem:[#allocation6 + $0xdc] sm:$0xf] }
0x10d8   :  { %4144 = vmatpush.bf16.msrb.mxu1 %v5255_v13  ;;  %v5704_v49 = vld [vmem:[#allocation6 + $0xf4] sm:$0xf0]  ;;  %v5372_v54 = vld [vmem:[#allocation6 + $0xf8] sm:$0xf0]  ;;  %v5699_v26 = vld [vmem:[#allocation6 + $0xd4] sm:$0xf]  ;;  %v5363_v23 = vor.u32 %v5703_v27, %v5362_v41 }
0x10d9   :  { %4158 = vmatmul.bf16.vlgmr.msrb.gmra.mxu2 %v8093_v45  ;;  %4132 = vmatmul.bf16.vlgmr.msrb.gmra.mxu0 %v8093_v45  ;;  %v5364_v9 = vld [vmem:[#allocation6 + $0xf0] sm:$0xf0]  ;;  %v5371_v29 = vor.u32 %v5704_v49, %v5370_v20  ;;  %v5330_v34 = vld [vmem:[#allocation6 + $0x90] sm:$0xf]  ;;  %v5375_v3 = vor.u32 %v5700_v52, %v5372_v54  ;;  %v5338_v50 = vld [vmem:[#allocation6 + $0x98] sm:$0xf] }
0x10da   :  { %4176 = vmatpush.bf16.msra.mxu0 %v5491_v56  ;;  %4202 = vmatpush.bf16.msra.mxu2 %v5499_v7  ;;  %v5695_v33 = vld [vmem:[#allocation6 + $0xac] sm:$0xf0]  ;;  %v5696_v17 = vld [vmem:[#allocation6 + $0xb4] sm:$0xf0]  ;;  %v5367_v44 = vor.u32 %v5699_v26, %v5364_v9  ;;  %v5692_v24 = vld [vmem:[#allocation6 + $0x9c] sm:$0xf] }
0x10db   :  { %4215 = vmatpush.bf16.msra.mxu3 %v5503_v42  ;;  %4145 = vmatmul.bf16.vlgmr.msrb.gmra.mxu1 %v8093_v45  ;;  %v5340_v46 = vld [vmem:[#allocation6 + $0xb8] sm:$0xf0]  ;;  %v5691_v36 = vld [vmem:[#allocation6 + $0x94] sm:$0xf]  ;;  %v5331_v1 = vor.u32 %v5695_v33, %v5330_v34  ;;  %v5339_v32 = vor.u32 %v5696_v17, %v5338_v50  ;;  %v5298_v56 = vld [vmem:[#allocation6 + $0x50] sm:$0xf] }
0x10dc   :  { %4189 = vmatpush.bf16.msra.mxu1 %v5495_v19  ;;  %4171 = vmatmul.bf16.vlgmr.msrb.gmra.mxu3 %v8093_v45  ;;  %v5332_v2 = vld [vmem:[#allocation6 + $0xb0] sm:$0xf0]  ;;  %v5343_v7 = vor.u32 %v5692_v24, %v5340_v46  ;;  %v5687_v51 = vld [vmem:[#allocation6 + $0x6c] sm:$0xf0]  ;;  %v5306_v42 = vld [vmem:[#allocation6 + $0x58] sm:$0xf] }
0x10dd   :  { %v5688_v13 = vld [vmem:[#allocation6 + $0x74] sm:$0xf0]  ;;  %v5335_v55 = vor.u32 %v5691_v36, %v5332_v2  ;;  %v5684_v6 = vld [vmem:[#allocation6 + $0x5c] sm:$0xf]  ;;  %v5683_v19 = vld [vmem:[#allocation6 + $0x54] sm:$0xf]  ;;  %v5299_v14 = vor.u32 %v5687_v51, %v5298_v56 }
0x10de   :  { %4177 = vmatpush.bf16.msra.mxu0 %v5459_v40  ;;  %4203 = vmatpush.bf16.msra.mxu2 %v5467_v60  ;;  %v5308_v57 = vld [vmem:[#allocation6 + $0x78] sm:$0xf0]  ;;  %v5300_v61 = vld [vmem:[#allocation6 + $0x70] sm:$0xf0]  ;;  %v5307_v12 = vor.u32 %v5688_v13, %v5306_v42  ;;  %v5266_v59 = vld [vmem:[#allocation6 + $0x10] sm:$0xf] }
0x10df   :  { %4216 = vmatpush.bf16.msra.mxu3 %v5471_v8  ;;  %v5311_v40 = vor.u32 %v5684_v6, %v5308_v57  ;;  %v5679_v60 = vld [vmem:[#allocation6 + $0x2c] sm:$0xf0]  ;;  %v5274_v37 = vld [vmem:[#allocation6 + $0x18] sm:$0xf]  ;;  %v5303_v53 = vor.u32 %v5683_v19, %v5300_v61  ;;  %v5676_v62 = vld [vmem:[#allocation6 + $0x1c] sm:$0xf] }
0x10e0   :  { %4190 = vmatpush.bf16.msra.mxu1 %v5463_v28  ;;  %v5680_v8 = vld [vmem:[#allocation6 + $0x34] sm:$0xf0]  ;;  %v5276_v58 = vld [vmem:[#allocation6 + $0x38] sm:$0xf0]  ;;  %v5675_v28 = vld [vmem:[#allocation6 + $0x14] sm:$0xf]  ;;  %v5267_v63 = vor.u32 %v5679_v60, %v5266_v59 }
0x10e1   :  { %v5268_v0 = vld [vmem:[#allocation6 + $0x30] sm:$0xf0]  ;;  %v5275_v30 = vor.u32 %v5680_v8, %v5274_v37  ;;  %v5279_v38 = vor.u32 %v5676_v62, %v5276_v58  ;;  %v4283_v16 = vld [vmem:[%s8513_s7 + $0x178] sm:$0xff]  ;;  %v4249_v4 = vld [vmem:[%s8513_s7 + $0x68] sm:$0xff]  ;;  %s4535_s9 = sshll.u32 %s6239_s21, 4  ;;  %s4537_s24 = sshll.u32 %s8520_s14, 4  ;;  %s4536_s9 = int_to_ptr.vmem [resolvable:$true] %s4535_s9  ;;  %s4538_s24 = int_to_ptr.hbm [resolvable:$true] %s4537_s24 }
0x10e2   :  { %4178 = vmatpush.bf16.msra.mxu0 %v5427_v21  ;;  %4204 = vmatpush.bf16.msra.mxu2 %v5435_v22  ;;  %v5271_v21 = vor.u32 %v5675_v28, %v5268_v0  ;;  %v4251_v22 = vld [vmem:[%s8513_s7 + $0x78] sm:$0xff]  ;;  %v4282_v35 = vld [vmem:[%s8513_s7 + $0x170] sm:$0xff]  ;;  %v4281_v48 = vld [vmem:[%s8513_s7 + $0x168] sm:$0xff]  ;;  %vm4528_vm4 = vcmask 33792  }
0x10e3   :  { %4217 = vmatpush.bf16.msra.mxu3 %v5439_v11  ;;  %v4250_v11 = vld [vmem:[%s8513_s7 + $0x70] sm:$0xff]  ;;  %v4267_v31 = vld [vmem:[%s8513_s7 + $0xf8] sm:$0xff]  ;;  %v4248_v43 = vld [vmem:[%s8513_s7 + $0x60] sm:$0xff] }
0x10e4   :  { %4191 = vmatpush.bf16.msra.mxu1 %v5431_v18  ;;  %v4299_v18 = vld [vmem:[%s8513_s7 + $0x1f8] sm:$0xff]  ;;  %v4266_v15 = vld [vmem:[%s8513_s7 + $0xf0] sm:$0xff]  ;;  %v4297_v41 = vld [vmem:[%s8513_s7 + $0x1e8] sm:$0xff] }
0x10e5   :  { %v4298_v47 = vld [vmem:[%s8513_s7 + $0x1f0] sm:$0xff]  ;;  %v4264_v27 = vld [vmem:[%s8513_s7 + $0xe0] sm:$0xff]  ;;  %v4263_v52 = vld [vmem:[%s8513_s7 + $0xd8] sm:$0xff] }
0x10e6   :  { %4179 = vmatpush.bf16.msra.mxu0 %v5395_v5  ;;  %4205 = vmatpush.bf16.msra.mxu2 %v5403_v10  ;;  %v4280_v5 = vld [vmem:[%s8513_s7 + $0x160] sm:$0xff]  ;;  %v4247_v10 = vld [vmem:[%s8513_s7 + $0x58] sm:$0xff]  ;;  %v4246_v20 = vld [vmem:[%s8513_s7 + $0x50] sm:$0xff] }
0x10e7   :  { %4218 = vmatpush.bf16.msra.mxu3 %v5407_v25  ;;  %v4279_v25 = vld [vmem:[%s8513_s7 + $0x158] sm:$0xff]  ;;  %v4296_v49 = vld [vmem:[%s8513_s7 + $0x1e0] sm:$0xff]  ;;  %v4245_v54 = vld [vmem:[%s8513_s7 + $0x48] sm:$0xff] }
0x10e8   :  { %4192 = vmatpush.bf16.msra.mxu1 %v5399_v39  ;;  %v4278_v39 = vld [vmem:[%s8513_s7 + $0x150] sm:$0xff]  ;;  %v4295_v26 = vld [vmem:[%s8513_s7 + $0x1d8] sm:$0xff]  ;;  %v4277_v9 = vld [vmem:[%s8513_s7 + $0x148] sm:$0xff] }
0x10e9   :  { %v4294_v34 = vld [vmem:[%s8513_s7 + $0x1d0] sm:$0xff]  ;;  %v4261_v33 = vld [vmem:[%s8513_s7 + $0xc8] sm:$0xff]  ;;  %v4243_v50 = vld [vmem:[%s8513_s7 + $0x38] sm:$0xff] }
0x10ea   :  { %4180 = vmatpush.bf16.msra.mxu0 %v5363_v23  ;;  %4206 = vmatpush.bf16.msra.mxu2 %v5371_v29  ;;  %v4262_v23 = vld [vmem:[%s8513_s7 + $0xd0] sm:$0xff]  ;;  %v4244_v29 = vld [vmem:[%s8513_s7 + $0x40] sm:$0xff]  ;;  %v4293_v17 = vld [vmem:[%s8513_s7 + $0x1c8] sm:$0xff] }
0x10eb   :  { %4219 = vmatpush.bf16.msra.mxu3 %v5375_v3  ;;  %v4276_v3 = vld [vmem:[%s8513_s7 + $0x140] sm:$0xff]  ;;  %v4242_v46 = vld [vmem:[%s8513_s7 + $0x30] sm:$0xff]  ;;  %v4291_v56 = vld [vmem:[%s8513_s7 + $0x1b8] sm:$0xff] }
0x10ec   :  { %4193 = vmatpush.bf16.msra.mxu1 %v5367_v44  ;;  %v4275_v44 = vld [vmem:[%s8513_s7 + $0x138] sm:$0xff]  ;;  %v4260_v24 = vld [vmem:[%s8513_s7 + $0xc0] sm:$0xff]  ;;  %v4274_v2 = vld [vmem:[%s8513_s7 + $0x130] sm:$0xff] }
0x10ed   :  { %v4292_v36 = vld [vmem:[%s8513_s7 + $0x1c0] sm:$0xff]  ;;  %v4258_v51 = vld [vmem:[%s8513_s7 + $0xb0] sm:$0xff]  ;;  %v4257_v6 = vld [vmem:[%s8513_s7 + $0xa8] sm:$0xff] }
0x10ee   :  { %4181 = vmatpush.bf16.msra.mxu0 %v5331_v1  ;;  %4207 = vmatpush.bf16.msra.mxu2 %v5339_v32  ;;  %v4259_v1 = vld [vmem:[%s8513_s7 + $0xb8] sm:$0xff]  ;;  %v4241_v32 = vld [vmem:[%s8513_s7 + $0x28] sm:$0xff]  ;;  %v4240_v42 = vld [vmem:[%s8513_s7 + $0x20] sm:$0xff] }
0x10ef   :  { %4220 = vmatpush.bf16.msra.mxu3 %v5343_v7  ;;  %v4273_v7 = vld [vmem:[%s8513_s7 + $0x128] sm:$0xff]  ;;  %v4290_v13 = vld [vmem:[%s8513_s7 + $0x1b0] sm:$0xff]  ;;  %v4239_v57 = vld [vmem:[%s8513_s7 + $0x18] sm:$0xff] }
0x10f0   :  { %4194 = vmatpush.bf16.msra.mxu1 %v5335_v55  ;;  %v4272_v55 = vld [vmem:[%s8513_s7 + $0x120] sm:$0xff]  ;;  %v4289_v19 = vld [vmem:[%s8513_s7 + $0x1a8] sm:$0xff]  ;;  %v4271_v61 = vld [vmem:[%s8513_s7 + $0x118] sm:$0xff] }
0x10f1   :  { %v4288_v59 = vld [vmem:[%s8513_s7 + $0x1a0] sm:$0xff]  ;;  %v4255_v60 = vld [vmem:[%s8513_s7 + $0x98] sm:$0xff]  ;;  %v4237_v37 = vld [vmem:[%s8513_s7 + $0x8] sm:$0xff] }
0x10f2   :  { %4182 = vmatpush.bf16.msra.mxu0 %v5299_v14  ;;  %4208 = vmatpush.bf16.msra.mxu2 %v5307_v12  ;;  %v4256_v14 = vld [vmem:[%s8513_s7 + $0xa0] sm:$0xff]  ;;  %v4238_v12 = vld [vmem:[%s8513_s7 + $0x10] sm:$0xff]  ;;  %v4287_v8 = vld [vmem:[%s8513_s7 + $0x198] sm:$0xff] }
0x10f3   :  { %4221 = vmatpush.bf16.msra.mxu3 %v5311_v40  ;;  %v4270_v40 = vld [vmem:[%s8513_s7 + $0x110] sm:$0xff]  ;;  %v4236_v58 = vld [vmem:[%s8513_s7] sm:$0xff]  ;;  %v4315_v28 = vld [vmem:[%s8513_s7 + $0x278] sm:$0xff] }
0x10f4   :  { %4195 = vmatpush.bf16.msra.mxu1 %v5303_v53  ;;  %v4269_v53 = vld [vmem:[%s8513_s7 + $0x108] sm:$0xff]  ;;  %v4254_v62 = vld [vmem:[%s8513_s7 + $0x90] sm:$0xff] }
0x10f5   :  { %v4286_v0 = vld [vmem:[%s8513_s7 + $0x190] sm:$0xff] }
0x10f6   :  { %4183 = vmatpush.bf16.msra.mxu0 %v5267_v63  ;;  %4209 = vmatpush.bf16.msra.mxu2 %v5275_v30  ;;  %v4253_v63 = vld [vmem:[%s8513_s7 + $0x88] sm:$0xff]  ;;  %v4268_v30 = vld [vmem:[%s8513_s7 + $0x100] sm:$0xff] }
0x10f7   :  { %4222 = vmatpush.bf16.msra.mxu3 %v5279_v38  ;;  %v4314_v38 = vld [vmem:[%s8513_s7 + $0x270] sm:$0xff] }
0x10f8   :  { %4196 = vmatpush.bf16.msra.mxu1 %v5271_v21  ;;  %v4285_v21 = vld [vmem:[%s8513_s7 + $0x188] sm:$0xff] }
0x10f9   :  { %4184 = vmatmul.bf16.vlgmr.msra.gmra.mxu0 %v8093_v45  ;;  %4210 = vmatmul.bf16.vlgmr.msra.gmra.mxu2 %v8093_v45 }
0x10fa   :  { %4368 = vmatpush.msrb.mxu0 %v4251_v22  ;;  %4408 = vmatpush.msrb.mxu2 %v4283_v16  ;;  %v4252_v22 = vld [vmem:[%s8513_s7 + $0x80] sm:$0xff]  ;;  %v4347_v16 = vld [vmem:[%s8513_s7 + $0x378] sm:$0xff] }
0x10fb   :  { %4223 = vmatmul.bf16.vlgmr.msra.gmra.mxu3 %v8093_v45  ;;  %4197 = vmatmul.bf16.vlgmr.msra.gmra.mxu1 %v8093_v45  ;;  %v4265_v45 = vld [vmem:[%s8513_s7 + $0xe8] sm:$0xff] }
0x10fc   :  { %4369 = vmatpush.msrb.mxu0 %v4250_v11  ;;  %4409 = vmatpush.msrb.mxu2 %v4282_v35  ;;  %v4331_v11 = vld [vmem:[%s8513_s7 + $0x2f8] sm:$0xff]  ;;  %v4313_v35 = vld [vmem:[%s8513_s7 + $0x268] sm:$0xff] }
0x10fd   :  { %4388 = vmatpush.msrb.mxu1 %v4267_v31  ;;  %4428 = vmatpush.msrb.mxu3 %v4299_v18  ;;  %v4284_v31 = vld [vmem:[%s8513_s7 + $0x180] sm:$0xff] }
0x10fe   :  { %4370 = vmatpush.msrb.mxu0 %v4249_v4  ;;  %4410 = vmatpush.msrb.mxu2 %v4281_v48  ;;  %v4330_v4 = vld [vmem:[%s8513_s7 + $0x2f0] sm:$0xff]  ;;  %v4312_v18 = vld [vmem:[%s8513_s7 + $0x260] sm:$0xff]  ;;  %v4329_v48 = vld [vmem:[%s8513_s7 + $0x2e8] sm:$0xff] }
0x10ff   :  { %4389 = vmatpush.msrb.mxu1 %v4266_v15  ;;  %4429 = vmatpush.msrb.mxu3 %v4298_v47  ;;  %v4311_v15 = vld [vmem:[%s8513_s7 + $0x258] sm:$0xff]  ;;  %v4346_v47 = vld [vmem:[%s8513_s7 + $0x370] sm:$0xff] }
0x1100   :  { %4371 = vmatpush.msrb.mxu0 %v4248_v43  ;;  %4411 = vmatpush.msrb.mxu2 %v4280_v5  ;;  %v4328_v43 = vld [vmem:[%s8513_s7 + $0x2e0] sm:$0xff]  ;;  %v4363_v5 = vld [vmem:[%s8513_s7 + $0x3f8] sm:$0xff] }
0x1101   :  { %4390 = vmatpush.msrb.mxu1 %v4265_v45  ;;  %4430 = vmatpush.msrb.mxu3 %v4297_v41  ;;  %v4310_v45 = vld [vmem:[%s8513_s7 + $0x250] sm:$0xff]  ;;  %v4345_v41 = vld [vmem:[%s8513_s7 + $0x368] sm:$0xff] }
0x1102   :  { %4372 = vmatpush.msrb.mxu0 %v4247_v10  ;;  %4412 = vmatpush.msrb.mxu2 %v4279_v25  ;;  %v4327_v10 = vld [vmem:[%s8513_s7 + $0x2d8] sm:$0xff]  ;;  %v4362_v25 = vld [vmem:[%s8513_s7 + $0x3f0] sm:$0xff] }
0x1103   :  { %4391 = vmatpush.msrb.mxu1 %v4264_v27  ;;  %4431 = vmatpush.msrb.mxu3 %v4296_v49  ;;  %v4309_v27 = vld [vmem:[%s8513_s7 + $0x248] sm:$0xff]  ;;  %v4344_v49 = vld [vmem:[%s8513_s7 + $0x360] sm:$0xff] }
0x1104   :  { %4373 = vmatpush.msrb.mxu0 %v4246_v20  ;;  %4413 = vmatpush.msrb.mxu2 %v4278_v39  ;;  %v4326_v20 = vld [vmem:[%s8513_s7 + $0x2d0] sm:$0xff]  ;;  %v4361_v39 = vld [vmem:[%s8513_s7 + $0x3e8] sm:$0xff] }
0x1105   :  { %4392 = vmatpush.msrb.mxu1 %v4263_v52  ;;  %4432 = vmatpush.msrb.mxu3 %v4295_v26  ;;  %v4308_v52 = vld [vmem:[%s8513_s7 + $0x240] sm:$0xff]  ;;  %v4343_v26 = vld [vmem:[%s8513_s7 + $0x358] sm:$0xff] }
0x1106   :  { %4374 = vmatpush.msrb.mxu0 %v4245_v54  ;;  %4414 = vmatpush.msrb.mxu2 %v4277_v9  ;;  %v4325_v54 = vld [vmem:[%s8513_s7 + $0x2c8] sm:$0xff]  ;;  %v4360_v9 = vld [vmem:[%s8513_s7 + $0x3e0] sm:$0xff] }
0x1107   :  { %4393 = vmatpush.msrb.mxu1 %v4262_v23  ;;  %4433 = vmatpush.msrb.mxu3 %v4294_v34  ;;  %v4307_v23 = vld [vmem:[%s8513_s7 + $0x238] sm:$0xff]  ;;  %v4342_v34 = vld [vmem:[%s8513_s7 + $0x350] sm:$0xff] }
0x1108   :  { %4375 = vmatpush.msrb.mxu0 %v4244_v29  ;;  %4415 = vmatpush.msrb.mxu2 %v4276_v3  ;;  %v4324_v29 = vld [vmem:[%s8513_s7 + $0x2c0] sm:$0xff]  ;;  %v4359_v3 = vld [vmem:[%s8513_s7 + $0x3d8] sm:$0xff] }
0x1109   :  { %4394 = vmatpush.msrb.mxu1 %v4261_v33  ;;  %4434 = vmatpush.msrb.mxu3 %v4293_v17  ;;  %v4306_v33 = vld [vmem:[%s8513_s7 + $0x230] sm:$0xff]  ;;  %v4341_v17 = vld [vmem:[%s8513_s7 + $0x348] sm:$0xff] }
0x110a   :  { %4376 = vmatpush.msrb.mxu0 %v4243_v50  ;;  %4416 = vmatpush.msrb.mxu2 %v4275_v44  ;;  %v4323_v50 = vld [vmem:[%s8513_s7 + $0x2b8] sm:$0xff]  ;;  %v4358_v44 = vld [vmem:[%s8513_s7 + $0x3d0] sm:$0xff] }
0x110b   :  { %4395 = vmatpush.msrb.mxu1 %v4260_v24  ;;  %4435 = vmatpush.msrb.mxu3 %v4292_v36  ;;  %v4305_v24 = vld [vmem:[%s8513_s7 + $0x228] sm:$0xff]  ;;  %v4340_v36 = vld [vmem:[%s8513_s7 + $0x340] sm:$0xff] }
0x110c   :  { %4377 = vmatpush.msrb.mxu0 %v4242_v46  ;;  %4417 = vmatpush.msrb.mxu2 %v4274_v2  ;;  %v4322_v46 = vld [vmem:[%s8513_s7 + $0x2b0] sm:$0xff]  ;;  %v4357_v2 = vld [vmem:[%s8513_s7 + $0x3c8] sm:$0xff] }
0x110d   :  { %4396 = vmatpush.msrb.mxu1 %v4259_v1  ;;  %4436 = vmatpush.msrb.mxu3 %v4291_v56  ;;  %v4304_v1 = vld [vmem:[%s8513_s7 + $0x220] sm:$0xff]  ;;  %v4339_v56 = vld [vmem:[%s8513_s7 + $0x338] sm:$0xff] }
0x110e   :  { %4378 = vmatpush.msrb.mxu0 %v4241_v32  ;;  %4418 = vmatpush.msrb.mxu2 %v4273_v7  ;;  %v4321_v32 = vld [vmem:[%s8513_s7 + $0x2a8] sm:$0xff]  ;;  %v4356_v7 = vld [vmem:[%s8513_s7 + $0x3c0] sm:$0xff] }
0x110f   :  { %4397 = vmatpush.msrb.mxu1 %v4258_v51  ;;  %4437 = vmatpush.msrb.mxu3 %v4290_v13  ;;  %v4303_v51 = vld [vmem:[%s8513_s7 + $0x218] sm:$0xff]  ;;  %v4338_v13 = vld [vmem:[%s8513_s7 + $0x330] sm:$0xff] }
0x1110   :  { %4379 = vmatpush.msrb.mxu0 %v4240_v42  ;;  %4419 = vmatpush.msrb.mxu2 %v4272_v55  ;;  %v4320_v42 = vld [vmem:[%s8513_s7 + $0x2a0] sm:$0xff]  ;;  %v4355_v55 = vld [vmem:[%s8513_s7 + $0x3b8] sm:$0xff] }
0x1111   :  { %4398 = vmatpush.msrb.mxu1 %v4257_v6  ;;  %4438 = vmatpush.msrb.mxu3 %v4289_v19  ;;  %v8430_v6 = vld [vmem:[%s8512_s6] sm:$0xff]  ;;  %v4319_v19 = vld [vmem:[%s8513_s7 + $0x298] sm:$0xff] }
0x1112   :  { %4380 = vmatpush.msrb.mxu0 %v4239_v57  ;;  %4420 = vmatpush.msrb.mxu2 %v4271_v61  ;;  %v4302_v57 = vld [vmem:[%s8513_s7 + $0x210] sm:$0xff]  ;;  %v4337_v61 = vld [vmem:[%s8513_s7 + $0x328] sm:$0xff] }
0x1113   :  { %4399 = vmatpush.msrb.mxu1 %v4256_v14  ;;  %4439 = vmatpush.msrb.mxu3 %v4288_v59  ;;  %v3785_v14 = vperm.slane %v8430_v6, 0  ;;  %v4301_v59 = vld [vmem:[%s8513_s7 + $0x208] sm:$0xff] }
0x1114   :  { %4381 = vmatpush.msrb.mxu0 %v4238_v12  ;;  %4421 = vmatpush.msrb.mxu2 %v4270_v40  ;;  %v4354_v12 = vld [vmem:[%s8513_s7 + $0x3b0] sm:$0xff] }
0x1115   :  { %4400 = vmatpush.msrb.mxu1 %v4255_v60  ;;  %4440 = vmatpush.msrb.mxu3 %v4287_v8  ;;  %v4318_v40 = vld [vmem:[%s8513_s7 + $0x290] sm:$0xff]  ;;  %v4336_v60 = vld [vmem:[%s8513_s7 + $0x320] sm:$0xff]  ;;  %v4353_v8 = vld [vmem:[%s8513_s7 + $0x3a8] sm:$0xff] }
0x1116   :  { %4382 = vmatpush.msrb.mxu0 %v4237_v37  ;;  %4422 = vmatpush.msrb.mxu2 %v4269_v53  ;;  %v3786_v37 = vperm.slane %v8430_v6, 1 }
0x1117   :  { %4401 = vmatpush.msrb.mxu1 %v4254_v62  ;;  %4441 = vmatpush.msrb.mxu3 %v4286_v0  ;;  %v4300_v62 = vld [vmem:[%s8513_s7 + $0x200] sm:$0xff] }
0x1118   :  { %4383 = vmatpush.msrb.mxu0 %v4236_v58  ;;  %4423 = vmatpush.msrb.mxu2 %v4268_v30  ;;  %v4317_v58 = vld [vmem:[%s8513_s7 + $0x288] sm:$0xff]  ;;  %v3787_v30 = vperm.slane %v8430_v6, 2 }
0x1119   :  { %4402 = vmatpush.msrb.mxu1 %v4253_v63  ;;  %4442 = vmatpush.msrb.mxu3 %v4285_v21  ;;  %v4352_v63 = vld [vmem:[%s8513_s7 + $0x3a0] sm:$0xff] }
0x111a   :  { %4448 = vmatpush.msra.mxu0 %v4315_v28  ;;  %4488 = vmatpush.msra.mxu2 %v4347_v16  ;;  %v4335_v28 = vld [vmem:[%s8513_s7 + $0x318] sm:$0xff]  ;;  %v4316_v21 = vld [vmem:[%s8513_s7 + $0x280] sm:$0xff] }
0x111b   :  { %4403 = vmatpush.msrb.mxu1 %v4252_v22  ;;  %4443 = vmatpush.msrb.mxu3 %v4284_v31  ;;  %v4334_v22 = vld [vmem:[%s8513_s7 + $0x310] sm:$0xff]  ;;  %v4351_v16 = vld [vmem:[%s8513_s7 + $0x398] sm:$0xff] }
0x111c   :  { %4449 = vmatpush.msra.mxu0 %v4314_v38  ;;  %4489 = vmatpush.msra.mxu2 %v4346_v47 }
0x111d   :  { %4468 = vmatpush.msra.mxu1 %v4331_v11  ;;  %4508 = vmatpush.msra.mxu3 %v4363_v5  ;;  %v4332_v5 = vld [vmem:[%s8513_s7 + $0x300] sm:$0xff] }
0x111e   :  { %4450 = vmatpush.msra.mxu0 %v4313_v35  ;;  %4490 = vmatpush.msra.mxu2 %v4345_v41  ;;  %v3788_v35 = vperm.slane %v8430_v6, 3  ;;  %v4348_v41 = vld [vmem:[%s8513_s7 + $0x380] sm:$0xff] }
0x111f   :  { %4469 = vmatpush.msra.mxu1 %v4330_v4  ;;  %4509 = vmatpush.msra.mxu3 %v4362_v25  ;;  %v4333_v4 = vld [vmem:[%s8513_s7 + $0x308] sm:$0xff] }
0x1120   :  { %4451 = vmatpush.msra.mxu0 %v4312_v18  ;;  %4491 = vmatpush.msra.mxu2 %v4344_v49  ;;  %v4350_v18 = vld [vmem:[%s8513_s7 + $0x390] sm:$0xff] }
0x1121   :  { %4470 = vmatpush.msra.mxu1 %v4329_v48  ;;  %4510 = vmatpush.msra.mxu3 %v4361_v39 }
0x1122   :  { %4452 = vmatpush.msra.mxu0 %v4311_v15  ;;  %4492 = vmatpush.msra.mxu2 %v4343_v26  ;;  %v3790_v26 = vperm.slane %v8430_v6, 5 }
0x1123   :  { %4471 = vmatpush.msra.mxu1 %v4328_v43  ;;  %4511 = vmatpush.msra.mxu3 %v4360_v9 }
0x1124   :  { %4453 = vmatpush.msra.mxu0 %v4310_v45  ;;  %4493 = vmatpush.msra.mxu2 %v4342_v34  ;;  %v4349_v45 = vld [vmem:[%s8513_s7 + $0x388] sm:$0xff] }
0x1125   :  { %4472 = vmatpush.msra.mxu1 %v4327_v10  ;;  %4512 = vmatpush.msra.mxu3 %v4359_v3 }
0x1126   :  { %4454 = vmatpush.msra.mxu0 %v4309_v27  ;;  %4494 = vmatpush.msra.mxu2 %v4341_v17 }
0x1127   :  { %4473 = vmatpush.msra.mxu1 %v4326_v20  ;;  %4513 = vmatpush.msra.mxu3 %v4358_v44 }
0x1128   :  { %4455 = vmatpush.msra.mxu0 %v4308_v52  ;;  %4495 = vmatpush.msra.mxu2 %v4340_v36 }
0x1129   :  { %4474 = vmatpush.msra.mxu1 %v4325_v54  ;;  %4514 = vmatpush.msra.mxu3 %v4357_v2  ;;  %v3789_v54 = vperm.slane %v8430_v6, 4 }
0x112a   :  { %4456 = vmatpush.msra.mxu0 %v4307_v23  ;;  %4496 = vmatpush.msra.mxu2 %v4339_v56 }
0x112b   :  { %4475 = vmatpush.msra.mxu1 %v4324_v29  ;;  %4515 = vmatpush.msra.mxu3 %v4356_v7 }
0x112c   :  { %4457 = vmatpush.msra.mxu0 %v4306_v33  ;;  %4497 = vmatpush.msra.mxu2 %v4338_v13  ;;  %v3791_v33 = vperm.slane %v8430_v6, 6 }
0x112d   :  { %4476 = vmatpush.msra.mxu1 %v4323_v50  ;;  %4516 = vmatpush.msra.mxu3 %v4355_v55  ;;  %v3792_v50 = vperm.slane %v8430_v6, 7 }
0x112e   :  { %4458 = vmatpush.msra.mxu0 %v4305_v24  ;;  %4498 = vmatpush.msra.mxu2 %v4337_v61 }
0x112f   :  { %4477 = vmatpush.msra.mxu1 %v4322_v46  ;;  %4517 = vmatpush.msra.mxu3 %v4354_v12 }
0x1130   :  { %4459 = vmatpush.msra.mxu0 %v4304_v1  ;;  %4499 = vmatpush.msra.mxu2 %v4336_v60 }
0x1131   :  { %4478 = vmatpush.msra.mxu1 %v4321_v32  ;;  %4518 = vmatpush.msra.mxu3 %v4353_v8 }
0x1132   :  { %4460 = vmatpush.msra.mxu0 %v4303_v51  ;;  %4500 = vmatpush.msra.mxu2 %v4335_v28 }
0x1133   :  { %4479 = vmatpush.msra.mxu1 %v4320_v42  ;;  %4519 = vmatpush.msra.mxu3 %v4352_v63  ;;  %v6126_v42 = vld [vmem:[%s8514_s8] ss:$0 sm:$0xff] }
0x1134   :  { %4461 = vmatpush.msra.mxu0 %v4302_v57  ;;  %4501 = vmatpush.msra.mxu2 %v4334_v22 }
0x1135   :  { %4480 = vmatpush.msra.mxu1 %v4319_v19  ;;  %4520 = vmatpush.msra.mxu3 %v4351_v16 }
0x1136   :  { %4462 = vmatpush.msra.mxu0 %v4301_v59  ;;  %4502 = vmatpush.msra.mxu2 %v4333_v4 }
0x1137   :  { %4481 = vmatpush.msra.mxu1 %v4318_v40  ;;  %4521 = vmatpush.msra.mxu3 %v4350_v18 }
0x1138   :  { %4463 = vmatpush.msra.mxu0 %v4300_v62  ;;  %4503 = vmatpush.msra.mxu2 %v4332_v5 }
0x1139   :  { %4482 = vmatpush.msra.mxu1 %v4317_v58  ;;  %4522 = vmatpush.msra.mxu3 %v4349_v45 }
0x113b   :  { %4483 = vmatpush.msra.mxu1 %v4316_v21  ;;  %4523 = vmatpush.msra.mxu3 %v4348_v41 }
0x1156   :  { %v4133_v53 = vpop.f32.mrf.mxu0 }
0x1157   :  { %v4134_v0 = vadd.f32 %v4133_v53, %v3785_v14 }
0x1158   :  { %v4146_v38 = vpop.f32.mrf.mxu1 }
0x1159   :  { %v4228_v11 = vmax.f32 %v4134_v0, 0.0  ;;  %v4147_v31 = vadd.f32 %v4146_v38, %v3786_v37 }
0x115b   :  { %v4229_v15 = vmax.f32 %v4147_v31, 0.0  ;;  %4384 = vmatmul.f32.vlgmr.msrb.gmra.mxu0 %v4228_v11 }
0x115c   :  { %v4159_v48 = vpop.f32.mrf.mxu2 }
0x115d   :  { %v4160_v43 = vadd.f32 %v4159_v48, %v3787_v30  ;;  %4404 = vmatmul.f32.vlgmr.msrb.gmra.mxu1 %v4229_v15 }
0x115e   :  { %v4135_v27 = vpop.f32.mrf.mxu0 }
0x115f   :  { %v4172_v47 = vpop.f32.mrf.mxu3  ;;  %v4230_v25 = vmax.f32 %v4160_v43, 0.0 }
0x1160   :  { %v4173_v10 = vadd.f32 %v4172_v47, %v3788_v35  ;;  %v4148_v49 = vpop.f32.mrf.mxu1 }
0x1161   :  { %4424 = vmatmul.f32.vlgmr.msrb.gmra.mxu2 %v4230_v25 }
0x1162   :  { %v4231_v20 = vmax.f32 %v4173_v10, 0.0 }
0x1164   :  { %4444 = vmatmul.f32.vlgmr.msrb.gmra.mxu3 %v4231_v20  ;;  %v4161_v39 = vpop.f32.mrf.mxu2 }
0x1167   :  { %v4174_v52 = vpop.f32.mrf.mxu3 }
0x1176   :  { %v4185_v9 = vpop.f32.mrf.mxu0 }
0x1177   :  { %v4186_v23 = vadd.f32 %v4185_v9, %v3789_v54 }
0x1178   :  { %v4198_v29 = vpop.f32.mrf.mxu1 }
0x1179   :  { %v4232_v34 = vmax.f32 %v4186_v23, 0.0  ;;  %v4199_v3 = vadd.f32 %v4198_v29, %v3790_v26 }
0x117b   :  { %v4233_v17 = vmax.f32 %v4199_v3, 0.0  ;;  %4464 = vmatmul.f32.vlgmr.msra.gmra.mxu0 %v4232_v34 }
0x117c   :  { %v4211_v44 = vpop.f32.mrf.mxu2 }
0x117d   :  { %v4212_v24 = vadd.f32 %v4211_v44, %v3791_v33  ;;  %4484 = vmatmul.f32.vlgmr.msra.gmra.mxu1 %v4233_v17 }
0x117e   :  { %v4224_v46 = vpop.f32.mrf.mxu3  ;;  %v4187_v2 = vpop.f32.mrf.mxu0 }
0x117f   :  { %v4225_v36 = vadd.f32 %v4224_v46, %v3792_v50  ;;  %v4234_v1 = vmax.f32 %v4212_v24, 0.0 }
0x1180   :  { %v4200_v56 = vpop.f32.mrf.mxu1 }
0x1181   :  { %v4235_v32 = vmax.f32 %v4225_v36, 0.0  ;;  %4504 = vmatmul.f32.vlgmr.msra.gmra.mxu2 %v4234_v1 }
0x1183   :  { %4524 = vmatmul.f32.vlgmr.msra.gmra.mxu3 %v4235_v32 }
0x1184   :  { %v4213_v7 = vpop.f32.mrf.mxu2 }
0x1186   :  { %v4226_v51 = vpop.f32.mrf.mxu3 }
0x11d8   :  { %v4385_v13 = vpop.f32.mrf.mxu0 }
0x11d9   :  { %v4386_v55 = vadd.f32 %v6126_v42, %v4385_v13 }
0x11da   :  { %v4405_v6 = vpop.f32.mrf.mxu1 }
0x11db   :  { %v4406_v57 = vadd.f32 %v4405_v6, %v4386_v55 }
0x11e4   :  { %v4425_v19 = vpop.f32.mrf.mxu2 }
0x11e5   :  { %v4426_v61 = vadd.f32 %v4425_v19, %v4406_v57 }
0x11e7   :  { %v4445_v14 = vpop.f32.mrf.mxu3 }
0x11e8   :  { %v4446_v12 = vadd.f32 %v4445_v14, %v4426_v61 }
0x11f8   :  { %v4465_v59 = vpop.f32.mrf.mxu0 }
0x11f9   :  { %v4466_v40 = vadd.f32 %v4465_v59, %v4446_v12 }
0x11fa   :  { %v4485_v60 = vpop.f32.mrf.mxu1 }
0x11fb   :  { %v4486_v37 = vadd.f32 %v4485_v60, %v4466_v40 }
0x1204   :  { %v4505_v8 = vpop.f32.mrf.mxu2 }
0x1205   :  { %v4506_v53 = vadd.f32 %v4505_v8, %v4486_v37 }
0x1206   :  { %v4525_v62 = vpop.f32.mrf.mxu3 }
0x1207   :  { %v4526_v58 = vadd.f32 %v4525_v62, %v4506_v53 }
0x1209   :  { %4529 = vst.msk [vmem:[#allocation8] sm:$0x3] %vm4528_vm4, %v4526_v58 }
0x120a   :  { %4540 = dma.vmem_to_hbm [thread:$0]  %s4536_s9, 32, %s4538_s24, [#allocation9]  }
0x120b   :  { %6233 = dma.done.wait [#allocation9], 32  }
0x120c   :  { %6234 = vsyncadd [#allocation9], 4294967264 }
0x120d   :  { %4545 = vsyncpa [#allocation9], 1 }
0x120e   :  { %4546 = vsyncmov [#allocation7] }
0x1211   :  { %s4547_s8 = vpop.sfrf %4546 }
0x1212   :  { %p5504_p0 = scmp.ne.s32.totalorder %s4547_s8, 0 }
0x1214   :  { %4551 = shalt.err (%p5504_p0)  }
0x1215   :  { %4553 = vsyncmov [#allocation7 + $0x1] }
0x1218   :  { %s4554_s10 = vpop.sfrf %4553 }
0x1219   :  { %p5505_p1 = scmp.ne.s32.totalorder %s4554_s10, 0 }
0x121b   :  { %4558 = shalt.err (%p5505_p1)  }
0x121c   :  { %4560 = vsyncmov [#allocation7 + $0x2] }
0x121f   :  { %s4561_s14 = vpop.sfrf %4560 }
0x1220   :  { %p5506_p2 = scmp.ne.s32.totalorder %s4561_s14, 0 }
0x1222   :  { %4565 = shalt.err (%p5506_p2)  }
0x1223   :  { %4567 = vsyncmov [#allocation7 + $0x3] }
0x1226   :  { %s4568_s12 = vpop.sfrf %4567 }
0x1227   :  { %p5507_p3 = scmp.ne.s32.totalorder %s4568_s12, 0 }
0x1229   :  { %4572 = shalt.err (%p5507_p3)  }
0x122a   :  { %4574 = vsyncmov [#allocation7 + $0x4] }
0x122d   :  { %s4575_s2 = vpop.sfrf %4574 }
0x122e   :  { %p5508_p4 = scmp.ne.s32.totalorder %s4575_s2, 0 }
0x1230   :  { %4579 = shalt.err (%p5508_p4)  }

</bundles_post_ra>
